<compile_context>
chip_gen: v7x
topology: tpu7x:2x2x1
jax: 0.10.0
libtpu: 0.0.40
codegen_flags: <defaults>
</compile_context>

<pallas_src>
import functools

import jax
import jax.numpy as jnp
from jax.experimental import pallas as pl
from jax.experimental.pallas import tpu as pltpu

C = 128            # lane-dense padded channel width
K = 4              # conv kernel size (stem + all block convs)
STRIDE = 2
STEM_PAD = 1
BLOCK_PADS = (1, 1, 1, 1, 1, 0)
NUM_BLOCKS = 6
EPS = 1e-5


def _conv_out_len(length, pad):
    return (length + 2 * pad - K) // STRIDE + 1


# ------------------------------------------------------------------ kernel

def _net_kernel(x_ref, w0_ref, b0_ref, bn1_ref, w1_ref, b1_ref,
                w2_ref, b2_ref, wd_ref, bd_ref, o_ref, scr_ref, *, a, b):
    f32 = jnp.float32
    bf16 = jnp.bfloat16
    TB, L0, Cc = x_ref.shape

    def strided_conv(h, w_slab, bias, pad, Lo):
        """Conv1d(k=4, s=2, padding=pad) over a (TB, L, C) slab.
        A zero-haloed copy of h is staged in VMEM scratch; the 4 taps are
        sublane-strided (stride=2) loads, concatenated lane-wise into a
        (TB*Lo, 4C=512) im2col slab and contracted against the pre-packed
        bf16 (4C, C) weight slab in ONE 512-deep MXU matmul."""
        tb, l, c = h.shape
        zrow = jnp.zeros((tb, 1, c), f32)
        scr_ref[:, 0:1, :] = zrow                      # left zero halo
        scr_ref[:, l + 1:l + 2, :] = zrow              # right zero halo
        scr_ref[:, 1:l + 1, :] = h                     # payload at rows [1, l]
        taps = jnp.concatenate(
            [scr_ref[:, pl.ds(1 + kk - pad, Lo, stride=2), :] for kk in range(K)],
            axis=-1)                                   # (TB, Lo, 4C)
        taps = taps.reshape(tb * Lo, K * c).astype(bf16)
        out = jnp.dot(taps, w_slab, preferred_element_type=f32) + bias
        return out.reshape(tb, Lo, c)

    # ---- stem: Conv1d(k=4, s=2, p=1), no nonlinearity ----------------------
    L = L0
    Lo = _conv_out_len(L, STEM_PAD)
    h = strided_conv(x_ref[...], w0_ref[...], b0_ref[...], STEM_PAD, Lo)
    L = Lo

    # ---- 6 fused residual blocks (eval mode: BN folded, dropout = identity) -
    for i in range(NUM_BLOCKS):
        pad = BLOCK_PADS[i]
        Lo = _conv_out_len(L, pad)
        x_in = h

        # residual / downsample path first (keeps the live set small):
        # ds_conv with ds_bn folded into its weight slab.
        res = strided_conv(x_in, wd_ref[i], bd_ref[i], pad, Lo)

        # main path: bn1 + ReLU -> 1x1 conv (bn2 folded) + ReLU -> conv2.
        ss = bn1_ref[i]                                              # (2, C)
        hm = jnp.maximum(x_in * ss[0:1, :] + ss[1:2, :], 0.0)
        hm = jnp.dot(hm.reshape(TB * L, Cc).astype(bf16), w1_ref[i],
                     preferred_element_type=f32) + b1_ref[i]
        hm = jnp.maximum(hm, 0.0).reshape(TB, L, Cc)
        main = strided_conv(hm, w2_ref[i], b2_ref[i], pad, Lo)

        # a * downsample(x) + b * main   (Dropout = identity in eval mode)
        h = a * res + b * main
        L = Lo

    o_ref[...] = h                                                   # (TB, L_final, C)


# ------------------------------------------------------------------ wrapper

def feature_extractor_text(x, prep, *, a, b, c_out, tb=8):
    """x: (B, L, num_features) exactly as passed to the PyTorch forward.
    Returns PyTorch NCL layout (B, c_out, L_final)."""
    B, L, NF = x.shape
    assert NF <= C
    TB = max(1, min(tb, B))
    Bp = ((B + TB - 1) // TB) * TB
    # one-time lane padding (and batch padding to a TB multiple)
    xp = jnp.pad(x.astype(jnp.float32), ((0, Bp - B), (0, 0), (0, C - NF)))

    # static replay of the sequence-length schedule
    Lc = L
    for p in (STEM_PAD,) + BLOCK_PADS:
        Lc = _conv_out_len(Lc, p)
    L_final = Lc

    kernel = functools.partial(_net_kernel, a=float(a), b=float(b))
    out = pl.pallas_call(
        kernel,
        out_shape=jax.ShapeDtypeStruct((Bp, L_final, C), jnp.float32),
        grid=(Bp // TB,),
        in_specs=[
            pl.BlockSpec((TB, L, C), lambda bi: (bi, 0, 0)),             # x
            pl.BlockSpec((K * C, C), lambda bi: (0, 0)),                 # w0 (bf16)
            pl.BlockSpec((1, C), lambda bi: (0, 0)),                     # b0
            pl.BlockSpec((NUM_BLOCKS, 2, C), lambda bi: (0, 0, 0)),      # bn1 scale/shift
            pl.BlockSpec((NUM_BLOCKS, C, C), lambda bi: (0, 0, 0)),      # w1 (bn2 folded, bf16)
            pl.BlockSpec((NUM_BLOCKS, 1, C), lambda bi: (0, 0, 0)),      # b1 (bn2 folded)
            pl.BlockSpec((NUM_BLOCKS, K * C, C), lambda bi: (0, 0, 0)),  # w2 (bf16)
            pl.BlockSpec((NUM_BLOCKS, 1, C), lambda bi: (0, 0, 0)),      # b2
            pl.BlockSpec((NUM_BLOCKS, K * C, C), lambda bi: (0, 0, 0)),  # wd (ds_bn folded, bf16)
            pl.BlockSpec((NUM_BLOCKS, 1, C), lambda bi: (0, 0, 0)),      # bd (ds_bn folded)
        ],
        out_specs=pl.BlockSpec((TB, L_final, C), lambda bi: (bi, 0, 0)),
        scratch_shapes=[pltpu.VMEM((TB, L + 2, C), jnp.float32)],        # zero-haloed staging
        compiler_params=pltpu.CompilerParams(
            dimension_semantics=("parallel",),
            vmem_limit_bytes=32 * 1024 * 1024,
        ),
    )(xp, prep["w0"], prep["b0"], prep["bn1"], prep["w1"], prep["b1"],
      prep["w2"], prep["b2"], prep["wd"], prep["bd"])

    # drop batch/lane padding, return PyTorch NCL layout (B, C_out, L_out)
    return jnp.transpose(out[:B, :, :c_out], (0, 2, 1))


# --------------------------------------------------------- parameter prep

def _pad_mat(m, rows, cols):
    return jnp.pad(m, ((0, rows - m.shape[0]), (0, cols - m.shape[1])))


def _pad_row(v, cols):
    return jnp.pad(v.reshape(1, -1), ((0, 0), (0, cols - v.shape[0])))


def _bn_scale_shift(bn):
    s = bn["gamma"] / jnp.sqrt(bn["var"] + EPS)
    t = bn["beta"] - bn["mean"] * s
    return s, t


def _conv_taps(w, col_scale=None):
    """PyTorch conv weight (Cout, Cin, k) -> (k*C, C) bf16 matmul tap slab.
    Tap kk occupies rows [kk*C, kk*C + Cin); optional per-output-channel scale
    folds a following eval-mode BatchNorm into the weight (folded in f32,
    then cast to bf16 for the MXU)."""
    cout, cin, k = w.shape
    taps = []
    for kk in range(k):
        wk = jnp.transpose(w[:, :, kk])                 # (Cin, Cout)
        if col_scale is not None:
            wk = wk * col_scale[None, :]
        taps.append(_pad_mat(wk, C, C))
    return jnp.concatenate(taps, axis=0).astype(jnp.bfloat16)   # (k*C, C)


def prepare_params(params):
    """One-time prep: fold eval BN into conv weights, transpose to matmul
    layout, zero-pad channels to 128 lanes, cast weights to bf16 and stack the
    6 residual blocks into 10 uniform arrays (done once, outside the fwd)."""
    prep = {
        "w0": _conv_taps(params["conv1"]["w"]),
        "b0": _pad_row(params["conv1"]["b"], C),
    }
    bn1, w1, b1, w2, b2, wd, bd = [], [], [], [], [], [], []
    for i in range(1, NUM_BLOCKS + 1):
        p = params[f"rb{i}"]
        assert p["conv2"]["w"].shape[0] <= C and p["conv2"]["w"].shape[1] <= C
        s1, t1 = _bn_scale_shift(p["bn1"])
        bn1.append(jnp.concatenate([_pad_row(s1, C), _pad_row(t1, C)], axis=0))
        s2, t2 = _bn_scale_shift(p["bn2"])              # bn2 -> fold into 1x1 conv
        w1.append(_conv_taps(p["conv1"]["w"], col_scale=s2))
        b1.append(_pad_row(p["conv1"]["b"] * s2 + t2, C))
        w2.append(_conv_taps(p["conv2"]["w"]))
        b2.append(_pad_row(p["conv2"]["b"], C))
        sd, td = _bn_scale_shift(p["ds_bn"])            # ds_bn -> fold into ds_conv
        wd.append(_conv_taps(p["ds_conv"]["w"], col_scale=sd))
        bd.append(_pad_row(p["ds_conv"]["b"] * sd + td, C))
    prep.update(bn1=jnp.stack(bn1), w1=jnp.stack(w1), b1=jnp.stack(b1),
                w2=jnp.stack(w2), b2=jnp.stack(b2),
                wd=jnp.stack(wd), bd=jnp.stack(bd))
    return prep


# ------------------------------------------------------- raw ("torch") params

def _init_conv(key, cin, cout, k):
    k1, k2 = jax.random.split(key)
    bound = 1.0 / jnp.sqrt(jnp.float32(cin * k))
    w = jax.random.uniform(k1, (cout, cin, k), jnp.float32, -bound, bound)
    b = jax.random.uniform(k2, (cout,), jnp.float32, -bound, bound)
    return {"w": w, "b": b}


def _init_bn(key, c):
    k1, k2 = jax.random.split(key)
    return {
        "gamma": 1.0 + 0.1 * jax.random.normal(k1, (c,), jnp.float32),
        "beta": 0.1 * jax.random.normal(k2, (c,), jnp.float32),
        "mean": jnp.zeros((c,), jnp.float32),
        "var": jnp.ones((c,), jnp.float32),
    }


def _init_resblock(key, cin, cout, k):
    ks = jax.random.split(key, 6)
    return {
        "bn1": _init_bn(ks[0], cin),
        "conv1": _init_conv(ks[1], cin, cin, 1),
        "bn2": _init_bn(ks[2], cin),
        "conv2": _init_conv(ks[3], cin, cout, k),
        "ds_conv": _init_conv(ks[4], cin, cout, k),
        "ds_bn": _init_bn(ks[5], cout),
    }


def init_params(key, num_features, filter_dim_text):
    f = filter_dim_text
    ks = jax.random.split(key, 7)
    params = {"conv1": _init_conv(ks[0], num_features, f, K)}
    chans = [f, 2 * f, 3 * f, 4 * f, 5 * f, 5 * f, 5 * f]
    for i in range(1, NUM_BLOCKS + 1):
        params[f"rb{i}"] = _init_resblock(ks[i], chans[i - 1], chans[i], K)
    return params


# ------------------------------------------------------ pure-JAX reference

def _ref_conv1d(x, w, bias, *, stride, padding):
    """x channels-last (B, L, Cin); w PyTorch layout (Cout, Cin, k)."""
    Bb, L, cin = x.shape
    cout, _, k = w.shape
    xp = jnp.pad(x, ((0, 0), (padding, padding), (0, 0)))
    Lo = (L + 2 * padding - k) // stride + 1
    taps = [xp[:, kk: kk + stride * (Lo - 1) + 1: stride, :] for kk in range(k)]
    patches = jnp.stack(taps, axis=2).reshape(Bb * Lo, k * cin)
    wmat = jnp.transpose(w, (2, 1, 0)).reshape(k * cin, cout)
    return (patches @ wmat + bias).reshape(Bb, Lo, cout)


def _ref_bn(x, bn):
    s, t = _bn_scale_shift(bn)
    return x * s[None, None, :] + t[None, None, :]


def reference_forward(x, params, *, a, b):
    h = _ref_conv1d(x, params["conv1"]["w"], params["conv1"]["b"],
                    stride=STRIDE, padding=STEM_PAD)
    for i in range(1, NUM_BLOCKS + 1):
        p = params[f"rb{i}"]
        pad = BLOCK_PADS[i - 1]
        out = jnp.maximum(_ref_bn(h, p["bn1"]), 0.0)
        out = _ref_conv1d(out, p["conv1"]["w"], p["conv1"]["b"], stride=1, padding=0)
        out = jnp.maximum(_ref_bn(out, p["bn2"]), 0.0)
        out = _ref_conv1d(out, p["conv2"]["w"], p["conv2"]["b"],
                          stride=STRIDE, padding=pad)
        res = _ref_bn(_ref_conv1d(h, p["ds_conv"]["w"], p["ds_conv"]["b"],
                                  stride=STRIDE, padding=pad), p["ds_bn"])
        h = a * res + b * out
    return jnp.transpose(h, (0, 2, 1))        # PyTorch NCL layout


# ------------------------------------------------------------------ main

if __name__ == "__main__":
    # num_features=8, filter_dim_text=8, seq_len=256
    # (seq must survive 7 stride-2 stages: 256->128->64->32->16->8->4->1)
    B, L, NF, FD = 4, 256, 8, 8
    A_VAL, B_VAL = 1.0, 1.0

    key = jax.random.PRNGKey(0)
    kx, kp = jax.random.split(key)
    x = jax.random.normal(kx, (B, L, NF), jnp.float32)
    params = init_params(kp, NF, FD)
    prep = prepare_params(params)            # one-time fold/pack/pad (weights -> bf16)

    # TB=2 batch elements per grid step -> grid=(2,), both megacore TCs busy.
    fwd = jax.jit(functools.partial(feature_extractor_text,
                                    a=A_VAL, b=B_VAL, c_out=5 * FD, tb=2))
    out = fwd(x, prep)
    jax.block_until_ready(out)

    assert out.shape == (B, 5 * FD, 1), out.shape
    assert bool(jnp.all(jnp.isfinite(out)))

    # cross-check against a pure-JAX f32 reference of the PyTorch forward
    ref = reference_forward(x, params, a=A_VAL, b=B_VAL)
    assert ref.shape == out.shape, (ref.shape, out.shape)
    rel_err = float(jnp.max(jnp.abs(out - ref)) / (jnp.max(jnp.abs(ref)) + 1e-6))
    assert rel_err < 5e-2, rel_err

    print("KERNEL_OK")
</pallas_src>

<mosaic_0001>
module attributes {stable_mosaic.version = 11 : i64} {
  func.func @_net_kernel(%arg0: i32, %arg1: memref<2x256x128xf32, #tpu.memory_space<vmem>>, %arg2: memref<512x128xbf16, #tpu.memory_space<vmem>>, %arg3: memref<1x128xf32, #tpu.memory_space<vmem>>, %arg4: memref<6x2x128xf32, #tpu.memory_space<vmem>>, %arg5: memref<6x128x128xbf16, #tpu.memory_space<vmem>>, %arg6: memref<6x1x128xf32, #tpu.memory_space<vmem>>, %arg7: memref<6x512x128xbf16, #tpu.memory_space<vmem>>, %arg8: memref<6x1x128xf32, #tpu.memory_space<vmem>>, %arg9: memref<6x512x128xbf16, #tpu.memory_space<vmem>>, %arg10: memref<6x1x128xf32, #tpu.memory_space<vmem>>, %arg11: memref<2x1x128xf32, #tpu.memory_space<vmem>>, %arg12: memref<2x258x128xf32, #tpu.memory_space<vmem>>) attributes {dimension_semantics = [#tpu.dimension_semantics<parallel>], iteration_bounds = array<i64: 2>, scalar_prefetch = 0 : i64, scratch_operands = 1 : i64, tpu.core_type = #tpu.core_type<tc>, window_params = [{transform_indices = @transform_0, window_bounds = array<i64: 2, 256, 128>}, {pipeline_mode = #tpu.pipeline_mode<synchronous>, transform_indices = @transform_1, window_bounds = array<i64: 512, 128>}, {pipeline_mode = #tpu.pipeline_mode<synchronous>, transform_indices = @transform_2, window_bounds = array<i64: 1, 128>}, {pipeline_mode = #tpu.pipeline_mode<synchronous>, transform_indices = @transform_3, window_bounds = array<i64: 6, 2, 128>}, {pipeline_mode = #tpu.pipeline_mode<synchronous>, transform_indices = @transform_4, window_bounds = array<i64: 6, 128, 128>}, {pipeline_mode = #tpu.pipeline_mode<synchronous>, transform_indices = @transform_5, window_bounds = array<i64: 6, 1, 128>}, {pipeline_mode = #tpu.pipeline_mode<synchronous>, transform_indices = @transform_6, window_bounds = array<i64: 6, 512, 128>}, {pipeline_mode = #tpu.pipeline_mode<synchronous>, transform_indices = @transform_7, window_bounds = array<i64: 6, 1, 128>}, {pipeline_mode = #tpu.pipeline_mode<synchronous>, transform_indices = @transform_8, window_bounds = array<i64: 6, 512, 128>}, {pipeline_mode = #tpu.pipeline_mode<synchronous>, transform_indices = @transform_9, window_bounds = array<i64: 6, 1, 128>}, {transform_indices = @transform_10, window_bounds = array<i64: 2, 1, 128>}]} {
    %c0 = arith.constant 0 : index
    %c0_0 = arith.constant 0 : index
    %c0_1 = arith.constant 0 : index
    %0 = vector.load %arg1[%c0, %c0_0, %c0_1] : memref<2x256x128xf32, #tpu.memory_space<vmem>>, vector<2x256x128xf32>
    %c0_2 = arith.constant 0 : index
    %c0_3 = arith.constant 0 : index
    %1 = vector.load %arg2[%c0_2, %c0_3] : memref<512x128xbf16, #tpu.memory_space<vmem>>, vector<512x128xbf16>
    %c0_4 = arith.constant 0 : index
    %c0_5 = arith.constant 0 : index
    %2 = vector.load %arg3[%c0_4, %c0_5] : memref<1x128xf32, #tpu.memory_space<vmem>>, vector<1x128xf32>
    %cst = arith.constant 0.000000e+00 : f32
    %3 = vector.broadcast %cst : f32 to vector<2x1x128xf32>
    %c0_6 = arith.constant 0 : index
    %c0_7 = arith.constant 0 : index
    %c0_8 = arith.constant 0 : index
    %4 = vector.load %arg12[%c0_6, %c0_7, %c0_8] : memref<2x258x128xf32, #tpu.memory_space<vmem>>, vector<2x1x128xf32>
    tpu.vector_store %arg12[%c0_6, %c0_7, %c0_8], %3 {strides = array<i32>} : memref<2x258x128xf32, #tpu.memory_space<vmem>>, vector<2x1x128xf32>,
    %c0_9 = arith.constant 0 : index
    %c257 = arith.constant 257 : index
    %c0_10 = arith.constant 0 : index
    %5 = vector.load %arg12[%c0_9, %c257, %c0_10] : memref<2x258x128xf32, #tpu.memory_space<vmem>>, vector<2x1x128xf32>
    tpu.vector_store %arg12[%c0_9, %c257, %c0_10], %3 {strides = array<i32>} : memref<2x258x128xf32, #tpu.memory_space<vmem>>, vector<2x1x128xf32>,
    %c0_11 = arith.constant 0 : index
    %c1 = arith.constant 1 : index
    %c0_12 = arith.constant 0 : index
    %6 = vector.load %arg12[%c0_11, %c1, %c0_12] : memref<2x258x128xf32, #tpu.memory_space<vmem>>, vector<2x256x128xf32>
    tpu.vector_store %arg12[%c0_11, %c1, %c0_12], %0 {strides = array<i32>} : memref<2x258x128xf32, #tpu.memory_space<vmem>>, vector<2x256x128xf32>,
    %c0_13 = arith.constant 0 : index
    %c0_14 = arith.constant 0 : index
    %c0_15 = arith.constant 0 : index
    %7 = tpu.strided_load %arg12[%c0_13, %c0_14, %c0_15] {strides = array<i32: 1, 2, 1>} : memref<2x258x128xf32, #tpu.memory_space<vmem>>, vector<2x128x128xf32>
    %c0_16 = arith.constant 0 : index
    %c1_17 = arith.constant 1 : index
    %c0_18 = arith.constant 0 : index
    %8 = tpu.strided_load %arg12[%c0_16, %c1_17, %c0_18] {strides = array<i32: 1, 2, 1>} : memref<2x258x128xf32, #tpu.memory_space<vmem>>, vector<2x128x128xf32>
    %c0_19 = arith.constant 0 : index
    %c2 = arith.constant 2 : index
    %c0_20 = arith.constant 0 : index
    %9 = tpu.strided_load %arg12[%c0_19, %c2, %c0_20] {strides = array<i32: 1, 2, 1>} : memref<2x258x128xf32, #tpu.memory_space<vmem>>, vector<2x128x128xf32>
    %c0_21 = arith.constant 0 : index
    %c3 = arith.constant 3 : index
    %c0_22 = arith.constant 0 : index
    %10 = tpu.strided_load %arg12[%c0_21, %c3, %c0_22] {strides = array<i32: 1, 2, 1>} : memref<2x258x128xf32, #tpu.memory_space<vmem>>, vector<2x128x128xf32>
    %11 = tpu.concatenate %7, %8, %9, %10 in 2 : vector<2x128x128xf32>, vector<2x128x128xf32>, vector<2x128x128xf32>, vector<2x128x128xf32> -> vector<2x128x512xf32>
    %12 = vector.shape_cast %11 : vector<2x128x512xf32> to vector<256x512xf32>
    %13 = arith.truncf %12 : vector<256x512xf32> to vector<256x512xbf16>
    %cst_23 = arith.constant dense<0.000000e+00> : vector<256x128xf32>
    %14 = tpu.matmul %13, %1, %cst_23 {dimension_numbers = #tpu.dot_dimension_numbers<[1], [0], [0], [1], [0, 0, 1, 1], [], []>} : vector<256x512xbf16>, vector<512x128xbf16>, vector<256x128xf32> -> vector<256x128xf32>
    %15 = vector.broadcast %2 : vector<1x128xf32> to vector<256x128xf32>
    %16 = arith.addf %14, %15 : vector<256x128xf32>
    %17 = vector.shape_cast %16 : vector<256x128xf32> to vector<2x128x128xf32>
    %c0_24 = arith.constant 0 : index
    %c0_25 = arith.constant 0 : index
    %c0_26 = arith.constant 0 : index
    %18 = vector.load %arg9[%c0_24, %c0_25, %c0_26] : memref<6x512x128xbf16, #tpu.memory_space<vmem>>, vector<1x512x128xbf16>
    %19 = vector.shape_cast %18 : vector<1x512x128xbf16> to vector<512x128xbf16>
    %c0_27 = arith.constant 0 : index
    %c0_28 = arith.constant 0 : index
    %c0_29 = arith.constant 0 : index
    %20 = vector.load %arg10[%c0_27, %c0_28, %c0_29] : memref<6x1x128xf32, #tpu.memory_space<vmem>>, vector<1x1x128xf32>
    %21 = vector.shape_cast %20 : vector<1x1x128xf32> to vector<1x128xf32>
    %cst_30 = arith.constant 0.000000e+00 : f32
    %22 = vector.broadcast %cst_30 : f32 to vector<2x1x128xf32>
    %c0_31 = arith.constant 0 : index
    %c0_32 = arith.constant 0 : index
    %c0_33 = arith.constant 0 : index
    %23 = vector.load %arg12[%c0_31, %c0_32, %c0_33] : memref<2x258x128xf32, #tpu.memory_space<vmem>>, vector<2x1x128xf32>
    tpu.vector_store %arg12[%c0_31, %c0_32, %c0_33], %22 {strides = array<i32>} : memref<2x258x128xf32, #tpu.memory_space<vmem>>, vector<2x1x128xf32>,
    %c0_34 = arith.constant 0 : index
    %c129 = arith.constant 129 : index
    %c0_35 = arith.constant 0 : index
    %24 = vector.load %arg12[%c0_34, %c129, %c0_35] : memref<2x258x128xf32, #tpu.memory_space<vmem>>, vector<2x1x128xf32>
    tpu.vector_store %arg12[%c0_34, %c129, %c0_35], %22 {strides = array<i32>} : memref<2x258x128xf32, #tpu.memory_space<vmem>>, vector<2x1x128xf32>,
    %c0_36 = arith.constant 0 : index
    %c1_37 = arith.constant 1 : index
    %c0_38 = arith.constant 0 : index
    %25 = vector.load %arg12[%c0_36, %c1_37, %c0_38] : memref<2x258x128xf32, #tpu.memory_space<vmem>>, vector<2x128x128xf32>
    tpu.vector_store %arg12[%c0_36, %c1_37, %c0_38], %17 {strides = array<i32>} : memref<2x258x128xf32, #tpu.memory_space<vmem>>, vector<2x128x128xf32>,
    %c0_39 = arith.constant 0 : index
    %c0_40 = arith.constant 0 : index
    %c0_41 = arith.constant 0 : index
    %26 = tpu.strided_load %arg12[%c0_39, %c0_40, %c0_41] {strides = array<i32: 1, 2, 1>} : memref<2x258x128xf32, #tpu.memory_space<vmem>>, vector<2x64x128xf32>
    %c0_42 = arith.constant 0 : index
    %c1_43 = arith.constant 1 : index
    %c0_44 = arith.constant 0 : index
    %27 = tpu.strided_load %arg12[%c0_42, %c1_43, %c0_44] {strides = array<i32: 1, 2, 1>} : memref<2x258x128xf32, #tpu.memory_space<vmem>>, vector<2x64x128xf32>
    %c0_45 = arith.constant 0 : index
    %c2_46 = arith.constant 2 : index
    %c0_47 = arith.constant 0 : index
    %28 = tpu.strided_load %arg12[%c0_45, %c2_46, %c0_47] {strides = array<i32: 1, 2, 1>} : memref<2x258x128xf32, #tpu.memory_space<vmem>>, vector<2x64x128xf32>
    %c0_48 = arith.constant 0 : index
    %c3_49 = arith.constant 3 : index
    %c0_50 = arith.constant 0 : index
    %29 = tpu.strided_load %arg12[%c0_48, %c3_49, %c0_50] {strides = array<i32: 1, 2, 1>} : memref<2x258x128xf32, #tpu.memory_space<vmem>>, vector<2x64x128xf32>
    %30 = tpu.concatenate %26, %27, %28, %29 in 2 : vector<2x64x128xf32>, vector<2x64x128xf32>, vector<2x64x128xf32>, vector<2x64x128xf32> -> vector<2x64x512xf32>
    %31 = vector.shape_cast %30 : vector<2x64x512xf32> to vector<128x512xf32>
    %32 = arith.truncf %31 : vector<128x512xf32> to vector<128x512xbf16>
    %cst_51 = arith.constant dense<0.000000e+00> : vector<128x128xf32>
    %33 = tpu.matmul %32, %19, %cst_51 {dimension_numbers = #tpu.dot_dimension_numbers<[1], [0], [0], [1], [0, 0, 1, 1], [], []>} : vector<128x512xbf16>, vector<512x128xbf16>, vector<128x128xf32> -> vector<128x128xf32>
    %34 = vector.broadcast %21 : vector<1x128xf32> to vector<128x128xf32>
    %35 = arith.addf %33, %34 : vector<128x128xf32>
    %36 = vector.shape_cast %35 : vector<128x128xf32> to vector<2x64x128xf32>
    %c0_52 = arith.constant 0 : index
    %c0_53 = arith.constant 0 : index
    %c0_54 = arith.constant 0 : index
    %37 = vector.load %arg4[%c0_52, %c0_53, %c0_54] : memref<6x2x128xf32, #tpu.memory_space<vmem>>, vector<1x2x128xf32>
    %38 = vector.shape_cast %37 : vector<1x2x128xf32> to vector<2x128xf32>
    %39 = vector.extract_strided_slice %38 {offsets = [0, 0], sizes = [1, 128], strides = [1, 1]} : vector<2x128xf32> to vector<1x128xf32>
    %40 = vector.shape_cast %39 : vector<1x128xf32> to vector<1x1x128xf32>
    %41 = vector.broadcast %40 : vector<1x1x128xf32> to vector<2x128x128xf32>
    %42 = arith.mulf %17, %41 : vector<2x128x128xf32>
    %43 = vector.extract_strided_slice %38 {offsets = [1, 0], sizes = [1, 128], strides = [1, 1]} : vector<2x128xf32> to vector<1x128xf32>
    %44 = vector.shape_cast %43 : vector<1x128xf32> to vector<1x1x128xf32>
    %45 = vector.broadcast %44 : vector<1x1x128xf32> to vector<2x128x128xf32>
    %46 = arith.addf %42, %45 : vector<2x128x128xf32>
    %cst_55 = arith.constant 0.000000e+00 : f32
    %47 = vector.broadcast %cst_55 : f32 to vector<2x128x128xf32>
    %48 = arith.maximumf %46, %47 : vector<2x128x128xf32>
    %49 = vector.shape_cast %48 : vector<2x128x128xf32> to vector<256x128xf32>
    %50 = arith.truncf %49 : vector<256x128xf32> to vector<256x128xbf16>
    %c0_56 = arith.constant 0 : index
    %c0_57 = arith.constant 0 : index
    %c0_58 = arith.constant 0 : index
    %51 = vector.load %arg5[%c0_56, %c0_57, %c0_58] : memref<6x128x128xbf16, #tpu.memory_space<vmem>>, vector<1x128x128xbf16>
    %52 = vector.shape_cast %51 : vector<1x128x128xbf16> to vector<128x128xbf16>
    %cst_59 = arith.constant dense<0.000000e+00> : vector<256x128xf32>
    %53 = tpu.matmul %50, %52, %cst_59 {dimension_numbers = #tpu.dot_dimension_numbers<[1], [0], [0], [1], [0, 0, 1, 1], [], []>} : vector<256x128xbf16>, vector<128x128xbf16>, vector<256x128xf32> -> vector<256x128xf32>
    %c0_60 = arith.constant 0 : index
    %c0_61 = arith.constant 0 : index
    %c0_62 = arith.constant 0 : index
    %54 = vector.load %arg6[%c0_60, %c0_61, %c0_62] : memref<6x1x128xf32, #tpu.memory_space<vmem>>, vector<1x1x128xf32>
    %55 = vector.shape_cast %54 : vector<1x1x128xf32> to vector<1x128xf32>
    %56 = vector.broadcast %55 : vector<1x128xf32> to vector<256x128xf32>
    %57 = arith.addf %53, %56 : vector<256x128xf32>
    %cst_63 = arith.constant 0.000000e+00 : f32
    %58 = vector.broadcast %cst_63 : f32 to vector<256x128xf32>
    %59 = arith.maximumf %57, %58 : vector<256x128xf32>
    %60 = vector.shape_cast %59 : vector<256x128xf32> to vector<2x128x128xf32>
    %c0_64 = arith.constant 0 : index
    %c0_65 = arith.constant 0 : index
    %c0_66 = arith.constant 0 : index
    %61 = vector.load %arg7[%c0_64, %c0_65, %c0_66] : memref<6x512x128xbf16, #tpu.memory_space<vmem>>, vector<1x512x128xbf16>
    %62 = vector.shape_cast %61 : vector<1x512x128xbf16> to vector<512x128xbf16>
    %c0_67 = arith.constant 0 : index
    %c0_68 = arith.constant 0 : index
    %c0_69 = arith.constant 0 : index
    %63 = vector.load %arg8[%c0_67, %c0_68, %c0_69] : memref<6x1x128xf32, #tpu.memory_space<vmem>>, vector<1x1x128xf32>
    %64 = vector.shape_cast %63 : vector<1x1x128xf32> to vector<1x128xf32>
    %cst_70 = arith.constant 0.000000e+00 : f32
    %65 = vector.broadcast %cst_70 : f32 to vector<2x1x128xf32>
    %c0_71 = arith.constant 0 : index
    %c0_72 = arith.constant 0 : index
    %c0_73 = arith.constant 0 : index
    %66 = vector.load %arg12[%c0_71, %c0_72, %c0_73] : memref<2x258x128xf32, #tpu.memory_space<vmem>>, vector<2x1x128xf32>
    tpu.vector_store %arg12[%c0_71, %c0_72, %c0_73], %65 {strides = array<i32>} : memref<2x258x128xf32, #tpu.memory_space<vmem>>, vector<2x1x128xf32>,
    %c0_74 = arith.constant 0 : index
    %c129_75 = arith.constant 129 : index
    %c0_76 = arith.constant 0 : index
    %67 = vector.load %arg12[%c0_74, %c129_75, %c0_76] : memref<2x258x128xf32, #tpu.memory_space<vmem>>, vector<2x1x128xf32>
    tpu.vector_store %arg12[%c0_74, %c129_75, %c0_76], %65 {strides = array<i32>} : memref<2x258x128xf32, #tpu.memory_space<vmem>>, vector<2x1x128xf32>,
    %c0_77 = arith.constant 0 : index
    %c1_78 = arith.constant 1 : index
    %c0_79 = arith.constant 0 : index
    %68 = vector.load %arg12[%c0_77, %c1_78, %c0_79] : memref<2x258x128xf32, #tpu.memory_space<vmem>>, vector<2x128x128xf32>
    tpu.vector_store %arg12[%c0_77, %c1_78, %c0_79], %60 {strides = array<i32>} : memref<2x258x128xf32, #tpu.memory_space<vmem>>, vector<2x128x128xf32>,
    %c0_80 = arith.constant 0 : index
    %c0_81 = arith.constant 0 : index
    %c0_82 = arith.constant 0 : index
    %69 = tpu.strided_load %arg12[%c0_80, %c0_81, %c0_82] {strides = array<i32: 1, 2, 1>} : memref<2x258x128xf32, #tpu.memory_space<vmem>>, vector<2x64x128xf32>
    %c0_83 = arith.constant 0 : index
    %c1_84 = arith.constant 1 : index
    %c0_85 = arith.constant 0 : index
    %70 = tpu.strided_load %arg12[%c0_83, %c1_84, %c0_85] {strides = array<i32: 1, 2, 1>} : memref<2x258x128xf32, #tpu.memory_space<vmem>>, vector<2x64x128xf32>
    %c0_86 = arith.constant 0 : index
    %c2_87 = arith.constant 2 : index
    %c0_88 = arith.constant 0 : index
    %71 = tpu.strided_load %arg12[%c0_86, %c2_87, %c0_88] {strides = array<i32: 1, 2, 1>} : memref<2x258x128xf32, #tpu.memory_space<vmem>>, vector<2x64x128xf32>
    %c0_89 = arith.constant 0 : index
    %c3_90 = arith.constant 3 : index
    %c0_91 = arith.constant 0 : index
    %72 = tpu.strided_load %arg12[%c0_89, %c3_90, %c0_91] {strides = array<i32: 1, 2, 1>} : memref<2x258x128xf32, #tpu.memory_space<vmem>>, vector<2x64x128xf32>
    %73 = tpu.concatenate %69, %70, %71, %72 in 2 : vector<2x64x128xf32>, vector<2x64x128xf32>, vector<2x64x128xf32>, vector<2x64x128xf32> -> vector<2x64x512xf32>
    %74 = vector.shape_cast %73 : vector<2x64x512xf32> to vector<128x512xf32>
    %75 = arith.truncf %74 : vector<128x512xf32> to vector<128x512xbf16>
    %cst_92 = arith.constant dense<0.000000e+00> : vector<128x128xf32>
    %76 = tpu.matmul %75, %62, %cst_92 {dimension_numbers = #tpu.dot_dimension_numbers<[1], [0], [0], [1], [0, 0, 1, 1], [], []>} : vector<128x512xbf16>, vector<512x128xbf16>, vector<128x128xf32> -> vector<128x128xf32>
    %77 = vector.broadcast %64 : vector<1x128xf32> to vector<128x128xf32>
    %78 = arith.addf %76, %77 : vector<128x128xf32>
    %79 = vector.shape_cast %78 : vector<128x128xf32> to vector<2x64x128xf32>
    %cst_93 = arith.constant 1.000000e+00 : f32
    %80 = vector.broadcast %cst_93 : f32 to vector<2x64x128xf32>
    %81 = arith.mulf %80, %36 : vector<2x64x128xf32>
    %cst_94 = arith.constant 1.000000e+00 : f32
    %82 = vector.broadcast %cst_94 : f32 to vector<2x64x128xf32>
    %83 = arith.mulf %82, %79 : vector<2x64x128xf32>
    %84 = arith.addf %81, %83 : vector<2x64x128xf32>
    %c1_95 = arith.constant 1 : index
    %c0_96 = arith.constant 0 : index
    %c0_97 = arith.constant 0 : index
    %85 = vector.load %arg9[%c1_95, %c0_96, %c0_97] : memref<6x512x128xbf16, #tpu.memory_space<vmem>>, vector<1x512x128xbf16>
    %86 = vector.shape_cast %85 : vector<1x512x128xbf16> to vector<512x128xbf16>
    %c1_98 = arith.constant 1 : index
    %c0_99 = arith.constant 0 : index
    %c0_100 = arith.constant 0 : index
    %87 = vector.load %arg10[%c1_98, %c0_99, %c0_100] : memref<6x1x128xf32, #tpu.memory_space<vmem>>, vector<1x1x128xf32>
    %88 = vector.shape_cast %87 : vector<1x1x128xf32> to vector<1x128xf32>
    %cst_101 = arith.constant 0.000000e+00 : f32
    %89 = vector.broadcast %cst_101 : f32 to vector<2x1x128xf32>
    %c0_102 = arith.constant 0 : index
    %c0_103 = arith.constant 0 : index
    %c0_104 = arith.constant 0 : index
    %90 = vector.load %arg12[%c0_102, %c0_103, %c0_104] : memref<2x258x128xf32, #tpu.memory_space<vmem>>, vector<2x1x128xf32>
    tpu.vector_store %arg12[%c0_102, %c0_103, %c0_104], %89 {strides = array<i32>} : memref<2x258x128xf32, #tpu.memory_space<vmem>>, vector<2x1x128xf32>,
    %c0_105 = arith.constant 0 : index
    %c65 = arith.constant 65 : index
    %c0_106 = arith.constant 0 : index
    %91 = vector.load %arg12[%c0_105, %c65, %c0_106] : memref<2x258x128xf32, #tpu.memory_space<vmem>>, vector<2x1x128xf32>
    tpu.vector_store %arg12[%c0_105, %c65, %c0_106], %89 {strides = array<i32>} : memref<2x258x128xf32, #tpu.memory_space<vmem>>, vector<2x1x128xf32>,
    %c0_107 = arith.constant 0 : index
    %c1_108 = arith.constant 1 : index
    %c0_109 = arith.constant 0 : index
    %92 = vector.load %arg12[%c0_107, %c1_108, %c0_109] : memref<2x258x128xf32, #tpu.memory_space<vmem>>, vector<2x64x128xf32>
    tpu.vector_store %arg12[%c0_107, %c1_108, %c0_109], %84 {strides = array<i32>} : memref<2x258x128xf32, #tpu.memory_space<vmem>>, vector<2x64x128xf32>,
    %c0_110 = arith.constant 0 : index
    %c0_111 = arith.constant 0 : index
    %c0_112 = arith.constant 0 : index
    %93 = tpu.strided_load %arg12[%c0_110, %c0_111, %c0_112] {strides = array<i32: 1, 2, 1>} : memref<2x258x128xf32, #tpu.memory_space<vmem>>, vector<2x32x128xf32>
    %c0_113 = arith.constant 0 : index
    %c1_114 = arith.constant 1 : index
    %c0_115 = arith.constant 0 : index
    %94 = tpu.strided_load %arg12[%c0_113, %c1_114, %c0_115] {strides = array<i32: 1, 2, 1>} : memref<2x258x128xf32, #tpu.memory_space<vmem>>, vector<2x32x128xf32>
    %c0_116 = arith.constant 0 : index
    %c2_117 = arith.constant 2 : index
    %c0_118 = arith.constant 0 : index
    %95 = tpu.strided_load %arg12[%c0_116, %c2_117, %c0_118] {strides = array<i32: 1, 2, 1>} : memref<2x258x128xf32, #tpu.memory_space<vmem>>, vector<2x32x128xf32>
    %c0_119 = arith.constant 0 : index
    %c3_120 = arith.constant 3 : index
    %c0_121 = arith.constant 0 : index
    %96 = tpu.strided_load %arg12[%c0_119, %c3_120, %c0_121] {strides = array<i32: 1, 2, 1>} : memref<2x258x128xf32, #tpu.memory_space<vmem>>, vector<2x32x128xf32>
    %97 = tpu.concatenate %93, %94, %95, %96 in 2 : vector<2x32x128xf32>, vector<2x32x128xf32>, vector<2x32x128xf32>, vector<2x32x128xf32> -> vector<2x32x512xf32>
    %98 = vector.shape_cast %97 : vector<2x32x512xf32> to vector<64x512xf32>
    %99 = arith.truncf %98 : vector<64x512xf32> to vector<64x512xbf16>
    %cst_122 = arith.constant dense<0.000000e+00> : vector<64x128xf32>
    %100 = tpu.matmul %99, %86, %cst_122 {dimension_numbers = #tpu.dot_dimension_numbers<[1], [0], [0], [1], [0, 0, 1, 1], [], []>} : vector<64x512xbf16>, vector<512x128xbf16>, vector<64x128xf32> -> vector<64x128xf32>
    %101 = vector.broadcast %88 : vector<1x128xf32> to vector<64x128xf32>
    %102 = arith.addf %100, %101 : vector<64x128xf32>
    %103 = vector.shape_cast %102 : vector<64x128xf32> to vector<2x32x128xf32>
    %c1_123 = arith.constant 1 : index
    %c0_124 = arith.constant 0 : index
    %c0_125 = arith.constant 0 : index
    %104 = vector.load %arg4[%c1_123, %c0_124, %c0_125] : memref<6x2x128xf32, #tpu.memory_space<vmem>>, vector<1x2x128xf32>
    %105 = vector.shape_cast %104 : vector<1x2x128xf32> to vector<2x128xf32>
    %106 = vector.extract_strided_slice %105 {offsets = [0, 0], sizes = [1, 128], strides = [1, 1]} : vector<2x128xf32> to vector<1x128xf32>
    %107 = vector.shape_cast %106 : vector<1x128xf32> to vector<1x1x128xf32>
    %108 = vector.broadcast %107 : vector<1x1x128xf32> to vector<2x64x128xf32>
    %109 = arith.mulf %84, %108 : vector<2x64x128xf32>
    %110 = vector.extract_strided_slice %105 {offsets = [1, 0], sizes = [1, 128], strides = [1, 1]} : vector<2x128xf32> to vector<1x128xf32>
    %111 = vector.shape_cast %110 : vector<1x128xf32> to vector<1x1x128xf32>
    %112 = vector.broadcast %111 : vector<1x1x128xf32> to vector<2x64x128xf32>
    %113 = arith.addf %109, %112 : vector<2x64x128xf32>
    %cst_126 = arith.constant 0.000000e+00 : f32
    %114 = vector.broadcast %cst_126 : f32 to vector<2x64x128xf32>
    %115 = arith.maximumf %113, %114 : vector<2x64x128xf32>
    %116 = vector.shape_cast %115 : vector<2x64x128xf32> to vector<128x128xf32>
    %117 = arith.truncf %116 : vector<128x128xf32> to vector<128x128xbf16>
    %c1_127 = arith.constant 1 : index
    %c0_128 = arith.constant 0 : index
    %c0_129 = arith.constant 0 : index
    %118 = vector.load %arg5[%c1_127, %c0_128, %c0_129] : memref<6x128x128xbf16, #tpu.memory_space<vmem>>, vector<1x128x128xbf16>
    %119 = vector.shape_cast %118 : vector<1x128x128xbf16> to vector<128x128xbf16>
    %cst_130 = arith.constant dense<0.000000e+00> : vector<128x128xf32>
    %120 = tpu.matmul %117, %119, %cst_130 {dimension_numbers = #tpu.dot_dimension_numbers<[1], [0], [0], [1], [0, 0, 1, 1], [], []>} : vector<128x128xbf16>, vector<128x128xbf16>, vector<128x128xf32> -> vector<128x128xf32>
    %c1_131 = arith.constant 1 : index
    %c0_132 = arith.constant 0 : index
    %c0_133 = arith.constant 0 : index
    %121 = vector.load %arg6[%c1_131, %c0_132, %c0_133] : memref<6x1x128xf32, #tpu.memory_space<vmem>>, vector<1x1x128xf32>
    %122 = vector.shape_cast %121 : vector<1x1x128xf32> to vector<1x128xf32>
    %123 = vector.broadcast %122 : vector<1x128xf32> to vector<128x128xf32>
    %124 = arith.addf %120, %123 : vector<128x128xf32>
    %cst_134 = arith.constant 0.000000e+00 : f32
    %125 = vector.broadcast %cst_134 : f32 to vector<128x128xf32>
    %126 = arith.maximumf %124, %125 : vector<128x128xf32>
    %127 = vector.shape_cast %126 : vector<128x128xf32> to vector<2x64x128xf32>
    %c1_135 = arith.constant 1 : index
    %c0_136 = arith.constant 0 : index
    %c0_137 = arith.constant 0 : index
    %128 = vector.load %arg7[%c1_135, %c0_136, %c0_137] : memref<6x512x128xbf16, #tpu.memory_space<vmem>>, vector<1x512x128xbf16>
    %129 = vector.shape_cast %128 : vector<1x512x128xbf16> to vector<512x128xbf16>
    %c1_138 = arith.constant 1 : index
    %c0_139 = arith.constant 0 : index
    %c0_140 = arith.constant 0 : index
    %130 = vector.load %arg8[%c1_138, %c0_139, %c0_140] : memref<6x1x128xf32, #tpu.memory_space<vmem>>, vector<1x1x128xf32>
    %131 = vector.shape_cast %130 : vector<1x1x128xf32> to vector<1x128xf32>
    %cst_141 = arith.constant 0.000000e+00 : f32
    %132 = vector.broadcast %cst_141 : f32 to vector<2x1x128xf32>
    %c0_142 = arith.constant 0 : index
    %c0_143 = arith.constant 0 : index
    %c0_144 = arith.constant 0 : index
    %133 = vector.load %arg12[%c0_142, %c0_143, %c0_144] : memref<2x258x128xf32, #tpu.memory_space<vmem>>, vector<2x1x128xf32>
    tpu.vector_store %arg12[%c0_142, %c0_143, %c0_144], %132 {strides = array<i32>} : memref<2x258x128xf32, #tpu.memory_space<vmem>>, vector<2x1x128xf32>,
    %c0_145 = arith.constant 0 : index
    %c65_146 = arith.constant 65 : index
    %c0_147 = arith.constant 0 : index
    %134 = vector.load %arg12[%c0_145, %c65_146, %c0_147] : memref<2x258x128xf32, #tpu.memory_space<vmem>>, vector<2x1x128xf32>
    tpu.vector_store %arg12[%c0_145, %c65_146, %c0_147], %132 {strides = array<i32>} : memref<2x258x128xf32, #tpu.memory_space<vmem>>, vector<2x1x128xf32>,
    %c0_148 = arith.constant 0 : index
    %c1_149 = arith.constant 1 : index
    %c0_150 = arith.constant 0 : index
    %135 = vector.load %arg12[%c0_148, %c1_149, %c0_150] : memref<2x258x128xf32, #tpu.memory_space<vmem>>, vector<2x64x128xf32>
    tpu.vector_store %arg12[%c0_148, %c1_149, %c0_150], %127 {strides = array<i32>} : memref<2x258x128xf32, #tpu.memory_space<vmem>>, vector<2x64x128xf32>,
    %c0_151 = arith.constant 0 : index
    %c0_152 = arith.constant 0 : index
    %c0_153 = arith.constant 0 : index
    %136 = tpu.strided_load %arg12[%c0_151, %c0_152, %c0_153] {strides = array<i32: 1, 2, 1>} : memref<2x258x128xf32, #tpu.memory_space<vmem>>, vector<2x32x128xf32>
    %c0_154 = arith.constant 0 : index
    %c1_155 = arith.constant 1 : index
    %c0_156 = arith.constant 0 : index
    %137 = tpu.strided_load %arg12[%c0_154, %c1_155, %c0_156] {strides = array<i32: 1, 2, 1>} : memref<2x258x128xf32, #tpu.memory_space<vmem>>, vector<2x32x128xf32>
    %c0_157 = arith.constant 0 : index
    %c2_158 = arith.constant 2 : index
    %c0_159 = arith.constant 0 : index
    %138 = tpu.strided_load %arg12[%c0_157, %c2_158, %c0_159] {strides = array<i32: 1, 2, 1>} : memref<2x258x128xf32, #tpu.memory_space<vmem>>, vector<2x32x128xf32>
    %c0_160 = arith.constant 0 : index
    %c3_161 = arith.constant 3 : index
    %c0_162 = arith.constant 0 : index
    %139 = tpu.strided_load %arg12[%c0_160, %c3_161, %c0_162] {strides = array<i32: 1, 2, 1>} : memref<2x258x128xf32, #tpu.memory_space<vmem>>, vector<2x32x128xf32>
    %140 = tpu.concatenate %136, %137, %138, %139 in 2 : vector<2x32x128xf32>, vector<2x32x128xf32>, vector<2x32x128xf32>, vector<2x32x128xf32> -> vector<2x32x512xf32>
    %141 = vector.shape_cast %140 : vector<2x32x512xf32> to vector<64x512xf32>
    %142 = arith.truncf %141 : vector<64x512xf32> to vector<64x512xbf16>
    %cst_163 = arith.constant dense<0.000000e+00> : vector<64x128xf32>
    %143 = tpu.matmul %142, %129, %cst_163 {dimension_numbers = #tpu.dot_dimension_numbers<[1], [0], [0], [1], [0, 0, 1, 1], [], []>} : vector<64x512xbf16>, vector<512x128xbf16>, vector<64x128xf32> -> vector<64x128xf32>
    %144 = vector.broadcast %131 : vector<1x128xf32> to vector<64x128xf32>
    %145 = arith.addf %143, %144 : vector<64x128xf32>
    %146 = vector.shape_cast %145 : vector<64x128xf32> to vector<2x32x128xf32>
    %cst_164 = arith.constant 1.000000e+00 : f32
    %147 = vector.broadcast %cst_164 : f32 to vector<2x32x128xf32>
    %148 = arith.mulf %147, %103 : vector<2x32x128xf32>
    %cst_165 = arith.constant 1.000000e+00 : f32
    %149 = vector.broadcast %cst_165 : f32 to vector<2x32x128xf32>
    %150 = arith.mulf %149, %146 : vector<2x32x128xf32>
    %151 = arith.addf %148, %150 : vector<2x32x128xf32>
    %c2_166 = arith.constant 2 : index
    %c0_167 = arith.constant 0 : index
    %c0_168 = arith.constant 0 : index
    %152 = vector.load %arg9[%c2_166, %c0_167, %c0_168] : memref<6x512x128xbf16, #tpu.memory_space<vmem>>, vector<1x512x128xbf16>
    %153 = vector.shape_cast %152 : vector<1x512x128xbf16> to vector<512x128xbf16>
    %c2_169 = arith.constant 2 : index
    %c0_170 = arith.constant 0 : index
    %c0_171 = arith.constant 0 : index
    %154 = vector.load %arg10[%c2_169, %c0_170, %c0_171] : memref<6x1x128xf32, #tpu.memory_space<vmem>>, vector<1x1x128xf32>
    %155 = vector.shape_cast %154 : vector<1x1x128xf32> to vector<1x128xf32>
    %cst_172 = arith.constant 0.000000e+00 : f32
    %156 = vector.broadcast %cst_172 : f32 to vector<2x1x128xf32>
    %c0_173 = arith.constant 0 : index
    %c0_174 = arith.constant 0 : index
    %c0_175 = arith.constant 0 : index
    %157 = vector.load %arg12[%c0_173, %c0_174, %c0_175] : memref<2x258x128xf32, #tpu.memory_space<vmem>>, vector<2x1x128xf32>
    tpu.vector_store %arg12[%c0_173, %c0_174, %c0_175], %156 {strides = array<i32>} : memref<2x258x128xf32, #tpu.memory_space<vmem>>, vector<2x1x128xf32>,
    %c0_176 = arith.constant 0 : index
    %c33 = arith.constant 33 : index
    %c0_177 = arith.constant 0 : index
    %158 = vector.load %arg12[%c0_176, %c33, %c0_177] : memref<2x258x128xf32, #tpu.memory_space<vmem>>, vector<2x1x128xf32>
    tpu.vector_store %arg12[%c0_176, %c33, %c0_177], %156 {strides = array<i32>} : memref<2x258x128xf32, #tpu.memory_space<vmem>>, vector<2x1x128xf32>,
    %c0_178 = arith.constant 0 : index
    %c1_179 = arith.constant 1 : index
    %c0_180 = arith.constant 0 : index
    %159 = vector.load %arg12[%c0_178, %c1_179, %c0_180] : memref<2x258x128xf32, #tpu.memory_space<vmem>>, vector<2x32x128xf32>
    tpu.vector_store %arg12[%c0_178, %c1_179, %c0_180], %151 {strides = array<i32>} : memref<2x258x128xf32, #tpu.memory_space<vmem>>, vector<2x32x128xf32>,
    %c0_181 = arith.constant 0 : index
    %c0_182 = arith.constant 0 : index
    %c0_183 = arith.constant 0 : index
    %160 = tpu.strided_load %arg12[%c0_181, %c0_182, %c0_183] {strides = array<i32: 1, 2, 1>} : memref<2x258x128xf32, #tpu.memory_space<vmem>>, vector<2x16x128xf32>
    %c0_184 = arith.constant 0 : index
    %c1_185 = arith.constant 1 : index
    %c0_186 = arith.constant 0 : index
    %161 = tpu.strided_load %arg12[%c0_184, %c1_185, %c0_186] {strides = array<i32: 1, 2, 1>} : memref<2x258x128xf32, #tpu.memory_space<vmem>>, vector<2x16x128xf32>
    %c0_187 = arith.constant 0 : index
    %c2_188 = arith.constant 2 : index
    %c0_189 = arith.constant 0 : index
    %162 = tpu.strided_load %arg12[%c0_187, %c2_188, %c0_189] {strides = array<i32: 1, 2, 1>} : memref<2x258x128xf32, #tpu.memory_space<vmem>>, vector<2x16x128xf32>
    %c0_190 = arith.constant 0 : index
    %c3_191 = arith.constant 3 : index
    %c0_192 = arith.constant 0 : index
    %163 = tpu.strided_load %arg12[%c0_190, %c3_191, %c0_192] {strides = array<i32: 1, 2, 1>} : memref<2x258x128xf32, #tpu.memory_space<vmem>>, vector<2x16x128xf32>
    %164 = tpu.concatenate %160, %161, %162, %163 in 2 : vector<2x16x128xf32>, vector<2x16x128xf32>, vector<2x16x128xf32>, vector<2x16x128xf32> -> vector<2x16x512xf32>
    %165 = vector.shape_cast %164 : vector<2x16x512xf32> to vector<32x512xf32>
    %166 = arith.truncf %165 : vector<32x512xf32> to vector<32x512xbf16>
    %cst_193 = arith.constant dense<0.000000e+00> : vector<32x128xf32>
    %167 = tpu.matmul %166, %153, %cst_193 {dimension_numbers = #tpu.dot_dimension_numbers<[1], [0], [0], [1], [0, 0, 1, 1], [], []>} : vector<32x512xbf16>, vector<512x128xbf16>, vector<32x128xf32> -> vector<32x128xf32>
    %168 = vector.broadcast %155 : vector<1x128xf32> to vector<32x128xf32>
    %169 = arith.addf %167, %168 : vector<32x128xf32>
    %170 = vector.shape_cast %169 : vector<32x128xf32> to vector<2x16x128xf32>
    %c2_194 = arith.constant 2 : index
    %c0_195 = arith.constant 0 : index
    %c0_196 = arith.constant 0 : index
    %171 = vector.load %arg4[%c2_194, %c0_195, %c0_196] : memref<6x2x128xf32, #tpu.memory_space<vmem>>, vector<1x2x128xf32>
    %172 = vector.shape_cast %171 : vector<1x2x128xf32> to vector<2x128xf32>
    %173 = vector.extract_strided_slice %172 {offsets = [0, 0], sizes = [1, 128], strides = [1, 1]} : vector<2x128xf32> to vector<1x128xf32>
    %174 = vector.shape_cast %173 : vector<1x128xf32> to vector<1x1x128xf32>
    %175 = vector.broadcast %174 : vector<1x1x128xf32> to vector<2x32x128xf32>
    %176 = arith.mulf %151, %175 : vector<2x32x128xf32>
    %177 = vector.extract_strided_slice %172 {offsets = [1, 0], sizes = [1, 128], strides = [1, 1]} : vector<2x128xf32> to vector<1x128xf32>
    %178 = vector.shape_cast %177 : vector<1x128xf32> to vector<1x1x128xf32>
    %179 = vector.broadcast %178 : vector<1x1x128xf32> to vector<2x32x128xf32>
    %180 = arith.addf %176, %179 : vector<2x32x128xf32>
    %cst_197 = arith.constant 0.000000e+00 : f32
    %181 = vector.broadcast %cst_197 : f32 to vector<2x32x128xf32>
    %182 = arith.maximumf %180, %181 : vector<2x32x128xf32>
    %183 = vector.shape_cast %182 : vector<2x32x128xf32> to vector<64x128xf32>
    %184 = arith.truncf %183 : vector<64x128xf32> to vector<64x128xbf16>
    %c2_198 = arith.constant 2 : index
    %c0_199 = arith.constant 0 : index
    %c0_200 = arith.constant 0 : index
    %185 = vector.load %arg5[%c2_198, %c0_199, %c0_200] : memref<6x128x128xbf16, #tpu.memory_space<vmem>>, vector<1x128x128xbf16>
    %186 = vector.shape_cast %185 : vector<1x128x128xbf16> to vector<128x128xbf16>
    %cst_201 = arith.constant dense<0.000000e+00> : vector<64x128xf32>
    %187 = tpu.matmul %184, %186, %cst_201 {dimension_numbers = #tpu.dot_dimension_numbers<[1], [0], [0], [1], [0, 0, 1, 1], [], []>} : vector<64x128xbf16>, vector<128x128xbf16>, vector<64x128xf32> -> vector<64x128xf32>
    %c2_202 = arith.constant 2 : index
    %c0_203 = arith.constant 0 : index
    %c0_204 = arith.constant 0 : index
    %188 = vector.load %arg6[%c2_202, %c0_203, %c0_204] : memref<6x1x128xf32, #tpu.memory_space<vmem>>, vector<1x1x128xf32>
    %189 = vector.shape_cast %188 : vector<1x1x128xf32> to vector<1x128xf32>
    %190 = vector.broadcast %189 : vector<1x128xf32> to vector<64x128xf32>
    %191 = arith.addf %187, %190 : vector<64x128xf32>
    %cst_205 = arith.constant 0.000000e+00 : f32
    %192 = vector.broadcast %cst_205 : f32 to vector<64x128xf32>
    %193 = arith.maximumf %191, %192 : vector<64x128xf32>
    %194 = vector.shape_cast %193 : vector<64x128xf32> to vector<2x32x128xf32>
    %c2_206 = arith.constant 2 : index
    %c0_207 = arith.constant 0 : index
    %c0_208 = arith.constant 0 : index
    %195 = vector.load %arg7[%c2_206, %c0_207, %c0_208] : memref<6x512x128xbf16, #tpu.memory_space<vmem>>, vector<1x512x128xbf16>
    %196 = vector.shape_cast %195 : vector<1x512x128xbf16> to vector<512x128xbf16>
    %c2_209 = arith.constant 2 : index
    %c0_210 = arith.constant 0 : index
    %c0_211 = arith.constant 0 : index
    %197 = vector.load %arg8[%c2_209, %c0_210, %c0_211] : memref<6x1x128xf32, #tpu.memory_space<vmem>>, vector<1x1x128xf32>
    %198 = vector.shape_cast %197 : vector<1x1x128xf32> to vector<1x128xf32>
    %cst_212 = arith.constant 0.000000e+00 : f32
    %199 = vector.broadcast %cst_212 : f32 to vector<2x1x128xf32>
    %c0_213 = arith.constant 0 : index
    %c0_214 = arith.constant 0 : index
    %c0_215 = arith.constant 0 : index
    %200 = vector.load %arg12[%c0_213, %c0_214, %c0_215] : memref<2x258x128xf32, #tpu.memory_space<vmem>>, vector<2x1x128xf32>
    tpu.vector_store %arg12[%c0_213, %c0_214, %c0_215], %199 {strides = array<i32>} : memref<2x258x128xf32, #tpu.memory_space<vmem>>, vector<2x1x128xf32>,
    %c0_216 = arith.constant 0 : index
    %c33_217 = arith.constant 33 : index
    %c0_218 = arith.constant 0 : index
    %201 = vector.load %arg12[%c0_216, %c33_217, %c0_218] : memref<2x258x128xf32, #tpu.memory_space<vmem>>, vector<2x1x128xf32>
    tpu.vector_store %arg12[%c0_216, %c33_217, %c0_218], %199 {strides = array<i32>} : memref<2x258x128xf32, #tpu.memory_space<vmem>>, vector<2x1x128xf32>,
    %c0_219 = arith.constant 0 : index
    %c1_220 = arith.constant 1 : index
    %c0_221 = arith.constant 0 : index
    %202 = vector.load %arg12[%c0_219, %c1_220, %c0_221] : memref<2x258x128xf32, #tpu.memory_space<vmem>>, vector<2x32x128xf32>
    tpu.vector_store %arg12[%c0_219, %c1_220, %c0_221], %194 {strides = array<i32>} : memref<2x258x128xf32, #tpu.memory_space<vmem>>, vector<2x32x128xf32>,
    %c0_222 = arith.constant 0 : index
    %c0_223 = arith.constant 0 : index
    %c0_224 = arith.constant 0 : index
    %203 = tpu.strided_load %arg12[%c0_222, %c0_223, %c0_224] {strides = array<i32: 1, 2, 1>} : memref<2x258x128xf32, #tpu.memory_space<vmem>>, vector<2x16x128xf32>
    %c0_225 = arith.constant 0 : index
    %c1_226 = arith.constant 1 : index
    %c0_227 = arith.constant 0 : index
    %204 = tpu.strided_load %arg12[%c0_225, %c1_226, %c0_227] {strides = array<i32: 1, 2, 1>} : memref<2x258x128xf32, #tpu.memory_space<vmem>>, vector<2x16x128xf32>
    %c0_228 = arith.constant 0 : index
    %c2_229 = arith.constant 2 : index
    %c0_230 = arith.constant 0 : index
    %205 = tpu.strided_load %arg12[%c0_228, %c2_229, %c0_230] {strides = array<i32: 1, 2, 1>} : memref<2x258x128xf32, #tpu.memory_space<vmem>>, vector<2x16x128xf32>
    %c0_231 = arith.constant 0 : index
    %c3_232 = arith.constant 3 : index
    %c0_233 = arith.constant 0 : index
    %206 = tpu.strided_load %arg12[%c0_231, %c3_232, %c0_233] {strides = array<i32: 1, 2, 1>} : memref<2x258x128xf32, #tpu.memory_space<vmem>>, vector<2x16x128xf32>
    %207 = tpu.concatenate %203, %204, %205, %206 in 2 : vector<2x16x128xf32>, vector<2x16x128xf32>, vector<2x16x128xf32>, vector<2x16x128xf32> -> vector<2x16x512xf32>
    %208 = vector.shape_cast %207 : vector<2x16x512xf32> to vector<32x512xf32>
    %209 = arith.truncf %208 : vector<32x512xf32> to vector<32x512xbf16>
    %cst_234 = arith.constant dense<0.000000e+00> : vector<32x128xf32>
    %210 = tpu.matmul %209, %196, %cst_234 {dimension_numbers = #tpu.dot_dimension_numbers<[1], [0], [0], [1], [0, 0, 1, 1], [], []>} : vector<32x512xbf16>, vector<512x128xbf16>, vector<32x128xf32> -> vector<32x128xf32>
    %211 = vector.broadcast %198 : vector<1x128xf32> to vector<32x128xf32>
    %212 = arith.addf %210, %211 : vector<32x128xf32>
    %213 = vector.shape_cast %212 : vector<32x128xf32> to vector<2x16x128xf32>
    %cst_235 = arith.constant 1.000000e+00 : f32
    %214 = vector.broadcast %cst_235 : f32 to vector<2x16x128xf32>
    %215 = arith.mulf %214, %170 : vector<2x16x128xf32>
    %cst_236 = arith.constant 1.000000e+00 : f32
    %216 = vector.broadcast %cst_236 : f32 to vector<2x16x128xf32>
    %217 = arith.mulf %216, %213 : vector<2x16x128xf32>
    %218 = arith.addf %215, %217 : vector<2x16x128xf32>
    %c3_237 = arith.constant 3 : index
    %c0_238 = arith.constant 0 : index
    %c0_239 = arith.constant 0 : index
    %219 = vector.load %arg9[%c3_237, %c0_238, %c0_239] : memref<6x512x128xbf16, #tpu.memory_space<vmem>>, vector<1x512x128xbf16>
    %220 = vector.shape_cast %219 : vector<1x512x128xbf16> to vector<512x128xbf16>
    %c3_240 = arith.constant 3 : index
    %c0_241 = arith.constant 0 : index
    %c0_242 = arith.constant 0 : index
    %221 = vector.load %arg10[%c3_240, %c0_241, %c0_242] : memref<6x1x128xf32, #tpu.memory_space<vmem>>, vector<1x1x128xf32>
    %222 = vector.shape_cast %221 : vector<1x1x128xf32> to vector<1x128xf32>
    %cst_243 = arith.constant 0.000000e+00 : f32
    %223 = vector.broadcast %cst_243 : f32 to vector<2x1x128xf32>
    %c0_244 = arith.constant 0 : index
    %c0_245 = arith.constant 0 : index
    %c0_246 = arith.constant 0 : index
    %224 = vector.load %arg12[%c0_244, %c0_245, %c0_246] : memref<2x258x128xf32, #tpu.memory_space<vmem>>, vector<2x1x128xf32>
    tpu.vector_store %arg12[%c0_244, %c0_245, %c0_246], %223 {strides = array<i32>} : memref<2x258x128xf32, #tpu.memory_space<vmem>>, vector<2x1x128xf32>,
    %c0_247 = arith.constant 0 : index
    %c17 = arith.constant 17 : index
    %c0_248 = arith.constant 0 : index
    %225 = vector.load %arg12[%c0_247, %c17, %c0_248] : memref<2x258x128xf32, #tpu.memory_space<vmem>>, vector<2x1x128xf32>
    tpu.vector_store %arg12[%c0_247, %c17, %c0_248], %223 {strides = array<i32>} : memref<2x258x128xf32, #tpu.memory_space<vmem>>, vector<2x1x128xf32>,
    %c0_249 = arith.constant 0 : index
    %c1_250 = arith.constant 1 : index
    %c0_251 = arith.constant 0 : index
    %226 = vector.load %arg12[%c0_249, %c1_250, %c0_251] : memref<2x258x128xf32, #tpu.memory_space<vmem>>, vector<2x16x128xf32>
    tpu.vector_store %arg12[%c0_249, %c1_250, %c0_251], %218 {strides = array<i32>} : memref<2x258x128xf32, #tpu.memory_space<vmem>>, vector<2x16x128xf32>,
    %c0_252 = arith.constant 0 : index
    %c0_253 = arith.constant 0 : index
    %c0_254 = arith.constant 0 : index
    %227 = tpu.strided_load %arg12[%c0_252, %c0_253, %c0_254] {strides = array<i32: 1, 2, 1>} : memref<2x258x128xf32, #tpu.memory_space<vmem>>, vector<2x8x128xf32>
    %c0_255 = arith.constant 0 : index
    %c1_256 = arith.constant 1 : index
    %c0_257 = arith.constant 0 : index
    %228 = tpu.strided_load %arg12[%c0_255, %c1_256, %c0_257] {strides = array<i32: 1, 2, 1>} : memref<2x258x128xf32, #tpu.memory_space<vmem>>, vector<2x8x128xf32>
    %c0_258 = arith.constant 0 : index
    %c2_259 = arith.constant 2 : index
    %c0_260 = arith.constant 0 : index
    %229 = tpu.strided_load %arg12[%c0_258, %c2_259, %c0_260] {strides = array<i32: 1, 2, 1>} : memref<2x258x128xf32, #tpu.memory_space<vmem>>, vector<2x8x128xf32>
    %c0_261 = arith.constant 0 : index
    %c3_262 = arith.constant 3 : index
    %c0_263 = arith.constant 0 : index
    %230 = tpu.strided_load %arg12[%c0_261, %c3_262, %c0_263] {strides = array<i32: 1, 2, 1>} : memref<2x258x128xf32, #tpu.memory_space<vmem>>, vector<2x8x128xf32>
    %231 = tpu.concatenate %227, %228, %229, %230 in 2 : vector<2x8x128xf32>, vector<2x8x128xf32>, vector<2x8x128xf32>, vector<2x8x128xf32> -> vector<2x8x512xf32>
    %232 = vector.shape_cast %231 : vector<2x8x512xf32> to vector<16x512xf32>
    %233 = arith.truncf %232 : vector<16x512xf32> to vector<16x512xbf16>
    %cst_264 = arith.constant dense<0.000000e+00> : vector<16x128xf32>
    %234 = tpu.matmul %233, %220, %cst_264 {dimension_numbers = #tpu.dot_dimension_numbers<[1], [0], [0], [1], [0, 0, 1, 1], [], []>} : vector<16x512xbf16>, vector<512x128xbf16>, vector<16x128xf32> -> vector<16x128xf32>
    %235 = vector.broadcast %222 : vector<1x128xf32> to vector<16x128xf32>
    %236 = arith.addf %234, %235 : vector<16x128xf32>
    %237 = vector.shape_cast %236 : vector<16x128xf32> to vector<2x8x128xf32>
    %c3_265 = arith.constant 3 : index
    %c0_266 = arith.constant 0 : index
    %c0_267 = arith.constant 0 : index
    %238 = vector.load %arg4[%c3_265, %c0_266, %c0_267] : memref<6x2x128xf32, #tpu.memory_space<vmem>>, vector<1x2x128xf32>
    %239 = vector.shape_cast %238 : vector<1x2x128xf32> to vector<2x128xf32>
    %240 = vector.extract_strided_slice %239 {offsets = [0, 0], sizes = [1, 128], strides = [1, 1]} : vector<2x128xf32> to vector<1x128xf32>
    %241 = vector.shape_cast %240 : vector<1x128xf32> to vector<1x1x128xf32>
    %242 = vector.broadcast %241 : vector<1x1x128xf32> to vector<2x16x128xf32>
    %243 = arith.mulf %218, %242 : vector<2x16x128xf32>
    %244 = vector.extract_strided_slice %239 {offsets = [1, 0], sizes = [1, 128], strides = [1, 1]} : vector<2x128xf32> to vector<1x128xf32>
    %245 = vector.shape_cast %244 : vector<1x128xf32> to vector<1x1x128xf32>
    %246 = vector.broadcast %245 : vector<1x1x128xf32> to vector<2x16x128xf32>
    %247 = arith.addf %243, %246 : vector<2x16x128xf32>
    %cst_268 = arith.constant 0.000000e+00 : f32
    %248 = vector.broadcast %cst_268 : f32 to vector<2x16x128xf32>
    %249 = arith.maximumf %247, %248 : vector<2x16x128xf32>
    %250 = vector.shape_cast %249 : vector<2x16x128xf32> to vector<32x128xf32>
    %251 = arith.truncf %250 : vector<32x128xf32> to vector<32x128xbf16>
    %c3_269 = arith.constant 3 : index
    %c0_270 = arith.constant 0 : index
    %c0_271 = arith.constant 0 : index
    %252 = vector.load %arg5[%c3_269, %c0_270, %c0_271] : memref<6x128x128xbf16, #tpu.memory_space<vmem>>, vector<1x128x128xbf16>
    %253 = vector.shape_cast %252 : vector<1x128x128xbf16> to vector<128x128xbf16>
    %cst_272 = arith.constant dense<0.000000e+00> : vector<32x128xf32>
    %254 = tpu.matmul %251, %253, %cst_272 {dimension_numbers = #tpu.dot_dimension_numbers<[1], [0], [0], [1], [0, 0, 1, 1], [], []>} : vector<32x128xbf16>, vector<128x128xbf16>, vector<32x128xf32> -> vector<32x128xf32>
    %c3_273 = arith.constant 3 : index
    %c0_274 = arith.constant 0 : index
    %c0_275 = arith.constant 0 : index
    %255 = vector.load %arg6[%c3_273, %c0_274, %c0_275] : memref<6x1x128xf32, #tpu.memory_space<vmem>>, vector<1x1x128xf32>
    %256 = vector.shape_cast %255 : vector<1x1x128xf32> to vector<1x128xf32>
    %257 = vector.broadcast %256 : vector<1x128xf32> to vector<32x128xf32>
    %258 = arith.addf %254, %257 : vector<32x128xf32>
    %cst_276 = arith.constant 0.000000e+00 : f32
    %259 = vector.broadcast %cst_276 : f32 to vector<32x128xf32>
    %260 = arith.maximumf %258, %259 : vector<32x128xf32>
    %261 = vector.shape_cast %260 : vector<32x128xf32> to vector<2x16x128xf32>
    %c3_277 = arith.constant 3 : index
    %c0_278 = arith.constant 0 : index
    %c0_279 = arith.constant 0 : index
    %262 = vector.load %arg7[%c3_277, %c0_278, %c0_279] : memref<6x512x128xbf16, #tpu.memory_space<vmem>>, vector<1x512x128xbf16>
    %263 = vector.shape_cast %262 : vector<1x512x128xbf16> to vector<512x128xbf16>
    %c3_280 = arith.constant 3 : index
    %c0_281 = arith.constant 0 : index
    %c0_282 = arith.constant 0 : index
    %264 = vector.load %arg8[%c3_280, %c0_281, %c0_282] : memref<6x1x128xf32, #tpu.memory_space<vmem>>, vector<1x1x128xf32>
    %265 = vector.shape_cast %264 : vector<1x1x128xf32> to vector<1x128xf32>
    %cst_283 = arith.constant 0.000000e+00 : f32
    %266 = vector.broadcast %cst_283 : f32 to vector<2x1x128xf32>
    %c0_284 = arith.constant 0 : index
    %c0_285 = arith.constant 0 : index
    %c0_286 = arith.constant 0 : index
    %267 = vector.load %arg12[%c0_284, %c0_285, %c0_286] : memref<2x258x128xf32, #tpu.memory_space<vmem>>, vector<2x1x128xf32>
    tpu.vector_store %arg12[%c0_284, %c0_285, %c0_286], %266 {strides = array<i32>} : memref<2x258x128xf32, #tpu.memory_space<vmem>>, vector<2x1x128xf32>,
    %c0_287 = arith.constant 0 : index
    %c17_288 = arith.constant 17 : index
    %c0_289 = arith.constant 0 : index
    %268 = vector.load %arg12[%c0_287, %c17_288, %c0_289] : memref<2x258x128xf32, #tpu.memory_space<vmem>>, vector<2x1x128xf32>
    tpu.vector_store %arg12[%c0_287, %c17_288, %c0_289], %266 {strides = array<i32>} : memref<2x258x128xf32, #tpu.memory_space<vmem>>, vector<2x1x128xf32>,
    %c0_290 = arith.constant 0 : index
    %c1_291 = arith.constant 1 : index
    %c0_292 = arith.constant 0 : index
    %269 = vector.load %arg12[%c0_290, %c1_291, %c0_292] : memref<2x258x128xf32, #tpu.memory_space<vmem>>, vector<2x16x128xf32>
    tpu.vector_store %arg12[%c0_290, %c1_291, %c0_292], %261 {strides = array<i32>} : memref<2x258x128xf32, #tpu.memory_space<vmem>>, vector<2x16x128xf32>,
    %c0_293 = arith.constant 0 : index
    %c0_294 = arith.constant 0 : index
    %c0_295 = arith.constant 0 : index
    %270 = tpu.strided_load %arg12[%c0_293, %c0_294, %c0_295] {strides = array<i32: 1, 2, 1>} : memref<2x258x128xf32, #tpu.memory_space<vmem>>, vector<2x8x128xf32>
    %c0_296 = arith.constant 0 : index
    %c1_297 = arith.constant 1 : index
    %c0_298 = arith.constant 0 : index
    %271 = tpu.strided_load %arg12[%c0_296, %c1_297, %c0_298] {strides = array<i32: 1, 2, 1>} : memref<2x258x128xf32, #tpu.memory_space<vmem>>, vector<2x8x128xf32>
    %c0_299 = arith.constant 0 : index
    %c2_300 = arith.constant 2 : index
    %c0_301 = arith.constant 0 : index
    %272 = tpu.strided_load %arg12[%c0_299, %c2_300, %c0_301] {strides = array<i32: 1, 2, 1>} : memref<2x258x128xf32, #tpu.memory_space<vmem>>, vector<2x8x128xf32>
    %c0_302 = arith.constant 0 : index
    %c3_303 = arith.constant 3 : index
    %c0_304 = arith.constant 0 : index
    %273 = tpu.strided_load %arg12[%c0_302, %c3_303, %c0_304] {strides = array<i32: 1, 2, 1>} : memref<2x258x128xf32, #tpu.memory_space<vmem>>, vector<2x8x128xf32>
    %274 = tpu.concatenate %270, %271, %272, %273 in 2 : vector<2x8x128xf32>, vector<2x8x128xf32>, vector<2x8x128xf32>, vector<2x8x128xf32> -> vector<2x8x512xf32>
    %275 = vector.shape_cast %274 : vector<2x8x512xf32> to vector<16x512xf32>
    %276 = arith.truncf %275 : vector<16x512xf32> to vector<16x512xbf16>
    %cst_305 = arith.constant dense<0.000000e+00> : vector<16x128xf32>
    %277 = tpu.matmul %276, %263, %cst_305 {dimension_numbers = #tpu.dot_dimension_numbers<[1], [0], [0], [1], [0, 0, 1, 1], [], []>} : vector<16x512xbf16>, vector<512x128xbf16>, vector<16x128xf32> -> vector<16x128xf32>
    %278 = vector.broadcast %265 : vector<1x128xf32> to vector<16x128xf32>
    %279 = arith.addf %277, %278 : vector<16x128xf32>
    %280 = vector.shape_cast %279 : vector<16x128xf32> to vector<2x8x128xf32>
    %cst_306 = arith.constant 1.000000e+00 : f32
    %281 = vector.broadcast %cst_306 : f32 to vector<2x8x128xf32>
    %282 = arith.mulf %281, %237 : vector<2x8x128xf32>
    %cst_307 = arith.constant 1.000000e+00 : f32
    %283 = vector.broadcast %cst_307 : f32 to vector<2x8x128xf32>
    %284 = arith.mulf %283, %280 : vector<2x8x128xf32>
    %285 = arith.addf %282, %284 : vector<2x8x128xf32>
    %c4 = arith.constant 4 : index
    %c0_308 = arith.constant 0 : index
    %c0_309 = arith.constant 0 : index
    %286 = vector.load %arg9[%c4, %c0_308, %c0_309] : memref<6x512x128xbf16, #tpu.memory_space<vmem>>, vector<1x512x128xbf16>
    %287 = vector.shape_cast %286 : vector<1x512x128xbf16> to vector<512x128xbf16>
    %c4_310 = arith.constant 4 : index
    %c0_311 = arith.constant 0 : index
    %c0_312 = arith.constant 0 : index
    %288 = vector.load %arg10[%c4_310, %c0_311, %c0_312] : memref<6x1x128xf32, #tpu.memory_space<vmem>>, vector<1x1x128xf32>
    %289 = vector.shape_cast %288 : vector<1x1x128xf32> to vector<1x128xf32>
    %cst_313 = arith.constant 0.000000e+00 : f32
    %290 = vector.broadcast %cst_313 : f32 to vector<2x1x128xf32>
    %c0_314 = arith.constant 0 : index
    %c0_315 = arith.constant 0 : index
    %c0_316 = arith.constant 0 : index
    %291 = vector.load %arg12[%c0_314, %c0_315, %c0_316] : memref<2x258x128xf32, #tpu.memory_space<vmem>>, vector<2x1x128xf32>
    tpu.vector_store %arg12[%c0_314, %c0_315, %c0_316], %290 {strides = array<i32>} : memref<2x258x128xf32, #tpu.memory_space<vmem>>, vector<2x1x128xf32>,
    %c0_317 = arith.constant 0 : index
    %c9 = arith.constant 9 : index
    %c0_318 = arith.constant 0 : index
    %292 = vector.load %arg12[%c0_317, %c9, %c0_318] : memref<2x258x128xf32, #tpu.memory_space<vmem>>, vector<2x1x128xf32>
    tpu.vector_store %arg12[%c0_317, %c9, %c0_318], %290 {strides = array<i32>} : memref<2x258x128xf32, #tpu.memory_space<vmem>>, vector<2x1x128xf32>,
    %c0_319 = arith.constant 0 : index
    %c1_320 = arith.constant 1 : index
    %c0_321 = arith.constant 0 : index
    %293 = vector.load %arg12[%c0_319, %c1_320, %c0_321] : memref<2x258x128xf32, #tpu.memory_space<vmem>>, vector<2x8x128xf32>
    tpu.vector_store %arg12[%c0_319, %c1_320, %c0_321], %285 {strides = array<i32>} : memref<2x258x128xf32, #tpu.memory_space<vmem>>, vector<2x8x128xf32>,
    %c0_322 = arith.constant 0 : index
    %c0_323 = arith.constant 0 : index
    %c0_324 = arith.constant 0 : index
    %294 = tpu.strided_load %arg12[%c0_322, %c0_323, %c0_324] {strides = array<i32: 1, 2, 1>} : memref<2x258x128xf32, #tpu.memory_space<vmem>>, vector<2x4x128xf32>
    %c0_325 = arith.constant 0 : index
    %c1_326 = arith.constant 1 : index
    %c0_327 = arith.constant 0 : index
    %295 = tpu.strided_load %arg12[%c0_325, %c1_326, %c0_327] {strides = array<i32: 1, 2, 1>} : memref<2x258x128xf32, #tpu.memory_space<vmem>>, vector<2x4x128xf32>
    %c0_328 = arith.constant 0 : index
    %c2_329 = arith.constant 2 : index
    %c0_330 = arith.constant 0 : index
    %296 = tpu.strided_load %arg12[%c0_328, %c2_329, %c0_330] {strides = array<i32: 1, 2, 1>} : memref<2x258x128xf32, #tpu.memory_space<vmem>>, vector<2x4x128xf32>
    %c0_331 = arith.constant 0 : index
    %c3_332 = arith.constant 3 : index
    %c0_333 = arith.constant 0 : index
    %297 = tpu.strided_load %arg12[%c0_331, %c3_332, %c0_333] {strides = array<i32: 1, 2, 1>} : memref<2x258x128xf32, #tpu.memory_space<vmem>>, vector<2x4x128xf32>
    %298 = tpu.concatenate %294, %295, %296, %297 in 2 : vector<2x4x128xf32>, vector<2x4x128xf32>, vector<2x4x128xf32>, vector<2x4x128xf32> -> vector<2x4x512xf32>
    %299 = vector.shape_cast %298 : vector<2x4x512xf32> to vector<8x512xf32>
    %300 = arith.truncf %299 : vector<8x512xf32> to vector<8x512xbf16>
    %cst_334 = arith.constant dense<0.000000e+00> : vector<8x128xf32>
    %301 = tpu.matmul %300, %287, %cst_334 {dimension_numbers = #tpu.dot_dimension_numbers<[1], [0], [0], [1], [0, 0, 1, 1], [], []>} : vector<8x512xbf16>, vector<512x128xbf16>, vector<8x128xf32> -> vector<8x128xf32>
    %302 = vector.broadcast %289 : vector<1x128xf32> to vector<8x128xf32>
    %303 = arith.addf %301, %302 : vector<8x128xf32>
    %304 = vector.shape_cast %303 : vector<8x128xf32> to vector<2x4x128xf32>
    %c4_335 = arith.constant 4 : index
    %c0_336 = arith.constant 0 : index
    %c0_337 = arith.constant 0 : index
    %305 = vector.load %arg4[%c4_335, %c0_336, %c0_337] : memref<6x2x128xf32, #tpu.memory_space<vmem>>, vector<1x2x128xf32>
    %306 = vector.shape_cast %305 : vector<1x2x128xf32> to vector<2x128xf32>
    %307 = vector.extract_strided_slice %306 {offsets = [0, 0], sizes = [1, 128], strides = [1, 1]} : vector<2x128xf32> to vector<1x128xf32>
    %308 = vector.shape_cast %307 : vector<1x128xf32> to vector<1x1x128xf32>
    %309 = vector.broadcast %308 : vector<1x1x128xf32> to vector<2x8x128xf32>
    %310 = arith.mulf %285, %309 : vector<2x8x128xf32>
    %311 = vector.extract_strided_slice %306 {offsets = [1, 0], sizes = [1, 128], strides = [1, 1]} : vector<2x128xf32> to vector<1x128xf32>
    %312 = vector.shape_cast %311 : vector<1x128xf32> to vector<1x1x128xf32>
    %313 = vector.broadcast %312 : vector<1x1x128xf32> to vector<2x8x128xf32>
    %314 = arith.addf %310, %313 : vector<2x8x128xf32>
    %cst_338 = arith.constant 0.000000e+00 : f32
    %315 = vector.broadcast %cst_338 : f32 to vector<2x8x128xf32>
    %316 = arith.maximumf %314, %315 : vector<2x8x128xf32>
    %317 = vector.shape_cast %316 : vector<2x8x128xf32> to vector<16x128xf32>
    %318 = arith.truncf %317 : vector<16x128xf32> to vector<16x128xbf16>
    %c4_339 = arith.constant 4 : index
    %c0_340 = arith.constant 0 : index
    %c0_341 = arith.constant 0 : index
    %319 = vector.load %arg5[%c4_339, %c0_340, %c0_341] : memref<6x128x128xbf16, #tpu.memory_space<vmem>>, vector<1x128x128xbf16>
    %320 = vector.shape_cast %319 : vector<1x128x128xbf16> to vector<128x128xbf16>
    %cst_342 = arith.constant dense<0.000000e+00> : vector<16x128xf32>
    %321 = tpu.matmul %318, %320, %cst_342 {dimension_numbers = #tpu.dot_dimension_numbers<[1], [0], [0], [1], [0, 0, 1, 1], [], []>} : vector<16x128xbf16>, vector<128x128xbf16>, vector<16x128xf32> -> vector<16x128xf32>
    %c4_343 = arith.constant 4 : index
    %c0_344 = arith.constant 0 : index
    %c0_345 = arith.constant 0 : index
    %322 = vector.load %arg6[%c4_343, %c0_344, %c0_345] : memref<6x1x128xf32, #tpu.memory_space<vmem>>, vector<1x1x128xf32>
    %323 = vector.shape_cast %322 : vector<1x1x128xf32> to vector<1x128xf32>
    %324 = vector.broadcast %323 : vector<1x128xf32> to vector<16x128xf32>
    %325 = arith.addf %321, %324 : vector<16x128xf32>
    %cst_346 = arith.constant 0.000000e+00 : f32
    %326 = vector.broadcast %cst_346 : f32 to vector<16x128xf32>
    %327 = arith.maximumf %325, %326 : vector<16x128xf32>
    %328 = vector.shape_cast %327 : vector<16x128xf32> to vector<2x8x128xf32>
    %c4_347 = arith.constant 4 : index
    %c0_348 = arith.constant 0 : index
    %c0_349 = arith.constant 0 : index
    %329 = vector.load %arg7[%c4_347, %c0_348, %c0_349] : memref<6x512x128xbf16, #tpu.memory_space<vmem>>, vector<1x512x128xbf16>
    %330 = vector.shape_cast %329 : vector<1x512x128xbf16> to vector<512x128xbf16>
    %c4_350 = arith.constant 4 : index
    %c0_351 = arith.constant 0 : index
    %c0_352 = arith.constant 0 : index
    %331 = vector.load %arg8[%c4_350, %c0_351, %c0_352] : memref<6x1x128xf32, #tpu.memory_space<vmem>>, vector<1x1x128xf32>
    %332 = vector.shape_cast %331 : vector<1x1x128xf32> to vector<1x128xf32>
    %cst_353 = arith.constant 0.000000e+00 : f32
    %333 = vector.broadcast %cst_353 : f32 to vector<2x1x128xf32>
    %c0_354 = arith.constant 0 : index
    %c0_355 = arith.constant 0 : index
    %c0_356 = arith.constant 0 : index
    %334 = vector.load %arg12[%c0_354, %c0_355, %c0_356] : memref<2x258x128xf32, #tpu.memory_space<vmem>>, vector<2x1x128xf32>
    tpu.vector_store %arg12[%c0_354, %c0_355, %c0_356], %333 {strides = array<i32>} : memref<2x258x128xf32, #tpu.memory_space<vmem>>, vector<2x1x128xf32>,
    %c0_357 = arith.constant 0 : index
    %c9_358 = arith.constant 9 : index
    %c0_359 = arith.constant 0 : index
    %335 = vector.load %arg12[%c0_357, %c9_358, %c0_359] : memref<2x258x128xf32, #tpu.memory_space<vmem>>, vector<2x1x128xf32>
    tpu.vector_store %arg12[%c0_357, %c9_358, %c0_359], %333 {strides = array<i32>} : memref<2x258x128xf32, #tpu.memory_space<vmem>>, vector<2x1x128xf32>,
    %c0_360 = arith.constant 0 : index
    %c1_361 = arith.constant 1 : index
    %c0_362 = arith.constant 0 : index
    %336 = vector.load %arg12[%c0_360, %c1_361, %c0_362] : memref<2x258x128xf32, #tpu.memory_space<vmem>>, vector<2x8x128xf32>
    tpu.vector_store %arg12[%c0_360, %c1_361, %c0_362], %328 {strides = array<i32>} : memref<2x258x128xf32, #tpu.memory_space<vmem>>, vector<2x8x128xf32>,
    %c0_363 = arith.constant 0 : index
    %c0_364 = arith.constant 0 : index
    %c0_365 = arith.constant 0 : index
    %337 = tpu.strided_load %arg12[%c0_363, %c0_364, %c0_365] {strides = array<i32: 1, 2, 1>} : memref<2x258x128xf32, #tpu.memory_space<vmem>>, vector<2x4x128xf32>
    %c0_366 = arith.constant 0 : index
    %c1_367 = arith.constant 1 : index
    %c0_368 = arith.constant 0 : index
    %338 = tpu.strided_load %arg12[%c0_366, %c1_367, %c0_368] {strides = array<i32: 1, 2, 1>} : memref<2x258x128xf32, #tpu.memory_space<vmem>>, vector<2x4x128xf32>
    %c0_369 = arith.constant 0 : index
    %c2_370 = arith.constant 2 : index
    %c0_371 = arith.constant 0 : index
    %339 = tpu.strided_load %arg12[%c0_369, %c2_370, %c0_371] {strides = array<i32: 1, 2, 1>} : memref<2x258x128xf32, #tpu.memory_space<vmem>>, vector<2x4x128xf32>
    %c0_372 = arith.constant 0 : index
    %c3_373 = arith.constant 3 : index
    %c0_374 = arith.constant 0 : index
    %340 = tpu.strided_load %arg12[%c0_372, %c3_373, %c0_374] {strides = array<i32: 1, 2, 1>} : memref<2x258x128xf32, #tpu.memory_space<vmem>>, vector<2x4x128xf32>
    %341 = tpu.concatenate %337, %338, %339, %340 in 2 : vector<2x4x128xf32>, vector<2x4x128xf32>, vector<2x4x128xf32>, vector<2x4x128xf32> -> vector<2x4x512xf32>
    %342 = vector.shape_cast %341 : vector<2x4x512xf32> to vector<8x512xf32>
    %343 = arith.truncf %342 : vector<8x512xf32> to vector<8x512xbf16>
    %cst_375 = arith.constant dense<0.000000e+00> : vector<8x128xf32>
    %344 = tpu.matmul %343, %330, %cst_375 {dimension_numbers = #tpu.dot_dimension_numbers<[1], [0], [0], [1], [0, 0, 1, 1], [], []>} : vector<8x512xbf16>, vector<512x128xbf16>, vector<8x128xf32> -> vector<8x128xf32>
    %345 = vector.broadcast %332 : vector<1x128xf32> to vector<8x128xf32>
    %346 = arith.addf %344, %345 : vector<8x128xf32>
    %347 = vector.shape_cast %346 : vector<8x128xf32> to vector<2x4x128xf32>
    %cst_376 = arith.constant 1.000000e+00 : f32
    %348 = vector.broadcast %cst_376 : f32 to vector<2x4x128xf32>
    %349 = arith.mulf %348, %304 : vector<2x4x128xf32>
    %cst_377 = arith.constant 1.000000e+00 : f32
    %350 = vector.broadcast %cst_377 : f32 to vector<2x4x128xf32>
    %351 = arith.mulf %350, %347 : vector<2x4x128xf32>
    %352 = arith.addf %349, %351 : vector<2x4x128xf32>
    %c5 = arith.constant 5 : index
    %c0_378 = arith.constant 0 : index
    %c0_379 = arith.constant 0 : index
    %353 = vector.load %arg9[%c5, %c0_378, %c0_379] : memref<6x512x128xbf16, #tpu.memory_space<vmem>>, vector<1x512x128xbf16>
    %354 = vector.shape_cast %353 : vector<1x512x128xbf16> to vector<512x128xbf16>
    %c5_380 = arith.constant 5 : index
    %c0_381 = arith.constant 0 : index
    %c0_382 = arith.constant 0 : index
    %355 = vector.load %arg10[%c5_380, %c0_381, %c0_382] : memref<6x1x128xf32, #tpu.memory_space<vmem>>, vector<1x1x128xf32>
    %356 = vector.shape_cast %355 : vector<1x1x128xf32> to vector<1x128xf32>
    %cst_383 = arith.constant 0.000000e+00 : f32
    %357 = vector.broadcast %cst_383 : f32 to vector<2x1x128xf32>
    %c0_384 = arith.constant 0 : index
    %c0_385 = arith.constant 0 : index
    %c0_386 = arith.constant 0 : index
    %358 = vector.load %arg12[%c0_384, %c0_385, %c0_386] : memref<2x258x128xf32, #tpu.memory_space<vmem>>, vector<2x1x128xf32>
    tpu.vector_store %arg12[%c0_384, %c0_385, %c0_386], %357 {strides = array<i32>} : memref<2x258x128xf32, #tpu.memory_space<vmem>>, vector<2x1x128xf32>,
    %c0_387 = arith.constant 0 : index
    %c5_388 = arith.constant 5 : index
    %c0_389 = arith.constant 0 : index
    %359 = vector.load %arg12[%c0_387, %c5_388, %c0_389] : memref<2x258x128xf32, #tpu.memory_space<vmem>>, vector<2x1x128xf32>
    tpu.vector_store %arg12[%c0_387, %c5_388, %c0_389], %357 {strides = array<i32>} : memref<2x258x128xf32, #tpu.memory_space<vmem>>, vector<2x1x128xf32>,
    %c0_390 = arith.constant 0 : index
    %c1_391 = arith.constant 1 : index
    %c0_392 = arith.constant 0 : index
    %360 = vector.load %arg12[%c0_390, %c1_391, %c0_392] : memref<2x258x128xf32, #tpu.memory_space<vmem>>, vector<2x4x128xf32>
    tpu.vector_store %arg12[%c0_390, %c1_391, %c0_392], %352 {strides = array<i32>} : memref<2x258x128xf32, #tpu.memory_space<vmem>>, vector<2x4x128xf32>,
    %c0_393 = arith.constant 0 : index
    %c1_394 = arith.constant 1 : index
    %c0_395 = arith.constant 0 : index
    %361 = tpu.strided_load %arg12[%c0_393, %c1_394, %c0_395] {strides = array<i32: 1, 2, 1>} : memref<2x258x128xf32, #tpu.memory_space<vmem>>, vector<2x1x128xf32>
    %c0_396 = arith.constant 0 : index
    %c2_397 = arith.constant 2 : index
    %c0_398 = arith.constant 0 : index
    %362 = tpu.strided_load %arg12[%c0_396, %c2_397, %c0_398] {strides = array<i32: 1, 2, 1>} : memref<2x258x128xf32, #tpu.memory_space<vmem>>, vector<2x1x128xf32>
    %c0_399 = arith.constant 0 : index
    %c3_400 = arith.constant 3 : index
    %c0_401 = arith.constant 0 : index
    %363 = tpu.strided_load %arg12[%c0_399, %c3_400, %c0_401] {strides = array<i32: 1, 2, 1>} : memref<2x258x128xf32, #tpu.memory_space<vmem>>, vector<2x1x128xf32>
    %c0_402 = arith.constant 0 : index
    %c4_403 = arith.constant 4 : index
    %c0_404 = arith.constant 0 : index
    %364 = tpu.strided_load %arg12[%c0_402, %c4_403, %c0_404] {strides = array<i32: 1, 2, 1>} : memref<2x258x128xf32, #tpu.memory_space<vmem>>, vector<2x1x128xf32>
    %365 = tpu.concatenate %361, %362, %363, %364 in 2 : vector<2x1x128xf32>, vector<2x1x128xf32>, vector<2x1x128xf32>, vector<2x1x128xf32> -> vector<2x1x512xf32>
    %366 = vector.shape_cast %365 : vector<2x1x512xf32> to vector<2x512xf32>
    %367 = arith.truncf %366 : vector<2x512xf32> to vector<2x512xbf16>
    %cst_405 = arith.constant dense<0.000000e+00> : vector<2x128xf32>
    %368 = tpu.matmul %367, %354, %cst_405 {dimension_numbers = #tpu.dot_dimension_numbers<[1], [0], [0], [1], [0, 0, 1, 1], [], []>} : vector<2x512xbf16>, vector<512x128xbf16>, vector<2x128xf32> -> vector<2x128xf32>
    %369 = vector.broadcast %356 : vector<1x128xf32> to vector<2x128xf32>
    %370 = arith.addf %368, %369 : vector<2x128xf32>
    %371 = vector.shape_cast %370 : vector<2x128xf32> to vector<2x1x128xf32>
    %c5_406 = arith.constant 5 : index
    %c0_407 = arith.constant 0 : index
    %c0_408 = arith.constant 0 : index
    %372 = vector.load %arg4[%c5_406, %c0_407, %c0_408] : memref<6x2x128xf32, #tpu.memory_space<vmem>>, vector<1x2x128xf32>
    %373 = vector.shape_cast %372 : vector<1x2x128xf32> to vector<2x128xf32>
    %374 = vector.extract_strided_slice %373 {offsets = [0, 0], sizes = [1, 128], strides = [1, 1]} : vector<2x128xf32> to vector<1x128xf32>
    %375 = vector.shape_cast %374 : vector<1x128xf32> to vector<1x1x128xf32>
    %376 = vector.broadcast %375 : vector<1x1x128xf32> to vector<2x4x128xf32>
    %377 = arith.mulf %352, %376 : vector<2x4x128xf32>
    %378 = vector.extract_strided_slice %373 {offsets = [1, 0], sizes = [1, 128], strides = [1, 1]} : vector<2x128xf32> to vector<1x128xf32>
    %379 = vector.shape_cast %378 : vector<1x128xf32> to vector<1x1x128xf32>
    %380 = vector.broadcast %379 : vector<1x1x128xf32> to vector<2x4x128xf32>
    %381 = arith.addf %377, %380 : vector<2x4x128xf32>
    %cst_409 = arith.constant 0.000000e+00 : f32
    %382 = vector.broadcast %cst_409 : f32 to vector<2x4x128xf32>
    %383 = arith.maximumf %381, %382 : vector<2x4x128xf32>
    %384 = vector.shape_cast %383 : vector<2x4x128xf32> to vector<8x128xf32>
    %385 = arith.truncf %384 : vector<8x128xf32> to vector<8x128xbf16>
    %c5_410 = arith.constant 5 : index
    %c0_411 = arith.constant 0 : index
    %c0_412 = arith.constant 0 : index
    %386 = vector.load %arg5[%c5_410, %c0_411, %c0_412] : memref<6x128x128xbf16, #tpu.memory_space<vmem>>, vector<1x128x128xbf16>
    %387 = vector.shape_cast %386 : vector<1x128x128xbf16> to vector<128x128xbf16>
    %cst_413 = arith.constant dense<0.000000e+00> : vector<8x128xf32>
    %388 = tpu.matmul %385, %387, %cst_413 {dimension_numbers = #tpu.dot_dimension_numbers<[1], [0], [0], [1], [0, 0, 1, 1], [], []>} : vector<8x128xbf16>, vector<128x128xbf16>, vector<8x128xf32> -> vector<8x128xf32>
    %c5_414 = arith.constant 5 : index
    %c0_415 = arith.constant 0 : index
    %c0_416 = arith.constant 0 : index
    %389 = vector.load %arg6[%c5_414, %c0_415, %c0_416] : memref<6x1x128xf32, #tpu.memory_space<vmem>>, vector<1x1x128xf32>
    %390 = vector.shape_cast %389 : vector<1x1x128xf32> to vector<1x128xf32>
    %391 = vector.broadcast %390 : vector<1x128xf32> to vector<8x128xf32>
    %392 = arith.addf %388, %391 : vector<8x128xf32>
    %cst_417 = arith.constant 0.000000e+00 : f32
    %393 = vector.broadcast %cst_417 : f32 to vector<8x128xf32>
    %394 = arith.maximumf %392, %393 : vector<8x128xf32>
    %395 = vector.shape_cast %394 : vector<8x128xf32> to vector<2x4x128xf32>
    %c5_418 = arith.constant 5 : index
    %c0_419 = arith.constant 0 : index
    %c0_420 = arith.constant 0 : index
    %396 = vector.load %arg7[%c5_418, %c0_419, %c0_420] : memref<6x512x128xbf16, #tpu.memory_space<vmem>>, vector<1x512x128xbf16>
    %397 = vector.shape_cast %396 : vector<1x512x128xbf16> to vector<512x128xbf16>
    %c5_421 = arith.constant 5 : index
    %c0_422 = arith.constant 0 : index
    %c0_423 = arith.constant 0 : index
    %398 = vector.load %arg8[%c5_421, %c0_422, %c0_423] : memref<6x1x128xf32, #tpu.memory_space<vmem>>, vector<1x1x128xf32>
    %399 = vector.shape_cast %398 : vector<1x1x128xf32> to vector<1x128xf32>
    %cst_424 = arith.constant 0.000000e+00 : f32
    %400 = vector.broadcast %cst_424 : f32 to vector<2x1x128xf32>
    %c0_425 = arith.constant 0 : index
    %c0_426 = arith.constant 0 : index
    %c0_427 = arith.constant 0 : index
    %401 = vector.load %arg12[%c0_425, %c0_426, %c0_427] : memref<2x258x128xf32, #tpu.memory_space<vmem>>, vector<2x1x128xf32>
    tpu.vector_store %arg12[%c0_425, %c0_426, %c0_427], %400 {strides = array<i32>} : memref<2x258x128xf32, #tpu.memory_space<vmem>>, vector<2x1x128xf32>,
    %c0_428 = arith.constant 0 : index
    %c5_429 = arith.constant 5 : index
    %c0_430 = arith.constant 0 : index
    %402 = vector.load %arg12[%c0_428, %c5_429, %c0_430] : memref<2x258x128xf32, #tpu.memory_space<vmem>>, vector<2x1x128xf32>
    tpu.vector_store %arg12[%c0_428, %c5_429, %c0_430], %400 {strides = array<i32>} : memref<2x258x128xf32, #tpu.memory_space<vmem>>, vector<2x1x128xf32>,
    %c0_431 = arith.constant 0 : index
    %c1_432 = arith.constant 1 : index
    %c0_433 = arith.constant 0 : index
    %403 = vector.load %arg12[%c0_431, %c1_432, %c0_433] : memref<2x258x128xf32, #tpu.memory_space<vmem>>, vector<2x4x128xf32>
    tpu.vector_store %arg12[%c0_431, %c1_432, %c0_433], %395 {strides = array<i32>} : memref<2x258x128xf32, #tpu.memory_space<vmem>>, vector<2x4x128xf32>,
    %c0_434 = arith.constant 0 : index
    %c1_435 = arith.constant 1 : index
    %c0_436 = arith.constant 0 : index
    %404 = tpu.strided_load %arg12[%c0_434, %c1_435, %c0_436] {strides = array<i32: 1, 2, 1>} : memref<2x258x128xf32, #tpu.memory_space<vmem>>, vector<2x1x128xf32>
    %c0_437 = arith.constant 0 : index
    %c2_438 = arith.constant 2 : index
    %c0_439 = arith.constant 0 : index
    %405 = tpu.strided_load %arg12[%c0_437, %c2_438, %c0_439] {strides = array<i32: 1, 2, 1>} : memref<2x258x128xf32, #tpu.memory_space<vmem>>, vector<2x1x128xf32>
    %c0_440 = arith.constant 0 : index
    %c3_441 = arith.constant 3 : index
    %c0_442 = arith.constant 0 : index
    %406 = tpu.strided_load %arg12[%c0_440, %c3_441, %c0_442] {strides = array<i32: 1, 2, 1>} : memref<2x258x128xf32, #tpu.memory_space<vmem>>, vector<2x1x128xf32>
    %c0_443 = arith.constant 0 : index
    %c4_444 = arith.constant 4 : index
    %c0_445 = arith.constant 0 : index
    %407 = tpu.strided_load %arg12[%c0_443, %c4_444, %c0_445] {strides = array<i32: 1, 2, 1>} : memref<2x258x128xf32, #tpu.memory_space<vmem>>, vector<2x1x128xf32>
    %408 = tpu.concatenate %404, %405, %406, %407 in 2 : vector<2x1x128xf32>, vector<2x1x128xf32>, vector<2x1x128xf32>, vector<2x1x128xf32> -> vector<2x1x512xf32>
    %409 = vector.shape_cast %408 : vector<2x1x512xf32> to vector<2x512xf32>
    %410 = arith.truncf %409 : vector<2x512xf32> to vector<2x512xbf16>
    %cst_446 = arith.constant dense<0.000000e+00> : vector<2x128xf32>
    %411 = tpu.matmul %410, %397, %cst_446 {dimension_numbers = #tpu.dot_dimension_numbers<[1], [0], [0], [1], [0, 0, 1, 1], [], []>} : vector<2x512xbf16>, vector<512x128xbf16>, vector<2x128xf32> -> vector<2x128xf32>
    %412 = vector.broadcast %399 : vector<1x128xf32> to vector<2x128xf32>
    %413 = arith.addf %411, %412 : vector<2x128xf32>
    %414 = vector.shape_cast %413 : vector<2x128xf32> to vector<2x1x128xf32>
    %cst_447 = arith.constant 1.000000e+00 : f32
    %415 = vector.broadcast %cst_447 : f32 to vector<2x1x128xf32>
    %416 = arith.mulf %415, %371 : vector<2x1x128xf32>
    %cst_448 = arith.constant 1.000000e+00 : f32
    %417 = vector.broadcast %cst_448 : f32 to vector<2x1x128xf32>
    %418 = arith.mulf %417, %414 : vector<2x1x128xf32>
    %419 = arith.addf %416, %418 : vector<2x1x128xf32>
    %c0_449 = arith.constant 0 : index
    %c0_450 = arith.constant 0 : index
    %c0_451 = arith.constant 0 : index
    %420 = vector.load %arg11[%c0_449, %c0_450, %c0_451] : memref<2x1x128xf32, #tpu.memory_space<vmem>>, vector<2x1x128xf32>
    tpu.vector_store %arg11[%c0_449, %c0_450, %c0_451], %419 {strides = array<i32>} : memref<2x1x128xf32, #tpu.memory_space<vmem>>, vector<2x1x128xf32>,
    return
  }
  func.func @transform_0(%arg0: i32) -> (i32, i32, i32) {
    %c0_i32 = arith.constant 0 : i32
    %c0_i32_0 = arith.constant 0 : i32
    %c0_i32_1 = arith.constant 0 : i32
    return %arg0, %c0_i32, %c0_i32_0 : i32, i32, i32
  }
  func.func @transform_1(%arg0: i32) -> (i32, i32) {
    %c0_i32 = arith.constant 0 : i32
    %c0_i32_0 = arith.constant 0 : i32
    %c0_i32_1 = arith.constant 0 : i32
    return %c0_i32, %c0_i32_0 : i32, i32
  }
  func.func @transform_2(%arg0: i32) -> (i32, i32) {
    %c0_i32 = arith.constant 0 : i32
    %c0_i32_0 = arith.constant 0 : i32
    %c0_i32_1 = arith.constant 0 : i32
    return %c0_i32, %c0_i32_0 : i32, i32
  }
  func.func @transform_3(%arg0: i32) -> (i32, i32, i32) {
    %c0_i32 = arith.constant 0 : i32
    %c0_i32_0 = arith.constant 0 : i32
    %c0_i32_1 = arith.constant 0 : i32
    %c0_i32_2 = arith.constant 0 : i32
    return %c0_i32, %c0_i32_0, %c0_i32_1 : i32, i32, i32
  }
  func.func @transform_4(%arg0: i32) -> (i32, i32, i32) {
    %c0_i32 = arith.constant 0 : i32
    %c0_i32_0 = arith.constant 0 : i32
    %c0_i32_1 = arith.constant 0 : i32
    %c0_i32_2 = arith.constant 0 : i32
    return %c0_i32, %c0_i32_0, %c0_i32_1 : i32, i32, i32
  }
  func.func @transform_5(%arg0: i32) -> (i32, i32, i32) {
    %c0_i32 = arith.constant 0 : i32
    %c0_i32_0 = arith.constant 0 : i32
    %c0_i32_1 = arith.constant 0 : i32
    %c0_i32_2 = arith.constant 0 : i32
    return %c0_i32, %c0_i32_0, %c0_i32_1 : i32, i32, i32
  }
  func.func @transform_6(%arg0: i32) -> (i32, i32, i32) {
    %c0_i32 = arith.constant 0 : i32
    %c0_i32_0 = arith.constant 0 : i32
    %c0_i32_1 = arith.constant 0 : i32
    %c0_i32_2 = arith.constant 0 : i32
    return %c0_i32, %c0_i32_0, %c0_i32_1 : i32, i32, i32
  }
  func.func @transform_7(%arg0: i32) -> (i32, i32, i32) {
    %c0_i32 = arith.constant 0 : i32
    %c0_i32_0 = arith.constant 0 : i32
    %c0_i32_1 = arith.constant 0 : i32
    %c0_i32_2 = arith.constant 0 : i32
    return %c0_i32, %c0_i32_0, %c0_i32_1 : i32, i32, i32
  }
  func.func @transform_8(%arg0: i32) -> (i32, i32, i32) {
    %c0_i32 = arith.constant 0 : i32
    %c0_i32_0 = arith.constant 0 : i32
    %c0_i32_1 = arith.constant 0 : i32
    %c0_i32_2 = arith.constant 0 : i32
    return %c0_i32, %c0_i32_0, %c0_i32_1 : i32, i32, i32
  }
  func.func @transform_9(%arg0: i32) -> (i32, i32, i32) {
    %c0_i32 = arith.constant 0 : i32
    %c0_i32_0 = arith.constant 0 : i32
    %c0_i32_1 = arith.constant 0 : i32
    %c0_i32_2 = arith.constant 0 : i32
    return %c0_i32, %c0_i32_0, %c0_i32_1 : i32, i32, i32
  }
  func.func @transform_10(%arg0: i32) -> (i32, i32, i32) {
    %c0_i32 = arith.constant 0 : i32
    %c0_i32_0 = arith.constant 0 : i32
    %c0_i32_1 = arith.constant 0 : i32
    return %arg0, %c0_i32, %c0_i32_0 : i32, i32, i32
  }
}

</mosaic_0001>

<bundles_post_ra>
// kernel: feature_extractor_text.1
= control target key start
LH: loop header
LB: loop body
LE: loop exit
PB: predicated region body
PF: predicated region fallthrough
CT: control target
= control target key end

     0   :  { %15 = vsyncpa [#allocation4], 0  ;;  %s13076_s0 = inlined_call_operand.vmem [shape: f32[4,256,128], index: 0, kind: input, shape index: {}]   ;;  %s13077_s1 = inlined_call_operand.hbm [shape: bf16[512,128], index: 1, kind: input, shape index: {}]   ;;  %s13078_s2 = inlined_call_operand.vmem [shape: f32[1,128], index: 2, kind: input, shape index: {}]   ;;  %s13079_s3 = inlined_call_operand.vmem [shape: f32[6,2,128], index: 3, kind: input, shape index: {}]   ;;  %s13080_s4 = inlined_call_operand.hbm [shape: bf16[6,128,128], index: 4, kind: input, shape index: {}]   ;;  %s13081_s5 = inlined_call_operand.vmem [shape: f32[6,1,128], index: 5, kind: input, shape index: {}]   ;;  %s13082_s6 = inlined_call_operand.vmem [shape: bf16[6,512,128], index: 6, kind: input, shape index: {}]   ;;  %s13083_s7 = inlined_call_operand.vmem [shape: f32[6,1,128], index: 7, kind: input, shape index: {}]   ;;  %s13084_s8 = inlined_call_operand.vmem [shape: bf16[6,512,128], index: 8, kind: input, shape index: {}]   ;;  %s13085_s9 = inlined_call_operand.vmem [shape: f32[6,1,128], index: 9, kind: input, shape index: {}]   ;;  %s13086_s10 = inlined_call_operand.vmem [shape: f32[4,1,128], index: 10, kind: output, shape index: {}]  }
   0x1   :  { %16 = vsyncpa [#allocation6], 0  ;;  %s11116_s13 = smov 0  }
   0x2 LB: > { %s8056_s14 = sadd.s32 4294967295, %s11052_s13   ;;  %p8058_p0 = scmp.ge.s32.totalorder %s11052_s13, 1  ;;  %s11052_s13 = sphi %s11116_s13, %s22_s13  }
   0x3   : > { %p268_p1 = scmp.lt.s32.totalorder %s11052_s13, 3  ;;  %s11054_s15 = smov [#allocation3]  }
   0x4   : > { %s280_s16 = sshll.u32 %s11054_s15, 4  ;;  %p11130_p3 = scmp.eq.s32.totalorder %s8056_s14, 0  ;;  %s281_s16 = int_to_ptr.vmem [resolvable:$true] %s280_s16 }
   0x5   : > { %p11124_p2 = pnand %p8058_p0, %p268_p1  ;;  %s11055_s19 = smov [#allocation5]  }
   0x6   : > { %s13091_s18 = scalar_select %p11130_p3, 1, 0 }
   0x7   : > { %s13090_s17 = scalar_select %p11124_p2, 1, 0 }
   0x8   : > { %p10491_p4 = pneg %p11124_p2  ;;  %s299_s20 = sshll.u32 %s11055_s19, 4  ;;  %s11142_s20 = int_to_ptr.vmem [resolvable:$true] %s299_s20 }
   0x9   : > { %s10982_s24 = scalar_lea.hbm %s13077_s1, 4096 }
   0xa   : > { %p11138_p5 = pnand %p11130_p3, %p10491_p4  ;;  %p10983_p6 = scmp.ne.s32.totalorder %s13077_s1, %s10982_s24 }
   0xb   : > { %p10989_p10 = scmp.lt.u32.totalorder %s10982_s24, %s13077_s1 }
   0xc   : > { %p10984_p7 = pneg %p11138_p5 }
   0xe   : > { %p10985_p8 = pnand %p10984_p7, %p10983_p6 }
  0x10   : > { %p10986_p9 = pneg %p10985_p8 }
  0x12   : > { %p10991_p11 = pnand %p10989_p10, %p10986_p9 }
  0x14   : > { %10994 = shalt.err (!%p10991_p11)
}
  0x15   : > { %s10995_s29 = scalar_lea.vmem %s281_s16, 4096  ;;  %p11003_p1 = scmp.lt.s32.totalorder %s281_s16, %s281_s16 }
  0x16   : > { %p10996_p12 = scmp.ne.s32.totalorder %s281_s16, %s10995_s29  ;;  %p11004_p4 = scmp.lt.s32.totalorder %s10995_s29, %s10995_s29 }
  0x18   : > { %p10998_p13 = pnand %p10996_p12, %p10984_p7  ;;  %p11005_p3 = por %p11004_p4, %p11003_p1 }
  0x1a   : > { %p10999_p0 = pneg %p10998_p13 }
  0x1c   : > { %p11006_p2 = pnand %p11005_p3, %p10999_p0 }
  0x1e   : > { %11009 = shalt.err (!%p11006_p2)
}
  0x1f   : > { %s11056_s30 = smov 64   ;;  %s11057_s11 = smov 4  }
  0x20   : > { %10494 = dma.hbm_to_vmem [thread:$0]  (!%p11138_p5), %s13077_s1, 4096, %s281_s16, [#allocation4], %s11056_s30, %s11056_s30, %s11057_s11  }
  0x21   : > { %s11010_s23 = scalar_lea.hbm %s13080_s4, 6144 }
  0x22   : > { %p11011_p6 = scmp.ne.s32.totalorder %s13080_s4, %s11010_s23  ;;  %p11017_p8 = scmp.lt.u32.totalorder %s11010_s23, %s13080_s4 }
  0x24   : > { %p11013_p2 = pnand %p11011_p6, %p10984_p7 }
  0x26   : > { %p11014_p3 = pneg %p11013_p2 }
  0x28   : > { %p11019_p9 = pnand %p11017_p8, %p11014_p3 }
  0x2a   : > { %11022 = shalt.err (!%p11019_p9)
}
  0x2b   : > { %s11023_s16 = scalar_lea.vmem %s11142_s20, 6144  ;;  %p11031_p13 = scmp.lt.s32.totalorder %s11142_s20, %s11142_s20 }
  0x2c   : > { %p11024_p10 = scmp.ne.s32.totalorder %s11142_s20, %s11023_s16  ;;  %p11032_p0 = scmp.lt.s32.totalorder %s11023_s16, %s11023_s16 }
  0x2e   : > { %p11026_p11 = pnand %p11024_p10, %p10984_p7  ;;  %p11033_p1 = por %p11032_p0, %p11031_p13 }
  0x30   : > { %p11027_p12 = pneg %p11026_p11 }
  0x32   : > { %p11034_p4 = pnand %p11033_p1, %p11027_p12 }
  0x34   : > { %11037 = shalt.err (!%p11034_p4)
}
  0x35   : > { %10497 = dma.hbm_to_vmem [thread:$0]  (!%p11138_p5), %s13080_s4, 6144, %s11142_s20, [#allocation6], %s11056_s30, %s11056_s30, %s11057_s11  }
  0x36   : > { %p13093_p6 = scmp.ne.s32.totalorder %s13090_s17, 0 }
  0x37   : > { %p13094_p2 = scmp.ne.s32.totalorder (!%p13093_p6), %s13091_s18, 0 }
  0x38   : > { %340 = sbr.rel (%p13093_p6) target bundleno = 3432 (0xd68), region = 60 }
  0x3f   : > { %11043 = dma.done.wait (%p13094_p2), [#allocation4], 4096  }
  0x40   : > { %11045 = vsyncadd (%p13094_p2), [#allocation4], 4294963200 }
  0x41   : > { %11047 = dma.done.wait (%p13094_p2), [#allocation6], 6144  }
  0x42   : > { %11049 = vsyncadd (%p13094_p2), [#allocation6], 4294961152  ;;  %v11058_v0 = vmov 0.0   ;;  %v10517_v1 = vld [vmem:[#allocation3 + $0x40] sm:$0xff]   ;;  %v10521_v5 = vld [vmem:[#allocation3 + $0x48] sm:$0xff]   ;;  %s8065_s17 = sshll.u32 %s8056_s14, 1 }
  0x43   : > { %524 = vst [vmem:[#allocation2] sm:$0x1] %v11058_v0  ;;  %525 = vst [vmem:[#allocation2 + $0x108] sm:$0x1] %v11058_v0  ;;  %v10518_v2 = vld [vmem:[#allocation3 + $0xc0] sm:$0xff]   ;;  %9223 = vmatprep.subr.bf16.mxu0 %v10517_v1  ;;  %v10522_v6 = vld [vmem:[#allocation3 + $0xc8] sm:$0xff]  }
  0x44   : > { %526 = vst [vmem:[#allocation2 + $0x101] sm:$0x1] %v11058_v0  ;;  %527 = vst [vmem:[#allocation2 + $0x209] sm:$0x1] %v11058_v0  ;;  %v10519_v3 = vld [vmem:[#allocation3] sm:$0xff]   ;;  %9335 = vmatprep.subr.bf16.mxu1 %v10518_v2  ;;  %v10523_v7 = vld [vmem:[#allocation3 + $0x8] sm:$0xff]  }
  0x45   : > { %v10520_v4 = vld [vmem:[#allocation3 + $0x80] sm:$0xff]   ;;  %9224 = vmatpush3.bf16.msra.mxu0 %v10519_v3  ;;  %v10524_v8 = vld [vmem:[#allocation3 + $0x88] sm:$0xff]   ;;  %v10525_v9 = vld [vmem:[#allocation3 + $0x50] sm:$0xff]   ;;  %p383_p5 = scmp.lt.s32.totalorder %s8065_s17, 3  ;;  %vm11059_vm0 = vmmov 0   ;;  %vm7105_vm1 = vcmask 1041409  }
  0x46   : > { %9336 = vmatpush3.bf16.msra.mxu1 %v10520_v4  ;;  %9225 = vmatprep.subr.bf16.mxu0 %v10521_v5  ;;  %v10526_v10 = vld [vmem:[#allocation3 + $0xd0] sm:$0xff]   ;;  %v10529_v13 = vld [vmem:[#allocation3 + $0x58] sm:$0xff]   ;;  %v10533_v17 = vld [vmem:[#allocation3 + $0x60] sm:$0xff]  }
  0x47   : > { %9337 = vmatprep.subr.bf16.mxu1 %v10522_v6  ;;  %v10527_v11 = vld [vmem:[#allocation3 + $0x10] sm:$0xff]   ;;  %v10530_v14 = vld [vmem:[#allocation3 + $0xd8] sm:$0xff]   ;;  %v10534_v18 = vld [vmem:[#allocation3 + $0xe0] sm:$0xff]   ;;  %s13096_s17 = smov (!%p383_p5, %s8065_s17), 3 }
  0x48   : > { %v10528_v12 = vld [vmem:[#allocation3 + $0x90] sm:$0xff]   ;;  %v10531_v15 = vld [vmem:[#allocation3 + $0x18] sm:$0xff]   ;;  %v10535_v19 = vld [vmem:[#allocation3 + $0x20] sm:$0xff]   ;;  %s9222_s14 = sshll.u32 %s13096_s17, 8  ;;  %s392_s28 = scalar_lea.vmem %s13086_s10, %s13096_s17 }
  0x49   : > { %9226 = vmatpush3.bf16.msra.mxu0 %v10523_v7  ;;  %v10532_v16 = vld [vmem:[#allocation3 + $0x98] sm:$0xff]   ;;  %v10536_v20 = vld [vmem:[#allocation3 + $0xa0] sm:$0xff]   ;;  %v10537_v21 = vld [vmem:[#allocation3 + $0x68] sm:$0xff]   ;;  %s11213_s21 = scalar_lea.vmem %s13076_s0, %s9222_s14 }
  0x4a   : > { %9338 = vmatpush3.bf16.msra.mxu1 %v10524_v8  ;;  %9227 = vmatprep.subr.bf16.mxu0 %v10525_v9  ;;  %v10538_v22 = vld [vmem:[#allocation3 + $0xe8] sm:$0xff]   ;;  %v10541_v25 = vld [vmem:[#allocation3 + $0x70] sm:$0xff]   ;;  %v10545_v29 = vld [vmem:[#allocation3 + $0x78] sm:$0xff]  }
  0x4b   : > { %9339 = vmatprep.subr.bf16.mxu1 %v10526_v10  ;;  %v10539_v23 = vld [vmem:[#allocation3 + $0x28] sm:$0xff]   ;;  %v10542_v26 = vld [vmem:[#allocation3 + $0xf0] sm:$0xff]   ;;  %v10546_v30 = vld [vmem:[#allocation3 + $0xf8] sm:$0xff]  }
  0x4c   : > { %v10540_v24 = vld [vmem:[#allocation3 + $0xa8] sm:$0xff]   ;;  %v10543_v27 = vld [vmem:[#allocation3 + $0x30] sm:$0xff]   ;;  %v10547_v31 = vld [vmem:[#allocation3 + $0x38] sm:$0xff]  }
  0x4d   : > { %9228 = vmatpush3.bf16.msra.mxu0 %v10527_v11  ;;  %v10544_v28 = vld [vmem:[#allocation3 + $0xb0] sm:$0xff]   ;;  %v10548_v32 = vld [vmem:[#allocation3 + $0xb8] sm:$0xff]   ;;  %v397_v35 = vld [vmem:[%s11213_s21 + $0x10] sm:$0xff] }
  0x4e   : > { %9340 = vmatpush3.bf16.msra.mxu1 %v10528_v12  ;;  %9229 = vmatprep.subr.bf16.mxu0 %v10529_v13  ;;  %v395_v33 = vld [vmem:[%s11213_s21] sm:$0xff]  ;;  %v396_v34 = vld [vmem:[%s11213_s21 + $0x8] sm:$0xff]  ;;  %v398_v36 = vld [vmem:[%s11213_s21 + $0x18] sm:$0xff]  ;;  %530 = vst [vmem:[#allocation2 + $0x11] sm:$0xff] %v397_v35 }
  0x4f   : > { %9341 = vmatprep.subr.bf16.mxu1 %v10530_v14  ;;  %528 = vst [vmem:[#allocation2 + $0x1] sm:$0xff] %v395_v33  ;;  %529 = vst [vmem:[#allocation2 + $0x9] sm:$0xff] %v396_v34  ;;  %v399_v37 = vld [vmem:[%s11213_s21 + $0x20] sm:$0xff]  ;;  %v400_v38 = vld [vmem:[%s11213_s21 + $0x28] sm:$0xff] }
  0x50   : > { %531 = vst [vmem:[#allocation2 + $0x19] sm:$0xff] %v398_v36  ;;  %532 = vst [vmem:[#allocation2 + $0x21] sm:$0xff] %v399_v37  ;;  %v401_v39 = vld [vmem:[%s11213_s21 + $0x30] sm:$0xff]  ;;  %v402_v40 = vld [vmem:[%s11213_s21 + $0x38] sm:$0xff] }
  0x51   : > { %9230 = vmatpush3.bf16.msra.mxu0 %v10531_v15  ;;  %533 = vst [vmem:[#allocation2 + $0x29] sm:$0xff] %v400_v38  ;;  %v403_v41 = vld [vmem:[%s11213_s21 + $0x40] sm:$0xff]  ;;  %534 = vst [vmem:[#allocation2 + $0x31] sm:$0xff] %v401_v39  ;;  %v404_v42 = vld [vmem:[%s11213_s21 + $0x48] sm:$0xff] }
  0x52   : > { %9342 = vmatpush3.bf16.msra.mxu1 %v10532_v16  ;;  %9231 = vmatprep.subr.bf16.mxu0 %v10533_v17  ;;  %535 = vst [vmem:[#allocation2 + $0x39] sm:$0xff] %v402_v40  ;;  %536 = vst [vmem:[#allocation2 + $0x41] sm:$0xff] %v403_v41  ;;  %v405_v43 = vld [vmem:[%s11213_s21 + $0x50] sm:$0xff]  ;;  %v406_v44 = vld [vmem:[%s11213_s21 + $0x58] sm:$0xff] }
  0x53   : > { %9343 = vmatprep.subr.bf16.mxu1 %v10534_v18  ;;  %537 = vst [vmem:[#allocation2 + $0x49] sm:$0xff] %v404_v42  ;;  %538 = vst [vmem:[#allocation2 + $0x51] sm:$0xff] %v405_v43  ;;  %v407_v45 = vld [vmem:[%s11213_s21 + $0x60] sm:$0xff]  ;;  %v408_v46 = vld [vmem:[%s11213_s21 + $0x68] sm:$0xff] }
  0x54   : > { %539 = vst [vmem:[#allocation2 + $0x59] sm:$0xff] %v406_v44  ;;  %v409_v47 = vld [vmem:[%s11213_s21 + $0x70] sm:$0xff]  ;;  %540 = vst [vmem:[#allocation2 + $0x61] sm:$0xff] %v407_v45  ;;  %v410_v48 = vld [vmem:[%s11213_s21 + $0x78] sm:$0xff] }
  0x55   : > { %9232 = vmatpush3.bf16.msra.mxu0 %v10535_v19  ;;  %541 = vst [vmem:[#allocation2 + $0x69] sm:$0xff] %v408_v46  ;;  %542 = vst [vmem:[#allocation2 + $0x71] sm:$0xff] %v409_v47  ;;  %v411_v49 = vld [vmem:[%s11213_s21 + $0x80] sm:$0xff]  ;;  %v412_v50 = vld [vmem:[%s11213_s21 + $0x88] sm:$0xff] }
  0x56   : > { %9344 = vmatpush3.bf16.msra.mxu1 %v10536_v20  ;;  %9233 = vmatprep.subr.bf16.mxu0 %v10537_v21  ;;  %543 = vst [vmem:[#allocation2 + $0x79] sm:$0xff] %v410_v48  ;;  %544 = vst [vmem:[#allocation2 + $0x81] sm:$0xff] %v411_v49  ;;  %v413_v51 = vld [vmem:[%s11213_s21 + $0x90] sm:$0xff]  ;;  %v414_v52 = vld [vmem:[%s11213_s21 + $0x98] sm:$0xff] }
  0x57   : > { %9345 = vmatprep.subr.bf16.mxu1 %v10538_v22  ;;  %545 = vst [vmem:[#allocation2 + $0x89] sm:$0xff] %v412_v50  ;;  %v415_v53 = vld [vmem:[%s11213_s21 + $0xa0] sm:$0xff]  ;;  %546 = vst [vmem:[#allocation2 + $0x91] sm:$0xff] %v413_v51  ;;  %v416_v54 = vld [vmem:[%s11213_s21 + $0xa8] sm:$0xff] }
  0x58   : > { %547 = vst [vmem:[#allocation2 + $0x99] sm:$0xff] %v414_v52  ;;  %548 = vst [vmem:[#allocation2 + $0xa1] sm:$0xff] %v415_v53  ;;  %v417_v55 = vld [vmem:[%s11213_s21 + $0xb0] sm:$0xff]  ;;  %v418_v56 = vld [vmem:[%s11213_s21 + $0xb8] sm:$0xff] }
  0x59   : > { %9234 = vmatpush3.bf16.msra.mxu0 %v10539_v23  ;;  %v592_v57 = vld [vmem:[#allocation2] ss:$2 sm:$0xff]  ;;  %v656_v58 = vld [vmem:[#allocation2 + $0x1] ss:$2 sm:$0xff]  ;;  %549 = vst [vmem:[#allocation2 + $0xa9] sm:$0xff] %v416_v54  ;;  %550 = vst [vmem:[#allocation2 + $0xb1] sm:$0xff] %v417_v55 }
  0x5a   : > { %9346 = vmatpush3.bf16.msra.mxu1 %v10540_v24  ;;  %9235 = vmatprep.subr.bf16.mxu0 %v10541_v25  ;;  %v784_v59 = vld [vmem:[#allocation2 + $0x3] ss:$2 sm:$0xff]  ;;  %551 = vst [vmem:[#allocation2 + $0xb9] sm:$0xff] %v418_v56  ;;  %v594_v60 = vld [vmem:[#allocation2 + $0x10] ss:$2 sm:$0xff] }
  0x5b   : > { %9347 = vmatprep.subr.bf16.mxu1 %v10542_v26  ;;  %v658_v61 = vld [vmem:[#allocation2 + $0x11] ss:$2 sm:$0xff]  ;;  %1496 = vst [vmem:[#allocation2] sm:$0x1] %v11058_v0  ;;  %v847_v2 = vpack.c.bf16 %v594_v60, %v592_v57  ;;  %v720_v3 = vld [vmem:[#allocation2 + $0x2] ss:$2 sm:$0xff] }
  0x5c   : > { %v786_v62 = vld [vmem:[#allocation2 + $0x13] ss:$2 sm:$0xff]  ;;  %v848_v63 = vpack.c.bf16 %v658_v61, %v656_v58  ;;  %v722_v4 = vld [vmem:[#allocation2 + $0x12] ss:$2 sm:$0xff]  ;;  %v788_v8 = vld [vmem:[#allocation2 + $0x23] ss:$2 sm:$0xff] }
  0x5d   : > { %9236 = vmatpush3.bf16.msra.mxu0 %v10543_v27  ;;  %v850_v1 = vpack.c.bf16 %v786_v62, %v784_v59  ;;  %v660_v5 = vld [vmem:[#allocation2 + $0x21] ss:$2 sm:$0xff]  ;;  %v849_v6 = vpack.c.bf16 %v722_v4, %v720_v3  ;;  %v662_v7 = vld [vmem:[#allocation2 + $0x31] ss:$2 sm:$0xff]  ;;  %v596_v12 = vld [vmem:[#allocation2 + $0x20] ss:$2 sm:$0xff] }
  0x5e   : > { %9348 = vmatpush3.bf16.msra.mxu1 %v10544_v28  ;;  %9237 = vmatprep.subr.bf16.mxu0 %v10545_v29  ;;  %v790_v9 = vld [vmem:[#allocation2 + $0x33] ss:$2 sm:$0xff]  ;;  %v852_v10 = vpack.c.bf16 %v662_v7, %v660_v5  ;;  %v598_v13 = vld [vmem:[#allocation2 + $0x30] ss:$2 sm:$0xff]  ;;  %v792_v18 = vld [vmem:[#allocation2 + $0x43] ss:$2 sm:$0xff] }
  0x5f   : > { %9349 = vmatprep.subr.bf16.mxu1 %v10546_v30  ;;  %1141 = vmatprep.mubr.bf16.mxu0 %v848_v63  ;;  %v854_v11 = vpack.c.bf16 %v790_v9, %v788_v8  ;;  %v724_v14 = vld [vmem:[#allocation2 + $0x22] ss:$2 sm:$0xff]  ;;  %v726_v15 = vld [vmem:[#allocation2 + $0x32] ss:$2 sm:$0xff]  ;;  %v664_v16 = vld [vmem:[#allocation2 + $0x41] ss:$2 sm:$0xff]  ;;  %v851_v20 = vpack.c.bf16 %v598_v13, %v596_v12 }
  0x60   : > { %1302 = vmatprep.mubr.bf16.mxu1 %v850_v1  ;;  %v666_v17 = vld [vmem:[#allocation2 + $0x51] ss:$2 sm:$0xff]  ;;  %v853_v21 = vpack.c.bf16 %v726_v15, %v724_v14  ;;  %v11240_v25 = vld [vmem:[#allocation2 + $0x81] ss:$2 sm:$0xff]  ;;  %v600_v26 = vld [vmem:[#allocation2 + $0x40] ss:$2 sm:$0xff] }
  0x61   : > { %9238 = vmatpush3.bf16.msra.mxu0 %v10547_v31  ;;  %v794_v19 = vld [vmem:[#allocation2 + $0x53] ss:$2 sm:$0xff]  ;;  %v856_v22 = vpack.c.bf16 %v666_v17, %v664_v16  ;;  %v602_v27 = vld [vmem:[#allocation2 + $0x50] ss:$2 sm:$0xff]  ;;  %v796_v33 = vld [vmem:[#allocation2 + $0x63] ss:$2 sm:$0xff] }
  0x62   : > { %9350 = vmatpush3.bf16.msra.mxu1 %v10548_v32  ;;  %v858_v23 = vpack.c.bf16 %v794_v19, %v792_v18  ;;  %v798_v24 = vld [vmem:[#allocation2 + $0x73] ss:$2 sm:$0xff]  ;;  %v728_v28 = vld [vmem:[#allocation2 + $0x42] ss:$2 sm:$0xff]  ;;  %v730_v29 = vld [vmem:[#allocation2 + $0x52] ss:$2 sm:$0xff]  ;;  %v855_v37 = vpack.c.bf16 %v602_v27, %v600_v26 }
  0x63   : > { %1498 = vst [vmem:[#allocation2 + $0x81] sm:$0x1] %v11058_v0  ;;  %v419_v30 = vld [vmem:[%s11213_s21 + $0xc0] sm:$0xff]  ;;  %v670_v32 = vld [vmem:[#allocation2 + $0x71] ss:$2 sm:$0xff]  ;;  %v420_v34 = vld [vmem:[%s11213_s21 + $0xc8] sm:$0xff]  ;;  %v857_v38 = vpack.c.bf16 %v730_v29, %v728_v28  ;;  %v862_v43 = vpack.c.bf16 %v798_v24, %v796_v33 }
  0x64   : > { %1142 = vmatmul.mubr.bf16.vlgmr.msra.gmra.mrb[0].mxu0 %v847_v2  ;;  %v668_v31 = vld [vmem:[#allocation2 + $0x61] ss:$2 sm:$0xff]  ;;  %552 = vst [vmem:[#allocation2 + $0xc1] sm:$0xff] %v419_v30  ;;  %v421_v35 = vld [vmem:[%s11213_s21 + $0xd0] sm:$0xff]  ;;  %v422_v36 = vld [vmem:[%s11213_s21 + $0xd8] sm:$0xff] }
  0x65   : > { %1303 = vmatmul.mubr.bf16.vlgmr.msra.gmra.mrb[0].mxu1 %v849_v6  ;;  %1149 = vmatprep.mubr.bf16.mxu0 %v852_v10  ;;  %553 = vst [vmem:[#allocation2 + $0xc9] sm:$0xff] %v420_v34  ;;  %554 = vst [vmem:[#allocation2 + $0xd1] sm:$0xff] %v421_v35  ;;  %v423_v39 = vld [vmem:[%s11213_s21 + $0xe0] sm:$0xff]  ;;  %v424_v40 = vld [vmem:[%s11213_s21 + $0xe8] sm:$0xff]  ;;  %v860_v42 = vpack.c.bf16 %v670_v32, %v668_v31 }
  0x66   : > { %1310 = vmatprep.mubr.bf16.mxu1 %v854_v11  ;;  %555 = vst [vmem:[#allocation2 + $0xd9] sm:$0xff] %v422_v36  ;;  %v425_v41 = vld [vmem:[%s11213_s21 + $0xf0] sm:$0xff]  ;;  %556 = vst [vmem:[#allocation2 + $0xe1] sm:$0xff] %v423_v39  ;;  %v426_v44 = vld [vmem:[%s11213_s21 + $0xf8] sm:$0xff] }
  0x67   : > { %557 = vst [vmem:[#allocation2 + $0xe9] sm:$0xff] %v424_v40  ;;  %558 = vst [vmem:[#allocation2 + $0xf1] sm:$0xff] %v425_v41  ;;  %v427_v45 = vld [vmem:[%s11213_s21 + $0x100] sm:$0xff]  ;;  %v428_v46 = vld [vmem:[%s11213_s21 + $0x108] sm:$0xff] }
  0x68   : > { %559 = vst [vmem:[#allocation2 + $0xf9] sm:$0xff] %v426_v44  ;;  %v429_v47 = vld [vmem:[%s11213_s21 + $0x110] sm:$0xff]  ;;  %v430_v48 = vld [vmem:[%s11213_s21 + $0x118] sm:$0xff]  ;;  %560 = vst [vmem:[#allocation2 + $0x109] sm:$0xff] %v427_v45 }
  0x69   : > { %561 = vst [vmem:[#allocation2 + $0x111] sm:$0xff] %v428_v46  ;;  %v431_v49 = vld [vmem:[%s11213_s21 + $0x120] sm:$0xff]  ;;  %v606_v51 = vld [vmem:[#allocation2 + $0x70] ss:$2 sm:$0xff]  ;;  %562 = vst [vmem:[#allocation2 + $0x119] sm:$0xff] %v429_v47 }
  0x6a   : > { %v604_v50 = vld [vmem:[#allocation2 + $0x60] ss:$2 sm:$0xff]  ;;  %563 = vst [vmem:[#allocation2 + $0x121] sm:$0xff] %v430_v48  ;;  %564 = vst [vmem:[#allocation2 + $0x129] sm:$0xff] %v431_v49  ;;  %v433_v55 = vld [vmem:[%s11213_s21 + $0x130] sm:$0xff] }
  0x6b   : > { %v732_v52 = vld [vmem:[#allocation2 + $0x62] ss:$2 sm:$0xff]  ;;  %v734_v53 = vld [vmem:[#allocation2 + $0x72] ss:$2 sm:$0xff]  ;;  %v674_v57 = vld [vmem:[#allocation2 + $0x91] ss:$2 sm:$0xff]  ;;  %v859_v5 = vpack.c.bf16 %v606_v51, %v604_v50 }
  0x6c   : > { %1150 = vmatmul.mubr.bf16.gmra.mrb[4].mxu0 %v851_v20  ;;  %v432_v54 = vld [vmem:[%s11213_s21 + $0x128] sm:$0xff]  ;;  %v434_v56 = vld [vmem:[%s11213_s21 + $0x138] sm:$0xff]  ;;  %566 = vst [vmem:[#allocation2 + $0x139] sm:$0xff] %v433_v55  ;;  %v435_v59 = vld [vmem:[%s11213_s21 + $0x140] sm:$0xff]  ;;  %v861_v6 = vpack.c.bf16 %v734_v53, %v732_v52  ;;  %v864_v7 = vpack.c.bf16 %v674_v57, %v11240_v25 }
  0x6d   : > { %1311 = vmatmul.mubr.bf16.gmra.mrb[4].mxu1 %v853_v21  ;;  %1157 = vmatprep.mubr.bf16.mxu0 %v856_v22  ;;  %v800_v58 = vld [vmem:[#allocation2 + $0x83] ss:$2 sm:$0xff]  ;;  %565 = vst [vmem:[#allocation2 + $0x131] sm:$0xff] %v432_v54  ;;  %567 = vst [vmem:[#allocation2 + $0x141] sm:$0xff] %v434_v56  ;;  %v802_v62 = vld [vmem:[#allocation2 + $0x93] ss:$2 sm:$0xff] }
  0x6e   : > { %1318 = vmatprep.mubr.bf16.mxu1 %v858_v23  ;;  %v436_v60 = vld [vmem:[%s11213_s21 + $0x148] sm:$0xff]  ;;  %v437_v61 = vld [vmem:[%s11213_s21 + $0x150] sm:$0xff]  ;;  %568 = vst [vmem:[#allocation2 + $0x149] sm:$0xff] %v435_v59  ;;  %v438_v63 = vld [vmem:[%s11213_s21 + $0x158] sm:$0xff]  ;;  %v866_v8 = vpack.c.bf16 %v802_v62, %v800_v58 }
  0x6f   : > { %569 = vst [vmem:[#allocation2 + $0x151] sm:$0xff] %v436_v60  ;;  %570 = vst [vmem:[#allocation2 + $0x159] sm:$0xff] %v437_v61  ;;  %v439_v1 = vld [vmem:[%s11213_s21 + $0x160] sm:$0xff]  ;;  %v440_v2 = vld [vmem:[%s11213_s21 + $0x168] sm:$0xff] }
  0x70   : > { %571 = vst [vmem:[#allocation2 + $0x161] sm:$0xff] %v438_v63  ;;  %572 = vst [vmem:[#allocation2 + $0x169] sm:$0xff] %v439_v1  ;;  %v441_v3 = vld [vmem:[%s11213_s21 + $0x170] sm:$0xff]  ;;  %v442_v4 = vld [vmem:[%s11213_s21 + $0x178] sm:$0xff] }
  0x71   : > { %573 = vst [vmem:[#allocation2 + $0x171] sm:$0xff] %v440_v2  ;;  %574 = vst [vmem:[#allocation2 + $0x179] sm:$0xff] %v441_v3  ;;  %v608_v9 = vld [vmem:[#allocation2 + $0x80] ss:$2 sm:$0xff]  ;;  %v610_v10 = vld [vmem:[#allocation2 + $0x90] ss:$2 sm:$0xff] }
  0x72   : > { %575 = vst [vmem:[#allocation2 + $0x181] sm:$0xff] %v442_v4  ;;  %v11268_v11 = vld [vmem:[#allocation2 + $0x108] ss:$2 sm:$0xff]  ;;  %v676_v14 = vld [vmem:[#allocation2 + $0xa1] ss:$2 sm:$0xff]  ;;  %v863_v18 = vpack.c.bf16 %v610_v10, %v608_v9  ;;  %v446_v33 = vld [vmem:[%s11213_s21 + $0x198] sm:$0xff] }
  0x73   : > { %v736_v12 = vld [vmem:[#allocation2 + $0x82] ss:$2 sm:$0xff]  ;;  %v738_v13 = vld [vmem:[#allocation2 + $0x92] ss:$2 sm:$0xff]  ;;  %1497 = vst [vmem:[#allocation2 + $0x108] sm:$0x1] %v11058_v0 }
  0x74   : > { %1158 = vmatmul.mubr.bf16.gmra.mrb[8].mxu0 %v855_v37  ;;  %v678_v15 = vld [vmem:[#allocation2 + $0xb1] ss:$2 sm:$0xff]  ;;  %v865_v19 = vpack.c.bf16 %v738_v13, %v736_v12  ;;  %v612_v22 = vld [vmem:[#allocation2 + $0xa0] ss:$2 sm:$0xff]  ;;  %v614_v23 = vld [vmem:[#allocation2 + $0xb0] ss:$2 sm:$0xff] }
  0x75   : > { %1319 = vmatmul.mubr.bf16.gmra.mrb[8].mxu1 %v857_v38  ;;  %1165 = vmatprep.mubr.bf16.mxu0 %v860_v42  ;;  %v804_v16 = vld [vmem:[#allocation2 + $0xa3] ss:$2 sm:$0xff]  ;;  %v806_v17 = vld [vmem:[#allocation2 + $0xb3] ss:$2 sm:$0xff]  ;;  %v868_v20 = vpack.c.bf16 %v678_v15, %v676_v14  ;;  %v740_v24 = vld [vmem:[#allocation2 + $0xa2] ss:$2 sm:$0xff]  ;;  %v867_v34 = vpack.c.bf16 %v614_v23, %v612_v22 }
  0x76   : > { %1326 = vmatprep.mubr.bf16.mxu1 %v862_v43  ;;  %v870_v21 = vpack.c.bf16 %v806_v17, %v804_v16  ;;  %v742_v25 = vld [vmem:[#allocation2 + $0xb2] ss:$2 sm:$0xff]  ;;  %v680_v26 = vld [vmem:[#allocation2 + $0xc1] ss:$2 sm:$0xff]  ;;  %v682_v28 = vld [vmem:[#allocation2 + $0xd1] ss:$2 sm:$0xff] }
  0x77   : > { %v443_v27 = vld [vmem:[%s11213_s21 + $0x180] sm:$0xff]  ;;  %v444_v31 = vld [vmem:[%s11213_s21 + $0x188] sm:$0xff]  ;;  %v445_v32 = vld [vmem:[%s11213_s21 + $0x190] sm:$0xff]  ;;  %v869_v35 = vpack.c.bf16 %v742_v25, %v740_v24  ;;  %579 = vst [vmem:[#allocation2 + $0x1a1] sm:$0xff] %v446_v33  ;;  %v872_v39 = vpack.c.bf16 %v682_v28, %v680_v26 }
  0x78   : > { %v808_v29 = vld [vmem:[#allocation2 + $0xc3] ss:$2 sm:$0xff]  ;;  %v810_v30 = vld [vmem:[#allocation2 + $0xd3] ss:$2 sm:$0xff]  ;;  %576 = vst [vmem:[#allocation2 + $0x189] sm:$0xff] %v443_v27  ;;  %577 = vst [vmem:[#allocation2 + $0x191] sm:$0xff] %v444_v31 }
  0x79   : > { %578 = vst [vmem:[#allocation2 + $0x199] sm:$0xff] %v445_v32  ;;  %v447_v36 = vld [vmem:[%s11213_s21 + $0x1a0] sm:$0xff]  ;;  %v448_v37 = vld [vmem:[%s11213_s21 + $0x1a8] sm:$0xff]  ;;  %v449_v38 = vld [vmem:[%s11213_s21 + $0x1b0] sm:$0xff]  ;;  %v874_v40 = vpack.c.bf16 %v810_v30, %v808_v29 }
  0x7a   : > { %580 = vst [vmem:[#allocation2 + $0x1a9] sm:$0xff] %v447_v36  ;;  %v450_v41 = vld [vmem:[%s11213_s21 + $0x1b8] sm:$0xff]  ;;  %581 = vst [vmem:[#allocation2 + $0x1b1] sm:$0xff] %v448_v37  ;;  %v451_v42 = vld [vmem:[%s11213_s21 + $0x1c0] sm:$0xff] }
  0x7b   : > { %582 = vst [vmem:[#allocation2 + $0x1b9] sm:$0xff] %v449_v38  ;;  %v452_v43 = vld [vmem:[%s11213_s21 + $0x1c8] sm:$0xff]  ;;  %583 = vst [vmem:[#allocation2 + $0x1c1] sm:$0xff] %v450_v41  ;;  %v453_v44 = vld [vmem:[%s11213_s21 + $0x1d0] sm:$0xff] }
  0x7c   : > { %1166 = vmatmul.mubr.bf16.gmra.mrb[12].mxu0 %v859_v5  ;;  %584 = vst [vmem:[#allocation2 + $0x1c9] sm:$0xff] %v451_v42  ;;  %v454_v45 = vld [vmem:[%s11213_s21 + $0x1d8] sm:$0xff]  ;;  %585 = vst [vmem:[#allocation2 + $0x1d1] sm:$0xff] %v452_v43  ;;  %v455_v46 = vld [vmem:[%s11213_s21 + $0x1e0] sm:$0xff] }
  0x7d   : > { %1327 = vmatmul.mubr.bf16.gmra.mrb[12].mxu1 %v861_v6  ;;  %1173 = vmatprep.mubr.bf16.mxu0 %v864_v7  ;;  %v616_v47 = vld [vmem:[#allocation2 + $0xc0] ss:$2 sm:$0xff]  ;;  %v618_v48 = vld [vmem:[#allocation2 + $0xd0] ss:$2 sm:$0xff]  ;;  %586 = vst [vmem:[#allocation2 + $0x1d9] sm:$0xff] %v453_v44  ;;  %587 = vst [vmem:[#allocation2 + $0x1e1] sm:$0xff] %v454_v45 }
  0x7e   : > { %1334 = vmatprep.mubr.bf16.mxu1 %v866_v8  ;;  %v744_v49 = vld [vmem:[#allocation2 + $0xc2] ss:$2 sm:$0xff]  ;;  %v746_v50 = vld [vmem:[#allocation2 + $0xd2] ss:$2 sm:$0xff]  ;;  %588 = vst [vmem:[#allocation2 + $0x1e9] sm:$0xff] %v455_v46  ;;  %v871_v62 = vpack.c.bf16 %v618_v48, %v616_v47 }
  0x7f   : > { %v456_v51 = vld [vmem:[%s11213_s21 + $0x1e8] sm:$0xff]  ;;  %v457_v52 = vld [vmem:[%s11213_s21 + $0x1f0] sm:$0xff]  ;;  %v458_v53 = vld [vmem:[%s11213_s21 + $0x1f8] sm:$0xff]  ;;  %v873_v63 = vpack.c.bf16 %v746_v50, %v744_v49 }
  0x80   : > { %v684_v54 = vld [vmem:[#allocation2 + $0xe1] ss:$2 sm:$0xff]  ;;  %v686_v55 = vld [vmem:[#allocation2 + $0xf1] ss:$2 sm:$0xff]  ;;  %589 = vst [vmem:[#allocation2 + $0x1f1] sm:$0xff] %v456_v51  ;;  %590 = vst [vmem:[#allocation2 + $0x1f9] sm:$0xff] %v457_v52 }
  0x81   : > { %v812_v56 = vld [vmem:[#allocation2 + $0xe3] ss:$2 sm:$0xff]  ;;  %591 = vst [vmem:[#allocation2 + $0x201] sm:$0xff] %v458_v53  ;;  %v814_v58 = vld [vmem:[#allocation2 + $0xf3] ss:$2 sm:$0xff]  ;;  %v876_v1 = vpack.c.bf16 %v686_v55, %v684_v54 }
  0x82   : > { %v10549_v57 = vld [vmem:[%s13084_s8 + $0x40] sm:$0xff]   ;;  %v11295_v61 = vld [vmem:[#allocation2 + $0x189] ss:$2 sm:$0xff]  ;;  %v878_v2 = vpack.c.bf16 %v814_v58, %v812_v56  ;;  %v622_v4 = vld [vmem:[#allocation2 + $0xf0] ss:$2 sm:$0xff] }
  0x83   : > { %9447 = vmatprep.subr.bf16.mxu0 %v10549_v57  ;;  %v10550_v59 = vld [vmem:[%s13084_s8] sm:$0xff]   ;;  %v688_v7 = vld [vmem:[#allocation2 + $0x109] ss:$2 sm:$0xff]  ;;  %v628_v31 = vld [vmem:[#allocation2 + $0x128] ss:$2 sm:$0xff] }
  0x84   : > { %1174 = vmatmul.mubr.bf16.gmra.mrb[16].mxu0 %v863_v18  ;;  %v11293_v60 = vld [vmem:[#allocation2 + $0x17b] ss:$2 sm:$0xff]  ;;  %v620_v3 = vld [vmem:[#allocation2 + $0xe0] ss:$2 sm:$0xff]  ;;  %v816_v9 = vld [vmem:[#allocation2 + $0x10b] ss:$2 sm:$0xff] }
  0x85   : > { %1335 = vmatmul.mubr.bf16.gmra.mrb[16].mxu1 %v865_v19  ;;  %1181 = vmatprep.mubr.bf16.mxu0 %v868_v20  ;;  %1499 = vst [vmem:[#allocation2 + $0x189] sm:$0x1] %v11058_v0  ;;  %v748_v5 = vld [vmem:[#allocation2 + $0xe2] ss:$2 sm:$0xff]  ;;  %v750_v6 = vld [vmem:[#allocation2 + $0xf2] ss:$2 sm:$0xff]  ;;  %v875_v12 = vpack.c.bf16 %v622_v4, %v620_v3 }
  0x86   : > { %1342 = vmatprep.mubr.bf16.mxu1 %v870_v21  ;;  %9448 = vmatpush3.bf16.msra.mxu0 %v10550_v59  ;;  %v690_v8 = vld [vmem:[#allocation2 + $0x119] ss:$2 sm:$0xff]  ;;  %v877_v13 = vpack.c.bf16 %v750_v6, %v748_v5  ;;  %v10551_v16 = vld [vmem:[%s13084_s8 + $0x48] sm:$0xff]   ;;  %v626_v18 = vld [vmem:[#allocation2 + $0x118] ss:$2 sm:$0xff] }
  0x87   : > { %v818_v10 = vld [vmem:[#allocation2 + $0x11b] ss:$2 sm:$0xff]  ;;  %v880_v14 = vpack.c.bf16 %v690_v8, %v688_v7  ;;  %v752_v19 = vld [vmem:[#allocation2 + $0x10a] ss:$2 sm:$0xff]  ;;  %v754_v20 = vld [vmem:[#allocation2 + $0x11a] ss:$2 sm:$0xff]  ;;  %9449 = vmatprep.subr.bf16.mxu0 %v10551_v16  ;;  %v879_v27 = vpack.c.bf16 %v626_v18, %v11268_v11 }
  0x88   : > { %v882_v15 = vpack.c.bf16 %v818_v10, %v816_v9  ;;  %v10552_v17 = vld [vmem:[%s13084_s8 + $0x8] sm:$0xff]   ;;  %v10553_v21 = vld [vmem:[%s13084_s8 + $0x50] sm:$0xff]   ;;  %v694_v23 = vld [vmem:[#allocation2 + $0x139] ss:$2 sm:$0xff]  ;;  %v881_v28 = vpack.c.bf16 %v754_v20, %v752_v19 }
  0x89   : > { %v692_v22 = vld [vmem:[#allocation2 + $0x129] ss:$2 sm:$0xff]  ;;  %v630_v32 = vld [vmem:[#allocation2 + $0x138] ss:$2 sm:$0xff]  ;;  %v698_v36 = vld [vmem:[#allocation2 + $0x159] ss:$2 sm:$0xff] }
  0x8a   : > { %v820_v24 = vld [vmem:[#allocation2 + $0x12b] ss:$2 sm:$0xff]  ;;  %v822_v25 = vld [vmem:[#allocation2 + $0x13b] ss:$2 sm:$0xff]  ;;  %9450 = vmatpush3.bf16.msra.mxu0 %v10552_v17  ;;  %v884_v29 = vpack.c.bf16 %v694_v23, %v692_v22  ;;  %v756_v33 = vld [vmem:[#allocation2 + $0x12a] ss:$2 sm:$0xff] }
  0x8b   : > { %v10554_v26 = vld [vmem:[%s13084_s8 + $0x10] sm:$0xff]   ;;  %9451 = vmatprep.subr.bf16.mxu0 %v10553_v21  ;;  %v886_v30 = vpack.c.bf16 %v822_v25, %v820_v24  ;;  %v826_v38 = vld [vmem:[#allocation2 + $0x15b] ss:$2 sm:$0xff]  ;;  %v634_v43 = vld [vmem:[#allocation2 + $0x158] ss:$2 sm:$0xff] }
  0x8c   : > { %1182 = vmatmul.mubr.bf16.gmra.mrb[20].mxu0 %v867_v34  ;;  %v758_v34 = vld [vmem:[#allocation2 + $0x13a] ss:$2 sm:$0xff]  ;;  %v824_v37 = vld [vmem:[#allocation2 + $0x14b] ss:$2 sm:$0xff]  ;;  %v760_v44 = vld [vmem:[#allocation2 + $0x14a] ss:$2 sm:$0xff] }
  0x8d   : > { %1343 = vmatmul.mubr.bf16.gmra.mrb[20].mxu1 %v869_v35  ;;  %1189 = vmatprep.mubr.bf16.mxu0 %v872_v39  ;;  %v696_v35 = vld [vmem:[#allocation2 + $0x149] ss:$2 sm:$0xff]  ;;  %v883_v39 = vpack.c.bf16 %v630_v32, %v628_v31  ;;  %v890_v11 = vpack.c.bf16 %v826_v38, %v824_v37  ;;  %v632_v42 = vld [vmem:[#allocation2 + $0x148] ss:$2 sm:$0xff]  ;;  %v702_v47 = vld [vmem:[#allocation2 + $0x179] ss:$2 sm:$0xff] }
  0x8e   : > { %1350 = vmatprep.mubr.bf16.mxu1 %v874_v40  ;;  %9452 = vmatpush3.bf16.msra.mxu0 %v10554_v26  ;;  %v885_v40 = vpack.c.bf16 %v758_v34, %v756_v33  ;;  %v888_v41 = vpack.c.bf16 %v698_v36, %v696_v35  ;;  %v762_v45 = vld [vmem:[#allocation2 + $0x15a] ss:$2 sm:$0xff]  ;;  %v700_v46 = vld [vmem:[#allocation2 + $0x169] ss:$2 sm:$0xff]  ;;  %v887_v49 = vpack.c.bf16 %v634_v43, %v632_v42  ;;  %v764_v55 = vld [vmem:[#allocation2 + $0x16a] ss:$2 sm:$0xff] }
  0x8f   : > { %v828_v48 = vld [vmem:[#allocation2 + $0x16b] ss:$2 sm:$0xff]  ;;  %v889_v50 = vpack.c.bf16 %v762_v45, %v760_v44  ;;  %v892_v51 = vpack.c.bf16 %v702_v47, %v700_v46  ;;  %v636_v53 = vld [vmem:[#allocation2 + $0x168] ss:$2 sm:$0xff]  ;;  %v638_v54 = vld [vmem:[#allocation2 + $0x178] ss:$2 sm:$0xff] }
  0x90   : > { %v894_v52 = vpack.c.bf16 %v11293_v60, %v828_v48  ;;  %v766_v56 = vld [vmem:[#allocation2 + $0x17a] ss:$2 sm:$0xff]  ;;  %v706_v57 = vld [vmem:[#allocation2 + $0x199] ss:$2 sm:$0xff]  ;;  %v768_v6 = vld [vmem:[#allocation2 + $0x18a] ss:$2 sm:$0xff] }
  0x91   : > { %v832_v58 = vld [vmem:[#allocation2 + $0x18b] ss:$2 sm:$0xff]  ;;  %v834_v59 = vld [vmem:[#allocation2 + $0x19b] ss:$2 sm:$0xff]  ;;  %v640_v4 = vld [vmem:[#allocation2 + $0x188] ss:$2 sm:$0xff] }
  0x92   : > { %v898_v60 = vpack.c.bf16 %v834_v59, %v832_v58  ;;  %v10557_v3 = vld [vmem:[%s13084_s8 + $0x80] sm:$0xff]   ;;  %v708_v8 = vld [vmem:[#allocation2 + $0x1a9] ss:$2 sm:$0xff]  ;;  %v644_v23 = vld [vmem:[#allocation2 + $0x1a8] ss:$2 sm:$0xff] }
  0x93   : > { %v642_v5 = vld [vmem:[#allocation2 + $0x198] ss:$2 sm:$0xff]  ;;  %v710_v9 = vld [vmem:[#allocation2 + $0x1b9] ss:$2 sm:$0xff]  ;;  %v10561_v18 = vld [vmem:[%s13084_s8 + $0xd0] sm:$0xff]  }
  0x94   : > { %1190 = vmatmul.mubr.bf16.gmra.mrb[24].mxu0 %v871_v62  ;;  %v891_v62 = vpack.c.bf16 %v638_v54, %v636_v53  ;;  %v770_v7 = vld [vmem:[#allocation2 + $0x19a] ss:$2 sm:$0xff]  ;;  %v836_v10 = vld [vmem:[#allocation2 + $0x1ab] ss:$2 sm:$0xff]  ;;  %v895_v16 = vpack.c.bf16 %v642_v5, %v640_v4  ;;  %v900_v19 = vpack.c.bf16 %v710_v9, %v708_v8  ;;  %v772_v25 = vld [vmem:[#allocation2 + $0x1aa] ss:$2 sm:$0xff]  ;;  %v2037_v8 = vlaneseq }
  0x95   : > { %1351 = vmatmul.mubr.bf16.gmra.mrb[24].mxu1 %v873_v63  ;;  %1197 = vmatprep.mubr.bf16.mxu0 %v876_v1  ;;  %v893_v63 = vpack.c.bf16 %v766_v56, %v764_v55  ;;  %v10555_v1 = vld [vmem:[%s13084_s8 + $0xc0] sm:$0xff]   ;;  %v897_v17 = vpack.c.bf16 %v770_v7, %v768_v6  ;;  %v10562_v21 = vld [vmem:[%s13084_s8 + $0x90] sm:$0xff]   ;;  %v10565_v32 = vld [vmem:[%s13084_s8 + $0xd8] sm:$0xff]  }
  0x96   : > { %1358 = vmatprep.mubr.bf16.mxu1 %v878_v2  ;;  %v896_v2 = vpack.c.bf16 %v706_v57, %v11295_v61  ;;  %9511 = vmatprep.subr.bf16.mxu1 %v10555_v1  ;;  %v10559_v61 = vld [vmem:[%s13084_s8 + $0xc8] sm:$0xff]   ;;  %v10563_v22 = vld [vmem:[%s13084_s8 + $0x60] sm:$0xff]   ;;  %v10566_v33 = vld [vmem:[%s13084_s8 + $0x98] sm:$0xff]   ;;  %v11394_v9 = vshrl.u32 %v2037_v8, 7 }
  0x97   : > { %9512 = vmatpush3.bf16.msra.mxu1 %v10557_v3  ;;  %v646_v24 = vld [vmem:[#allocation2 + $0x1b8] ss:$2 sm:$0xff]  ;;  %v842_v31 = vld [vmem:[#allocation2 + $0x1db] ss:$2 sm:$0xff]  ;;  %v10571_v45 = vld [vmem:[%s13084_s8 + $0x70] sm:$0xff]  }
  0x98   : > { %9513 = vmatprep.subr.bf16.mxu1 %v10559_v61  ;;  %v774_v26 = vld [vmem:[#allocation2 + $0x1ba] ss:$2 sm:$0xff]  ;;  %v899_v35 = vpack.c.bf16 %v646_v24, %v644_v23  ;;  %v776_v43 = vld [vmem:[#allocation2 + $0x1ca] ss:$2 sm:$0xff]  ;;  %v716_v46 = vld [vmem:[#allocation2 + $0x1e9] ss:$2 sm:$0xff] }
  0x99   : > { %v10567_v34 = vld [vmem:[%s13084_s8 + $0x68] sm:$0xff]   ;;  %v901_v36 = vpack.c.bf16 %v774_v26, %v772_v25  ;;  %v650_v42 = vld [vmem:[#allocation2 + $0x1d8] ss:$2 sm:$0xff]  ;;  %v718_v47 = vld [vmem:[#allocation2 + $0x1f9] ss:$2 sm:$0xff] }
  0x9a   : > { %v10568_v37 = vld [vmem:[%s13084_s8 + $0x28] sm:$0xff]   ;;  %v10575_v53 = vld [vmem:[%s13084_s8 + $0x78] sm:$0xff]   ;;  %v908_v57 = vpack.c.bf16 %v718_v47, %v716_v46  ;;  %v10577_v59 = vld [vmem:[%s13084_s8 + $0xf0] sm:$0xff]  }
  0x9b   : > { %v778_v44 = vld [vmem:[#allocation2 + $0x1da] ss:$2 sm:$0xff]  ;;  %v844_v48 = vld [vmem:[#allocation2 + $0x1eb] ss:$2 sm:$0xff] }
  0x9c   : > { %1198 = vmatmul.mubr.bf16.gmra.mrb[28].mxu0 %v875_v12  ;;  %v838_v12 = vld [vmem:[#allocation2 + $0x1bb] ss:$2 sm:$0xff]  ;;  %v905_v55 = vpack.c.bf16 %v778_v44, %v776_v43  ;;  %v654_v1 = vld [vmem:[#allocation2 + $0x1f8] ss:$2 sm:$0xff]  ;;  %v11391_v7 = vld [vmem:[#allocation5] sm:$0xff]  }
  0x9d   : > { %1359 = vmatmul.mubr.bf16.gmra.mrb[28].mxu1 %v877_v13  ;;  %1205 = vmatprep.mubr.bf16.mxu0 %v880_v14  ;;  %v10560_v13 = vld [vmem:[%s13084_s8 + $0x88] sm:$0xff]   ;;  %v10556_v14 = vld [vmem:[%s13084_s8 + $0x58] sm:$0xff]   ;;  %v902_v20 = vpack.c.bf16 %v838_v12, %v836_v10  ;;  %v11397_v10 = vsub.s32 0, %v11394_v9  ;;  %v11402_v12 = vld [vmem:[%s13078_s2] ss:$0 sm:$0xff] }
  0x9e   : > { %1366 = vmatprep.mubr.bf16.mxu1 %v882_v15  ;;  %v10558_v15 = vld [vmem:[%s13084_s8 + $0x18] sm:$0xff]   ;;  %9514 = vmatpush3.bf16.msra.mxu1 %v10560_v13  ;;  %v2036_v61 = vld [vmem:[%s13079_s3] sm:$0x3] }
  0x9f   : > { %9453 = vmatprep.subr.bf16.mxu0 %v10556_v14  ;;  %9515 = vmatprep.subr.bf16.mxu1 %v10561_v18  ;;  %v10576_v56 = vld [vmem:[%s13084_s8 + $0x38] sm:$0xff]   ;;  %v11412_v25 = vrot.slane %v2036_v61, %v11397_v10 }
  0xa0   : > { %9454 = vmatpush3.bf16.msra.mxu0 %v10558_v15  ;;  %v10579_v3 = vld [vmem:[%s13084_s8 + $0xf8] sm:$0xff]  }
  0xa1   : > { %9455 = vmatprep.subr.bf16.mxu0 %v10563_v22  ;;  %v10580_v4 = vld [vmem:[%s13084_s8 + $0xb8] sm:$0xff]  }
  0xa2   : > { %9516 = vmatpush3.bf16.msra.mxu1 %v10562_v21  ;;  %v11408_v21 = vsub.s32 1, %v11394_v9 }
  0xa3   : > { %9517 = vmatprep.subr.bf16.mxu1 %v10565_v32 }
  0xa4   : > { %1206 = vmatmul.mubr.bf16.gmra.mrb[32].mxu0 %v879_v27  ;;  %v10564_v27 = vld [vmem:[%s13084_s8 + $0x20] sm:$0xff]  }
  0xa5   : > { %1367 = vmatmul.mubr.bf16.gmra.mrb[32].mxu1 %v881_v28  ;;  %1213 = vmatprep.mubr.bf16.mxu0 %v884_v29  ;;  %v712_v28 = vld [vmem:[#allocation2 + $0x1c9] ss:$2 sm:$0xff]  ;;  %v714_v29 = vld [vmem:[#allocation2 + $0x1d9] ss:$2 sm:$0xff] }
  0xa6   : > { %1374 = vmatprep.mubr.bf16.mxu1 %v886_v30  ;;  %v840_v30 = vld [vmem:[#allocation2 + $0x1cb] ss:$2 sm:$0xff]  ;;  %9456 = vmatpush3.bf16.msra.mxu0 %v10564_v27  ;;  %v904_v38 = vpack.c.bf16 %v714_v29, %v712_v28 }
  0xa7   : > { %9518 = vmatpush3.bf16.msra.mxu1 %v10566_v33  ;;  %9457 = vmatprep.subr.bf16.mxu0 %v10567_v34 }
  0xaa   : > { %9458 = vmatpush3.bf16.msra.mxu0 %v10568_v37 }
  0xab   : > { %9459 = vmatprep.subr.bf16.mxu0 %v10571_v45 }
  0xac   : > { %1214 = vmatmul.mubr.bf16.gmra.mrb[36].mxu0 %v883_v39  ;;  %v906_v39 = vpack.c.bf16 %v842_v31, %v840_v30  ;;  %v11416_v30 = vrot.slane %v2036_v61, %v11408_v21 }
  0xad   : > { %1375 = vmatmul.mubr.bf16.gmra.mrb[36].mxu1 %v885_v40  ;;  %1221 = vmatprep.mubr.bf16.mxu0 %v888_v41  ;;  %v10569_v40 = vld [vmem:[%s13084_s8 + $0xe0] sm:$0xff]  }
  0xae   : > { %1382 = vmatprep.mubr.bf16.mxu1 %v890_v11  ;;  %v10570_v41 = vld [vmem:[%s13084_s8 + $0xa0] sm:$0xff]   ;;  %v648_v11 = vld [vmem:[#allocation2 + $0x1c8] ss:$2 sm:$0xff]  ;;  %9519 = vmatprep.subr.bf16.mxu1 %v10569_v40 }
  0xaf   : > { %9520 = vmatpush3.bf16.msra.mxu1 %v10570_v41  ;;  %v903_v54 = vpack.c.bf16 %v650_v42, %v648_v11 }
  0xb4   : > { %1222 = vmatmul.mubr.bf16.gmra.mrb[40].mxu0 %v887_v49  ;;  %v846_v49 = vld [vmem:[#allocation2 + $0x1fb] ss:$2 sm:$0xff] }
  0xb5   : > { %1383 = vmatmul.mubr.bf16.gmra.mrb[40].mxu1 %v889_v50  ;;  %1229 = vmatprep.mubr.bf16.mxu0 %v892_v51  ;;  %v10572_v50 = vld [vmem:[%s13084_s8 + $0x30] sm:$0xff]   ;;  %v10573_v51 = vld [vmem:[%s13084_s8 + $0xe8] sm:$0xff]   ;;  %v910_v58 = vpack.c.bf16 %v846_v49, %v844_v48 }
  0xb6   : > { %1390 = vmatprep.mubr.bf16.mxu1 %v894_v52  ;;  %v10574_v52 = vld [vmem:[%s13084_s8 + $0xa8] sm:$0xff]   ;;  %9460 = vmatpush3.bf16.msra.mxu0 %v10572_v50 }
  0xb7   : > { %9521 = vmatprep.subr.bf16.mxu1 %v10573_v51  ;;  %9461 = vmatprep.subr.bf16.mxu0 %v10575_v53 }
  0xb8   : > { %9522 = vmatpush3.bf16.msra.mxu1 %v10574_v52 }
  0xb9   : > { %9523 = vmatprep.subr.bf16.mxu1 %v10577_v59 }
  0xba   : > { %9462 = vmatpush3.bf16.msra.mxu0 %v10576_v56 }
  0xbb   : > { %10319 = vmatprep.subr.bf16.mxu0 %v11391_v7 }
  0xbc   : > { %1230 = vmatmul.mubr.bf16.gmra.mrb[44].mxu0 %v891_v62  ;;  %v10578_v62 = vld [vmem:[%s13084_s8 + $0xb0] sm:$0xff]  }
  0xbd   : > { %1391 = vmatmul.mubr.bf16.gmra.mrb[44].mxu1 %v893_v63  ;;  %1237 = vmatprep.mubr.bf16.mxu0 %v896_v2  ;;  %v652_v63 = vld [vmem:[#allocation2 + $0x1e8] ss:$2 sm:$0xff] }
  0xbe   : > { %1398 = vmatprep.mubr.bf16.mxu1 %v898_v60  ;;  %v780_v2 = vld [vmem:[#allocation2 + $0x1ea] ss:$2 sm:$0xff]  ;;  %v782_v60 = vld [vmem:[#allocation2 + $0x1fa] ss:$2 sm:$0xff]  ;;  %9524 = vmatpush3.bf16.msra.mxu1 %v10578_v62  ;;  %v907_v5 = vpack.c.bf16 %v654_v1, %v652_v63 }
  0xbf   : > { %9525 = vmatprep.subr.bf16.mxu1 %v10579_v3  ;;  %v909_v6 = vpack.c.bf16 %v782_v60, %v780_v2 }
  0xc2   : > { %9526 = vmatpush3.bf16.msra.mxu1 %v10580_v4 }
  0xc4   : > { %1238 = vmatmul.mubr.bf16.gmra.mrb[48].mxu0 %v895_v16 }
  0xc5   : > { %1399 = vmatmul.mubr.bf16.gmra.mrb[48].mxu1 %v897_v17  ;;  %1245 = vmatprep.mubr.bf16.mxu0 %v900_v19 }
  0xc6   : > { %1406 = vmatprep.mubr.bf16.mxu1 %v902_v20 }
  0xcc   : > { %1246 = vmatmul.mubr.bf16.gmra.mrb[52].mxu0 %v899_v35 }
  0xcd   : > { %1407 = vmatmul.mubr.bf16.gmra.mrb[52].mxu1 %v901_v36  ;;  %1253 = vmatprep.mubr.bf16.mxu0 %v904_v38 }
  0xce   : > { %1414 = vmatprep.mubr.bf16.mxu1 %v906_v39 }
  0xd4   : > { %1254 = vmatmul.mubr.bf16.gmra.mrb[56].mxu0 %v903_v54 }
  0xd5   : > { %1415 = vmatmul.mubr.bf16.gmra.mrb[56].mxu1 %v905_v55  ;;  %1261 = vmatprep.mubr.bf16.mxu0 %v908_v57 }
  0xd6   : > { %1422 = vmatprep.mubr.bf16.mxu1 %v910_v58 }
  0xdc   : > { %1262 = vmatmul.mubr.bf16.gmra.mrb[60].mxu0 %v907_v5 }
  0xdd   : > { %1423 = vmatmul.mubr.bf16.gmra.mrb[60].mxu1 %v909_v6 }
 0x137   : > { %v9239_v13 = vpop.f32.mrb[0].mxu0 }
 0x138   : > { %v9351_v14 = vpop.f32.mrb[0].mxu1  ;;  %v9240_v15 = vpop.f32.mrb[1].mxu0 }
 0x139   : > { %v9352_v16 = vpop.f32.mrb[1].mxu1  ;;  %v9241_v17 = vadd.f32 %v9240_v15, %v9239_v13  ;;  %v9242_v19 = vpop.f32.mrb[2].mxu0 }
 0x13a   : > { %v9353_v18 = vadd.f32 %v9352_v16, %v9351_v14  ;;  %v9354_v20 = vpop.f32.mrb[2].mxu1  ;;  %v9243_v22 = vpop.f32.mrb[3].mxu0 }
 0x13b   : > { %v9355_v23 = vpop.f32.mrb[3].mxu1  ;;  %v1144_v24 = vadd.f32 %v9241_v17, %v11402_v12  ;;  %v9244_v26 = vadd.f32 %v9243_v22, %v9242_v19 }
 0x13c   : > { %v9356_v27 = vadd.f32 %v9355_v23, %v9354_v20 }
 0x13d   : > { %v1305_v28 = vadd.f32 %v9353_v18, %v1144_v24  ;;  %v1147_v29 = vadd.f32 %v9244_v26, %v11402_v12 }
 0x13f   : > { %1500 = vst [vmem:[#allocation2 + $0x1] sm:$0xff] %v1305_v28  ;;  %v2041_v31 = vmul.f32 %v11412_v25, %v1305_v28  ;;  %v1308_v32 = vadd.f32 %v9356_v27, %v1147_v29  ;;  %v9245_v33 = vpop.f32.mrb[4].mxu0 }
 0x140   : > { %v9357_v34 = vpop.f32.mrb[4].mxu1  ;;  %v9246_v35 = vpop.f32.mrb[5].mxu0 }
 0x141   : > { %v9358_v36 = vpop.f32.mrb[5].mxu1  ;;  %1501 = vst [vmem:[#allocation2 + $0x9] sm:$0xff] %v1308_v32  ;;  %v2042_v37 = vmul.f32 %v11412_v25, %v1308_v32  ;;  %v9247_v38 = vadd.f32 %v9246_v35, %v9245_v33  ;;  %v9248_v40 = vpop.f32.mrb[6].mxu0  ;;  %v2077_v11 = vadd.f32 %v11416_v30, %v2041_v31 }
 0x142   : > { %v9359_v39 = vadd.f32 %v9358_v36, %v9357_v34  ;;  %v9360_v41 = vpop.f32.mrb[6].mxu1  ;;  %v9249_v42 = vpop.f32.mrb[7].mxu0 }
 0x143   : > { %v9361_v43 = vpop.f32.mrb[7].mxu1  ;;  %v1152_v44 = vadd.f32 %v9247_v38, %v11402_v12  ;;  %v9250_v45 = vadd.f32 %v9249_v42, %v9248_v40  ;;  %v2078_v47 = vadd.f32 %v11416_v30, %v2042_v37  ;;  %v2109_v50 = vmax.f32 %v2077_v11, 0.0  ;;  %v10582_v37 = vld [vmem:[#allocation5 + $0x8] sm:$0xff]  }
 0x144   : > { %v9362_v46 = vadd.f32 %v9361_v43, %v9360_v41 }
 0x145   : > { %v1313_v48 = vadd.f32 %v9359_v39, %v1152_v44  ;;  %v1155_v49 = vadd.f32 %v9250_v45, %v11402_v12  ;;  %v2110_v51 = vmax.f32 %v2078_v47, 0.0  ;;  %v10583_v45 = vld [vmem:[#allocation5 + $0x10] sm:$0xff]  }
 0x147   : > { %1502 = vst [vmem:[#allocation2 + $0x11] sm:$0xff] %v1313_v48  ;;  %v2043_v52 = vmul.f32 %v11412_v25, %v1313_v48  ;;  %v1316_v53 = vadd.f32 %v9362_v46, %v1155_v49  ;;  %v9251_v54 = vpop.f32.mrb[8].mxu0  ;;  %v11425_v56 = vpack.c.bf16 %v2110_v51, %v2109_v50 }
 0x148   : > { %v9363_v55 = vpop.f32.mrb[8].mxu1  ;;  %v1532_v57 = vld [vmem:[#allocation2] ss:$2 sm:$0xff]  ;;  %v9252_v62 = vpop.f32.mrb[9].mxu0  ;;  %v1548_v16 = vld [vmem:[#allocation2 + $0x1] ss:$2 sm:$0xff] }
 0x149   : > { %2486 = vst [vmem:[#allocation2] sm:$0x1] %v11058_v0  ;;  %v2079_v58 = vadd.f32 %v11416_v30, %v2043_v52  ;;  %1503 = vst [vmem:[#allocation2 + $0x19] sm:$0xff] %v1316_v53  ;;  %v2044_v59 = vmul.f32 %v11412_v25, %v1316_v53  ;;  %v9364_v63 = vpop.f32.mrb[9].mxu1  ;;  %v9253_v1 = vadd.f32 %v9252_v62, %v9251_v54  ;;  %v9254_v60 = vpop.f32.mrb[10].mxu0 }
 0x14a   : > { %v9365_v2 = vadd.f32 %v9364_v63, %v9363_v55  ;;  %v9366_v3 = vpop.f32.mrb[10].mxu1  ;;  %v9255_v5 = vpop.f32.mrb[11].mxu0  ;;  %v1565_v47 = vld [vmem:[#allocation2 + $0x2] ss:$2 sm:$0xff] }
 0x14b   : > { %v2080_v4 = vadd.f32 %v11416_v30, %v2044_v59  ;;  %v9367_v6 = vpop.f32.mrb[11].mxu1  ;;  %v1160_v8 = vadd.f32 %v9253_v1, %v11402_v12  ;;  %v9256_v61 = vadd.f32 %v9255_v5, %v9254_v60  ;;  %v2111_v14 = vmax.f32 %v2079_v58, 0.0 }
 0x14c   : > { %v9368_v13 = vadd.f32 %v9367_v6, %v9366_v3 }
 0x14d   : > { %v2112_v15 = vmax.f32 %v2080_v4, 0.0  ;;  %v1321_v17 = vadd.f32 %v9365_v2, %v1160_v8  ;;  %v1163_v18 = vadd.f32 %v9256_v61, %v11402_v12 }
 0x14e   : > { %v1596_v48 = vld [vmem:[#allocation2 + $0x3] ss:$2 sm:$0xff] }
 0x14f   : > { %v11433_v19 = vpack.c.bf16 %v2112_v15, %v2111_v14  ;;  %v9257_v20 = vpop.f32.mrb[12].mxu0  ;;  %1504 = vst [vmem:[#allocation2 + $0x21] sm:$0xff] %v1321_v17  ;;  %v2045_v24 = vmul.f32 %v11412_v25, %v1321_v17  ;;  %v1324_v26 = vadd.f32 %v9368_v13, %v1163_v18  ;;  %v10584_v13 = vld [vmem:[#allocation5 + $0x18] sm:$0xff]   ;;  %v10585_v18 = vld [vmem:[#allocation5 + $0x20] sm:$0xff]  }
 0x150   : > { %v9369_v22 = vpop.f32.mrb[12].mxu1  ;;  %v1533_v23 = vld [vmem:[#allocation2 + $0x10] ss:$2 sm:$0xff]  ;;  %v9258_v27 = vpop.f32.mrb[13].mxu0  ;;  %v1549_v29 = vld [vmem:[#allocation2 + $0x11] ss:$2 sm:$0xff] }
 0x151   : > { %v9370_v28 = vpop.f32.mrb[13].mxu1  ;;  %v9259_v31 = vadd.f32 %v9258_v27, %v9257_v20  ;;  %v9260_v33 = vpop.f32.mrb[14].mxu0  ;;  %v1613_v35 = vpack.c.bf16 %v1549_v29, %v1548_v16  ;;  %v1612_v36 = vpack.c.bf16 %v1533_v23, %v1532_v57  ;;  %1505 = vst [vmem:[#allocation2 + $0x29] sm:$0xff] %v1324_v26  ;;  %v2046_v38 = vmul.f32 %v11412_v25, %v1324_v26  ;;  %v1567_v44 = vld [vmem:[#allocation2 + $0x12] ss:$2 sm:$0xff] }
 0x152   : > { %v9371_v32 = vadd.f32 %v9370_v28, %v9369_v22  ;;  %v9372_v34 = vpop.f32.mrb[14].mxu1  ;;  %v9261_v39 = vpop.f32.mrb[15].mxu0  ;;  %v2081_v41 = vadd.f32 %v11416_v30, %v2045_v24  ;;  %v1614_v1 = vpack.c.bf16 %v1567_v44, %v1565_v47 }
 0x153   : > { %v9373_v40 = vpop.f32.mrb[15].mxu1  ;;  %v1168_v11 = vadd.f32 %v9259_v31, %v11402_v12  ;;  %v9262_v42 = vadd.f32 %v9261_v39, %v9260_v33  ;;  %1874 = vmatprep.mubr.bf16.mxu0 %v1613_v35  ;;  %v2082_v46 = vadd.f32 %v11416_v30, %v2046_v38 }
 0x154   : > { %v9374_v43 = vadd.f32 %v9373_v40, %v9372_v34  ;;  %1875 = vmatmul.mubr.bf16.vlgmr.msra.gmra.mrb[64].mxu0 %v1612_v36  ;;  %v2113_v51 = vmax.f32 %v2081_v41, 0.0 }
 0x155   : > { %v1329_v49 = vadd.f32 %v9371_v32, %v1168_v11  ;;  %v1171_v50 = vadd.f32 %v9262_v42, %v11402_v12  ;;  %10320 = vmatpush3.bf16.msra.mxu0 %v11391_v7  ;;  %v2114_v52 = vmax.f32 %v2082_v46, 0.0 }
 0x156   : > { %10321 = vmatprep.subr.bf16.mxu0 %v10582_v37  ;;  %v1597_v58 = vld [vmem:[#allocation2 + $0x13] ss:$2 sm:$0xff] }
 0x157   : > { %1506 = vst [vmem:[#allocation2 + $0x31] sm:$0xff] %v1329_v49  ;;  %v2047_v53 = vmul.f32 %v11412_v25, %v1329_v49  ;;  %v1332_v54 = vadd.f32 %v9374_v43, %v1171_v50  ;;  %v9263_v55 = vpop.f32.mrb[16].mxu0  ;;  %v1615_v63 = vpack.c.bf16 %v1597_v58, %v1596_v48  ;;  %v11443_v2 = vpack.c.bf16 %v2114_v52, %v2113_v51 }
 0x158   : > { %v9375_v57 = vpop.f32.mrb[16].mxu1  ;;  %v9264_v59 = vpop.f32.mrb[17].mxu0  ;;  %v1550_v26 = vld [vmem:[#allocation2 + $0x21] ss:$2 sm:$0xff]  ;;  %v1534_v43 = vld [vmem:[#allocation2 + $0x20] ss:$2 sm:$0xff] }
 0x159   : > { %v9376_v62 = vpop.f32.mrb[17].mxu1  ;;  %1507 = vst [vmem:[#allocation2 + $0x39] sm:$0xff] %v1332_v54  ;;  %v2048_v60 = vmul.f32 %v11412_v25, %v1332_v54  ;;  %v9265_v7 = vadd.f32 %v9264_v59, %v9263_v55  ;;  %v9266_v4 = vpop.f32.mrb[18].mxu0  ;;  %10322 = vmatpush3.bf16.msra.mxu0 %v10582_v37  ;;  %v2083_v6 = vadd.f32 %v11416_v30, %v2047_v53  ;;  %v10586_v37 = vld [vmem:[#allocation5 + $0x28] sm:$0xff]   ;;  %v10587_v54 = vld [vmem:[#allocation5 + $0x30] sm:$0xff]  }
 0x15a   : > { %v9377_v3 = vadd.f32 %v9376_v62, %v9375_v57  ;;  %v9378_v5 = vpop.f32.mrb[18].mxu1  ;;  %1971 = vmatprep.mubr.bf16.mxu1 %v1615_v63  ;;  %v9267_v8 = vpop.f32.mrb[19].mxu0  ;;  %10323 = vmatprep.subr.bf16.mxu0 %v10583_v45  ;;  %v1569_v58 = vld [vmem:[#allocation2 + $0x22] ss:$2 sm:$0xff] }
 0x15b   : > { %v9379_v61 = vpop.f32.mrb[19].mxu1  ;;  %v1176_v14 = vadd.f32 %v9265_v7, %v11402_v12  ;;  %v9268_v15 = vadd.f32 %v9267_v8, %v9266_v4  ;;  %1972 = vmatmul.mubr.bf16.vlgmr.msra.gmra.mrb[64].mxu1 %v1614_v1  ;;  %v2084_v17 = vadd.f32 %v11416_v30, %v2048_v60  ;;  %v2115_v23 = vmax.f32 %v2083_v6, 0.0 }
 0x15c   : > { %v9380_v16 = vadd.f32 %v9379_v61, %v9378_v5 }
 0x15d   : > { %v1337_v20 = vadd.f32 %v9377_v3, %v1176_v14  ;;  %v1179_v22 = vadd.f32 %v9268_v15, %v11402_v12  ;;  %10324 = vmatpush3.bf16.msra.mxu0 %v10583_v45  ;;  %v2116_v24 = vmax.f32 %v2084_v17, 0.0 }
 0x15e   : > { %10325 = vmatprep.subr.bf16.mxu0 %v10584_v13  ;;  %v1598_v52 = vld [vmem:[#allocation2 + $0x23] ss:$2 sm:$0xff] }
 0x15f   : > { %1508 = vst [vmem:[#allocation2 + $0x41] sm:$0xff] %v1337_v20  ;;  %v2049_v27 = vmul.f32 %v11412_v25, %v1337_v20  ;;  %v1340_v28 = vadd.f32 %v9380_v16, %v1179_v22  ;;  %v9269_v29 = vpop.f32.mrb[20].mxu0  ;;  %v11451_v32 = vpack.c.bf16 %v2116_v24, %v2115_v23 }
 0x160   : > { %v9381_v31 = vpop.f32.mrb[20].mxu1  ;;  %v9270_v33 = vpop.f32.mrb[21].mxu0  ;;  %v1551_v35 = vld [vmem:[#allocation2 + $0x31] ss:$2 sm:$0xff]  ;;  %v1535_v36 = vld [vmem:[#allocation2 + $0x30] ss:$2 sm:$0xff] }
 0x161   : > { %v9382_v34 = vpop.f32.mrb[21].mxu1  ;;  %1509 = vst [vmem:[#allocation2 + $0x49] sm:$0xff] %v1340_v28  ;;  %v2050_v38 = vmul.f32 %v11412_v25, %v1340_v28  ;;  %v9271_v39 = vadd.f32 %v9270_v33, %v9269_v29  ;;  %v9272_v41 = vpop.f32.mrb[22].mxu0  ;;  %v1617_v42 = vpack.c.bf16 %v1551_v35, %v1550_v26  ;;  %10326 = vmatpush3.bf16.msra.mxu0 %v10584_v13  ;;  %v1571_v53 = vld [vmem:[#allocation2 + $0x32] ss:$2 sm:$0xff] }
 0x162   : > { %v9383_v40 = vadd.f32 %v9382_v34, %v9381_v31  ;;  %v9384_v11 = vpop.f32.mrb[22].mxu1  ;;  %v9273_v44 = vpop.f32.mrb[23].mxu0  ;;  %v1616_v46 = vpack.c.bf16 %v1535_v36, %v1534_v43  ;;  %10327 = vmatprep.subr.bf16.mxu0 %v10585_v18  ;;  %v2085_v47 = vadd.f32 %v11416_v30, %v2049_v27  ;;  %v1618_v61 = vpack.c.bf16 %v1571_v53, %v1569_v58 }
 0x163   : > { %v9385_v45 = vpop.f32.mrb[23].mxu1  ;;  %v1184_v48 = vadd.f32 %v9271_v39, %v11402_v12  ;;  %v9274_v49 = vadd.f32 %v9273_v44, %v9272_v41  ;;  %1882 = vmatprep.mubr.bf16.mxu0 %v1617_v42  ;;  %v2086_v51 = vadd.f32 %v11416_v30, %v2050_v38 }
 0x164   : > { %v9386_v50 = vadd.f32 %v9385_v45, %v9384_v11  ;;  %1883 = vmatmul.mubr.bf16.gmra.mrb[68].mxu0 %v1616_v46  ;;  %v2117_v59 = vmax.f32 %v2085_v47, 0.0 }
 0x165   : > { %v1345_v55 = vadd.f32 %v9383_v40, %v1184_v48  ;;  %v1187_v57 = vadd.f32 %v9274_v49, %v11402_v12  ;;  %10328 = vmatpush3.bf16.msra.mxu0 %v10585_v18  ;;  %v2118_v62 = vmax.f32 %v2086_v51, 0.0  ;;  %v10588_v18 = vld [vmem:[#allocation5 + $0x38] sm:$0xff]  }
 0x166   : > { %v1599_v63 = vld [vmem:[#allocation2 + $0x33] ss:$2 sm:$0xff]  ;;  %10329 = vmatprep.subr.bf16.mxu0 %v10586_v37 }
 0x167   : > { %1510 = vst [vmem:[#allocation2 + $0x51] sm:$0xff] %v1345_v55  ;;  %v2051_v1 = vmul.f32 %v11412_v25, %v1345_v55  ;;  %v1348_v60 = vadd.f32 %v9386_v50, %v1187_v57  ;;  %v9275_v7 = vpop.f32.mrb[24].mxu0  ;;  %v1619_v4 = vpack.c.bf16 %v1599_v63, %v1598_v52  ;;  %v11459_v5 = vpack.c.bf16 %v2118_v62, %v2117_v59 }
 0x168   : > { %v9387_v3 = vpop.f32.mrb[24].mxu1  ;;  %v9276_v6 = vpop.f32.mrb[25].mxu0  ;;  %v1552_v35 = vld [vmem:[#allocation2 + $0x41] ss:$2 sm:$0xff]  ;;  %v1536_v50 = vld [vmem:[#allocation2 + $0x40] ss:$2 sm:$0xff] }
 0x169   : > { %v9388_v8 = vpop.f32.mrb[25].mxu1  ;;  %1511 = vst [vmem:[#allocation2 + $0x59] sm:$0xff] %v1348_v60  ;;  %v2052_v13 = vmul.f32 %v11412_v25, %v1348_v60  ;;  %v9277_v14 = vadd.f32 %v9276_v6, %v9275_v7  ;;  %v9278_v16 = vpop.f32.mrb[26].mxu0  ;;  %1979 = vmatprep.mubr.bf16.mxu1 %v1619_v4  ;;  %10330 = vmatpush3.bf16.msra.mxu0 %v10586_v37  ;;  %v1573_v7 = vld [vmem:[#allocation2 + $0x42] ss:$2 sm:$0xff] }
 0x16a   : > { %v9389_v15 = vadd.f32 %v9388_v8, %v9387_v3  ;;  %v9390_v17 = vpop.f32.mrb[26].mxu1  ;;  %v9279_v20 = vpop.f32.mrb[27].mxu0  ;;  %1980 = vmatmul.mubr.bf16.gmra.mrb[68].mxu1 %v1618_v61  ;;  %10331 = vmatprep.subr.bf16.mxu0 %v10587_v54  ;;  %v2087_v23 = vadd.f32 %v11416_v30, %v2051_v1 }
 0x16b   : > { %v9391_v22 = vpop.f32.mrb[27].mxu1  ;;  %v1192_v24 = vadd.f32 %v9277_v14, %v11402_v12  ;;  %v9280_v26 = vadd.f32 %v9279_v20, %v9278_v16  ;;  %v2088_v28 = vadd.f32 %v11416_v30, %v2052_v13 }
 0x16c   : > { %v9392_v27 = vadd.f32 %v9391_v22, %v9390_v17  ;;  %v2119_v33 = vmax.f32 %v2087_v23, 0.0 }
 0x16d   : > { %v1353_v29 = vadd.f32 %v9389_v15, %v1192_v24  ;;  %v1195_v31 = vadd.f32 %v9280_v26, %v11402_v12  ;;  %10332 = vmatpush3.bf16.msra.mxu0 %v10587_v54  ;;  %v2120_v34 = vmax.f32 %v2088_v28, 0.0 }
 0x16e   : > { %10333 = vmatprep.subr.bf16.mxu0 %v10588_v18  ;;  %v1600_v62 = vld [vmem:[#allocation2 + $0x43] ss:$2 sm:$0xff] }
 0x16f   : > { %1512 = vst [vmem:[#allocation2 + $0x61] sm:$0xff] %v1353_v29  ;;  %v2053_v36 = vmul.f32 %v11412_v25, %v1353_v29  ;;  %v1356_v37 = vadd.f32 %v9392_v27, %v1195_v31  ;;  %v9281_v38 = vpop.f32.mrb[28].mxu0  ;;  %v11467_v40 = vpack.c.bf16 %v2120_v34, %v2119_v33 }
 0x170   : > { %v9393_v39 = vpop.f32.mrb[28].mxu1  ;;  %v9282_v41 = vpop.f32.mrb[29].mxu0  ;;  %v1553_v42 = vld [vmem:[#allocation2 + $0x51] ss:$2 sm:$0xff]  ;;  %v1537_v43 = vld [vmem:[#allocation2 + $0x50] ss:$2 sm:$0xff] }
 0x171   : > { %v9394_v11 = vpop.f32.mrb[29].mxu1  ;;  %1513 = vst [vmem:[#allocation2 + $0x69] sm:$0xff] %v1356_v37  ;;  %v2054_v44 = vmul.f32 %v11412_v25, %v1356_v37  ;;  %v9283_v45 = vadd.f32 %v9282_v41, %v9281_v38  ;;  %v9284_v47 = vpop.f32.mrb[30].mxu0  ;;  %v1621_v49 = vpack.c.bf16 %v1553_v42, %v1552_v35  ;;  %10334 = vmatpush3.bf16.msra.mxu0 %v10588_v18  ;;  %v1575_v63 = vld [vmem:[#allocation2 + $0x52] ss:$2 sm:$0xff] }
 0x172   : > { %v9395_v46 = vadd.f32 %v9394_v11, %v9393_v39  ;;  %v9396_v48 = vpop.f32.mrb[30].mxu1  ;;  %v9285_v51 = vpop.f32.mrb[31].mxu0  ;;  %v1620_v53 = vpack.c.bf16 %v1537_v43, %v1536_v50  ;;  %v2089_v54 = vadd.f32 %v11416_v30, %v2053_v36  ;;  %v1622_v20 = vpack.c.bf16 %v1575_v63, %v1573_v7 }
 0x173   : > { %v9397_v52 = vpop.f32.mrb[31].mxu1  ;;  %v1200_v55 = vadd.f32 %v9283_v45, %v11402_v12  ;;  %v9286_v57 = vadd.f32 %v9285_v51, %v9284_v47  ;;  %1890 = vmatprep.mubr.bf16.mxu0 %v1621_v49  ;;  %v2090_v59 = vadd.f32 %v11416_v30, %v2054_v44 }
 0x174   : > { %v9398_v58 = vadd.f32 %v9397_v52, %v9396_v48  ;;  %1891 = vmatmul.mubr.bf16.gmra.mrb[72].mxu0 %v1620_v53  ;;  %v2121_v3 = vmax.f32 %v2089_v54, 0.0 }
 0x175   : > { %v1361_v1 = vadd.f32 %v9395_v46, %v1200_v55  ;;  %v1203_v60 = vadd.f32 %v9286_v57, %v11402_v12  ;;  %v2122_v4 = vmax.f32 %v2090_v59, 0.0 }
 0x176   : > { %v1601_v6 = vld [vmem:[#allocation2 + $0x53] ss:$2 sm:$0xff] }
 0x177   : > { %1514 = vst [vmem:[#allocation2 + $0x71] sm:$0xff] %v1361_v1  ;;  %v2055_v8 = vmul.f32 %v11412_v25, %v1361_v1  ;;  %v1364_v61 = vadd.f32 %v9398_v58, %v1203_v60  ;;  %v9287_v13 = vpop.f32.mrb[32].mxu0  ;;  %v1623_v15 = vpack.c.bf16 %v1601_v6, %v1600_v62  ;;  %v11475_v16 = vpack.c.bf16 %v2122_v4, %v2121_v3 }
 0x178   : > { %v9399_v14 = vpop.f32.mrb[32].mxu1  ;;  %v9288_v17 = vpop.f32.mrb[33].mxu0  ;;  %v1554_v11 = vld [vmem:[#allocation2 + $0x61] ss:$2 sm:$0xff]  ;;  %v1538_v47 = vld [vmem:[#allocation2 + $0x60] ss:$2 sm:$0xff] }
 0x179   : > { %v9400_v18 = vpop.f32.mrb[33].mxu1  ;;  %1515 = vst [vmem:[#allocation2 + $0x79] sm:$0xff] %v1364_v61  ;;  %v2056_v22 = vmul.f32 %v11412_v25, %v1364_v61  ;;  %v9289_v23 = vadd.f32 %v9288_v17, %v9287_v13  ;;  %v9290_v26 = vpop.f32.mrb[34].mxu0  ;;  %1987 = vmatprep.mubr.bf16.mxu1 %v1623_v15  ;;  %v2091_v28 = vadd.f32 %v11416_v30, %v2055_v8  ;;  %v1577_v48 = vld [vmem:[#allocation2 + $0x62] ss:$2 sm:$0xff] }
 0x17a   : > { %v9401_v24 = vadd.f32 %v9400_v18, %v9399_v14  ;;  %v9402_v27 = vpop.f32.mrb[34].mxu1  ;;  %v9291_v29 = vpop.f32.mrb[35].mxu0  ;;  %1988 = vmatmul.mubr.bf16.gmra.mrb[72].mxu1 %v1622_v20 }
 0x17b   : > { %v9403_v31 = vpop.f32.mrb[35].mxu1  ;;  %v1208_v33 = vadd.f32 %v9289_v23, %v11402_v12  ;;  %v9292_v34 = vadd.f32 %v9291_v29, %v9290_v26  ;;  %v2092_v36 = vadd.f32 %v11416_v30, %v2056_v22  ;;  %v2123_v39 = vmax.f32 %v2091_v28, 0.0 }
 0x17c   : > { %v9404_v35 = vadd.f32 %v9403_v31, %v9402_v27 }
 0x17d   : > { %v1369_v37 = vadd.f32 %v9401_v24, %v1208_v33  ;;  %v1211_v38 = vadd.f32 %v9292_v34, %v11402_v12  ;;  %v2124_v41 = vmax.f32 %v2092_v36, 0.0 }
 0x17e   : > { %v1602_v46 = vld [vmem:[#allocation2 + $0x63] ss:$2 sm:$0xff] }
 0x17f   : > { %1516 = vst [vmem:[#allocation2 + $0x109] sm:$0xff] %v1369_v37  ;;  %v2057_v42 = vmul.f32 %v11412_v25, %v1369_v37  ;;  %v1372_v43 = vadd.f32 %v9404_v35, %v1211_v38  ;;  %v9293_v44 = vpop.f32.mrb[36].mxu0  ;;  %v11483_v49 = vpack.c.bf16 %v2124_v41, %v2123_v39 }
 0x180   : > { %v9405_v45 = vpop.f32.mrb[36].mxu1  ;;  %v9294_v50 = vpop.f32.mrb[37].mxu0  ;;  %v1555_v52 = vld [vmem:[#allocation2 + $0x71] ss:$2 sm:$0xff]  ;;  %v1539_v63 = vld [vmem:[#allocation2 + $0x70] ss:$2 sm:$0xff] }
 0x181   : > { %v9406_v51 = vpop.f32.mrb[37].mxu1  ;;  %v1603_v53 = vld [vmem:[#allocation2 + $0x73] ss:$2 sm:$0xff]  ;;  %1517 = vst [vmem:[#allocation2 + $0x111] sm:$0xff] %v1372_v43  ;;  %v2058_v54 = vmul.f32 %v11412_v25, %v1372_v43  ;;  %v9295_v55 = vadd.f32 %v9294_v50, %v9293_v44  ;;  %v9296_v58 = vpop.f32.mrb[38].mxu0  ;;  %v1625_v62 = vpack.c.bf16 %v1555_v52, %v1554_v11  ;;  %v1624_v4 = vpack.c.bf16 %v1539_v63, %v1538_v47 }
 0x182   : > { %v9407_v57 = vadd.f32 %v9406_v51, %v9405_v45  ;;  %v9408_v59 = vpop.f32.mrb[38].mxu1  ;;  %2488 = vst [vmem:[#allocation2 + $0x81] sm:$0x1] %v11058_v0  ;;  %v1579_v1 = vld [vmem:[#allocation2 + $0x72] ss:$2 sm:$0xff]  ;;  %v9297_v60 = vpop.f32.mrb[39].mxu0  ;;  %v1627_v3 = vpack.c.bf16 %v1603_v53, %v1602_v46  ;;  %v2093_v8 = vadd.f32 %v11416_v30, %v2057_v42 }
 0x183   : > { %v9409_v7 = vpop.f32.mrb[39].mxu1  ;;  %v1626_v6 = vpack.c.bf16 %v1579_v1, %v1577_v48  ;;  %v1216_v61 = vadd.f32 %v9295_v55, %v11402_v12  ;;  %v9298_v13 = vadd.f32 %v9297_v60, %v9296_v58  ;;  %1898 = vmatprep.mubr.bf16.mxu0 %v1625_v62  ;;  %v2094_v15 = vadd.f32 %v11416_v30, %v2058_v54  ;;  %v11502_v51 = vld [vmem:[%s13078_s2] ss:$0 sm:$0xff] }
 0x184   : > { %v9410_v14 = vadd.f32 %v9409_v7, %v9408_v59  ;;  %1995 = vmatprep.mubr.bf16.mxu1 %v1627_v3  ;;  %1899 = vmatmul.mubr.bf16.gmra.mrb[76].mxu0 %v1624_v4  ;;  %v2125_v20 = vmax.f32 %v2093_v8, 0.0 }
 0x185   : > { %v1377_v17 = vadd.f32 %v9407_v57, %v1216_v61  ;;  %v1219_v18 = vadd.f32 %v9298_v13, %v11402_v12  ;;  %1996 = vmatmul.mubr.bf16.gmra.mrb[76].mxu1 %v1626_v6  ;;  %v2126_v22 = vmax.f32 %v2094_v15, 0.0 }
 0x187   : > { %1518 = vst [vmem:[#allocation2 + $0x119] sm:$0xff] %v1377_v17  ;;  %v2059_v23 = vmul.f32 %v11412_v25, %v1377_v17  ;;  %v1380_v24 = vadd.f32 %v9410_v14, %v1219_v18  ;;  %v9299_v26 = vpop.f32.mrb[40].mxu0  ;;  %v11492_v28 = vpack.c.bf16 %v2126_v22, %v2125_v20 }
 0x188   : > { %v9411_v27 = vpop.f32.mrb[40].mxu1  ;;  %v1540_v29 = vld [vmem:[#allocation2 + $0x108] ss:$2 sm:$0xff]  ;;  %v9300_v33 = vpop.f32.mrb[41].mxu0  ;;  %v1556_v48 = vld [vmem:[#allocation2 + $0x109] ss:$2 sm:$0xff] }
 0x189   : > { %2487 = vst [vmem:[#allocation2 + $0x108] sm:$0x1] %v11058_v0  ;;  %1519 = vst [vmem:[#allocation2 + $0x121] sm:$0xff] %v1380_v24  ;;  %v2060_v31 = vmul.f32 %v11412_v25, %v1380_v24  ;;  %v9412_v34 = vpop.f32.mrb[41].mxu1  ;;  %v2095_v35 = vadd.f32 %v11416_v30, %v2059_v23  ;;  %v9301_v36 = vadd.f32 %v9300_v33, %v9299_v26  ;;  %v9302_v38 = vpop.f32.mrb[42].mxu0 }
 0x18a   : > { %v9413_v37 = vadd.f32 %v9412_v34, %v9411_v27  ;;  %v9414_v39 = vpop.f32.mrb[42].mxu1  ;;  %v9303_v41 = vpop.f32.mrb[43].mxu0  ;;  %v1581_v23 = vld [vmem:[#allocation2 + $0x10a] ss:$2 sm:$0xff] }
 0x18b   : > { %v9415_v11 = vpop.f32.mrb[43].mxu1  ;;  %v2096_v42 = vadd.f32 %v11416_v30, %v2060_v31  ;;  %v1224_v43 = vadd.f32 %v9301_v36, %v11402_v12  ;;  %v9304_v44 = vadd.f32 %v9303_v41, %v9302_v38  ;;  %v2127_v46 = vmax.f32 %v2095_v35, 0.0 }
 0x18c   : > { %v9416_v45 = vadd.f32 %v9415_v11, %v9414_v39 }
 0x18d   : > { %v2128_v47 = vmax.f32 %v2096_v42, 0.0  ;;  %v1385_v50 = vadd.f32 %v9413_v37, %v1224_v43  ;;  %v1227_v52 = vadd.f32 %v11502_v51, %v9304_v44 }
 0x18e   : > { %v1604_v24 = vld [vmem:[#allocation2 + $0x10b] ss:$2 sm:$0xff] }
 0x18f   : > { %v9305_v53 = vpop.f32.mrb[44].mxu0  ;;  %v11505_v55 = vpack.c.bf16 %v2128_v47, %v2127_v46  ;;  %1520 = vst [vmem:[#allocation2 + $0x129] sm:$0xff] %v1385_v50  ;;  %v2061_v12 = vmul.f32 %v11412_v25, %v1385_v50  ;;  %v1388_v58 = vadd.f32 %v9416_v45, %v1227_v52 }
 0x190   : > { %v9417_v54 = vpop.f32.mrb[44].mxu1  ;;  %v1541_v57 = vld [vmem:[#allocation2 + $0x118] ss:$2 sm:$0xff]  ;;  %v9306_v59 = vpop.f32.mrb[45].mxu0  ;;  %v1557_v63 = vld [vmem:[#allocation2 + $0x119] ss:$2 sm:$0xff] }
 0x191   : > { %v9418_v62 = vpop.f32.mrb[45].mxu1  ;;  %v9307_v1 = vadd.f32 %v9306_v59, %v9305_v53  ;;  %v9308_v7 = vpop.f32.mrb[46].mxu0  ;;  %v1629_v4 = vpack.c.bf16 %v1557_v63, %v1556_v48  ;;  %v1628_v6 = vpack.c.bf16 %v1541_v57, %v1540_v29  ;;  %1521 = vst [vmem:[#allocation2 + $0x131] sm:$0xff] %v1388_v58  ;;  %v2062_v8 = vmul.f32 %v11412_v25, %v1388_v58  ;;  %v1583_v20 = vld [vmem:[#allocation2 + $0x11a] ss:$2 sm:$0xff] }
 0x192   : > { %v9419_v60 = vadd.f32 %v9418_v62, %v9417_v54  ;;  %v9420_v3 = vpop.f32.mrb[46].mxu1  ;;  %v9309_v61 = vpop.f32.mrb[47].mxu0  ;;  %v2097_v14 = vadd.f32 %v11416_v30, %v2061_v12  ;;  %v1630_v11 = vpack.c.bf16 %v1583_v20, %v1581_v23 }
 0x193   : > { %v9421_v13 = vpop.f32.mrb[47].mxu1  ;;  %v1232_v15 = vadd.f32 %v11502_v51, %v9307_v1  ;;  %v9310_v17 = vadd.f32 %v9309_v61, %v9308_v7  ;;  %1906 = vmatprep.mubr.bf16.mxu0 %v1629_v4  ;;  %v2098_v22 = vadd.f32 %v11416_v30, %v2062_v8 }
 0x194   : > { %v9422_v18 = vadd.f32 %v9421_v13, %v9420_v3  ;;  %1907 = vmatmul.mubr.bf16.gmra.mrb[80].mxu0 %v1628_v6  ;;  %v2129_v29 = vmax.f32 %v2097_v14, 0.0 }
 0x195   : > { %v1393_v26 = vadd.f32 %v9419_v60, %v1232_v15  ;;  %v1235_v27 = vadd.f32 %v11502_v51, %v9310_v17  ;;  %v2130_v31 = vmax.f32 %v2098_v22, 0.0 }
 0x196   : > { %v1605_v37 = vld [vmem:[#allocation2 + $0x11b] ss:$2 sm:$0xff] }
 0x197   : > { %1522 = vst [vmem:[#allocation2 + $0x139] sm:$0xff] %v1393_v26  ;;  %v2063_v33 = vmul.f32 %v11412_v25, %v1393_v26  ;;  %v1396_v34 = vadd.f32 %v9422_v18, %v1235_v27  ;;  %v9311_v35 = vpop.f32.mrb[48].mxu0  ;;  %v1631_v41 = vpack.c.bf16 %v1605_v37, %v1604_v24  ;;  %v11514_v42 = vpack.c.bf16 %v2130_v31, %v2129_v29 }
 0x198   : > { %v9423_v36 = vpop.f32.mrb[48].mxu1  ;;  %v9312_v38 = vpop.f32.mrb[49].mxu0  ;;  %v1558_v1 = vld [vmem:[#allocation2 + $0x129] ss:$2 sm:$0xff]  ;;  %v1542_v24 = vld [vmem:[#allocation2 + $0x128] ss:$2 sm:$0xff] }
 0x199   : > { %v9424_v39 = vpop.f32.mrb[49].mxu1  ;;  %1523 = vst [vmem:[#allocation2 + $0x141] sm:$0xff] %v1396_v34  ;;  %v2064_v43 = vmul.f32 %v11412_v25, %v1396_v34  ;;  %v9313_v44 = vadd.f32 %v9312_v38, %v9311_v35  ;;  %v9314_v46 = vpop.f32.mrb[50].mxu0  ;;  %v2099_v48 = vadd.f32 %v11416_v30, %v2063_v33  ;;  %2003 = vmatprep.mubr.bf16.mxu1 %v1631_v41 }
 0x19a   : > { %v9425_v45 = vadd.f32 %v9424_v39, %v9423_v36  ;;  %v9426_v47 = vpop.f32.mrb[50].mxu1  ;;  %v9315_v50 = vpop.f32.mrb[51].mxu0  ;;  %2004 = vmatmul.mubr.bf16.gmra.mrb[80].mxu1 %v1630_v11 }
 0x19b   : > { %v9427_v52 = vpop.f32.mrb[51].mxu1  ;;  %v1240_v53 = vadd.f32 %v11502_v51, %v9313_v44  ;;  %v9316_v54 = vadd.f32 %v9315_v50, %v9314_v46  ;;  %v2100_v12 = vadd.f32 %v11416_v30, %v2064_v43  ;;  %v2131_v62 = vmax.f32 %v2099_v48, 0.0 }
 0x19c   : > { %v9428_v57 = vadd.f32 %v9427_v52, %v9426_v47  ;;  %v1585_v52 = vld [vmem:[#allocation2 + $0x12a] ss:$2 sm:$0xff] }
 0x19d   : > { %v1401_v58 = vadd.f32 %v9425_v45, %v1240_v53  ;;  %v1243_v59 = vadd.f32 %v11502_v51, %v9316_v54  ;;  %v2132_v63 = vmax.f32 %v2100_v12, 0.0 }
 0x19e   : > { %v1606_v37 = vld [vmem:[#allocation2 + $0x12b] ss:$2 sm:$0xff] }
 0x19f   : > { %1524 = vst [vmem:[#allocation2 + $0x149] sm:$0xff] %v1401_v58  ;;  %v2065_v60 = vmul.f32 %v11412_v25, %v1401_v58  ;;  %v1404_v7 = vadd.f32 %v9428_v57, %v1243_v59  ;;  %v9317_v3 = vpop.f32.mrb[52].mxu0  ;;  %v11522_v6 = vpack.c.bf16 %v2132_v63, %v2131_v62 }
 0x1a0   : > { %v9429_v4 = vpop.f32.mrb[52].mxu1  ;;  %v9318_v8 = vpop.f32.mrb[53].mxu0  ;;  %v1559_v13 = vld [vmem:[#allocation2 + $0x139] ss:$2 sm:$0xff]  ;;  %v1543_v14 = vld [vmem:[#allocation2 + $0x138] ss:$2 sm:$0xff] }
 0x1a1   : > { %v9430_v61 = vpop.f32.mrb[53].mxu1  ;;  %1525 = vst [vmem:[#allocation2 + $0x151] sm:$0xff] %v1404_v7  ;;  %v2066_v15 = vmul.f32 %v11412_v25, %v1404_v7  ;;  %v9319_v17 = vadd.f32 %v9318_v8, %v9317_v3  ;;  %v9320_v20 = vpop.f32.mrb[54].mxu0  ;;  %v1633_v23 = vpack.c.bf16 %v1559_v13, %v1558_v1  ;;  %v1632_v29 = vpack.c.bf16 %v1543_v14, %v1542_v24  ;;  %v1587_v38 = vld [vmem:[#allocation2 + $0x13a] ss:$2 sm:$0xff] }
 0x1a2   : > { %v9431_v18 = vadd.f32 %v9430_v61, %v9429_v4  ;;  %v9432_v22 = vpop.f32.mrb[54].mxu1  ;;  %v9321_v26 = vpop.f32.mrb[55].mxu0  ;;  %v2101_v31 = vadd.f32 %v11416_v30, %v2065_v60  ;;  %v1634_v12 = vpack.c.bf16 %v1587_v38, %v1585_v52 }
 0x1a3   : > { %v9433_v27 = vpop.f32.mrb[55].mxu1  ;;  %v1248_v33 = vadd.f32 %v11502_v51, %v9319_v17  ;;  %v9322_v34 = vadd.f32 %v9321_v26, %v9320_v20  ;;  %1914 = vmatprep.mubr.bf16.mxu0 %v1633_v23  ;;  %v2102_v36 = vadd.f32 %v11416_v30, %v2066_v15 }
 0x1a4   : > { %v9434_v35 = vadd.f32 %v9433_v27, %v9432_v22  ;;  %1915 = vmatmul.mubr.bf16.gmra.mrb[84].mxu0 %v1632_v29  ;;  %v2133_v11 = vmax.f32 %v2101_v31, 0.0 }
 0x1a5   : > { %v1409_v39 = vadd.f32 %v9431_v18, %v1248_v33  ;;  %v1251_v41 = vadd.f32 %v11502_v51, %v9322_v34  ;;  %v2134_v43 = vmax.f32 %v2102_v36, 0.0 }
 0x1a6   : > { %v1607_v44 = vld [vmem:[#allocation2 + $0x13b] ss:$2 sm:$0xff] }
 0x1a7   : > { %1526 = vst [vmem:[#allocation2 + $0x159] sm:$0xff] %v1409_v39  ;;  %v2067_v45 = vmul.f32 %v11412_v25, %v1409_v39  ;;  %v1412_v46 = vadd.f32 %v9434_v35, %v1251_v41  ;;  %v9323_v47 = vpop.f32.mrb[56].mxu0  ;;  %v1635_v50 = vpack.c.bf16 %v1607_v44, %v1606_v37  ;;  %v11530_v53 = vpack.c.bf16 %v2134_v43, %v2133_v11 }
 0x1a8   : > { %v9435_v48 = vpop.f32.mrb[56].mxu1  ;;  %v9324_v54 = vpop.f32.mrb[57].mxu0  ;;  %v1560_v20 = vld [vmem:[#allocation2 + $0x149] ss:$2 sm:$0xff]  ;;  %v1544_v11 = vld [vmem:[#allocation2 + $0x148] ss:$2 sm:$0xff] }
 0x1a9   : > { %v9436_v57 = vpop.f32.mrb[57].mxu1  ;;  %1527 = vst [vmem:[#allocation2 + $0x161] sm:$0xff] %v1412_v46  ;;  %v2068_v58 = vmul.f32 %v11412_v25, %v1412_v46  ;;  %v9325_v59 = vadd.f32 %v9324_v54, %v9323_v47  ;;  %v9326_v63 = vpop.f32.mrb[58].mxu0  ;;  %2011 = vmatprep.mubr.bf16.mxu1 %v1635_v50  ;;  %v2103_v60 = vadd.f32 %v11416_v30, %v2067_v45 }
 0x1aa   : > { %v9437_v62 = vadd.f32 %v9436_v57, %v9435_v48  ;;  %v9438_v1 = vpop.f32.mrb[58].mxu1  ;;  %v9327_v7 = vpop.f32.mrb[59].mxu0  ;;  %2012 = vmatmul.mubr.bf16.gmra.mrb[84].mxu1 %v1634_v12 }
 0x1ab   : > { %v9439_v3 = vpop.f32.mrb[59].mxu1  ;;  %v1256_v4 = vadd.f32 %v11502_v51, %v9325_v59  ;;  %v9328_v8 = vadd.f32 %v9327_v7, %v9326_v63  ;;  %v2104_v13 = vadd.f32 %v11416_v30, %v2068_v58  ;;  %v2135_v17 = vmax.f32 %v2103_v60, 0.0  ;;  %v1589_v59 = vld [vmem:[#allocation2 + $0x14a] ss:$2 sm:$0xff] }
 0x1ac   : > { %v9440_v61 = vadd.f32 %v9439_v3, %v9438_v1 }
 0x1ad   : > { %v1417_v14 = vadd.f32 %v9437_v62, %v1256_v4  ;;  %v1259_v15 = vadd.f32 %v11502_v51, %v9328_v8  ;;  %v2136_v18 = vmax.f32 %v2104_v13, 0.0 }
 0x1ae   : > { %v1608_v54 = vld [vmem:[#allocation2 + $0x14b] ss:$2 sm:$0xff] }
 0x1af   : > { %1528 = vst [vmem:[#allocation2 + $0x169] sm:$0xff] %v1417_v14  ;;  %v2069_v22 = vmul.f32 %v11412_v25, %v1417_v14  ;;  %v1420_v23 = vadd.f32 %v9440_v61, %v1259_v15  ;;  %v9329_v24 = vpop.f32.mrb[60].mxu0  ;;  %v11538_v27 = vpack.c.bf16 %v2136_v18, %v2135_v17 }
 0x1b0   : > { %v9441_v26 = vpop.f32.mrb[60].mxu1  ;;  %v9330_v29 = vpop.f32.mrb[61].mxu0  ;;  %v1561_v33 = vld [vmem:[#allocation2 + $0x159] ss:$2 sm:$0xff]  ;;  %v1545_v34 = vld [vmem:[#allocation2 + $0x158] ss:$2 sm:$0xff] }
 0x1b1   : > { %v9442_v31 = vpop.f32.mrb[61].mxu1  ;;  %1529 = vst [vmem:[#allocation2 + $0x171] sm:$0xff] %v1420_v23  ;;  %v2070_v35 = vmul.f32 %v11412_v25, %v1420_v23  ;;  %v9331_v36 = vadd.f32 %v9330_v29, %v9329_v24  ;;  %v9332_v38 = vpop.f32.mrb[62].mxu0  ;;  %v1637_v41 = vpack.c.bf16 %v1561_v33, %v1560_v20  ;;  %v1636_v45 = vpack.c.bf16 %v1545_v34, %v1544_v11  ;;  %v1591_v57 = vld [vmem:[#allocation2 + $0x15a] ss:$2 sm:$0xff] }
 0x1b2   : > { %v9443_v37 = vadd.f32 %v9442_v31, %v9441_v26  ;;  %v9444_v39 = vpop.f32.mrb[62].mxu1  ;;  %v9333_v43 = vpop.f32.mrb[63].mxu0  ;;  %v2105_v46 = vadd.f32 %v11416_v30, %v2069_v22  ;;  %v1638_v8 = vpack.c.bf16 %v1591_v57, %v1589_v59  ;;  %v10609_v11 = vld [vmem:[%s13082_s6 + $0x68] sm:$0xff]  }
 0x1b3   : > { %v9445_v44 = vpop.f32.mrb[63].mxu1  ;;  %v1264_v47 = vadd.f32 %v11502_v51, %v9331_v36  ;;  %v9334_v48 = vadd.f32 %v9333_v43, %v9332_v38  ;;  %1922 = vmatprep.mubr.bf16.mxu0 %v1637_v41  ;;  %v2106_v52 = vadd.f32 %v11416_v30, %v2070_v35  ;;  %v10604_v36 = vld [vmem:[%s13082_s6 + $0x98] sm:$0xff]   ;;  %v10606_v38 = vld [vmem:[%s13082_s6 + $0x20] sm:$0xff]   ;;  %v10610_v43 = vld [vmem:[%s13082_s6 + $0x28] sm:$0xff]  }
 0x1b4   : > { %v9446_v50 = vadd.f32 %v9445_v44, %v9444_v39  ;;  %1923 = vmatmul.mubr.bf16.gmra.mrb[88].mxu0 %v1636_v45  ;;  %v2137_v62 = vmax.f32 %v2105_v46, 0.0  ;;  %v10607_v39 = vld [vmem:[%s13082_s6 + $0xe0] sm:$0xff]   ;;  %v10611_v44 = vld [vmem:[%s13082_s6 + $0xe8] sm:$0xff]  }
 0x1b5   : > { %v1425_v12 = vadd.f32 %v9443_v37, %v1264_v47  ;;  %v1267_v58 = vadd.f32 %v11502_v51, %v9334_v48  ;;  %v2138_v63 = vmax.f32 %v2106_v52, 0.0  ;;  %v10605_v37 = vld [vmem:[%s13082_s6 + $0x60] sm:$0xff]   ;;  %v10612_v45 = vld [vmem:[%s13082_s6 + $0xa8] sm:$0xff]  }
 0x1b6   : > { %v1609_v1 = vld [vmem:[#allocation2 + $0x15b] ss:$2 sm:$0xff] }
 0x1b7   : > { %1530 = vst [vmem:[#allocation2 + $0x179] sm:$0xff] %v1425_v12  ;;  %v2071_v60 = vmul.f32 %v11412_v25, %v1425_v12  ;;  %v1428_v7 = vadd.f32 %v9446_v50, %v1267_v58  ;;  %v1639_v3 = vpack.c.bf16 %v1609_v1, %v1608_v54  ;;  %v2155_v4 = vpack.c.bf16 %v2138_v63, %v2137_v62  ;;  %v10608_v41 = vld [vmem:[%s13082_s6 + $0xa0] sm:$0xff]   ;;  %v10613_v54 = vld [vmem:[%s13082_s6 + $0x70] sm:$0xff]   ;;  %v10617_v62 = vld [vmem:[%s13082_s6 + $0x78] sm:$0xff]  }
 0x1b8   : > { %v1562_v17 = vld [vmem:[#allocation2 + $0x169] ss:$2 sm:$0xff]  ;;  %v1546_v20 = vld [vmem:[#allocation2 + $0x168] ss:$2 sm:$0xff]  ;;  %v11645_v58 = vld [vmem:[%s13085_s9] ss:$0 sm:$0xff] }
 0x1b9   : > { %1531 = vst [vmem:[#allocation2 + $0x181] sm:$0xff] %v1428_v7  ;;  %v2072_v61 = vmul.f32 %v11412_v25, %v1428_v7  ;;  %2019 = vmatprep.mubr.bf16.mxu1 %v1639_v3  ;;  %v2107_v13 = vadd.f32 %v11416_v30, %v2071_v60  ;;  %v1593_v22 = vld [vmem:[#allocation2 + $0x16a] ss:$2 sm:$0xff] }
 0x1ba   : > { %2020 = vmatmul.mubr.bf16.gmra.mrb[88].mxu1 %v1638_v8  ;;  %v10614_v12 = vld [vmem:[%s13082_s6 + $0x30] sm:$0xff]   ;;  %v10618_v7 = vld [vmem:[%s13082_s6 + $0x38] sm:$0xff]  }
 0x1bb   : > { %v2108_v51 = vadd.f32 %v11416_v30, %v2072_v61  ;;  %v2139_v14 = vmax.f32 %v2107_v13, 0.0  ;;  %v10589_v30 = vld [vmem:[%s13082_s6 + $0x40] sm:$0xff]   ;;  %v10615_v1 = vld [vmem:[%s13082_s6 + $0xf0] sm:$0xff]  }
 0x1bc   : > { %9599 = vmatprep.subr.bf16.mxu1 %v10589_v30  ;;  %v10616_v60 = vld [vmem:[%s13082_s6 + $0xb0] sm:$0xff]  }
 0x1bd   : > { %v2140_v15 = vmax.f32 %v2108_v51, 0.0 }
 0x1be   : > { %v1610_v18 = vld [vmem:[#allocation2 + $0x16b] ss:$2 sm:$0xff] }
 0x1bf   : > { %v2156_v23 = vpack.c.bf16 %v2140_v15, %v2139_v14 }
 0x1c0   : > { %v1563_v24 = vld [vmem:[#allocation2 + $0x179] ss:$2 sm:$0xff]  ;;  %v1547_v29 = vld [vmem:[#allocation2 + $0x178] ss:$2 sm:$0xff] }
 0x1c1   : > { %v1611_v26 = vld [vmem:[#allocation2 + $0x17b] ss:$2 sm:$0xff]  ;;  %v1641_v31 = vpack.c.bf16 %v1563_v24, %v1562_v17  ;;  %v1640_v25 = vpack.c.bf16 %v1547_v29, %v1546_v20  ;;  %v1595_v34 = vld [vmem:[#allocation2 + $0x17a] ss:$2 sm:$0xff] }
 0x1c2   : > { %v1643_v33 = vpack.c.bf16 %v1611_v26, %v1610_v18  ;;  %2489 = vst [vmem:[#allocation2 + $0x189] sm:$0x1] %v11058_v0  ;;  %v1642_v35 = vpack.c.bf16 %v1595_v34, %v1593_v22  ;;  %v10619_v17 = vld [vmem:[%s13082_s6 + $0xf8] sm:$0xff]  }
 0x1c3   : > { %1930 = vmatprep.mubr.bf16.mxu0 %v1641_v31  ;;  %v10620_v18 = vld [vmem:[%s13082_s6 + $0xb8] sm:$0xff]  }
 0x1c4   : > { %2027 = vmatprep.mubr.bf16.mxu1 %v1643_v33  ;;  %1931 = vmatmul.mubr.bf16.gmra.mrb[92].mxu0 %v1640_v25 }
 0x1c5   : > { %2028 = vmatmul.mubr.bf16.gmra.mrb[92].mxu1 %v1642_v35  ;;  %10335 = vmatprep.mubr.bf16.mxu0 %v11425_v56  ;;  %v10590_v56 = vld [vmem:[%s13082_s6] sm:$0xff]  }
 0x1c6   : > { %9600 = vmatpush3.bf16.msra.mxu1 %v10590_v56 }
 0x1cc   : > { %10336 = vmatmul.mubr.bf16.vlgmr.msra.gmra.mrb[96].mxu0 %v11433_v19  ;;  %v10591_v19 = vld [vmem:[%s13082_s6 + $0xc0] sm:$0xff]  }
 0x1cd   : > { %10339 = vmatprep.mubr.bf16.mxu0 %v11443_v2  ;;  %9663 = vmatprep.subr.bf16.mxu0 %v10591_v19  ;;  %v10592_v2 = vld [vmem:[%s13082_s6 + $0x80] sm:$0xff]  }
 0x1ce   : > { %9664 = vmatpush3.bf16.msra.mxu0 %v10592_v2 }
 0x1d4   : > { %10340 = vmatmul.mubr.bf16.gmra.mrb[100].mxu0 %v11451_v32  ;;  %v10593_v32 = vld [vmem:[%s13082_s6 + $0x48] sm:$0xff]  }
 0x1d5   : > { %10343 = vmatprep.mubr.bf16.mxu0 %v11459_v5  ;;  %9601 = vmatprep.subr.bf16.mxu1 %v10593_v32  ;;  %v10594_v5 = vld [vmem:[%s13082_s6 + $0x8] sm:$0xff]  }
 0x1d6   : > { %9602 = vmatpush3.bf16.msra.mxu1 %v10594_v5 }
 0x1dc   : > { %10344 = vmatmul.mubr.bf16.gmra.mrb[104].mxu0 %v11467_v40  ;;  %v10595_v40 = vld [vmem:[%s13082_s6 + $0xc8] sm:$0xff]  }
 0x1dd   : > { %10347 = vmatprep.mubr.bf16.mxu0 %v11475_v16  ;;  %9665 = vmatprep.subr.bf16.mxu0 %v10595_v40  ;;  %v10596_v16 = vld [vmem:[%s13082_s6 + $0x88] sm:$0xff]  }
 0x1de   : > { %9666 = vmatpush3.bf16.msra.mxu0 %v10596_v16 }
 0x1e4   : > { %10348 = vmatmul.mubr.bf16.gmra.mrb[108].mxu0 %v11483_v49  ;;  %v10597_v49 = vld [vmem:[%s13082_s6 + $0x50] sm:$0xff]  }
 0x1e5   : > { %10351 = vmatprep.mubr.bf16.mxu0 %v11492_v28  ;;  %v10598_v28 = vld [vmem:[%s13082_s6 + $0x10] sm:$0xff]   ;;  %9603 = vmatprep.subr.bf16.mxu1 %v10597_v49 }
 0x1e6   : > { %9604 = vmatpush3.bf16.msra.mxu1 %v10598_v28 }
 0x1ec   : > { %10352 = vmatmul.mubr.bf16.gmra.mrb[112].mxu0 %v11505_v55  ;;  %v10599_v55 = vld [vmem:[%s13082_s6 + $0xd0] sm:$0xff]  }
 0x1ed   : > { %10355 = vmatprep.mubr.bf16.mxu0 %v11514_v42  ;;  %9667 = vmatprep.subr.bf16.mxu0 %v10599_v55  ;;  %v10600_v42 = vld [vmem:[%s13082_s6 + $0x90] sm:$0xff]  }
 0x1ee   : > { %9668 = vmatpush3.bf16.msra.mxu0 %v10600_v42 }
 0x1f4   : > { %10356 = vmatmul.mubr.bf16.gmra.mrb[116].mxu0 %v11522_v6  ;;  %v10601_v6 = vld [vmem:[%s13082_s6 + $0x58] sm:$0xff]  }
 0x1f5   : > { %10359 = vmatprep.mubr.bf16.mxu0 %v11530_v53  ;;  %9605 = vmatprep.subr.bf16.mxu1 %v10601_v6  ;;  %v10602_v53 = vld [vmem:[%s13082_s6 + $0x18] sm:$0xff]  }
 0x1f6   : > { %9606 = vmatpush3.bf16.msra.mxu1 %v10602_v53 }
 0x1f7   : > { %9607 = vmatprep.subr.bf16.mxu1 %v10605_v37 }
 0x1fa   : > { %9608 = vmatpush3.bf16.msra.mxu1 %v10606_v38 }
 0x1fb   : > { %9609 = vmatprep.subr.bf16.mxu1 %v10609_v11 }
 0x1fc   : > { %10360 = vmatmul.mubr.bf16.gmra.mrb[120].mxu0 %v11538_v27  ;;  %v10603_v27 = vld [vmem:[%s13082_s6 + $0xd8] sm:$0xff]  }
 0x1fd   : > { %10363 = vmatprep.mubr.bf16.mxu0 %v2155_v4  ;;  %9669 = vmatprep.subr.bf16.mxu0 %v10603_v27 }
 0x1fe   : > { %9670 = vmatpush3.bf16.msra.mxu0 %v10604_v36  ;;  %9610 = vmatpush3.bf16.msra.mxu1 %v10610_v43 }
 0x1ff   : > { %9671 = vmatprep.subr.bf16.mxu0 %v10607_v39  ;;  %9611 = vmatprep.subr.bf16.mxu1 %v10613_v54 }
 0x202   : > { %9672 = vmatpush3.bf16.msra.mxu0 %v10608_v41  ;;  %9612 = vmatpush3.bf16.msra.mxu1 %v10614_v12 }
 0x203   : > { %9673 = vmatprep.subr.bf16.mxu0 %v10611_v44  ;;  %9613 = vmatprep.subr.bf16.mxu1 %v10617_v62 }
 0x204   : > { %10364 = vmatmul.mubr.bf16.gmra.mrb[124].mxu0 %v2156_v23 }
 0x206   : > { %9674 = vmatpush3.bf16.msra.mxu0 %v10612_v45  ;;  %9614 = vmatpush3.bf16.msra.mxu1 %v10618_v7 }
 0x207   : > { %9675 = vmatprep.subr.bf16.mxu0 %v10615_v1 }
 0x20a   : > { %9676 = vmatpush3.bf16.msra.mxu0 %v10616_v60 }
 0x20b   : > { %9677 = vmatprep.subr.bf16.mxu0 %v10619_v17 }
 0x20e   : > { %9678 = vmatpush3.bf16.msra.mxu0 %v10620_v18 }
 0x227   : > { %v9463_v46 = vpop.f32.mrb[64].mxu0 }
 0x228   : > { %v9464_v47 = vpop.f32.mrb[65].mxu0 }
 0x229   : > { %v9465_v48 = vadd.f32 %v9464_v47, %v9463_v46  ;;  %v9466_v50 = vpop.f32.mrb[66].mxu0 }
 0x22a   : > { %v9467_v52 = vpop.f32.mrb[67].mxu0 }
 0x22b   : > { %v9468_v57 = vadd.f32 %v9467_v52, %v9466_v50  ;;  %v1877_v3 = vadd.f32 %v9465_v48, %v11645_v58 }
 0x22d   : > { %v1880_v13 = vadd.f32 %v9468_v57, %v11645_v58 }
 0x22e   : > { %v9527_v59 = vpop.f32.mrb[64].mxu1 }
 0x22f   : > { %v9528_v63 = vpop.f32.mrb[65].mxu1 }
 0x230   : > { %v9529_v4 = vadd.f32 %v9528_v63, %v9527_v59  ;;  %v9530_v8 = vpop.f32.mrb[66].mxu1 }
 0x231   : > { %v9531_v61 = vpop.f32.mrb[67].mxu1 }
 0x232   : > { %v11661_v51 = vadd.f32 %v9529_v4, %v1877_v3  ;;  %v9532_v14 = vadd.f32 %v9531_v61, %v9530_v8 }
 0x234   : > { %v11663_v15 = vadd.f32 %v9532_v14, %v1880_v13 }
 0x237   : > { %v9469_v20 = vpop.f32.mrb[68].mxu0 }
 0x238   : > { %v9470_v22 = vpop.f32.mrb[69].mxu0 }
 0x239   : > { %v9471_v23 = vadd.f32 %v9470_v22, %v9469_v20  ;;  %v9472_v24 = vpop.f32.mrb[70].mxu0 }
 0x23a   : > { %v9473_v26 = vpop.f32.mrb[71].mxu0 }
 0x23b   : > { %v9474_v29 = vadd.f32 %v9473_v26, %v9472_v24  ;;  %v1885_v25 = vadd.f32 %v9471_v23, %v11645_v58  ;;  %v11690_v23 = vld [vmem:[#allocation5 + $0x40] sm:$0xff]  }
 0x23c   : > { %10367 = vmatprep.subr.bf16.mxu0 %v11690_v23 }
 0x23d   : > { %v9533_v31 = vpop.f32.mrb[68].mxu1  ;;  %v1888_v56 = vadd.f32 %v9474_v29, %v11645_v58 }
 0x23e   : > { %v9534_v33 = vpop.f32.mrb[69].mxu1 }
 0x23f   : > { %v9535_v34 = vadd.f32 %v9534_v33, %v9533_v31  ;;  %v9536_v35 = vpop.f32.mrb[70].mxu1 }
 0x240   : > { %v9537_v30 = vpop.f32.mrb[71].mxu1 }
 0x241   : > { %v11673_v19 = vadd.f32 %v9535_v34, %v1885_v25  ;;  %v9538_v2 = vadd.f32 %v9537_v30, %v9536_v35 }
 0x243   : > { %v11675_v32 = vadd.f32 %v9538_v2, %v1888_v56 }
 0x247   : > { %v9475_v5 = vpop.f32.mrb[72].mxu0 }
 0x248   : > { %v9476_v40 = vpop.f32.mrb[73].mxu0 }
 0x249   : > { %v9477_v16 = vadd.f32 %v9476_v40, %v9475_v5  ;;  %v9478_v49 = vpop.f32.mrb[74].mxu0 }
 0x24a   : > { %v9479_v28 = vpop.f32.mrb[75].mxu0 }
 0x24b   : > { %v9480_v55 = vadd.f32 %v9479_v28, %v9478_v49  ;;  %v1893_v53 = vadd.f32 %v9477_v16, %v11645_v58 }
 0x24d   : > { %v9539_v42 = vpop.f32.mrb[72].mxu1  ;;  %v1896_v38 = vadd.f32 %v9480_v55, %v11645_v58 }
 0x24e   : > { %v9540_v6 = vpop.f32.mrb[73].mxu1 }
 0x24f   : > { %v9541_v27 = vadd.f32 %v9540_v6, %v9539_v42  ;;  %v9542_v36 = vpop.f32.mrb[74].mxu1 }
 0x250   : > { %v9543_v37 = vpop.f32.mrb[75].mxu1 }
 0x251   : > { %v11679_v39 = vadd.f32 %v9541_v27, %v1893_v53  ;;  %v9544_v41 = vadd.f32 %v9543_v37, %v9542_v36 }
 0x253   : > { %v11681_v11 = vadd.f32 %v9544_v41, %v1896_v38 }
 0x257   : > { %v9481_v43 = vpop.f32.mrb[76].mxu0 }
 0x258   : > { %v9545_v44 = vpop.f32.mrb[76].mxu1  ;;  %v9482_v45 = vpop.f32.mrb[77].mxu0 }
 0x259   : > { %v9483_v46 = vadd.f32 %v9482_v45, %v9481_v43  ;;  %v9546_v47 = vpop.f32.mrb[77].mxu1  ;;  %v9484_v48 = vpop.f32.mrb[78].mxu0 }
 0x25a   : > { %v9547_v50 = vadd.f32 %v9546_v47, %v9545_v44  ;;  %v9548_v52 = vpop.f32.mrb[78].mxu1  ;;  %v9485_v54 = vpop.f32.mrb[79].mxu0 }
 0x25b   : > { %v1901_v57 = vadd.f32 %v9483_v46, %v11645_v58  ;;  %v9486_v12 = vadd.f32 %v9485_v54, %v9484_v48  ;;  %v9549_v59 = vpop.f32.mrb[79].mxu1 }
 0x25c   : > { %v9550_v62 = vadd.f32 %v9549_v59, %v9548_v52 }
 0x25d   : > { %v11684_v63 = vadd.f32 %v9547_v50, %v1901_v57  ;;  %v1904_v1 = vadd.f32 %v9486_v12, %v11645_v58 }
 0x25f   : > { %v11687_v60 = vadd.f32 %v9550_v62, %v1904_v1 }
 0x267   : > { %v9487_v7 = vpop.f32.mrb[80].mxu0 }
 0x268   : > { %v9488_v3 = vpop.f32.mrb[81].mxu0 }
 0x269   : > { %v9489_v4 = vadd.f32 %v9488_v3, %v9487_v7  ;;  %v9490_v8 = vpop.f32.mrb[82].mxu0 }
 0x26a   : > { %v9491_v61 = vpop.f32.mrb[83].mxu0 }
 0x26b   : > { %v9492_v13 = vadd.f32 %v9491_v61, %v9490_v8  ;;  %v1909_v18 = vadd.f32 %v9489_v4, %v11645_v58 }
 0x26d   : > { %v9551_v14 = vpop.f32.mrb[80].mxu1  ;;  %v1912_v26 = vadd.f32 %v9492_v13, %v11645_v58 }
 0x26e   : > { %v9552_v17 = vpop.f32.mrb[81].mxu1 }
 0x26f   : > { %v9553_v20 = vadd.f32 %v9552_v17, %v9551_v14  ;;  %v9554_v22 = vpop.f32.mrb[82].mxu1 }
 0x270   : > { %v9555_v24 = vpop.f32.mrb[83].mxu1 }
 0x271   : > { %v11693_v29 = vadd.f32 %v9553_v20, %v1909_v18  ;;  %v9556_v31 = vadd.f32 %v9555_v24, %v9554_v22 }
 0x273   : > { %v11696_v33 = vadd.f32 %v9556_v31, %v1912_v26  ;;  %v11717_v31 = vld [vmem:[%s13081_s5] ss:$0 sm:$0xff] }
 0x277   : > { %v9493_v25 = vpop.f32.mrb[84].mxu0 }
 0x278   : > { %v9494_v34 = vpop.f32.mrb[85].mxu0 }
 0x279   : > { %v9495_v35 = vadd.f32 %v9494_v34, %v9493_v25  ;;  %v9496_v30 = vpop.f32.mrb[86].mxu0 }
 0x27a   : > { %v9497_v56 = vpop.f32.mrb[87].mxu0 }
 0x27b   : > { %v9498_v2 = vadd.f32 %v9497_v56, %v9496_v30  ;;  %v1917_v16 = vadd.f32 %v9495_v35, %v11645_v58 }
 0x27d   : > { %v9557_v5 = vpop.f32.mrb[84].mxu1  ;;  %v1920_v42 = vadd.f32 %v9498_v2, %v11645_v58 }
 0x27e   : > { %v9558_v40 = vpop.f32.mrb[85].mxu1 }
 0x27f   : > { %v9559_v49 = vadd.f32 %v9558_v40, %v9557_v5  ;;  %v9560_v28 = vpop.f32.mrb[86].mxu1 }
 0x280   : > { %v9561_v55 = vpop.f32.mrb[87].mxu1 }
 0x281   : > { %v11700_v6 = vadd.f32 %v9559_v49, %v1917_v16  ;;  %v9562_v53 = vadd.f32 %v9561_v55, %v9560_v28 }
 0x283   : > { %v11702_v27 = vadd.f32 %v9562_v53, %v1920_v42 }
 0x287   : > { %v9499_v36 = vpop.f32.mrb[88].mxu0 }
 0x288   : > { %v9500_v37 = vpop.f32.mrb[89].mxu0 }
 0x289   : > { %v9501_v38 = vadd.f32 %v9500_v37, %v9499_v36  ;;  %v9502_v41 = vpop.f32.mrb[90].mxu0 }
 0x28a   : > { %v9503_v43 = vpop.f32.mrb[91].mxu0 }
 0x28b   : > { %v9504_v44 = vadd.f32 %v9503_v43, %v9502_v41  ;;  %v1925_v47 = vadd.f32 %v9501_v38, %v11645_v58 }
 0x28d   : > { %v9563_v45 = vpop.f32.mrb[88].mxu1  ;;  %v1928_v54 = vadd.f32 %v9504_v44, %v11645_v58 }
 0x28e   : > { %v9564_v46 = vpop.f32.mrb[89].mxu1 }
 0x28f   : > { %v9565_v48 = vadd.f32 %v9564_v46, %v9563_v45  ;;  %v9566_v50 = vpop.f32.mrb[90].mxu1 }
 0x290   : > { %v9567_v52 = vpop.f32.mrb[91].mxu1 }
 0x291   : > { %v11706_v57 = vadd.f32 %v9565_v48, %v1925_v47  ;;  %v9568_v12 = vadd.f32 %v9567_v52, %v9566_v50 }
 0x293   : > { %v11708_v59 = vadd.f32 %v9568_v12, %v1928_v54 }
 0x297   : > { %v9505_v62 = vpop.f32.mrb[92].mxu0 }
 0x298   : > { %v9569_v1 = vpop.f32.mrb[92].mxu1  ;;  %v9506_v7 = vpop.f32.mrb[93].mxu0 }
 0x299   : > { %v9570_v3 = vpop.f32.mrb[93].mxu1  ;;  %v9507_v4 = vadd.f32 %v9506_v7, %v9505_v62  ;;  %v9508_v61 = vpop.f32.mrb[94].mxu0 }
 0x29a   : > { %v9571_v8 = vadd.f32 %v9570_v3, %v9569_v1  ;;  %v9572_v13 = vpop.f32.mrb[94].mxu1  ;;  %v9509_v14 = vpop.f32.mrb[95].mxu0 }
 0x29b   : > { %v9573_v17 = vpop.f32.mrb[95].mxu1  ;;  %v1933_v18 = vadd.f32 %v9507_v4, %v11645_v58  ;;  %v9510_v20 = vadd.f32 %v9509_v14, %v9508_v61 }
 0x29c   : > { %v9574_v22 = vadd.f32 %v9573_v17, %v9572_v13 }
 0x29d   : > { %v11711_v24 = vadd.f32 %v9571_v8, %v1933_v18  ;;  %v1936_v26 = vadd.f32 %v9510_v20, %v11645_v58 }
 0x29f   : > { %v11719_v25 = vadd.f32 %v9574_v22, %v1936_v26  ;;  %v10337_v34 = vpop.f32.mrb[96].mxu0 }
 0x2a0   : > { %v2271_v35 = vadd.f32 %v10337_v34, %v11717_v31  ;;  %v2262_v30 = vpop.f32.mrb[97].mxu0 }
 0x2a1   : > { %v2263_v56 = vadd.f32 %v11717_v31, %v2262_v30  ;;  %v10338_v2 = vpop.f32.mrb[98].mxu0 }
 0x2a2   : > { %v2391_v5 = vmax.f32 %v2271_v35, 0.0  ;;  %v2274_v40 = vadd.f32 %v10338_v2, %v11717_v31  ;;  %v2265_v16 = vpop.f32.mrb[99].mxu0 }
 0x2a3   : > { %v2389_v49 = vmax.f32 %v2263_v56, 0.0  ;;  %v2266_v58 = vadd.f32 %v11717_v31, %v2265_v16 }
 0x2a4   : > { %2492 = vst [vmem:[#allocation2 + $0x11] sm:$0xff] %v2391_v5  ;;  %v2392_v28 = vmax.f32 %v2274_v40, 0.0  ;;  %v10622_v40 = vld [vmem:[#allocation5 + $0x48] sm:$0xff]  }
 0x2a5   : > { %2490 = vst [vmem:[#allocation2 + $0x1] sm:$0xff] %v2389_v49  ;;  %v2390_v55 = vmax.f32 %v2266_v58, 0.0 }
 0x2a6   : > { %2493 = vst [vmem:[#allocation2 + $0x19] sm:$0xff] %v2392_v28 }
 0x2a7   : > { %2491 = vst [vmem:[#allocation2 + $0x9] sm:$0xff] %v2390_v55  ;;  %v10341_v42 = vpop.f32.mrb[100].mxu0 }
 0x2a8   : > { %v2287_v53 = vadd.f32 %v10341_v42, %v11717_v31  ;;  %v2278_v36 = vpop.f32.mrb[101].mxu0 }
 0x2a9   : > { %v2279_v37 = vadd.f32 %v11717_v31, %v2278_v36  ;;  %v10342_v38 = vpop.f32.mrb[102].mxu0 }
 0x2aa   : > { %v2395_v41 = vmax.f32 %v2287_v53, 0.0  ;;  %v2290_v43 = vadd.f32 %v10342_v38, %v11717_v31  ;;  %v2281_v44 = vpop.f32.mrb[103].mxu0 }
 0x2ab   : > { %v2393_v45 = vmax.f32 %v2279_v37, 0.0  ;;  %v2282_v46 = vadd.f32 %v11717_v31, %v2281_v44 }
 0x2ac   : > { %2496 = vst [vmem:[#allocation2 + $0x31] sm:$0xff] %v2395_v41  ;;  %v2396_v47 = vmax.f32 %v2290_v43, 0.0 }
 0x2ad   : > { %2494 = vst [vmem:[#allocation2 + $0x21] sm:$0xff] %v2393_v45  ;;  %v2394_v48 = vmax.f32 %v2282_v46, 0.0  ;;  %v2539_v50 = vld [vmem:[#allocation2 + $0x11] ss:$2 sm:$0xff]  ;;  %v2555_v26 = vld [vmem:[#allocation2 + $0x12] ss:$2 sm:$0xff] }
 0x2ae   : > { %v2522_v52 = vld [vmem:[#allocation2] ss:$2 sm:$0xff]  ;;  %2497 = vst [vmem:[#allocation2 + $0x39] sm:$0xff] %v2396_v47  ;;  %v2538_v54 = vld [vmem:[#allocation2 + $0x1] ss:$2 sm:$0xff] }
 0x2af   : > { %3093 = vst [vmem:[#allocation2] sm:$0x1] %v11058_v0  ;;  %2495 = vst [vmem:[#allocation2 + $0x29] sm:$0xff] %v2394_v48  ;;  %v10345_v12 = vpop.f32.mrb[104].mxu0  ;;  %v2587_v62 = vpack.c.bf16 %v2539_v50, %v2538_v54  ;;  %v2523_v1 = vld [vmem:[#allocation2 + $0x10] ss:$2 sm:$0xff] }
 0x2b0   : > { %v2303_v7 = vadd.f32 %v10345_v12, %v11717_v31  ;;  %v2294_v3 = vpop.f32.mrb[105].mxu0  ;;  %v2586_v4 = vpack.c.bf16 %v2523_v1, %v2522_v52  ;;  %v2554_v22 = vld [vmem:[#allocation2 + $0x2] ss:$2 sm:$0xff]  ;;  %v2570_v35 = vld [vmem:[#allocation2 + $0x3] ss:$2 sm:$0xff] }
 0x2b1   : > { %v2295_v8 = vadd.f32 %v11717_v31, %v2294_v3  ;;  %v10346_v61 = vpop.f32.mrb[106].mxu0  ;;  %2848 = vmatprep.mubr.bf16.mxu1 %v2587_v62  ;;  %v2588_v16 = vpack.c.bf16 %v2555_v26, %v2554_v22 }
 0x2b2   : > { %v2399_v13 = vmax.f32 %v2303_v7, 0.0  ;;  %v2306_v14 = vadd.f32 %v10346_v61, %v11717_v31  ;;  %v2297_v17 = vpop.f32.mrb[107].mxu0  ;;  %2849 = vmatmul.mubr.bf16.vlgmr.msra.gmra.mrb[96].mxu1 %v2586_v4 }
 0x2b3   : > { %v2397_v18 = vmax.f32 %v2295_v8, 0.0  ;;  %v2298_v20 = vadd.f32 %v11717_v31, %v2297_v17 }
 0x2b4   : > { %2500 = vst [vmem:[#allocation2 + $0x51] sm:$0xff] %v2399_v13  ;;  %v2400_v34 = vmax.f32 %v2306_v14, 0.0  ;;  %v2571_v30 = vld [vmem:[#allocation2 + $0x13] ss:$2 sm:$0xff] }
 0x2b5   : > { %2498 = vst [vmem:[#allocation2 + $0x41] sm:$0xff] %v2397_v18  ;;  %v2398_v56 = vmax.f32 %v2298_v20, 0.0  ;;  %v2589_v2 = vpack.c.bf16 %v2571_v30, %v2570_v35  ;;  %v2541_v5 = vld [vmem:[#allocation2 + $0x31] ss:$2 sm:$0xff]  ;;  %v2557_v50 = vld [vmem:[#allocation2 + $0x32] ss:$2 sm:$0xff] }
 0x2b6   : > { %2501 = vst [vmem:[#allocation2 + $0x59] sm:$0xff] %v2400_v34  ;;  %v2540_v49 = vld [vmem:[#allocation2 + $0x21] ss:$2 sm:$0xff]  ;;  %v2524_v58 = vld [vmem:[#allocation2 + $0x20] ss:$2 sm:$0xff] }
 0x2b7   : > { %v2525_v28 = vld [vmem:[#allocation2 + $0x30] ss:$2 sm:$0xff]  ;;  %2499 = vst [vmem:[#allocation2 + $0x49] sm:$0xff] %v2398_v56  ;;  %v10349_v55 = vpop.f32.mrb[108].mxu0  ;;  %2945 = vmatprep.mubr.bf16.mxu0 %v2589_v2  ;;  %v2591_v42 = vpack.c.bf16 %v2541_v5, %v2540_v49  ;;  %v2572_v54 = vld [vmem:[#allocation2 + $0x23] ss:$2 sm:$0xff] }
 0x2b8   : > { %v2590_v53 = vpack.c.bf16 %v2525_v28, %v2524_v58  ;;  %v2319_v36 = vadd.f32 %v10349_v55, %v11717_v31  ;;  %v2310_v37 = vpop.f32.mrb[109].mxu0  ;;  %2946 = vmatmul.mubr.bf16.vlgmr.msra.gmra.mrb[128].mxu0 %v2588_v16  ;;  %v2556_v48 = vld [vmem:[#allocation2 + $0x22] ss:$2 sm:$0xff] }
 0x2b9   : > { %v2311_v38 = vadd.f32 %v11717_v31, %v2310_v37  ;;  %v10350_v41 = vpop.f32.mrb[110].mxu0  ;;  %2856 = vmatprep.mubr.bf16.mxu1 %v2591_v42  ;;  %10368 = vmatpush3.bf16.msra.mxu0 %v11690_v23  ;;  %v2592_v23 = vpack.c.bf16 %v2557_v50, %v2556_v48 }
 0x2ba   : > { %v2403_v43 = vmax.f32 %v2319_v36, 0.0  ;;  %v2322_v44 = vadd.f32 %v10350_v41, %v11717_v31  ;;  %v2313_v45 = vpop.f32.mrb[111].mxu0  ;;  %2857 = vmatmul.mubr.bf16.gmra.mrb[100].mxu1 %v2590_v53  ;;  %10369 = vmatprep.subr.bf16.mxu0 %v10622_v40 }
 0x2bb   : > { %v2401_v46 = vmax.f32 %v2311_v38, 0.0  ;;  %v2314_v47 = vadd.f32 %v11717_v31, %v2313_v45 }
 0x2bc   : > { %2504 = vst [vmem:[#allocation2 + $0x71] sm:$0xff] %v2403_v43  ;;  %v2404_v52 = vmax.f32 %v2322_v44, 0.0  ;;  %v2573_v12 = vld [vmem:[#allocation2 + $0x33] ss:$2 sm:$0xff] }
 0x2bd   : > { %2502 = vst [vmem:[#allocation2 + $0x61] sm:$0xff] %v2401_v46  ;;  %v2402_v62 = vmax.f32 %v2314_v47, 0.0  ;;  %v2593_v1 = vpack.c.bf16 %v2573_v12, %v2572_v54  ;;  %v2543_v7 = vld [vmem:[#allocation2 + $0x51] ss:$2 sm:$0xff]  ;;  %10370 = vmatpush3.bf16.msra.mxu0 %v10622_v40  ;;  %v2559_v5 = vld [vmem:[#allocation2 + $0x52] ss:$2 sm:$0xff] }
 0x2be   : > { %2505 = vst [vmem:[#allocation2 + $0x79] sm:$0xff] %v2404_v52  ;;  %v2542_v3 = vld [vmem:[#allocation2 + $0x41] ss:$2 sm:$0xff]  ;;  %v2526_v4 = vld [vmem:[#allocation2 + $0x40] ss:$2 sm:$0xff] }
 0x2bf   : > { %v2527_v8 = vld [vmem:[#allocation2 + $0x50] ss:$2 sm:$0xff]  ;;  %2503 = vst [vmem:[#allocation2 + $0x69] sm:$0xff] %v2402_v62  ;;  %v10353_v61 = vpop.f32.mrb[112].mxu0  ;;  %2953 = vmatprep.mubr.bf16.mxu0 %v2593_v1  ;;  %v2595_v13 = vpack.c.bf16 %v2543_v7, %v2542_v3  ;;  %3095 = vst [vmem:[#allocation2 + $0x41] sm:$0x1] %v11058_v0 }
 0x2c0   : > { %v2594_v14 = vpack.c.bf16 %v2527_v8, %v2526_v4  ;;  %v2335_v17 = vadd.f32 %v10353_v61, %v11717_v31  ;;  %v2326_v18 = vpop.f32.mrb[113].mxu0  ;;  %2954 = vmatmul.mubr.bf16.gmra.mrb[132].mxu0 %v2592_v23  ;;  %v2558_v2 = vld [vmem:[#allocation2 + $0x42] ss:$2 sm:$0xff]  ;;  %v2574_v16 = vld [vmem:[#allocation2 + $0x43] ss:$2 sm:$0xff] }
 0x2c1   : > { %v2327_v20 = vadd.f32 %v11717_v31, %v2326_v18  ;;  %v10354_v22 = vpop.f32.mrb[114].mxu0  ;;  %2864 = vmatprep.mubr.bf16.mxu1 %v2595_v13  ;;  %v2596_v53 = vpack.c.bf16 %v2559_v5, %v2558_v2 }
 0x2c2   : > { %v2407_v26 = vmax.f32 %v2335_v17, 0.0  ;;  %v2338_v34 = vadd.f32 %v10354_v22, %v11717_v31  ;;  %v2329_v35 = vpop.f32.mrb[115].mxu0  ;;  %2865 = vmatmul.mubr.bf16.gmra.mrb[104].mxu1 %v2594_v14 }
 0x2c3   : > { %v2405_v30 = vmax.f32 %v2327_v20, 0.0  ;;  %v2330_v56 = vadd.f32 %v11717_v31, %v2329_v35 }
 0x2c4   : > { %2508 = vst [vmem:[#allocation2 + $0x119] sm:$0xff] %v2407_v26  ;;  %v2408_v40 = vmax.f32 %v2338_v34, 0.0  ;;  %v2575_v49 = vld [vmem:[#allocation2 + $0x53] ss:$2 sm:$0xff] }
 0x2c5   : > { %2506 = vst [vmem:[#allocation2 + $0x109] sm:$0xff] %v2405_v30  ;;  %v2406_v58 = vmax.f32 %v2330_v56, 0.0  ;;  %v2597_v28 = vpack.c.bf16 %v2575_v49, %v2574_v16  ;;  %v2545_v55 = vld [vmem:[#allocation2 + $0x71] ss:$2 sm:$0xff]  ;;  %v2561_v3 = vld [vmem:[#allocation2 + $0x72] ss:$2 sm:$0xff] }
 0x2c6   : > { %v2577_v42 = vld [vmem:[#allocation2 + $0x73] ss:$2 sm:$0xff]  ;;  %2509 = vst [vmem:[#allocation2 + $0x121] sm:$0xff] %v2408_v40  ;;  %v2576_v37 = vld [vmem:[#allocation2 + $0x63] ss:$2 sm:$0xff] }
 0x2c7   : > { %v2544_v36 = vld [vmem:[#allocation2 + $0x61] ss:$2 sm:$0xff]  ;;  %v2528_v38 = vld [vmem:[#allocation2 + $0x60] ss:$2 sm:$0xff]  ;;  %2507 = vst [vmem:[#allocation2 + $0x111] sm:$0xff] %v2406_v58  ;;  %v10357_v41 = vpop.f32.mrb[116].mxu0  ;;  %2961 = vmatprep.mubr.bf16.mxu0 %v2597_v28  ;;  %v2601_v44 = vpack.c.bf16 %v2577_v42, %v2576_v37 }
 0x2c8   : > { %v2599_v43 = vpack.c.bf16 %v2545_v55, %v2544_v36  ;;  %v2529_v45 = vld [vmem:[#allocation2 + $0x70] ss:$2 sm:$0xff]  ;;  %v2351_v46 = vadd.f32 %v10357_v41, %v11717_v31  ;;  %v2342_v47 = vpop.f32.mrb[117].mxu0  ;;  %2962 = vmatmul.mubr.bf16.gmra.mrb[136].mxu0 %v2596_v53 }
 0x2c9   : > { %v2598_v48 = vpack.c.bf16 %v2529_v45, %v2528_v38  ;;  %v2343_v50 = vadd.f32 %v11717_v31, %v2342_v47  ;;  %v10358_v52 = vpop.f32.mrb[118].mxu0  ;;  %2969 = vmatprep.mubr.bf16.mxu0 %v2601_v44  ;;  %v2560_v23 = vld [vmem:[#allocation2 + $0x62] ss:$2 sm:$0xff] }
 0x2ca   : > { %2872 = vmatprep.mubr.bf16.mxu1 %v2599_v43  ;;  %v2411_v54 = vmax.f32 %v2351_v46, 0.0  ;;  %v2354_v12 = vadd.f32 %v10358_v52, %v11717_v31  ;;  %v2345_v62 = vpop.f32.mrb[119].mxu0  ;;  %v2600_v14 = vpack.c.bf16 %v2561_v3, %v2560_v23 }
 0x2cb   : > { %2873 = vmatmul.mubr.bf16.gmra.mrb[108].mxu1 %v2598_v48  ;;  %v2409_v1 = vmax.f32 %v2343_v50, 0.0  ;;  %v2346_v7 = vadd.f32 %v11717_v31, %v2345_v62 }
 0x2cc   : > { %2512 = vst [vmem:[#allocation2 + $0x139] sm:$0xff] %v2411_v54  ;;  %v2412_v4 = vmax.f32 %v2354_v12, 0.0 }
 0x2cd   : > { %2510 = vst [vmem:[#allocation2 + $0x129] sm:$0xff] %v2409_v1  ;;  %v2410_v8 = vmax.f32 %v2346_v7, 0.0  ;;  %v2547_v61 = vld [vmem:[#allocation2 + $0x119] ss:$2 sm:$0xff]  ;;  %v2563_v28 = vld [vmem:[#allocation2 + $0x11a] ss:$2 sm:$0xff] }
 0x2ce   : > { %v2530_v13 = vld [vmem:[#allocation2 + $0x108] ss:$2 sm:$0xff]  ;;  %2513 = vst [vmem:[#allocation2 + $0x141] sm:$0xff] %v2412_v4  ;;  %v2546_v17 = vld [vmem:[#allocation2 + $0x109] ss:$2 sm:$0xff] }
 0x2cf   : > { %3094 = vst [vmem:[#allocation2 + $0x108] sm:$0x1] %v11058_v0  ;;  %2511 = vst [vmem:[#allocation2 + $0x131] sm:$0xff] %v2410_v8  ;;  %v10361_v18 = vpop.f32.mrb[120].mxu0  ;;  %v2603_v20 = vpack.c.bf16 %v2547_v61, %v2546_v17  ;;  %v2531_v22 = vld [vmem:[#allocation2 + $0x118] ss:$2 sm:$0xff] }
 0x2d0   : > { %v2367_v26 = vadd.f32 %v10361_v18, %v11717_v31  ;;  %v2358_v34 = vpop.f32.mrb[121].mxu0  ;;  %2970 = vmatmul.mubr.bf16.gmra.mrb[140].mxu0 %v2600_v14  ;;  %v2602_v35 = vpack.c.bf16 %v2531_v22, %v2530_v13  ;;  %v2562_v58 = vld [vmem:[#allocation2 + $0x10a] ss:$2 sm:$0xff]  ;;  %v2578_v42 = vld [vmem:[#allocation2 + $0x10b] ss:$2 sm:$0xff] }
 0x2d1   : > { %v2359_v30 = vadd.f32 %v11717_v31, %v2358_v34  ;;  %v10362_v56 = vpop.f32.mrb[122].mxu0  ;;  %2880 = vmatprep.mubr.bf16.mxu1 %v2603_v20  ;;  %v2604_v41 = vpack.c.bf16 %v2563_v28, %v2562_v58 }
 0x2d2   : > { %v2415_v2 = vmax.f32 %v2367_v26, 0.0  ;;  %v2370_v5 = vadd.f32 %v10362_v56, %v11717_v31  ;;  %v2361_v40 = vpop.f32.mrb[123].mxu0 }
 0x2d3   : > { %2881 = vmatmul.mubr.bf16.gmra.mrb[112].mxu1 %v2602_v35  ;;  %v2413_v16 = vmax.f32 %v2359_v30, 0.0  ;;  %v2362_v49 = vadd.f32 %v11717_v31, %v2361_v40 }
 0x2d4   : > { %2516 = vst [vmem:[#allocation2 + $0x159] sm:$0xff] %v2415_v2  ;;  %v2416_v55 = vmax.f32 %v2370_v5, 0.0  ;;  %v2579_v53 = vld [vmem:[#allocation2 + $0x11b] ss:$2 sm:$0xff] }
 0x2d5   : > { %2514 = vst [vmem:[#allocation2 + $0x149] sm:$0xff] %v2413_v16  ;;  %v2414_v36 = vmax.f32 %v2362_v49, 0.0  ;;  %v2605_v37 = vpack.c.bf16 %v2579_v53, %v2578_v42  ;;  %v2549_v38 = vld [vmem:[#allocation2 + $0x139] ss:$2 sm:$0xff]  ;;  %v2565_v8 = vld [vmem:[#allocation2 + $0x13a] ss:$2 sm:$0xff] }
 0x2d6   : > { %2517 = vst [vmem:[#allocation2 + $0x161] sm:$0xff] %v2416_v55  ;;  %v2548_v43 = vld [vmem:[#allocation2 + $0x129] ss:$2 sm:$0xff]  ;;  %v2532_v44 = vld [vmem:[#allocation2 + $0x128] ss:$2 sm:$0xff] }
 0x2d7   : > { %v2533_v45 = vld [vmem:[#allocation2 + $0x138] ss:$2 sm:$0xff]  ;;  %2515 = vst [vmem:[#allocation2 + $0x151] sm:$0xff] %v2414_v36  ;;  %v10365_v46 = vpop.f32.mrb[124].mxu0  ;;  %2977 = vmatprep.mubr.bf16.mxu0 %v2605_v37  ;;  %v2607_v47 = vpack.c.bf16 %v2549_v38, %v2548_v43  ;;  %v2580_v13 = vld [vmem:[#allocation2 + $0x12b] ss:$2 sm:$0xff] }
 0x2d8   : > { %v2606_v48 = vpack.c.bf16 %v2533_v45, %v2532_v44  ;;  %v2383_v50 = vadd.f32 %v10365_v46, %v11717_v31  ;;  %v2374_v52 = vpop.f32.mrb[125].mxu0  ;;  %2978 = vmatmul.mubr.bf16.gmra.mrb[144].mxu0 %v2604_v41  ;;  %v2564_v4 = vld [vmem:[#allocation2 + $0x12a] ss:$2 sm:$0xff]  ;;  %v10623_v46 = vld [vmem:[#allocation5 + $0x50] sm:$0xff]  }
 0x2d9   : > { %v2375_v54 = vadd.f32 %v11717_v31, %v2374_v52  ;;  %v10366_v12 = vpop.f32.mrb[126].mxu0  ;;  %2888 = vmatprep.mubr.bf16.mxu1 %v2607_v47  ;;  %v2608_v22 = vpack.c.bf16 %v2565_v8, %v2564_v4  ;;  %10371 = vmatprep.subr.bf16.mxu0 %v10623_v46  ;;  %v10624_v47 = vld [vmem:[%s13084_s8 + $0x140] sm:$0xff]   ;;  %v10627_v52 = vld [vmem:[%s13084_s8 + $0x108] sm:$0xff]   ;;  %v10636_v8 = vld [vmem:[#allocation5 + $0x68] sm:$0xff]  }
 0x2da   : > { %v2419_v62 = vmax.f32 %v2383_v50, 0.0  ;;  %v2386_v1 = vadd.f32 %v10366_v12, %v11717_v31  ;;  %v2377_v7 = vpop.f32.mrb[127].mxu0  ;;  %10372 = vmatpush3.bf16.msra.mxu0 %v10623_v46  ;;  %9727 = vmatprep.subr.bf16.mxu1 %v10624_v47  ;;  %v10626_v50 = vld [vmem:[%s13084_s8 + $0x148] sm:$0xff]   ;;  %v10635_v4 = vld [vmem:[%s13084_s8 + $0x120] sm:$0xff]  }
 0x2db   : > { %2889 = vmatmul.mubr.bf16.gmra.mrb[116].mxu1 %v2606_v48  ;;  %v2417_v23 = vmax.f32 %v2375_v54, 0.0  ;;  %v2378_v3 = vadd.f32 %v11717_v31, %v2377_v7  ;;  %v10625_v48 = vld [vmem:[%s13084_s8 + $0x100] sm:$0xff]   ;;  %v10629_v54 = vld [vmem:[%s13084_s8 + $0x150] sm:$0xff]   ;;  %v10628_v12 = vld [vmem:[#allocation5 + $0x58] sm:$0xff]  }
 0x2dc   : > { %2520 = vst [vmem:[#allocation2 + $0x179] sm:$0xff] %v2419_v62  ;;  %v2420_v61 = vmax.f32 %v2386_v1, 0.0  ;;  %v2581_v14 = vld [vmem:[#allocation2 + $0x13b] ss:$2 sm:$0xff]  ;;  %9728 = vmatpush3.bf16.msra.mxu1 %v10625_v48  ;;  %v10630_v62 = vld [vmem:[%s13084_s8 + $0x110] sm:$0xff]   ;;  %10373 = vmatprep.subr.bf16.mxu0 %v10628_v12 }
 0x2dd   : > { %2518 = vst [vmem:[#allocation2 + $0x169] sm:$0xff] %v2417_v23  ;;  %v2418_v17 = vmax.f32 %v2378_v3, 0.0  ;;  %v2609_v18 = vpack.c.bf16 %v2581_v14, %v2580_v13  ;;  %v2551_v20 = vld [vmem:[#allocation2 + $0x159] ss:$2 sm:$0xff]  ;;  %v2567_v2 = vld [vmem:[#allocation2 + $0x15a] ss:$2 sm:$0xff]  ;;  %9729 = vmatprep.subr.bf16.mxu1 %v10626_v50 }
 0x2de   : > { %2521 = vst [vmem:[#allocation2 + $0x181] sm:$0xff] %v2420_v61  ;;  %v2550_v26 = vld [vmem:[#allocation2 + $0x149] ss:$2 sm:$0xff]  ;;  %v2534_v34 = vld [vmem:[#allocation2 + $0x148] ss:$2 sm:$0xff]  ;;  %10374 = vmatpush3.bf16.msra.mxu0 %v10628_v12  ;;  %v10631_v1 = vld [vmem:[%s13084_s8 + $0x158] sm:$0xff]  }
 0x2df   : > { %v2535_v35 = vld [vmem:[#allocation2 + $0x158] ss:$2 sm:$0xff]  ;;  %2519 = vst [vmem:[#allocation2 + $0x171] sm:$0xff] %v2418_v17  ;;  %2985 = vmatprep.mubr.bf16.mxu0 %v2609_v18  ;;  %v2611_v30 = vpack.c.bf16 %v2551_v20, %v2550_v26  ;;  %3096 = vst [vmem:[#allocation2 + $0x149] sm:$0x1] %v11058_v0  ;;  %v10633_v23 = vld [vmem:[#allocation5 + $0x60] sm:$0xff]  }
 0x2e0   : > { %v2610_v31 = vpack.c.bf16 %v2535_v35, %v2534_v34  ;;  %2986 = vmatmul.mubr.bf16.gmra.mrb[148].mxu0 %v2608_v22  ;;  %v2566_v56 = vld [vmem:[#allocation2 + $0x14a] ss:$2 sm:$0xff]  ;;  %v2582_v5 = vld [vmem:[#allocation2 + $0x14b] ss:$2 sm:$0xff]  ;;  %9730 = vmatpush3.bf16.msra.mxu1 %v10627_v52  ;;  %v10634_v3 = vld [vmem:[%s13084_s8 + $0x160] sm:$0xff]  }
 0x2e1   : > { %2896 = vmatprep.mubr.bf16.mxu1 %v2611_v30  ;;  %v2612_v28 = vpack.c.bf16 %v2567_v2, %v2566_v56  ;;  %9731 = vmatprep.subr.bf16.mxu1 %v10629_v54  ;;  %v10632_v7 = vld [vmem:[%s13084_s8 + $0x118] sm:$0xff]   ;;  %v10637_v61 = vld [vmem:[%s13084_s8 + $0x168] sm:$0xff]   ;;  %v10639_v14 = vld [vmem:[#allocation5 + $0x70] sm:$0xff]  }
 0x2e2   : > { %10375 = vmatprep.subr.bf16.mxu0 %v10633_v23  ;;  %v10638_v13 = vld [vmem:[%s13084_s8 + $0x128] sm:$0xff]   ;;  %v10640_v17 = vld [vmem:[%s13084_s8 + $0x170] sm:$0xff]   ;;  %v10643_v22 = vld [vmem:[%s13084_s8 + $0x178] sm:$0xff]  }
 0x2e3   : > { %2897 = vmatmul.mubr.bf16.gmra.mrb[120].mxu1 %v2610_v31  ;;  %10376 = vmatpush3.bf16.msra.mxu0 %v10633_v23  ;;  %v10641_v18 = vld [vmem:[%s13084_s8 + $0x130] sm:$0xff]   ;;  %v10642_v20 = vld [vmem:[#allocation5 + $0x78] sm:$0xff]   ;;  %v10644_v26 = vld [vmem:[%s13084_s8 + $0x138] sm:$0xff]  }
 0x2e4   : > { %v2583_v40 = vld [vmem:[#allocation2 + $0x15b] ss:$2 sm:$0xff]  ;;  %9732 = vmatpush3.bf16.msra.mxu1 %v10630_v62  ;;  %10377 = vmatprep.subr.bf16.mxu0 %v10636_v8 }
 0x2e5   : > { %v2613_v16 = vpack.c.bf16 %v2583_v40, %v2582_v5  ;;  %v2553_v49 = vld [vmem:[#allocation2 + $0x179] ss:$2 sm:$0xff]  ;;  %v2569_v44 = vld [vmem:[#allocation2 + $0x17a] ss:$2 sm:$0xff]  ;;  %9733 = vmatprep.subr.bf16.mxu1 %v10631_v1 }
 0x2e6   : > { %v2585_v58 = vld [vmem:[#allocation2 + $0x17b] ss:$2 sm:$0xff]  ;;  %v2584_v42 = vld [vmem:[#allocation2 + $0x16b] ss:$2 sm:$0xff]  ;;  %v2536_v53 = vld [vmem:[#allocation2 + $0x168] ss:$2 sm:$0xff] }
 0x2e7   : > { %v2552_v55 = vld [vmem:[#allocation2 + $0x169] ss:$2 sm:$0xff]  ;;  %2993 = vmatprep.mubr.bf16.mxu0 %v2613_v16  ;;  %v2617_v37 = vpack.c.bf16 %v2585_v58, %v2584_v42  ;;  %v2537_v38 = vld [vmem:[#allocation2 + $0x178] ss:$2 sm:$0xff]  ;;  %10378 = vmatpush3.bf16.msra.mxu0 %v10636_v8 }
 0x2e8   : > { %v2615_v36 = vpack.c.bf16 %v2553_v49, %v2552_v55  ;;  %2994 = vmatmul.mubr.bf16.gmra.mrb[152].mxu0 %v2612_v28  ;;  %v2614_v41 = vpack.c.bf16 %v2537_v38, %v2536_v53  ;;  %v2568_v43 = vld [vmem:[#allocation2 + $0x16a] ss:$2 sm:$0xff]  ;;  %9734 = vmatpush3.bf16.msra.mxu1 %v10632_v7  ;;  %v10645_v34 = vld [vmem:[%s13084_s8 + $0x1c0] sm:$0xff]  }
 0x2e9   : > { %3001 = vmatprep.mubr.bf16.mxu0 %v2617_v37  ;;  %v2616_v45 = vpack.c.bf16 %v2569_v44, %v2568_v43  ;;  %9735 = vmatprep.subr.bf16.mxu1 %v10634_v3  ;;  %v11812_v40 = vld [vmem:[%s13083_s7] ss:$0 sm:$0xff]  ;;  %v8275_v49 = vld [vmem:[%s13079_s3 + $0x2] sm:$0x3] }
 0x2ea   : > { %2904 = vmatprep.mubr.bf16.mxu1 %v2615_v36  ;;  %10379 = vmatprep.subr.bf16.mxu0 %v10639_v14  ;;  %v11819_v36 = vrot.slane %v8275_v49, %v11397_v10  ;;  %v11824_v54 = vrot.slane %v8275_v49, %v11408_v21 }
 0x2eb   : > { %2905 = vmatmul.mubr.bf16.gmra.mrb[124].mxu1 %v2614_v41  ;;  %10380 = vmatpush3.bf16.msra.mxu0 %v10639_v14 }
 0x2ec   : > { %9736 = vmatpush3.bf16.msra.mxu1 %v10635_v4  ;;  %10381 = vmatprep.subr.bf16.mxu0 %v10642_v20 }
 0x2ed   : > { %9737 = vmatprep.subr.bf16.mxu1 %v10637_v61 }
 0x2ef   : > { %10382 = vmatpush3.bf16.msra.mxu0 %v10642_v20 }
 0x2f0   : > { %3002 = vmatmul.mubr.bf16.gmra.mrb[156].mxu0 %v2616_v45  ;;  %9738 = vmatpush3.bf16.msra.mxu1 %v10638_v13 }
 0x2f1   : > { %9739 = vmatprep.subr.bf16.mxu1 %v10640_v17 }
 0x2f4   : > { %9740 = vmatpush3.bf16.msra.mxu1 %v10641_v18 }
 0x2f5   : > { %9741 = vmatprep.subr.bf16.mxu1 %v10643_v22 }
 0x2f8   : > { %9742 = vmatpush3.bf16.msra.mxu1 %v10644_v26 }
 0x2f9   : > { %9767 = vmatprep.subr.bf16.mxu1 %v10645_v34 }
 0x385   : > { %v9615_v35 = vpop.f32.mrb[96].mxu1 }
 0x386   : > { %v9616_v30 = vpop.f32.mrb[97].mxu1 }
 0x387   : > { %v9617_v31 = vadd.f32 %v9616_v30, %v9615_v35  ;;  %v9618_v56 = vpop.f32.mrb[98].mxu1 }
 0x388   : > { %v9619_v2 = vpop.f32.mrb[99].mxu1 }
 0x389   : > { %v9620_v5 = vadd.f32 %v9619_v2, %v9618_v56  ;;  %v2851_v28 = vadd.f32 %v9617_v31, %v11812_v40 }
 0x38b   : > { %v9679_v16 = vpop.f32.mrb[128].mxu0  ;;  %v2854_v41 = vadd.f32 %v9620_v5, %v11812_v40 }
 0x38c   : > { %v9680_v58 = vpop.f32.mrb[129].mxu0 }
 0x38d   : > { %v9681_v55 = vadd.f32 %v9680_v58, %v9679_v16  ;;  %v9621_v42 = vpop.f32.mrb[100].mxu1  ;;  %v9682_v53 = vpop.f32.mrb[130].mxu0 }
 0x38e   : > { %v9622_v37 = vpop.f32.mrb[101].mxu1  ;;  %v9683_v38 = vpop.f32.mrb[131].mxu0 }
 0x38f   : > { %v2948_v43 = vadd.f32 %v9681_v55, %v2851_v28  ;;  %v9623_v44 = vadd.f32 %v9622_v37, %v9621_v42  ;;  %v9684_v45 = vadd.f32 %v9683_v38, %v9682_v53  ;;  %v9624_v46 = vpop.f32.mrb[102].mxu1 }
 0x390   : > { %v9625_v47 = vpop.f32.mrb[103].mxu1 }
 0x391   : > { %v3010_v48 = vadd.f32 %v2948_v43, %v11661_v51  ;;  %v2951_v50 = vadd.f32 %v9684_v45, %v2854_v41  ;;  %v9626_v52 = vadd.f32 %v9625_v47, %v9624_v46  ;;  %v2859_v23 = vadd.f32 %v9623_v44, %v11812_v40 }
 0x393   : > { %v3495_v12 = vmul.f32 %v11819_v36, %v3010_v48  ;;  %3097 = vst [vmem:[#allocation2 + $0x1] sm:$0xff] %v3010_v48  ;;  %v3011_v62 = vadd.f32 %v2951_v50, %v11663_v15  ;;  %v9685_v1 = vpop.f32.mrb[132].mxu0  ;;  %v2862_v61 = vadd.f32 %v9626_v52, %v11812_v40 }
 0x394   : > { %v9686_v7 = vpop.f32.mrb[133].mxu0 }
 0x395   : > { %v3496_v3 = vmul.f32 %v11819_v36, %v3011_v62  ;;  %3098 = vst [vmem:[#allocation2 + $0x9] sm:$0xff] %v3011_v62  ;;  %v9687_v4 = vadd.f32 %v9686_v7, %v9685_v1  ;;  %v9627_v8 = vpop.f32.mrb[104].mxu1  ;;  %v9688_v51 = vpop.f32.mrb[134].mxu0  ;;  %v3515_v17 = vadd.f32 %v11824_v54, %v3495_v12 }
 0x396   : > { %v9628_v13 = vpop.f32.mrb[105].mxu1  ;;  %v9689_v14 = vpop.f32.mrb[135].mxu0 }
 0x397   : > { %v2956_v18 = vadd.f32 %v9687_v4, %v2859_v23  ;;  %v9629_v20 = vadd.f32 %v9628_v13, %v9627_v8  ;;  %v9690_v22 = vadd.f32 %v9689_v14, %v9688_v51  ;;  %v9630_v15 = vpop.f32.mrb[106].mxu1  ;;  %v3516_v26 = vadd.f32 %v11824_v54, %v3496_v3 }
 0x398   : > { %v9631_v34 = vpop.f32.mrb[107].mxu1  ;;  %v3531_v56 = vmax.f32 %v3515_v17, 0.0 }
 0x399   : > { %v3012_v35 = vadd.f32 %v2956_v18, %v11673_v19  ;;  %v2959_v30 = vadd.f32 %v9690_v22, %v2862_v61  ;;  %v9632_v31 = vadd.f32 %v9631_v34, %v9630_v15  ;;  %v3532_v2 = vmax.f32 %v3516_v26, 0.0  ;;  %v10646_v34 = vld [vmem:[%s13084_s8 + $0x180] sm:$0xff]  }
 0x39a   : > { %v2867_v53 = vadd.f32 %v9629_v20, %v11812_v40 }
 0x39b   : > { %v3497_v5 = vmul.f32 %v11819_v36, %v3012_v35  ;;  %3099 = vst [vmem:[#allocation2 + $0x11] sm:$0xff] %v3012_v35  ;;  %v3013_v16 = vadd.f32 %v2959_v30, %v11675_v32  ;;  %v9691_v49 = vpop.f32.mrb[136].mxu0  ;;  %v3547_v28 = vpack.c.bf16 %v3532_v2, %v3531_v56  ;;  %v2870_v48 = vadd.f32 %v9632_v31, %v11812_v40  ;;  %v10647_v56 = vld [vmem:[%s13084_s8 + $0x1c8] sm:$0xff]  }
 0x39c   : > { %v9692_v58 = vpop.f32.mrb[137].mxu0  ;;  %v3113_v55 = vld [vmem:[#allocation2] ss:$2 sm:$0xff]  ;;  %v3121_v51 = vld [vmem:[#allocation2 + $0x1] ss:$2 sm:$0xff] }
 0x39d   : > { %v3517_v42 = vadd.f32 %v11824_v54, %v3497_v5  ;;  %v3498_v37 = vmul.f32 %v11819_v36, %v3013_v16  ;;  %3100 = vst [vmem:[#allocation2 + $0x19] sm:$0xff] %v3013_v16  ;;  %v9693_v19 = vadd.f32 %v9692_v58, %v9691_v49  ;;  %v9694_v41 = vpop.f32.mrb[138].mxu0  ;;  %3808 = vst [vmem:[#allocation2] sm:$0x1] %v11058_v0  ;;  %10383 = vmatprep.mubr.bf16.mxu0 %v3547_v28 }
 0x39e   : > { %v9633_v38 = vpop.f32.mrb[108].mxu1  ;;  %v9695_v44 = vpop.f32.mrb[139].mxu0 }
 0x39f   : > { %v9634_v43 = vpop.f32.mrb[109].mxu1  ;;  %v3518_v32 = vadd.f32 %v11824_v54, %v3498_v37  ;;  %v2964_v45 = vadd.f32 %v9693_v19, %v2867_v53  ;;  %v9696_v50 = vadd.f32 %v9695_v44, %v9694_v41  ;;  %v3533_v12 = vmax.f32 %v3517_v42, 0.0  ;;  %v10648_v19 = vld [vmem:[%s13084_s8 + $0x188] sm:$0xff]  }
 0x3a0   : > { %v9635_v46 = vadd.f32 %v9634_v43, %v9633_v38  ;;  %v9636_v47 = vpop.f32.mrb[110].mxu1  ;;  %v10649_v43 = vld [vmem:[%s13084_s8 + $0x1d0] sm:$0xff]  }
 0x3a1   : > { %v9637_v52 = vpop.f32.mrb[111].mxu1  ;;  %v3534_v62 = vmax.f32 %v3518_v32, 0.0  ;;  %v3014_v1 = vadd.f32 %v2964_v45, %v11679_v39  ;;  %v2967_v23 = vadd.f32 %v9696_v50, %v2870_v48 }
 0x3a2   : > { %v9638_v7 = vadd.f32 %v9637_v52, %v9636_v47  ;;  %v2875_v18 = vadd.f32 %v9635_v46, %v11812_v40 }
 0x3a3   : > { %v3548_v3 = vpack.c.bf16 %v3534_v62, %v3533_v12  ;;  %v3499_v4 = vmul.f32 %v11819_v36, %v3014_v1  ;;  %3101 = vst [vmem:[#allocation2 + $0x21] sm:$0xff] %v3014_v1  ;;  %v9697_v8 = vpop.f32.mrb[140].mxu0  ;;  %v3015_v61 = vadd.f32 %v2967_v23, %v11681_v11  ;;  %v10650_v62 = vld [vmem:[%s13084_s8 + $0x190] sm:$0xff]  }
 0x3a4   : > { %v9698_v13 = vpop.f32.mrb[141].mxu0  ;;  %v3122_v14 = vld [vmem:[#allocation2 + $0x11] ss:$2 sm:$0xff]  ;;  %v3114_v17 = vld [vmem:[#allocation2 + $0x10] ss:$2 sm:$0xff]  ;;  %v2878_v2 = vadd.f32 %v9638_v7, %v11812_v40 }
 0x3a5   : > { %v9699_v20 = vadd.f32 %v9698_v13, %v9697_v8  ;;  %v9700_v15 = vpop.f32.mrb[142].mxu0  ;;  %10384 = vmatmul.mubr.bf16.vlgmr.msra.gmra.mrb[160].mxu0 %v3548_v3  ;;  %v3146_v39 = vpack.c.bf16 %v3122_v14, %v3121_v51  ;;  %v3145_v26 = vpack.c.bf16 %v3114_v17, %v3113_v55  ;;  %v3500_v35 = vmul.f32 %v11819_v36, %v3015_v61  ;;  %v10651_v3 = vld [vmem:[%s13084_s8 + $0x1d8] sm:$0xff]  }
 0x3a6   : > { %v9639_v22 = vpop.f32.mrb[112].mxu1  ;;  %3102 = vst [vmem:[#allocation2 + $0x29] sm:$0xff] %v3015_v61  ;;  %v9701_v11 = vpop.f32.mrb[143].mxu0  ;;  %v3519_v31 = vadd.f32 %v11824_v54, %v3499_v4 }
 0x3a7   : > { %v9640_v30 = vpop.f32.mrb[113].mxu1  ;;  %v2972_v5 = vadd.f32 %v9699_v20, %v2875_v18  ;;  %v9702_v49 = vadd.f32 %v9701_v11, %v9700_v15  ;;  %3391 = vmatprep.mubr.bf16.mxu1 %v3146_v39  ;;  %v3520_v55 = vadd.f32 %v11824_v54, %v3500_v35 }
 0x3a8   : > { %v9641_v16 = vadd.f32 %v9640_v30, %v9639_v22  ;;  %v9642_v58 = vpop.f32.mrb[114].mxu1  ;;  %3392 = vmatmul.mubr.bf16.vlgmr.msra.gmra.mrb[128].mxu1 %v3145_v26  ;;  %v3535_v38 = vmax.f32 %v3519_v31, 0.0  ;;  %v10652_v22 = vld [vmem:[%s13084_s8 + $0x198] sm:$0xff]   ;;  %v10653_v26 = vld [vmem:[%s13084_s8 + $0x1e0] sm:$0xff]  }
 0x3a9   : > { %v9643_v28 = vpop.f32.mrb[115].mxu1  ;;  %v3016_v42 = vadd.f32 %v2972_v5, %v11684_v63  ;;  %v2975_v53 = vadd.f32 %v9702_v49, %v2878_v2  ;;  %9768 = vmatpush3.bf16.msra.mxu1 %v10646_v34  ;;  %v3536_v41 = vmax.f32 %v3520_v55, 0.0 }
 0x3aa   : > { %v9644_v37 = vadd.f32 %v9643_v28, %v9642_v58  ;;  %9769 = vmatprep.subr.bf16.mxu1 %v10647_v56  ;;  %v2883_v47 = vadd.f32 %v9641_v16, %v11812_v40 }
 0x3ab   : > { %v3501_v44 = vmul.f32 %v11819_v36, %v3016_v42  ;;  %3103 = vst [vmem:[#allocation2 + $0x31] sm:$0xff] %v3016_v42  ;;  %v3017_v32 = vadd.f32 %v2975_v53, %v11687_v60  ;;  %v9703_v63 = vpop.f32.mrb[144].mxu0  ;;  %v3549_v46 = vpack.c.bf16 %v3536_v41, %v3535_v38 }
 0x3ac   : > { %v9704_v45 = vpop.f32.mrb[145].mxu0  ;;  %v2886_v1 = vadd.f32 %v9644_v37, %v11812_v40 }
 0x3ad   : > { %v3502_v48 = vmul.f32 %v11819_v36, %v3017_v32  ;;  %3104 = vst [vmem:[#allocation2 + $0x39] sm:$0xff] %v3017_v32  ;;  %v9705_v50 = vadd.f32 %v9704_v45, %v9703_v63  ;;  %v9706_v12 = vpop.f32.mrb[146].mxu0  ;;  %9770 = vmatpush3.bf16.msra.mxu1 %v10648_v19  ;;  %10387 = vmatprep.mubr.bf16.mxu0 %v3549_v46  ;;  %v3123_v30 = vld [vmem:[#allocation2 + $0x21] ss:$2 sm:$0xff]  ;;  %v3115_v11 = vld [vmem:[#allocation2 + $0x20] ss:$2 sm:$0xff] }
 0x3ae   : > { %v9645_v52 = vpop.f32.mrb[116].mxu1  ;;  %v9707_v7 = vpop.f32.mrb[147].mxu0  ;;  %v3521_v23 = vadd.f32 %v11824_v54, %v3501_v44  ;;  %9771 = vmatprep.subr.bf16.mxu1 %v10649_v43  ;;  %v10655_v44 = vld [vmem:[%s13084_s8 + $0x1e8] sm:$0xff]  }
 0x3af   : > { %v9646_v60 = vpop.f32.mrb[117].mxu1  ;;  %v2980_v4 = vadd.f32 %v9705_v50, %v2883_v47  ;;  %v9708_v51 = vadd.f32 %v9707_v7, %v9706_v12  ;;  %v3522_v13 = vadd.f32 %v11824_v54, %v3502_v48  ;;  %v10657_v7 = vld [vmem:[%s13084_s8 + $0x1f0] sm:$0xff]  }
 0x3b0   : > { %v9647_v8 = vadd.f32 %v9646_v60, %v9645_v52  ;;  %v9648_v61 = vpop.f32.mrb[118].mxu1  ;;  %v3537_v15 = vmax.f32 %v3521_v23, 0.0 }
 0x3b1   : > { %v9649_v14 = vpop.f32.mrb[119].mxu1  ;;  %v3018_v17 = vadd.f32 %v2980_v4, %v11693_v29  ;;  %v2983_v18 = vadd.f32 %v9708_v51, %v2886_v1  ;;  %9772 = vmatpush3.bf16.msra.mxu1 %v10650_v62  ;;  %v3538_v39 = vmax.f32 %v3522_v13, 0.0  ;;  %v10656_v62 = vld [vmem:[%s13084_s8 + $0x1a8] sm:$0xff]  }
 0x3b2   : > { %v9650_v20 = vadd.f32 %v9649_v14, %v9648_v61  ;;  %9773 = vmatprep.subr.bf16.mxu1 %v10651_v3  ;;  %v2891_v31 = vadd.f32 %v9647_v8, %v11812_v40 }
 0x3b3   : > { %v3503_v34 = vmul.f32 %v11819_v36, %v3018_v17  ;;  %3105 = vst [vmem:[#allocation2 + $0x109] sm:$0xff] %v3018_v17  ;;  %v3019_v35 = vadd.f32 %v2983_v18, %v11696_v33  ;;  %v9709_v29 = vpop.f32.mrb[148].mxu0  ;;  %v3550_v2 = vpack.c.bf16 %v3538_v39, %v3537_v15  ;;  %v10654_v33 = vld [vmem:[%s13084_s8 + $0x1a0] sm:$0xff]  }
 0x3b4   : > { %v9710_v56 = vpop.f32.mrb[149].mxu0  ;;  %v3124_v5 = vld [vmem:[#allocation2 + $0x31] ss:$2 sm:$0xff]  ;;  %v3116_v16 = vld [vmem:[#allocation2 + $0x30] ss:$2 sm:$0xff]  ;;  %v2894_v19 = vadd.f32 %v9650_v20, %v11812_v40 }
 0x3b5   : > { %v3504_v49 = vmul.f32 %v11819_v36, %v3019_v35  ;;  %3106 = vst [vmem:[#allocation2 + $0x111] sm:$0xff] %v3019_v35  ;;  %v9711_v58 = vadd.f32 %v9710_v56, %v9709_v29  ;;  %v9712_v55 = vpop.f32.mrb[150].mxu0  ;;  %v3150_v42 = vpack.c.bf16 %v3124_v5, %v3123_v30  ;;  %v3149_v53 = vpack.c.bf16 %v3116_v16, %v3115_v11  ;;  %v11890_v37 = vld [vmem:[#allocation2 + $0x33] ss:$2 sm:$0xff] }
 0x3b6   : > { %v9651_v28 = vpop.f32.mrb[120].mxu1  ;;  %9774 = vmatpush3.bf16.msra.mxu1 %v10652_v22  ;;  %10388 = vmatmul.mubr.bf16.gmra.mrb[164].mxu0 %v3550_v2  ;;  %v9713_v41 = vpop.f32.mrb[151].mxu0  ;;  %v3523_v43 = vadd.f32 %v11824_v54, %v3503_v34  ;;  %3810 = vst [vmem:[#allocation2 + $0x41] sm:$0x1] %v11058_v0  ;;  %v10658_v20 = vld [vmem:[%s13084_s8 + $0x1b0] sm:$0xff]   ;;  %v10660_v16 = vld [vmem:[%s13084_s8 + $0x1b8] sm:$0xff]  }
 0x3b7   : > { %v9652_v38 = vpop.f32.mrb[121].mxu1  ;;  %9775 = vmatprep.subr.bf16.mxu1 %v10653_v26  ;;  %v2988_v32 = vadd.f32 %v9711_v58, %v2891_v31  ;;  %v9714_v45 = vadd.f32 %v9713_v41, %v9712_v55  ;;  %3399 = vmatprep.mubr.bf16.mxu1 %v3150_v42  ;;  %v3524_v47 = vadd.f32 %v11824_v54, %v3504_v49  ;;  %v10659_v26 = vld [vmem:[%s13084_s8 + $0x1f8] sm:$0xff]  }
 0x3b8   : > { %v9653_v63 = vadd.f32 %v9652_v38, %v9651_v28  ;;  %v9654_v46 = vpop.f32.mrb[122].mxu1  ;;  %3400 = vmatmul.mubr.bf16.gmra.mrb[132].mxu1 %v3149_v53  ;;  %v3539_v1 = vmax.f32 %v3523_v43, 0.0  ;;  %v10661_v28 = vld [vmem:[%s13082_s6 + $0x140] sm:$0xff]  }
 0x3b9   : > { %v9655_v48 = vpop.f32.mrb[123].mxu1  ;;  %v3020_v50 = vadd.f32 %v2988_v32, %v11700_v6  ;;  %v2991_v52 = vadd.f32 %v9714_v45, %v2894_v19  ;;  %v3540_v60 = vmax.f32 %v3524_v47, 0.0 }
 0x3ba   : > { %v9656_v12 = vadd.f32 %v9655_v48, %v9654_v46  ;;  %9776 = vmatpush3.bf16.msra.mxu1 %v10654_v33  ;;  %v2899_v61 = vadd.f32 %v9653_v63, %v11812_v40 }
 0x3bb   : > { %9777 = vmatprep.subr.bf16.mxu1 %v10655_v44  ;;  %v3505_v23 = vmul.f32 %v11819_v36, %v3020_v50  ;;  %3107 = vst [vmem:[#allocation2 + $0x119] sm:$0xff] %v3020_v50  ;;  %v3021_v3 = vadd.f32 %v2991_v52, %v11702_v27  ;;  %v9715_v6 = vpop.f32.mrb[152].mxu0  ;;  %v3551_v8 = vpack.c.bf16 %v3540_v60, %v3539_v1 }
 0x3bc   : > { %v9716_v4 = vpop.f32.mrb[153].mxu0  ;;  %v3117_v51 = vld [vmem:[#allocation2 + $0x108] ss:$2 sm:$0xff]  ;;  %v2902_v27 = vadd.f32 %v9656_v12, %v11812_v40  ;;  %v3125_v53 = vld [vmem:[#allocation2 + $0x109] ss:$2 sm:$0xff] }
 0x3bd   : > { %v3506_v13 = vmul.f32 %v11819_v36, %v3021_v3  ;;  %3108 = vst [vmem:[#allocation2 + $0x121] sm:$0xff] %v3021_v3  ;;  %v9717_v14 = vadd.f32 %v9716_v4, %v9715_v6  ;;  %v9718_v18 = vpop.f32.mrb[154].mxu0  ;;  %3809 = vst [vmem:[#allocation2 + $0x108] sm:$0x1] %v11058_v0  ;;  %10391 = vmatprep.mubr.bf16.mxu0 %v3551_v8  ;;  %v3525_v39 = vadd.f32 %v11824_v54, %v3505_v23 }
 0x3be   : > { %v9657_v17 = vpop.f32.mrb[124].mxu1  ;;  %9778 = vmatpush3.bf16.msra.mxu1 %v10656_v62  ;;  %v9719_v15 = vpop.f32.mrb[155].mxu0 }
 0x3bf   : > { %v9658_v22 = vpop.f32.mrb[125].mxu1  ;;  %9779 = vmatprep.subr.bf16.mxu1 %v10657_v7  ;;  %v2996_v34 = vadd.f32 %v9717_v14, %v2899_v61  ;;  %v9720_v29 = vadd.f32 %v9719_v15, %v9718_v18  ;;  %v3526_v11 = vadd.f32 %v11824_v54, %v3506_v13  ;;  %v3541_v49 = vmax.f32 %v3525_v39, 0.0  ;;  %v3129_v39 = vld [vmem:[#allocation2 + $0x2] ss:$2 sm:$0xff] }
 0x3c0   : > { %v9659_v35 = vadd.f32 %v9658_v22, %v9657_v17  ;;  %v9660_v30 = vpop.f32.mrb[126].mxu1  ;;  %v3138_v17 = vld [vmem:[#allocation2 + $0x13] ss:$2 sm:$0xff] }
 0x3c1   : > { %v9661_v31 = vpop.f32.mrb[127].mxu1  ;;  %v3022_v56 = vadd.f32 %v2996_v34, %v11706_v57  ;;  %v2999_v2 = vadd.f32 %v9720_v29, %v2902_v27  ;;  %v3542_v58 = vmax.f32 %v3526_v11, 0.0  ;;  %v10663_v29 = vld [vmem:[%s13082_s6 + $0x148] sm:$0xff]  }
 0x3c2   : > { %v9662_v5 = vadd.f32 %v9661_v31, %v9660_v30  ;;  %9780 = vmatpush3.bf16.msra.mxu1 %v10658_v20  ;;  %v2907_v33 = vadd.f32 %v9659_v35, %v11812_v40  ;;  %v3139_v35 = vld [vmem:[#allocation2 + $0x23] ss:$2 sm:$0xff] }
 0x3c3   : > { %9781 = vmatprep.subr.bf16.mxu1 %v10659_v26  ;;  %v3507_v55 = vmul.f32 %v11819_v36, %v3022_v56  ;;  %3109 = vst [vmem:[#allocation2 + $0x129] sm:$0xff] %v3022_v56  ;;  %v3023_v42 = vadd.f32 %v2999_v2, %v11708_v59  ;;  %v9721_v57 = vpop.f32.mrb[156].mxu0  ;;  %v3552_v38 = vpack.c.bf16 %v3542_v58, %v3541_v49  ;;  %v10662_v26 = vld [vmem:[%s13082_s6 + $0x100] sm:$0xff]   ;;  %v10664_v11 = vld [vmem:[%s13082_s6 + $0x108] sm:$0xff]   ;;  %v10665_v31 = vld [vmem:[%s13082_s6 + $0x150] sm:$0xff]  }
 0x3c4   : > { %v9722_v19 = vpop.f32.mrb[157].mxu0  ;;  %v3126_v41 = vld [vmem:[#allocation2 + $0x119] ss:$2 sm:$0xff]  ;;  %v3118_v43 = vld [vmem:[#allocation2 + $0x118] ss:$2 sm:$0xff]  ;;  %v2910_v48 = vadd.f32 %v9662_v5, %v11812_v40  ;;  %v3152_v30 = vpack.c.bf16 %v11890_v37, %v3139_v35  ;;  %v10666_v37 = vld [vmem:[%s13082_s6 + $0x110] sm:$0xff]  }
 0x3c5   : > { %v3508_v44 = vmul.f32 %v11819_v36, %v3023_v42  ;;  %3110 = vst [vmem:[#allocation2 + $0x131] sm:$0xff] %v3023_v42  ;;  %v9723_v32 = vadd.f32 %v9722_v19, %v9721_v57  ;;  %v9724_v63 = vpop.f32.mrb[158].mxu0  ;;  %v3154_v45 = vpack.c.bf16 %v3126_v41, %v3125_v53  ;;  %v3153_v46 = vpack.c.bf16 %v3118_v43, %v3117_v51  ;;  %v3132_v56 = vld [vmem:[#allocation2 + $0x32] ss:$2 sm:$0xff]  ;;  %v3131_v5 = vld [vmem:[#allocation2 + $0x22] ss:$2 sm:$0xff] }
 0x3c6   : > { %9782 = vmatpush3.bf16.msra.mxu1 %v10660_v16  ;;  %10392 = vmatmul.mubr.bf16.gmra.mrb[168].mxu0 %v3552_v38  ;;  %v9725_v47 = vpop.f32.mrb[159].mxu0  ;;  %v3527_v59 = vadd.f32 %v11824_v54, %v3507_v55  ;;  %v3141_v16 = vld [vmem:[#allocation2 + $0x10b] ss:$2 sm:$0xff]  ;;  %v3151_v49 = vpack.c.bf16 %v3132_v56, %v3131_v5  ;;  %v3134_v55 = vld [vmem:[#allocation2 + $0x11a] ss:$2 sm:$0xff] }
 0x3c7   : > { %9823 = vmatprep.subr.bf16.mxu1 %v10661_v28  ;;  %v3004_v50 = vadd.f32 %v9723_v32, %v2907_v33  ;;  %v9726_v52 = vadd.f32 %v9725_v47, %v9724_v63  ;;  %3407 = vmatprep.mubr.bf16.mxu1 %v3154_v45  ;;  %v3528_v12 = vadd.f32 %v11824_v54, %v3508_v44  ;;  %v10667_v58 = vld [vmem:[%s13082_s6 + $0x158] sm:$0xff]   ;;  %v10669_v44 = vld [vmem:[%s13082_s6 + $0x1c0] sm:$0xff]   ;;  %v10674_v47 = vld [vmem:[%s13082_s6 + $0x188] sm:$0xff]  }
 0x3c8   : > { %3408 = vmatmul.mubr.bf16.gmra.mrb[136].mxu1 %v3153_v46  ;;  %v3543_v60 = vmax.f32 %v3527_v59, 0.0  ;;  %v3133_v42 = vld [vmem:[#allocation2 + $0x10a] ss:$2 sm:$0xff]  ;;  %v10670_v32 = vld [vmem:[%s13082_s6 + $0x180] sm:$0xff]   ;;  %9863 = vmatprep.subr.bf16.mxu0 %v10669_v44 }
 0x3c9   : > { %v3024_v62 = vadd.f32 %v3004_v50, %v11711_v24  ;;  %v3007_v1 = vadd.f32 %v9726_v52, %v2910_v48  ;;  %v3544_v7 = vmax.f32 %v3528_v12, 0.0  ;;  %v3155_v57 = vpack.c.bf16 %v3134_v55, %v3133_v42  ;;  %v10668_v43 = vld [vmem:[%s13082_s6 + $0x118] sm:$0xff]   ;;  %v10671_v63 = vld [vmem:[%s13082_s6 + $0x160] sm:$0xff]   ;;  %9864 = vmatpush3.bf16.msra.mxu0 %v10670_v32  ;;  %v10673_v46 = vld [vmem:[%s13082_s6 + $0x1c8] sm:$0xff]  }
 0x3ca   : > { %v3142_v2 = vld [vmem:[#allocation2 + $0x11b] ss:$2 sm:$0xff]  ;;  %9865 = vmatprep.subr.bf16.mxu0 %v10673_v46  ;;  %v10677_v50 = vld [vmem:[%s13082_s6 + $0x1d0] sm:$0xff]  }
 0x3cb   : > { %v3509_v23 = vmul.f32 %v11819_v36, %v3024_v62  ;;  %3111 = vst [vmem:[#allocation2 + $0x139] sm:$0xff] %v3024_v62  ;;  %v3025_v3 = vadd.f32 %v3007_v1, %v11719_v25  ;;  %v3553_v6 = vpack.c.bf16 %v3544_v7, %v3543_v60  ;;  %v3156_v28 = vpack.c.bf16 %v3142_v2, %v3141_v16  ;;  %v10672_v45 = vld [vmem:[%s13082_s6 + $0x120] sm:$0xff]   ;;  %v10675_v59 = vld [vmem:[%s13082_s6 + $0x168] sm:$0xff]   ;;  %v10678_v52 = vld [vmem:[%s13082_s6 + $0x190] sm:$0xff]  }
 0x3cc   : > { %v3127_v13 = vld [vmem:[#allocation2 + $0x129] ss:$2 sm:$0xff]  ;;  %v3119_v14 = vld [vmem:[#allocation2 + $0x128] ss:$2 sm:$0xff]  ;;  %v10681_v62 = vld [vmem:[%s13082_s6 + $0x1d8] sm:$0xff]  }
 0x3cd   : > { %v3510_v4 = vmul.f32 %v11819_v36, %v3025_v3  ;;  %3112 = vst [vmem:[#allocation2 + $0x141] sm:$0xff] %v3025_v3  ;;  %10395 = vmatprep.mubr.bf16.mxu0 %v3553_v6  ;;  %v3529_v40 = vadd.f32 %v11824_v54, %v3509_v23  ;;  %v3137_v36 = vld [vmem:[#allocation2 + $0x3] ss:$2 sm:$0xff]  ;;  %v3135_v38 = vld [vmem:[#allocation2 + $0x12a] ss:$2 sm:$0xff]  ;;  %9866 = vmatpush3.bf16.msra.mxu0 %v10674_v47 }
 0x3ce   : > { %v3148_v15 = vpack.c.bf16 %v3138_v17, %v3137_v36  ;;  %v10676_v48 = vld [vmem:[%s13082_s6 + $0x128] sm:$0xff]   ;;  %v10679_v12 = vld [vmem:[%s13082_s6 + $0x170] sm:$0xff]   ;;  %9867 = vmatprep.subr.bf16.mxu0 %v10677_v50  ;;  %v10683_v60 = vld [vmem:[%s13082_s6 + $0x178] sm:$0xff]  }
 0x3cf   : > { %v3530_v8 = vadd.f32 %v11824_v54, %v3510_v4  ;;  %v3545_v51 = vmax.f32 %v3529_v40, 0.0  ;;  %v3130_v54 = vld [vmem:[#allocation2 + $0x12] ss:$2 sm:$0xff]  ;;  %v10687_v4 = vld [vmem:[%s13082_s6 + $0x1e8] sm:$0xff]  }
 0x3d0   : > { %v3147_v34 = vpack.c.bf16 %v3130_v54, %v3129_v39  ;;  %v10680_v1 = vld [vmem:[%s13082_s6 + $0x130] sm:$0xff]   ;;  %v10682_v7 = vld [vmem:[%s13082_s6 + $0x198] sm:$0xff]   ;;  %v10685_v3 = vld [vmem:[%s13082_s6 + $0x1e0] sm:$0xff]  }
 0x3d1   : > { %v3546_v61 = vmax.f32 %v3530_v8, 0.0  ;;  %9868 = vmatpush3.bf16.msra.mxu0 %v10678_v52  ;;  %v10684_v23 = vld [vmem:[%s13082_s6 + $0x138] sm:$0xff]   ;;  %v10686_v6 = vld [vmem:[%s13082_s6 + $0x1a0] sm:$0xff]   ;;  %v10688_v40 = vld [vmem:[%s13082_s6 + $0x1a8] sm:$0xff]  }
 0x3d2   : > { %v3143_v53 = vld [vmem:[#allocation2 + $0x12b] ss:$2 sm:$0xff]  ;;  %9869 = vmatprep.subr.bf16.mxu0 %v10681_v62 }
 0x3d3   : > { %v3554_v24 = vpack.c.bf16 %v3546_v61, %v3545_v51  ;;  %v10689_v8 = vld [vmem:[%s13082_s6 + $0x1f0] sm:$0xff]   ;;  %v10691_v61 = vld [vmem:[%s13082_s6 + $0x1f8] sm:$0xff]  }
 0x3d4   : > { %v3128_v18 = vld [vmem:[#allocation2 + $0x139] ss:$2 sm:$0xff]  ;;  %v3120_v20 = vld [vmem:[#allocation2 + $0x138] ss:$2 sm:$0xff]  ;;  %v10690_v51 = vld [vmem:[%s13082_s6 + $0x1b0] sm:$0xff]  }
 0x3d5   : > { %v3144_v27 = vld [vmem:[#allocation2 + $0x13b] ss:$2 sm:$0xff]  ;;  %10396 = vmatmul.mubr.bf16.gmra.mrb[172].mxu0 %v3554_v24  ;;  %v3158_v25 = vpack.c.bf16 %v3128_v18, %v3127_v13  ;;  %v3157_v22 = vpack.c.bf16 %v3120_v20, %v3119_v14  ;;  %v3136_v19 = vld [vmem:[#allocation2 + $0x13a] ss:$2 sm:$0xff] }
 0x3d6   : > { %3811 = vst [vmem:[#allocation2 + $0x149] sm:$0x1] %v11058_v0  ;;  %v3160_v33 = vpack.c.bf16 %v3144_v27, %v3143_v53  ;;  %v3159_v41 = vpack.c.bf16 %v3136_v19, %v3135_v38  ;;  %9870 = vmatpush3.bf16.msra.mxu0 %v10682_v7  ;;  %v10692_v24 = vld [vmem:[%s13082_s6 + $0x1b8] sm:$0xff]   ;;  %v12038_v13 = vld [vmem:[%s13081_s5 + $0x1] ss:$0 sm:$0xff] }
 0x3d7   : > { %3415 = vmatprep.mubr.bf16.mxu1 %v3158_v25  ;;  %9871 = vmatprep.subr.bf16.mxu0 %v10685_v3 }
 0x3d8   : > { %3416 = vmatmul.mubr.bf16.gmra.mrb[140].mxu1 %v3157_v22 }
 0x3d9   : > { %3456 = vmatprep.mubr.bf16.mxu1 %v3148_v15 }
 0x3da   : > { %9872 = vmatpush3.bf16.msra.mxu0 %v10686_v6 }
 0x3db   : > { %9873 = vmatprep.subr.bf16.mxu0 %v10687_v4 }
 0x3de   : > { %9874 = vmatpush3.bf16.msra.mxu0 %v10688_v40 }
 0x3df   : > { %9875 = vmatprep.subr.bf16.mxu0 %v10689_v8 }
 0x3e0   : > { %3457 = vmatmul.mubr.bf16.vlgmr.msra.gmra.mrb[144].mxu1 %v3147_v34 }
 0x3e1   : > { %3464 = vmatprep.mubr.bf16.mxu1 %v3152_v30  ;;  %9824 = vmatpush3.bf16.msra.mxu1 %v10662_v26 }
 0x3e2   : > { %9825 = vmatprep.subr.bf16.mxu1 %v10663_v29  ;;  %9876 = vmatpush3.bf16.msra.mxu0 %v10690_v51 }
 0x3e3   : > { %9877 = vmatprep.subr.bf16.mxu0 %v10691_v61 }
 0x3e5   : > { %9826 = vmatpush3.bf16.msra.mxu1 %v10664_v11 }
 0x3e6   : > { %9827 = vmatprep.subr.bf16.mxu1 %v10665_v31  ;;  %9878 = vmatpush3.bf16.msra.mxu0 %v10692_v24 }
 0x3e8   : > { %3465 = vmatmul.mubr.bf16.gmra.mrb[148].mxu1 %v3151_v49 }
 0x3e9   : > { %3472 = vmatprep.mubr.bf16.mxu1 %v3156_v28  ;;  %9828 = vmatpush3.bf16.msra.mxu1 %v10666_v37 }
 0x3ea   : > { %9829 = vmatprep.subr.bf16.mxu1 %v10667_v58 }
 0x3ed   : > { %9830 = vmatpush3.bf16.msra.mxu1 %v10668_v43 }
 0x3ee   : > { %9831 = vmatprep.subr.bf16.mxu1 %v10671_v63 }
 0x3f0   : > { %3473 = vmatmul.mubr.bf16.gmra.mrb[152].mxu1 %v3155_v57 }
 0x3f1   : > { %3480 = vmatprep.mubr.bf16.mxu1 %v3160_v33  ;;  %9832 = vmatpush3.bf16.msra.mxu1 %v10672_v45 }
 0x3f2   : > { %9833 = vmatprep.subr.bf16.mxu1 %v10675_v59 }
 0x3f5   : > { %9834 = vmatpush3.bf16.msra.mxu1 %v10676_v48 }
 0x3f6   : > { %9835 = vmatprep.subr.bf16.mxu1 %v10679_v12 }
 0x3f8   : > { %3481 = vmatmul.mubr.bf16.gmra.mrb[156].mxu1 %v3159_v41 }
 0x3f9   : > { %9836 = vmatpush3.bf16.msra.mxu1 %v10680_v1 }
 0x3fa   : > { %9837 = vmatprep.subr.bf16.mxu1 %v10683_v60 }
 0x3fd   : > { %9838 = vmatpush3.bf16.msra.mxu1 %v10684_v23 }
 0x478   : > { %v10385_v14 = vpop.f32.mrb[160].mxu0 }
 0x479   : > { %v3671_v17 = vadd.f32 %v10385_v14, %v12038_v13  ;;  %v3662_v18 = vpop.f32.mrb[161].mxu0 }
 0x47a   : > { %v3663_v20 = vadd.f32 %v12038_v13, %v3662_v18  ;;  %v10386_v27 = vpop.f32.mrb[162].mxu0 }
 0x47b   : > { %v3727_v25 = vmax.f32 %v3671_v17, 0.0  ;;  %v3674_v22 = vadd.f32 %v10386_v27, %v12038_v13  ;;  %v9743_v36 = vpop.f32.mrb[128].mxu1  ;;  %v3665_v15 = vpop.f32.mrb[163].mxu0 }
 0x47c   : > { %v3725_v54 = vmax.f32 %v3663_v20, 0.0  ;;  %v3666_v39 = vadd.f32 %v12038_v13, %v3665_v15  ;;  %v9744_v26 = vpop.f32.mrb[129].mxu1 }
 0x47d   : > { %3814 = vst [vmem:[#allocation2 + $0x11] sm:$0xff] %v3727_v25  ;;  %v3728_v34 = vmax.f32 %v3674_v22, 0.0  ;;  %v12044_v35 = vadd.f32 %v9744_v26, %v9743_v36  ;;  %v9746_v29 = vpop.f32.mrb[130].mxu1 }
 0x47e   : > { %3812 = vst [vmem:[#allocation2 + $0x1] sm:$0xff] %v3725_v54  ;;  %v3726_v30 = vmax.f32 %v3666_v39, 0.0  ;;  %v9747_v11 = vpop.f32.mrb[131].mxu1 }
 0x47f   : > { %3815 = vst [vmem:[#allocation2 + $0x19] sm:$0xff] %v3728_v34  ;;  %v12046_v31 = vadd.f32 %v9747_v11, %v9746_v29 }
 0x480   : > { %3813 = vst [vmem:[#allocation2 + $0x9] sm:$0xff] %v3726_v30 }
 0x486   : > { %v3837_v56 = vld [vmem:[#allocation2 + $0x11] ss:$2 sm:$0xff]  ;;  %v3845_v50 = vld [vmem:[#allocation2 + $0x12] ss:$2 sm:$0xff] }
 0x487   : > { %v3836_v2 = vld [vmem:[#allocation2 + $0x1] ss:$2 sm:$0xff]  ;;  %v3828_v5 = vld [vmem:[#allocation2] ss:$2 sm:$0xff]  ;;  %v3829_v37 = vld [vmem:[#allocation2 + $0x10] ss:$2 sm:$0xff] }
 0x488   : > { %v3861_v16 = vpack.c.bf16 %v3837_v56, %v3836_v2  ;;  %v3860_v49 = vpack.c.bf16 %v3829_v37, %v3828_v5  ;;  %4279 = vst [vmem:[#allocation2] sm:$0x1] %v11058_v0  ;;  %v3844_v48 = vld [vmem:[#allocation2 + $0x2] ss:$2 sm:$0xff]  ;;  %v3852_v52 = vld [vmem:[#allocation2 + $0x3] ss:$2 sm:$0xff] }
 0x489   : > { %v10389_v58 = vpop.f32.mrb[164].mxu0  ;;  %v3862_v7 = vpack.c.bf16 %v3845_v50, %v3844_v48 }
 0x48a   : > { %v3687_v28 = vadd.f32 %v10389_v58, %v12038_v13  ;;  %v3678_v55 = vpop.f32.mrb[165].mxu0  ;;  %4106 = vmatprep.mubr.bf16.mxu1 %v3861_v16 }
 0x48b   : > { %v3679_v42 = vadd.f32 %v12038_v13, %v3678_v55  ;;  %v10390_v57 = vpop.f32.mrb[166].mxu0  ;;  %v9749_v53 = vpop.f32.mrb[132].mxu1  ;;  %4107 = vmatmul.mubr.bf16.vlgmr.msra.gmra.mrb[160].mxu1 %v3860_v49 }
 0x48c   : > { %v3731_v33 = vmax.f32 %v3687_v28, 0.0  ;;  %v3690_v19 = vadd.f32 %v10390_v57, %v12038_v13  ;;  %v3681_v38 = vpop.f32.mrb[167].mxu0  ;;  %v9750_v41 = vpop.f32.mrb[133].mxu1 }
 0x48d   : > { %v3729_v43 = vmax.f32 %v3679_v42, 0.0  ;;  %v3682_v44 = vadd.f32 %v12038_v13, %v3681_v38  ;;  %v12053_v32 = vadd.f32 %v9750_v41, %v9749_v53  ;;  %v9752_v63 = vpop.f32.mrb[134].mxu1 }
 0x48e   : > { %3818 = vst [vmem:[#allocation2 + $0x31] sm:$0xff] %v3731_v33  ;;  %v3732_v45 = vmax.f32 %v3690_v19, 0.0  ;;  %v9753_v46 = vpop.f32.mrb[135].mxu1 }
 0x48f   : > { %3816 = vst [vmem:[#allocation2 + $0x21] sm:$0xff] %v3729_v43  ;;  %v3730_v47 = vmax.f32 %v3682_v44, 0.0  ;;  %v12055_v59 = vadd.f32 %v9753_v46, %v9752_v63 }
 0x490   : > { %3819 = vst [vmem:[#allocation2 + $0x39] sm:$0xff] %v3732_v45 }
 0x491   : > { %3817 = vst [vmem:[#allocation2 + $0x29] sm:$0xff] %v3730_v47 }
 0x496   : > { %v3853_v12 = vld [vmem:[#allocation2 + $0x13] ss:$2 sm:$0xff] }
 0x497   : > { %v3863_v62 = vpack.c.bf16 %v3853_v12, %v3852_v52  ;;  %v3839_v1 = vld [vmem:[#allocation2 + $0x31] ss:$2 sm:$0xff]  ;;  %v3847_v29 = vld [vmem:[#allocation2 + $0x32] ss:$2 sm:$0xff] }
 0x498   : > { %v3855_v60 = vld [vmem:[#allocation2 + $0x33] ss:$2 sm:$0xff]  ;;  %v3854_v3 = vld [vmem:[#allocation2 + $0x23] ss:$2 sm:$0xff]  ;;  %v3830_v6 = vld [vmem:[#allocation2 + $0x20] ss:$2 sm:$0xff] }
 0x499   : > { %v3838_v23 = vld [vmem:[#allocation2 + $0x21] ss:$2 sm:$0xff]  ;;  %v10393_v4 = vpop.f32.mrb[168].mxu0  ;;  %4171 = vmatprep.mubr.bf16.mxu0 %v3863_v62  ;;  %v3867_v8 = vpack.c.bf16 %v3855_v60, %v3854_v3  ;;  %v3831_v51 = vld [vmem:[#allocation2 + $0x30] ss:$2 sm:$0xff] }
 0x49a   : > { %v3865_v40 = vpack.c.bf16 %v3839_v1, %v3838_v23  ;;  %4281 = vst [vmem:[#allocation2 + $0x21] sm:$0x1] %v11058_v0  ;;  %v3703_v61 = vadd.f32 %v10393_v4, %v12038_v13  ;;  %v3694_v24 = vpop.f32.mrb[169].mxu0  ;;  %4172 = vmatmul.mubr.bf16.vlgmr.msra.gmra.mrb[176].mxu0 %v3862_v7  ;;  %v3864_v14 = vpack.c.bf16 %v3831_v51, %v3830_v6  ;;  %v3846_v34 = vld [vmem:[#allocation2 + $0x22] ss:$2 sm:$0xff] }
 0x49b   : > { %v3695_v17 = vadd.f32 %v12038_v13, %v3694_v24  ;;  %v10394_v18 = vpop.f32.mrb[170].mxu0  ;;  %4179 = vmatprep.mubr.bf16.mxu0 %v3867_v8  ;;  %v9755_v20 = vpop.f32.mrb[136].mxu1  ;;  %v3866_v5 = vpack.c.bf16 %v3847_v29, %v3846_v34  ;;  %v8242_v1 = vld [vmem:[%s13085_s9 + $0x1] ss:$0 sm:$0xff] }
 0x49c   : > { %4114 = vmatprep.mubr.bf16.mxu1 %v3865_v40  ;;  %v3735_v27 = vmax.f32 %v3703_v61, 0.0  ;;  %v3706_v25 = vadd.f32 %v10394_v18, %v12038_v13  ;;  %v3697_v22 = vpop.f32.mrb[171].mxu0  ;;  %v9756_v36 = vpop.f32.mrb[137].mxu1  ;;  %v3394_v3 = vadd.f32 %v12044_v35, %v8242_v1 }
 0x49d   : > { %4115 = vmatmul.mubr.bf16.gmra.mrb[164].mxu1 %v3864_v14  ;;  %v3733_v15 = vmax.f32 %v3695_v17, 0.0  ;;  %v3698_v54 = vadd.f32 %v12038_v13, %v3697_v22  ;;  %v12062_v39 = vadd.f32 %v9756_v36, %v9755_v20  ;;  %v9758_v26 = vpop.f32.mrb[138].mxu1  ;;  %v3397_v17 = vadd.f32 %v12046_v31, %v8242_v1 }
 0x49e   : > { %3822 = vst [vmem:[#allocation2 + $0x119] sm:$0xff] %v3735_v27  ;;  %v3736_v30 = vmax.f32 %v3706_v25, 0.0  ;;  %v9759_v11 = vpop.f32.mrb[139].mxu1 }
 0x49f   : > { %3820 = vst [vmem:[#allocation2 + $0x109] sm:$0xff] %v3733_v15  ;;  %v3734_v56 = vmax.f32 %v3698_v54, 0.0  ;;  %v12064_v2 = vadd.f32 %v9759_v11, %v9758_v26 }
 0x4a0   : > { %3823 = vst [vmem:[#allocation2 + $0x121] sm:$0xff] %v3736_v30 }
 0x4a1   : > { %3821 = vst [vmem:[#allocation2 + $0x111] sm:$0xff] %v3734_v56  ;;  %v3402_v56 = vadd.f32 %v12053_v32, %v8242_v1  ;;  %v3413_v32 = vadd.f32 %v12064_v2, %v8242_v1  ;;  %v10693_v2 = vld [vmem:[%s13084_s8 + $0x240] sm:$0xff]  }
 0x4a2   : > { %4180 = vmatmul.mubr.bf16.gmra.mrb[180].mxu0 %v3866_v5  ;;  %9903 = vmatprep.subr.bf16.mxu1 %v10693_v2 }
 0x4a7   : > { %v3841_v37 = vld [vmem:[#allocation2 + $0x119] ss:$2 sm:$0xff]  ;;  %v3849_v23 = vld [vmem:[#allocation2 + $0x11a] ss:$2 sm:$0xff] }
 0x4a8   : > { %v10397_v16 = vpop.f32.mrb[172].mxu0  ;;  %v3840_v49 = vld [vmem:[#allocation2 + $0x109] ss:$2 sm:$0xff]  ;;  %v3832_v58 = vld [vmem:[#allocation2 + $0x108] ss:$2 sm:$0xff] }
 0x4a9   : > { %v3719_v28 = vadd.f32 %v10397_v16, %v12038_v13  ;;  %v3710_v55 = vpop.f32.mrb[173].mxu0  ;;  %v3869_v42 = vpack.c.bf16 %v3841_v37, %v3840_v49  ;;  %v3833_v57 = vld [vmem:[#allocation2 + $0x118] ss:$2 sm:$0xff]  ;;  %4280 = vst [vmem:[#allocation2 + $0x108] sm:$0x1] %v11058_v0  ;;  %v3405_v49 = vadd.f32 %v12055_v59, %v8242_v1 }
 0x4aa   : > { %v3711_v53 = vadd.f32 %v12038_v13, %v3710_v55  ;;  %v10398_v33 = vpop.f32.mrb[174].mxu0  ;;  %v3868_v19 = vpack.c.bf16 %v3833_v57, %v3832_v58  ;;  %v3848_v7 = vld [vmem:[#allocation2 + $0x10a] ss:$2 sm:$0xff]  ;;  %v3856_v40 = vld [vmem:[#allocation2 + $0x10b] ss:$2 sm:$0xff] }
 0x4ab   : > { %v3739_v38 = vmax.f32 %v3719_v28, 0.0  ;;  %v3722_v41 = vadd.f32 %v10398_v33, %v12038_v13  ;;  %4122 = vmatprep.mubr.bf16.mxu1 %v3869_v42  ;;  %v9761_v43 = vpop.f32.mrb[140].mxu1  ;;  %v3713_v44 = vpop.f32.mrb[175].mxu0  ;;  %v3870_v27 = vpack.c.bf16 %v3849_v23, %v3848_v7  ;;  %v3410_v33 = vadd.f32 %v12062_v39, %v8242_v1  ;;  %v10694_v7 = vld [vmem:[%s13084_s8 + $0x2c0] sm:$0xff]   ;;  %v10698_v23 = vld [vmem:[%s13084_s8 + $0x2c8] sm:$0xff]  }
 0x4ac   : > { %v3737_v63 = vmax.f32 %v3711_v53, 0.0  ;;  %v3714_v45 = vadd.f32 %v12038_v13, %v3713_v44  ;;  %4123 = vmatmul.mubr.bf16.gmra.mrb[168].mxu1 %v3868_v19  ;;  %v9762_v46 = vpop.f32.mrb[141].mxu1  ;;  %9931 = vmatprep.subr.bf16.mxu0 %v10694_v7 }
 0x4ad   : > { %3826 = vst [vmem:[#allocation2 + $0x139] sm:$0xff] %v3739_v38  ;;  %v3740_v47 = vmax.f32 %v3722_v41, 0.0  ;;  %v12071_v48 = vadd.f32 %v9762_v46, %v9761_v43  ;;  %v9764_v50 = vpop.f32.mrb[142].mxu1 }
 0x4ae   : > { %3824 = vst [vmem:[#allocation2 + $0x129] sm:$0xff] %v3737_v63  ;;  %v3738_v52 = vmax.f32 %v3714_v45, 0.0  ;;  %v9765_v12 = vpop.f32.mrb[143].mxu1 }
 0x4af   : > { %3827 = vst [vmem:[#allocation2 + $0x141] sm:$0xff] %v3740_v47  ;;  %v12073_v62 = vadd.f32 %v9765_v12, %v9764_v50  ;;  %v3418_v46 = vadd.f32 %v12071_v48, %v8242_v1  ;;  %v10695_v48 = vld [vmem:[%s13084_s8 + $0x200] sm:$0xff]  }
 0x4b0   : > { %3825 = vst [vmem:[#allocation2 + $0x131] sm:$0xff] %v3738_v52  ;;  %9904 = vmatpush3.bf16.msra.mxu1 %v10695_v48 }
 0x4b1   : > { %v3421_v12 = vadd.f32 %v12073_v62, %v8242_v1  ;;  %v10696_v62 = vld [vmem:[%s13084_s8 + $0x280] sm:$0xff]   ;;  %v10697_v1 = vld [vmem:[%s13084_s8 + $0x248] sm:$0xff]  }
 0x4b2   : > { %9932 = vmatpush3.bf16.msra.mxu0 %v10696_v62  ;;  %9905 = vmatprep.subr.bf16.mxu1 %v10697_v1 }
 0x4b3   : > { %v9783_v60 = vpop.f32.mrb[144].mxu1  ;;  %9933 = vmatprep.subr.bf16.mxu0 %v10698_v23 }
 0x4b4   : > { %v9784_v13 = vpop.f32.mrb[145].mxu1 }
 0x4b5   : > { %v9785_v6 = vadd.f32 %v9784_v13, %v9783_v60  ;;  %v9786_v4 = vpop.f32.mrb[146].mxu1  ;;  %v3857_v8 = vld [vmem:[#allocation2 + $0x11b] ss:$2 sm:$0xff] }
 0x4b6   : > { %v9787_v51 = vpop.f32.mrb[147].mxu1  ;;  %v3871_v61 = vpack.c.bf16 %v3857_v8, %v3856_v40  ;;  %v3843_v24 = vld [vmem:[#allocation2 + $0x139] ss:$2 sm:$0xff]  ;;  %v3851_v11 = vld [vmem:[#allocation2 + $0x13a] ss:$2 sm:$0xff]  ;;  %v10702_v40 = vld [vmem:[%s13084_s8 + $0x2d0] sm:$0xff]  }
 0x4b7   : > { %v3859_v14 = vld [vmem:[#allocation2 + $0x13b] ss:$2 sm:$0xff]  ;;  %v12080_v18 = vadd.f32 %v9785_v6, %v3394_v3  ;;  %v9788_v20 = vadd.f32 %v9787_v51, %v9786_v4  ;;  %v3858_v22 = vld [vmem:[#allocation2 + $0x12b] ss:$2 sm:$0xff]  ;;  %v3834_v36 = vld [vmem:[#allocation2 + $0x128] ss:$2 sm:$0xff] }
 0x4b8   : > { %v3842_v25 = vld [vmem:[#allocation2 + $0x129] ss:$2 sm:$0xff]  ;;  %4187 = vmatprep.mubr.bf16.mxu0 %v3871_v61  ;;  %v3875_v35 = vpack.c.bf16 %v3859_v14, %v3858_v22  ;;  %v3835_v54 = vld [vmem:[#allocation2 + $0x138] ss:$2 sm:$0xff] }
 0x4b9   : > { %v3873_v15 = vpack.c.bf16 %v3843_v24, %v3842_v25  ;;  %4282 = vst [vmem:[#allocation2 + $0x129] sm:$0x1] %v11058_v0  ;;  %v12083_v26 = vadd.f32 %v9788_v20, %v3397_v17  ;;  %4188 = vmatmul.mubr.bf16.gmra.mrb[184].mxu0 %v3870_v27  ;;  %v3872_v34 = vpack.c.bf16 %v3835_v54, %v3834_v36  ;;  %v3850_v30 = vld [vmem:[#allocation2 + $0x12a] ss:$2 sm:$0xff]  ;;  %v10709_v20 = vld [vmem:[%s13084_s8 + $0x260] sm:$0xff]  }
 0x4ba   : > { %4195 = vmatprep.mubr.bf16.mxu0 %v3875_v35  ;;  %v3874_v55 = vpack.c.bf16 %v3851_v11, %v3850_v30  ;;  %v10699_v3 = vld [vmem:[%s13084_s8 + $0x208] sm:$0xff]   ;;  %v10701_v4 = vld [vmem:[%s13084_s8 + $0x250] sm:$0xff]   ;;  %v10705_v61 = vld [vmem:[%s13084_s8 + $0x258] sm:$0xff]  }
 0x4bb   : > { %4130 = vmatprep.mubr.bf16.mxu1 %v3873_v15  ;;  %v9789_v31 = vpop.f32.mrb[148].mxu1  ;;  %v10700_v6 = vld [vmem:[%s13084_s8 + $0x288] sm:$0xff]   ;;  %9906 = vmatpush3.bf16.msra.mxu1 %v10699_v3  ;;  %v10703_v8 = vld [vmem:[%s13084_s8 + $0x210] sm:$0xff]   ;;  %v10706_v24 = vld [vmem:[%s13084_s8 + $0x2d8] sm:$0xff]  }
 0x4bc   : > { %4131 = vmatmul.mubr.bf16.gmra.mrb[172].mxu1 %v3872_v34  ;;  %v9790_v29 = vpop.f32.mrb[149].mxu1  ;;  %9934 = vmatpush3.bf16.msra.mxu0 %v10700_v6  ;;  %v10704_v51 = vld [vmem:[%s13084_s8 + $0x290] sm:$0xff]   ;;  %v10707_v14 = vld [vmem:[%s13084_s8 + $0x218] sm:$0xff]   ;;  %v10710_v27 = vld [vmem:[%s13084_s8 + $0x2e0] sm:$0xff]  }
 0x4bd   : > { %v9791_v5 = vadd.f32 %v9790_v29, %v9789_v31  ;;  %v9792_v37 = vpop.f32.mrb[150].mxu1  ;;  %9907 = vmatprep.subr.bf16.mxu1 %v10701_v4  ;;  %9935 = vmatprep.subr.bf16.mxu0 %v10702_v40  ;;  %v10708_v17 = vld [vmem:[%s13084_s8 + $0x298] sm:$0xff]   ;;  %v10711_v25 = vld [vmem:[%s13084_s8 + $0x220] sm:$0xff]   ;;  %v10713_v36 = vld [vmem:[%s13084_s8 + $0x268] sm:$0xff]  }
 0x4be   : > { %v9793_v16 = vpop.f32.mrb[151].mxu1  ;;  %v10712_v22 = vld [vmem:[%s13084_s8 + $0x2a0] sm:$0xff]   ;;  %v10714_v15 = vld [vmem:[%s13084_s8 + $0x2e8] sm:$0xff]   ;;  %v10717_v34 = vld [vmem:[%s13084_s8 + $0x270] sm:$0xff]  }
 0x4bf   : > { %v12087_v58 = vadd.f32 %v9791_v5, %v3402_v56  ;;  %v9794_v28 = vadd.f32 %v9793_v16, %v9792_v37  ;;  %9908 = vmatpush3.bf16.msra.mxu1 %v10703_v8  ;;  %v10715_v35 = vld [vmem:[%s13084_s8 + $0x228] sm:$0xff]   ;;  %v10718_v31 = vld [vmem:[%s13084_s8 + $0x2f0] sm:$0xff]   ;;  %v10721_v11 = vld [vmem:[%s13084_s8 + $0x278] sm:$0xff]  }
 0x4c0   : > { %9936 = vmatpush3.bf16.msra.mxu0 %v10704_v51  ;;  %9909 = vmatprep.subr.bf16.mxu1 %v10705_v61  ;;  %v10716_v54 = vld [vmem:[%s13084_s8 + $0x2a8] sm:$0xff]   ;;  %v10719_v29 = vld [vmem:[%s13084_s8 + $0x230] sm:$0xff]   ;;  %v10722_v56 = vld [vmem:[%s13084_s8 + $0x2f8] sm:$0xff]  }
 0x4c1   : > { %v12089_v42 = vadd.f32 %v9794_v28, %v3405_v49  ;;  %4196 = vmatmul.mubr.bf16.gmra.mrb[188].mxu0 %v3874_v55  ;;  %9937 = vmatprep.subr.bf16.mxu0 %v10706_v24  ;;  %v10720_v30 = vld [vmem:[%s13084_s8 + $0x2b0] sm:$0xff]   ;;  %v10723_v5 = vld [vmem:[%s13084_s8 + $0x238] sm:$0xff]  }
 0x4c2   : > { %v10724_v37 = vld [vmem:[%s13084_s8 + $0x2b8] sm:$0xff]   ;;  %v12199_v16 = vld [vmem:[#allocation5 + $0x80] sm:$0xff]  }
 0x4c3   : > { %v9795_v57 = vpop.f32.mrb[152].mxu1  ;;  %9910 = vmatpush3.bf16.msra.mxu1 %v10707_v14 }
 0x4c4   : > { %v9796_v53 = vpop.f32.mrb[153].mxu1  ;;  %9938 = vmatpush3.bf16.msra.mxu0 %v10708_v17  ;;  %9911 = vmatprep.subr.bf16.mxu1 %v10709_v20 }
 0x4c5   : > { %v9797_v19 = vadd.f32 %v9796_v53, %v9795_v57  ;;  %v9798_v38 = vpop.f32.mrb[154].mxu1  ;;  %9939 = vmatprep.subr.bf16.mxu0 %v10710_v27 }
 0x4c6   : > { %v9799_v41 = vpop.f32.mrb[155].mxu1 }
 0x4c7   : > { %v12093_v43 = vadd.f32 %v9797_v19, %v3410_v33  ;;  %v9800_v44 = vadd.f32 %v9799_v41, %v9798_v38  ;;  %9912 = vmatpush3.bf16.msra.mxu1 %v10711_v25  ;;  %v12205_v19 = vld [vmem:[%s13083_s7 + $0x1] ss:$0 sm:$0xff]  ;;  %v8482_v41 = vld [vmem:[%s13079_s3 + $0x4] sm:$0x3] }
 0x4c8   : > { %9940 = vmatpush3.bf16.msra.mxu0 %v10712_v22  ;;  %9913 = vmatprep.subr.bf16.mxu1 %v10713_v36  ;;  %v12217_v6 = vrot.slane %v8482_v41, %v11408_v21 }
 0x4c9   : > { %v12095_v59 = vadd.f32 %v9800_v44, %v3413_v32  ;;  %9941 = vmatprep.subr.bf16.mxu0 %v10714_v15 }
 0x4cb   : > { %v9801_v63 = vpop.f32.mrb[156].mxu1  ;;  %9914 = vmatpush3.bf16.msra.mxu1 %v10715_v35 }
 0x4cc   : > { %v9802_v45 = vpop.f32.mrb[157].mxu1  ;;  %9942 = vmatpush3.bf16.msra.mxu0 %v10716_v54  ;;  %9915 = vmatprep.subr.bf16.mxu1 %v10717_v34 }
 0x4cd   : > { %v9803_v47 = vadd.f32 %v9802_v45, %v9801_v63  ;;  %v9804_v50 = vpop.f32.mrb[158].mxu1  ;;  %9943 = vmatprep.subr.bf16.mxu0 %v10718_v31 }
 0x4ce   : > { %v9805_v52 = vpop.f32.mrb[159].mxu1 }
 0x4cf   : > { %v12099_v39 = vadd.f32 %v9803_v47, %v3418_v46  ;;  %v9806_v60 = vadd.f32 %v9805_v52, %v9804_v50  ;;  %9916 = vmatpush3.bf16.msra.mxu1 %v10719_v29  ;;  %v12212_v47 = vrot.slane %v8482_v41, %v11397_v10 }
 0x4d0   : > { %9944 = vmatpush3.bf16.msra.mxu0 %v10720_v30  ;;  %9917 = vmatprep.subr.bf16.mxu1 %v10721_v11 }
 0x4d1   : > { %v12101_v13 = vadd.f32 %v9806_v60, %v3421_v12  ;;  %9945 = vmatprep.subr.bf16.mxu0 %v10722_v56 }
 0x4d3   : > { %9918 = vmatpush3.bf16.msra.mxu1 %v10723_v5 }
 0x4d4   : > { %9946 = vmatpush3.bf16.msra.mxu0 %v10724_v37  ;;  %10399 = vmatprep.subr.bf16.mxu1 %v12199_v16 }
 0x55e   : > { %v9839_v49 = vpop.f32.mrb[160].mxu1 }
 0x55f   : > { %v9840_v28 = vpop.f32.mrb[161].mxu1 }
 0x560   : > { %v9841_v55 = vadd.f32 %v9840_v28, %v9839_v49  ;;  %v9842_v57 = vpop.f32.mrb[162].mxu1 }
 0x561   : > { %v9843_v53 = vpop.f32.mrb[163].mxu1 }
 0x562   : > { %v9844_v33 = vadd.f32 %v9843_v53, %v9842_v57  ;;  %v4109_v44 = vadd.f32 %v9841_v55, %v12205_v19 }
 0x564   : > { %v4112_v12 = vadd.f32 %v9844_v33, %v12205_v19 }
 0x56d   : > { %v9879_v38 = vpop.f32.mrb[176].mxu0 }
 0x56e   : > { %v9880_v32 = vpop.f32.mrb[177].mxu0 }
 0x56f   : > { %v9881_v63 = vadd.f32 %v9880_v32, %v9879_v38  ;;  %v9882_v46 = vpop.f32.mrb[178].mxu0 }
 0x570   : > { %v9845_v45 = vpop.f32.mrb[164].mxu1  ;;  %v9883_v52 = vpop.f32.mrb[179].mxu0 }
 0x571   : > { %v9846_v50 = vpop.f32.mrb[165].mxu1  ;;  %v4174_v60 = vadd.f32 %v9881_v63, %v4109_v44  ;;  %v9884_v7 = vadd.f32 %v9883_v52, %v9882_v46 }
 0x572   : > { %v9847_v2 = vadd.f32 %v9846_v50, %v9845_v45  ;;  %v9848_v48 = vpop.f32.mrb[166].mxu1 }
 0x573   : > { %v9849_v62 = vpop.f32.mrb[167].mxu1  ;;  %v4204_v1 = vadd.f32 %v4174_v60, %v12080_v18  ;;  %v4177_v23 = vadd.f32 %v9884_v7, %v4112_v12 }
 0x574   : > { %v9850_v3 = vadd.f32 %v9849_v62, %v9848_v48  ;;  %v4117_v61 = vadd.f32 %v9847_v2, %v12205_v19  ;;  %v10726_v2 = vld [vmem:[#allocation5 + $0x88] sm:$0xff]   ;;  %v10727_v48 = vld [vmem:[#allocation5 + $0x90] sm:$0xff]  }
 0x575   : > { %v4617_v4 = vmul.f32 %v12212_v47, %v4204_v1  ;;  %4283 = vst [vmem:[#allocation2 + $0x1] sm:$0xff] %v4204_v1  ;;  %v4205_v40 = vadd.f32 %v4177_v23, %v12083_v26  ;;  %v9885_v8 = vpop.f32.mrb[180].mxu0 }
 0x576   : > { %v9886_v51 = vpop.f32.mrb[181].mxu0  ;;  %v4120_v27 = vadd.f32 %v9850_v3, %v12205_v19 }
 0x577   : > { %v4618_v24 = vmul.f32 %v12212_v47, %v4205_v40  ;;  %4284 = vst [vmem:[#allocation2 + $0x9] sm:$0xff] %v4205_v40  ;;  %v9887_v14 = vadd.f32 %v9886_v51, %v9885_v8  ;;  %v9888_v17 = vpop.f32.mrb[182].mxu0  ;;  %v4629_v18 = vadd.f32 %v12217_v6, %v4617_v4 }
 0x578   : > { %v9889_v20 = vpop.f32.mrb[183].mxu0 }
 0x579   : > { %v4182_v25 = vadd.f32 %v9887_v14, %v4117_v61  ;;  %v9890_v22 = vadd.f32 %v9889_v20, %v9888_v17  ;;  %v4630_v36 = vadd.f32 %v12217_v6, %v4618_v24  ;;  %v4637_v35 = vmax.f32 %v4629_v18, 0.0 }
 0x57b   : > { %v4206_v26 = vadd.f32 %v4182_v25, %v12087_v58  ;;  %v4185_v15 = vadd.f32 %v9890_v22, %v4120_v27  ;;  %v4638_v54 = vmax.f32 %v4630_v36, 0.0 }
 0x57d   : > { %v4619_v34 = vmul.f32 %v12212_v47, %v4206_v26  ;;  %4285 = vst [vmem:[#allocation2 + $0x11] sm:$0xff] %v4206_v26  ;;  %v4207_v31 = vadd.f32 %v4185_v15, %v12089_v42  ;;  %v12229_v29 = vpack.c.bf16 %v4638_v54, %v4637_v35  ;;  %v10729_v15 = vld [vmem:[#allocation5 + $0xa0] sm:$0xff]  }
 0x57e   : > { %v4291_v30 = vld [vmem:[#allocation2] ss:$2 sm:$0xff]  ;;  %v4295_v38 = vld [vmem:[#allocation2 + $0x1] ss:$2 sm:$0xff] }
 0x57f   : > { %v4631_v11 = vadd.f32 %v12217_v6, %v4619_v34  ;;  %v4620_v56 = vmul.f32 %v12212_v47, %v4207_v31  ;;  %4286 = vst [vmem:[#allocation2 + $0x19] sm:$0xff] %v4207_v31  ;;  %v9851_v5 = vpop.f32.mrb[168].mxu1  ;;  %4862 = vst [vmem:[#allocation2] sm:$0x1] %v11058_v0  ;;  %v4299_v52 = vld [vmem:[#allocation2 + $0x2] ss:$2 sm:$0xff] }
 0x580   : > { %v9852_v58 = vpop.f32.mrb[169].mxu1 }
 0x581   : > { %v4632_v37 = vadd.f32 %v12217_v6, %v4620_v56  ;;  %v9853_v49 = vadd.f32 %v9852_v58, %v9851_v5  ;;  %v9854_v28 = vpop.f32.mrb[170].mxu1  ;;  %v4639_v57 = vmax.f32 %v4631_v11, 0.0 }
 0x582   : > { %v9855_v55 = vpop.f32.mrb[171].mxu1 }
 0x583   : > { %v4640_v53 = vmax.f32 %v4632_v37, 0.0  ;;  %v9856_v42 = vadd.f32 %v9855_v55, %v9854_v28  ;;  %v4125_v1 = vadd.f32 %v9853_v49, %v12205_v19 }
 0x584   : > { %v4303_v41 = vld [vmem:[#allocation2 + $0x3] ss:$2 sm:$0xff] }
 0x585   : > { %v12235_v33 = vpack.c.bf16 %v4640_v53, %v4639_v57  ;;  %v4128_v51 = vadd.f32 %v9856_v42, %v12205_v19 }
 0x586   : > { %v4296_v32 = vld [vmem:[#allocation2 + $0x11] ss:$2 sm:$0xff]  ;;  %v4292_v63 = vld [vmem:[#allocation2 + $0x10] ss:$2 sm:$0xff] }
 0x587   : > { %v4304_v44 = vld [vmem:[#allocation2 + $0x13] ss:$2 sm:$0xff]  ;;  %v4308_v45 = vpack.c.bf16 %v4296_v32, %v4295_v38  ;;  %v4307_v50 = vpack.c.bf16 %v4292_v63, %v4291_v30  ;;  %v4300_v12 = vld [vmem:[#allocation2 + $0x12] ss:$2 sm:$0xff] }
 0x588   : > { %v4310_v46 = vpack.c.bf16 %v4304_v44, %v4303_v41  ;;  %4864 = vst [vmem:[#allocation2 + $0x21] sm:$0x1] %v11058_v0  ;;  %v4309_v60 = vpack.c.bf16 %v4300_v12, %v4299_v52  ;;  %v10731_v38 = vld [vmem:[#allocation5 + $0xb0] sm:$0xff]   ;;  %v10732_v44 = vld [vmem:[#allocation5 + $0xb8] sm:$0xff]  }
 0x589   : > { %4545 = vmatprep.mubr.bf16.mxu1 %v4308_v45 }
 0x58a   : > { %4594 = vmatprep.mubr.bf16.mxu0 %v4310_v46  ;;  %4546 = vmatmul.mubr.bf16.vlgmr.msra.gmra.mrb[176].mxu1 %v4307_v50 }
 0x58b   : > { %4595 = vmatmul.mubr.bf16.vlgmr.msra.gmra.mrb[192].mxu0 %v4309_v60  ;;  %10400 = vmatpush3.bf16.msra.mxu1 %v12199_v16  ;;  %v10728_v16 = vld [vmem:[#allocation5 + $0x98] sm:$0xff]  }
 0x58c   : > { %v9891_v7 = vpop.f32.mrb[184].mxu0  ;;  %10401 = vmatprep.subr.bf16.mxu1 %v10726_v2 }
 0x58d   : > { %v9892_v62 = vpop.f32.mrb[185].mxu0 }
 0x58e   : > { %v9893_v23 = vadd.f32 %v9892_v62, %v9891_v7  ;;  %v9894_v4 = vpop.f32.mrb[186].mxu0 }
 0x58f   : > { %v9857_v3 = vpop.f32.mrb[172].mxu1  ;;  %v9895_v8 = vpop.f32.mrb[187].mxu0  ;;  %10402 = vmatpush3.bf16.msra.mxu1 %v10726_v2 }
 0x590   : > { %v9858_v40 = vpop.f32.mrb[173].mxu1  ;;  %v4190_v61 = vadd.f32 %v9893_v23, %v4125_v1  ;;  %v9896_v14 = vadd.f32 %v9895_v8, %v9894_v4  ;;  %10403 = vmatprep.subr.bf16.mxu1 %v10727_v48  ;;  %v10735_v4 = vld [vmem:[%s13082_s6 + $0x200] sm:$0xff]   ;;  %v10739_v8 = vld [vmem:[%s13082_s6 + $0x208] sm:$0xff]  }
 0x591   : > { %v9859_v24 = vadd.f32 %v9858_v40, %v9857_v3  ;;  %v9860_v17 = vpop.f32.mrb[174].mxu1  ;;  %v10734_v3 = vld [vmem:[%s13082_s6 + $0x2c0] sm:$0xff]   ;;  %v10738_v40 = vld [vmem:[%s13082_s6 + $0x2c8] sm:$0xff]  }
 0x592   : > { %v9861_v18 = vpop.f32.mrb[175].mxu1  ;;  %v4208_v20 = vadd.f32 %v4190_v61, %v12093_v43  ;;  %v4193_v27 = vadd.f32 %v9896_v14, %v4128_v51  ;;  %v10740_v51 = vld [vmem:[%s13082_s6 + $0x288] sm:$0xff]   ;;  %v10741_v61 = vld [vmem:[%s13082_s6 + $0x250] sm:$0xff]  }
 0x593   : > { %v9862_v25 = vadd.f32 %v9861_v18, %v9860_v17  ;;  %10404 = vmatpush3.bf16.msra.mxu1 %v10727_v48  ;;  %v4133_v54 = vadd.f32 %v9859_v24, %v12205_v19  ;;  %v10742_v24 = vld [vmem:[%s13082_s6 + $0x2d0] sm:$0xff]   ;;  %v10746_v18 = vld [vmem:[%s13082_s6 + $0x2d8] sm:$0xff]  }
 0x594   : > { %v4621_v22 = vmul.f32 %v12212_v47, %v4208_v20  ;;  %4287 = vst [vmem:[#allocation2 + $0x109] sm:$0xff] %v4208_v20  ;;  %v4209_v36 = vadd.f32 %v4193_v27, %v12095_v59  ;;  %v9897_v26 = vpop.f32.mrb[188].mxu0  ;;  %10405 = vmatprep.subr.bf16.mxu1 %v10728_v16  ;;  %v10730_v59 = vld [vmem:[#allocation5 + $0xa8] sm:$0xff]   ;;  %v10743_v14 = vld [vmem:[%s13082_s6 + $0x210] sm:$0xff]  }
 0x595   : > { %v9898_v35 = vpop.f32.mrb[189].mxu0  ;;  %v4136_v56 = vadd.f32 %v9862_v25, %v12205_v19  ;;  %v10744_v17 = vld [vmem:[%s13082_s6 + $0x290] sm:$0xff]   ;;  %v10747_v20 = vld [vmem:[%s13082_s6 + $0x218] sm:$0xff]   ;;  %v10749_v25 = vld [vmem:[%s13082_s6 + $0x260] sm:$0xff]  }
 0x596   : > { %v4622_v34 = vmul.f32 %v12212_v47, %v4209_v36  ;;  %4288 = vst [vmem:[#allocation2 + $0x111] sm:$0xff] %v4209_v36  ;;  %v9899_v31 = vadd.f32 %v9898_v35, %v9897_v26  ;;  %v9900_v30 = vpop.f32.mrb[190].mxu0  ;;  %v4633_v43 = vadd.f32 %v12217_v6, %v4621_v22  ;;  %v10748_v27 = vld [vmem:[%s13082_s6 + $0x298] sm:$0xff]   ;;  %v10750_v22 = vld [vmem:[%s13082_s6 + $0x2e0] sm:$0xff]   ;;  %v10754_v35 = vld [vmem:[%s13082_s6 + $0x2e8] sm:$0xff]  }
 0x597   : > { %v9901_v11 = vpop.f32.mrb[191].mxu0  ;;  %10406 = vmatpush3.bf16.msra.mxu1 %v10728_v16  ;;  %v10745_v16 = vld [vmem:[%s13082_s6 + $0x258] sm:$0xff]   ;;  %v10751_v36 = vld [vmem:[%s13082_s6 + $0x220] sm:$0xff]  }
 0x598   : > { %v4198_v5 = vadd.f32 %v9899_v31, %v4133_v54  ;;  %v9902_v58 = vadd.f32 %v9901_v11, %v9900_v30  ;;  %10407 = vmatprep.subr.bf16.mxu1 %v10729_v15  ;;  %v4634_v37 = vadd.f32 %v12217_v6, %v4622_v34  ;;  %v4641_v55 = vmax.f32 %v4633_v43, 0.0  ;;  %v10752_v26 = vld [vmem:[%s13082_s6 + $0x2a0] sm:$0xff]   ;;  %v10755_v54 = vld [vmem:[%s13082_s6 + $0x228] sm:$0xff]   ;;  %v10757_v31 = vld [vmem:[%s13082_s6 + $0x270] sm:$0xff]  }
 0x599   : > { %v10756_v34 = vld [vmem:[%s13082_s6 + $0x2a8] sm:$0xff]   ;;  %v10758_v30 = vld [vmem:[%s13082_s6 + $0x2f0] sm:$0xff]  }
 0x59a   : > { %v4210_v49 = vadd.f32 %v4198_v5, %v12099_v39  ;;  %v4201_v28 = vadd.f32 %v9902_v58, %v4136_v56  ;;  %v4642_v57 = vmax.f32 %v4634_v37, 0.0  ;;  %v10759_v43 = vld [vmem:[%s13082_s6 + $0x230] sm:$0xff]   ;;  %v10761_v56 = vld [vmem:[%s13082_s6 + $0x278] sm:$0xff]   ;;  %v10765_v37 = vld [vmem:[%s13084_s8 + $0x340] sm:$0xff]  }
 0x59b   : > { %10408 = vmatpush3.bf16.msra.mxu1 %v10729_v15  ;;  %v10753_v15 = vld [vmem:[%s13082_s6 + $0x268] sm:$0xff]   ;;  %v10760_v11 = vld [vmem:[%s13082_s6 + $0x2b0] sm:$0xff]   ;;  %v10762_v5 = vld [vmem:[%s13082_s6 + $0x2f8] sm:$0xff]  }
 0x59c   : > { %v4623_v53 = vmul.f32 %v12212_v47, %v4210_v49  ;;  %4289 = vst [vmem:[#allocation2 + $0x119] sm:$0xff] %v4210_v49  ;;  %v4211_v42 = vadd.f32 %v4201_v28, %v12101_v13  ;;  %10409 = vmatprep.subr.bf16.mxu1 %v10730_v59  ;;  %v4647_v19 = vpack.c.bf16 %v4642_v57, %v4641_v55  ;;  %v10763_v58 = vld [vmem:[%s13082_s6 + $0x238] sm:$0xff]   ;;  %v10767_v49 = vld [vmem:[%s13084_s8 + $0x3c0] sm:$0xff]  }
 0x59d   : > { %v4293_v41 = vld [vmem:[#allocation2 + $0x108] ss:$2 sm:$0xff]  ;;  %v4297_v13 = vld [vmem:[#allocation2 + $0x109] ss:$2 sm:$0xff]  ;;  %v8449_v57 = vld [vmem:[%s13085_s9 + $0x2] ss:$0 sm:$0xff] }
 0x59e   : > { %v4624_v32 = vmul.f32 %v12212_v47, %v4211_v42  ;;  %4290 = vst [vmem:[#allocation2 + $0x121] sm:$0xff] %v4211_v42  ;;  %4863 = vst [vmem:[#allocation2 + $0x108] sm:$0x1] %v11058_v0  ;;  %v4635_v39 = vadd.f32 %v12217_v6, %v4623_v53  ;;  %v4301_v62 = vld [vmem:[#allocation2 + $0x10a] ss:$2 sm:$0xff] }
 0x59f   : > { %10410 = vmatpush3.bf16.msra.mxu1 %v10730_v59  ;;  %v10764_v59 = vld [vmem:[%s13082_s6 + $0x2b8] sm:$0xff]  }
 0x5a0   : > { %10411 = vmatprep.subr.bf16.mxu1 %v10731_v38  ;;  %v4636_v63 = vadd.f32 %v12217_v6, %v4624_v32  ;;  %v4643_v45 = vmax.f32 %v4635_v39, 0.0  ;;  %v10733_v6 = vld [vmem:[%s13082_s6 + $0x240] sm:$0xff]  }
 0x5a1   : > { %9971 = vmatprep.subr.bf16.mxu0 %v10733_v6 }
 0x5a2   : > { %v4644_v46 = vmax.f32 %v4636_v63, 0.0  ;;  %9972 = vmatpush3.bf16.msra.mxu0 %v10735_v4 }
 0x5a3   : > { %10412 = vmatpush3.bf16.msra.mxu1 %v10731_v38  ;;  %v4305_v50 = vld [vmem:[#allocation2 + $0x10b] ss:$2 sm:$0xff] }
 0x5a4   : > { %10413 = vmatprep.subr.bf16.mxu1 %v10732_v44  ;;  %v4648_v52 = vpack.c.bf16 %v4644_v46, %v4643_v45 }
 0x5a5   : > { %v4298_v12 = vld [vmem:[#allocation2 + $0x119] ss:$2 sm:$0xff]  ;;  %v4294_v47 = vld [vmem:[#allocation2 + $0x118] ss:$2 sm:$0xff] }
 0x5a6   : > { %v4306_v60 = vld [vmem:[#allocation2 + $0x11b] ss:$2 sm:$0xff]  ;;  %v4312_v2 = vpack.c.bf16 %v4298_v12, %v4297_v13  ;;  %v4311_v48 = vpack.c.bf16 %v4294_v47, %v4293_v41  ;;  %v4302_v1 = vld [vmem:[#allocation2 + $0x11a] ss:$2 sm:$0xff] }
 0x5a7   : > { %v4314_v7 = vpack.c.bf16 %v4306_v60, %v4305_v50  ;;  %4865 = vst [vmem:[#allocation2 + $0x129] sm:$0x1] %v11058_v0  ;;  %v4313_v23 = vpack.c.bf16 %v4302_v1, %v4301_v62  ;;  %10414 = vmatpush3.bf16.msra.mxu1 %v10732_v44 }
 0x5a8   : > { %4553 = vmatprep.mubr.bf16.mxu1 %v4312_v2  ;;  %9999 = vmatprep.subr.bf16.mxu1 %v10734_v3 }
 0x5a9   : > { %4602 = vmatprep.mubr.bf16.mxu0 %v4314_v7  ;;  %4554 = vmatmul.mubr.bf16.gmra.mrb[180].mxu1 %v4311_v48 }
 0x5aa   : > { %4603 = vmatmul.mubr.bf16.gmra.mrb[196].mxu0 %v4313_v23  ;;  %10415 = vmatprep.mubr.bf16.mxu1 %v12229_v29  ;;  %v10736_v29 = vld [vmem:[%s13082_s6 + $0x280] sm:$0xff]  }
 0x5b1   : > { %10416 = vmatmul.mubr.bf16.vlgmr.msra.gmra.mrb[184].mxu1 %v12235_v33  ;;  %v10737_v33 = vld [vmem:[%s13082_s6 + $0x248] sm:$0xff]  }
 0x5b2   : > { %10419 = vmatprep.mubr.bf16.mxu1 %v4647_v19  ;;  %10000 = vmatpush3.bf16.msra.mxu1 %v10736_v29 }
 0x5b3   : > { %9973 = vmatprep.subr.bf16.mxu0 %v10737_v33  ;;  %10001 = vmatprep.subr.bf16.mxu1 %v10738_v40 }
 0x5b4   : > { %9974 = vmatpush3.bf16.msra.mxu0 %v10739_v8  ;;  %v8484_v8 = vld [vmem:[%s13081_s5 + $0x2] ss:$0 sm:$0xff] }
 0x5b5   : > { %9975 = vmatprep.subr.bf16.mxu0 %v10741_v61 }
 0x5b6   : > { %10002 = vmatpush3.bf16.msra.mxu1 %v10740_v51 }
 0x5b7   : > { %10003 = vmatprep.subr.bf16.mxu1 %v10742_v24 }
 0x5b8   : > { %9976 = vmatpush3.bf16.msra.mxu0 %v10743_v14 }
 0x5b9   : > { %10420 = vmatmul.mubr.bf16.gmra.mrb[188].mxu1 %v4648_v52  ;;  %9977 = vmatprep.subr.bf16.mxu0 %v10745_v16 }
 0x5ba   : > { %10004 = vmatpush3.bf16.msra.mxu1 %v10744_v17 }
 0x5bb   : > { %10005 = vmatprep.subr.bf16.mxu1 %v10746_v18 }
 0x5bc   : > { %9978 = vmatpush3.bf16.msra.mxu0 %v10747_v20 }
 0x5bd   : > { %9979 = vmatprep.subr.bf16.mxu0 %v10749_v25 }
 0x5be   : > { %10006 = vmatpush3.bf16.msra.mxu1 %v10748_v27 }
 0x5bf   : > { %10007 = vmatprep.subr.bf16.mxu1 %v10750_v22 }
 0x5c0   : > { %9980 = vmatpush3.bf16.msra.mxu0 %v10751_v36 }
 0x5c1   : > { %9981 = vmatprep.subr.bf16.mxu0 %v10753_v15 }
 0x5c2   : > { %10008 = vmatpush3.bf16.msra.mxu1 %v10752_v26 }
 0x5c3   : > { %10009 = vmatprep.subr.bf16.mxu1 %v10754_v35 }
 0x5c4   : > { %9982 = vmatpush3.bf16.msra.mxu0 %v10755_v54 }
 0x5c5   : > { %9983 = vmatprep.subr.bf16.mxu0 %v10757_v31 }
 0x5c6   : > { %10010 = vmatpush3.bf16.msra.mxu1 %v10756_v34 }
 0x5c7   : > { %10011 = vmatprep.subr.bf16.mxu1 %v10758_v30 }
 0x5c8   : > { %9984 = vmatpush3.bf16.msra.mxu0 %v10759_v43 }
 0x5c9   : > { %9985 = vmatprep.subr.bf16.mxu0 %v10761_v56 }
 0x5ca   : > { %10012 = vmatpush3.bf16.msra.mxu1 %v10760_v11 }
 0x5cb   : > { %10013 = vmatprep.subr.bf16.mxu1 %v10762_v5 }
 0x5cc   : > { %9986 = vmatpush3.bf16.msra.mxu0 %v10763_v58 }
 0x5cd   : > { %10027 = vmatprep.subr.bf16.mxu0 %v10765_v37 }
 0x5ce   : > { %10014 = vmatpush3.bf16.msra.mxu1 %v10764_v59 }
 0x5cf   : > { %10049 = vmatprep.subr.bf16.mxu1 %v10767_v49 }
 0x65d   : > { %v9919_v28 = vpop.f32.mrb[176].mxu1 }
 0x65e   : > { %v9947_v55 = vpop.f32.mrb[192].mxu0  ;;  %v9920_v53 = vpop.f32.mrb[177].mxu1 }
 0x65f   : > { %v9948_v42 = vpop.f32.mrb[193].mxu0  ;;  %v9921_v38 = vadd.f32 %v9920_v53, %v9919_v28  ;;  %v9922_v41 = vpop.f32.mrb[178].mxu1  ;;  %v10766_v28 = vld [vmem:[%s13084_s8 + $0x300] sm:$0xff]  }
 0x660   : > { %v9949_v19 = vadd.f32 %v9948_v42, %v9947_v55  ;;  %v9950_v32 = vpop.f32.mrb[194].mxu0  ;;  %v9923_v39 = vpop.f32.mrb[179].mxu1 }
 0x661   : > { %v9951_v44 = vpop.f32.mrb[195].mxu0  ;;  %v4548_v63 = vadd.f32 %v9921_v38, %v8449_v57  ;;  %v9924_v45 = vadd.f32 %v9923_v39, %v9922_v41 }
 0x662   : > { %v9952_v46 = vadd.f32 %v9951_v44, %v9950_v32 }
 0x663   : > { %v12364_v13 = vadd.f32 %v9949_v19, %v4548_v63  ;;  %v4551_v50 = vadd.f32 %v9924_v45, %v8449_v57 }
 0x665   : > { %v12366_v52 = vadd.f32 %v9952_v46, %v4551_v50 }
 0x67c   : > { %v9925_v12 = vpop.f32.mrb[180].mxu1 }
 0x67d   : > { %v9953_v60 = vpop.f32.mrb[196].mxu0  ;;  %v9926_v47 = vpop.f32.mrb[181].mxu1 }
 0x67e   : > { %v9954_v2 = vpop.f32.mrb[197].mxu0  ;;  %v9927_v7 = vadd.f32 %v9926_v47, %v9925_v12  ;;  %v9928_v62 = vpop.f32.mrb[182].mxu1 }
 0x67f   : > { %v9955_v48 = vadd.f32 %v9954_v2, %v9953_v60  ;;  %v9956_v1 = vpop.f32.mrb[198].mxu0  ;;  %v9929_v23 = vpop.f32.mrb[183].mxu1 }
 0x680   : > { %v9957_v6 = vpop.f32.mrb[199].mxu0  ;;  %v4556_v3 = vadd.f32 %v9927_v7, %v8449_v57  ;;  %v9930_v4 = vadd.f32 %v9929_v23, %v9928_v62  ;;  %v10768_v23 = vld [vmem:[%s13084_s8 + $0x380] sm:$0xff]  }
 0x681   : > { %v9958_v29 = vadd.f32 %v9957_v6, %v9956_v1  ;;  %v10769_v6 = vld [vmem:[%s13084_s8 + $0x348] sm:$0xff]  }
 0x682   : > { %v12368_v33 = vadd.f32 %v9955_v48, %v4556_v3  ;;  %v4559_v40 = vadd.f32 %v9930_v4, %v8449_v57  ;;  %v10770_v3 = vld [vmem:[%s13084_s8 + $0x308] sm:$0xff]  }
 0x683   : > { %v10771_v4 = vld [vmem:[%s13084_s8 + $0x3c8] sm:$0xff]  }
 0x684   : > { %v12373_v51 = vadd.f32 %v9958_v29, %v4559_v40  ;;  %v10417_v61 = vpop.f32.mrb[184].mxu1  ;;  %v10772_v29 = vld [vmem:[%s13084_s8 + $0x388] sm:$0xff]   ;;  %v10773_v40 = vld [vmem:[%s13084_s8 + $0x350] sm:$0xff]  }
 0x685   : > { %v4765_v24 = vadd.f32 %v10417_v61, %v8484_v8  ;;  %v4756_v14 = vpop.f32.mrb[185].mxu1  ;;  %v10775_v61 = vld [vmem:[%s13084_s8 + $0x3d0] sm:$0xff]  }
 0x686   : > { %v4757_v17 = vadd.f32 %v8484_v8, %v4756_v14  ;;  %v10418_v16 = vpop.f32.mrb[186].mxu1  ;;  %v10777_v14 = vld [vmem:[%s13084_s8 + $0x358] sm:$0xff]  }
 0x687   : > { %v4789_v18 = vmax.f32 %v4765_v24, 0.0  ;;  %v4768_v20 = vadd.f32 %v10418_v16, %v8484_v8  ;;  %v4759_v27 = vpop.f32.mrb[187].mxu1  ;;  %v10776_v24 = vld [vmem:[%s13084_s8 + $0x390] sm:$0xff]   ;;  %v10779_v16 = vld [vmem:[%s13084_s8 + $0x3d8] sm:$0xff]  }
 0x688   : > { %v4787_v25 = vmax.f32 %v4757_v17, 0.0  ;;  %v4760_v22 = vadd.f32 %v8484_v8, %v4759_v27  ;;  %v10778_v17 = vld [vmem:[%s13084_s8 + $0x318] sm:$0xff]   ;;  %v10782_v27 = vld [vmem:[%s13084_s8 + $0x320] sm:$0xff]  }
 0x689   : > { %4868 = vst [vmem:[#allocation2 + $0x11] sm:$0xff] %v4789_v18  ;;  %v4790_v36 = vmax.f32 %v4768_v20, 0.0  ;;  %v10780_v18 = vld [vmem:[%s13084_s8 + $0x398] sm:$0xff]   ;;  %v10781_v20 = vld [vmem:[%s13084_s8 + $0x360] sm:$0xff]  }
 0x68a   : > { %4866 = vst [vmem:[#allocation2 + $0x1] sm:$0xff] %v4787_v25  ;;  %v4788_v26 = vmax.f32 %v4760_v22, 0.0  ;;  %v10783_v25 = vld [vmem:[%s13084_s8 + $0x3e0] sm:$0xff]  }
 0x68b   : > { %4869 = vst [vmem:[#allocation2 + $0x19] sm:$0xff] %v4790_v36  ;;  %v10784_v22 = vld [vmem:[%s13084_s8 + $0x3a0] sm:$0xff]   ;;  %v10785_v36 = vld [vmem:[%s13084_s8 + $0x368] sm:$0xff]  }
 0x68c   : > { %4867 = vst [vmem:[#allocation2 + $0x9] sm:$0xff] %v4788_v26  ;;  %v10421_v15 = vpop.f32.mrb[188].mxu1  ;;  %v10786_v26 = vld [vmem:[%s13084_s8 + $0x328] sm:$0xff]  }
 0x68d   : > { %v4781_v35 = vadd.f32 %v10421_v15, %v8484_v8  ;;  %v4772_v54 = vpop.f32.mrb[189].mxu1  ;;  %v10787_v15 = vld [vmem:[%s13084_s8 + $0x3e8] sm:$0xff]  }
 0x68e   : > { %v4773_v34 = vadd.f32 %v8484_v8, %v4772_v54  ;;  %v10422_v31 = vpop.f32.mrb[190].mxu1  ;;  %v10789_v54 = vld [vmem:[%s13084_s8 + $0x370] sm:$0xff]  }
 0x68f   : > { %v4793_v30 = vmax.f32 %v4781_v35, 0.0  ;;  %v4784_v43 = vadd.f32 %v10422_v31, %v8484_v8  ;;  %v4775_v11 = vpop.f32.mrb[191].mxu1  ;;  %v10788_v35 = vld [vmem:[%s13084_s8 + $0x3a8] sm:$0xff]   ;;  %v10791_v31 = vld [vmem:[%s13084_s8 + $0x3f0] sm:$0xff]  }
 0x690   : > { %v4791_v56 = vmax.f32 %v4773_v34, 0.0  ;;  %v4776_v5 = vadd.f32 %v8484_v8, %v4775_v11  ;;  %v10774_v8 = vld [vmem:[%s13084_s8 + $0x310] sm:$0xff]   ;;  %v10795_v11 = vld [vmem:[%s13084_s8 + $0x3f8] sm:$0xff]  }
 0x691   : > { %4872 = vst [vmem:[#allocation2 + $0x119] sm:$0xff] %v4793_v30  ;;  %v4794_v58 = vmax.f32 %v4784_v43, 0.0  ;;  %v10790_v34 = vld [vmem:[%s13084_s8 + $0x330] sm:$0xff]   ;;  %v10793_v43 = vld [vmem:[%s13084_s8 + $0x378] sm:$0xff]  }
 0x692   : > { %4870 = vst [vmem:[#allocation2 + $0x109] sm:$0xff] %v4791_v56  ;;  %v4792_v59 = vmax.f32 %v4776_v5, 0.0  ;;  %v4879_v37 = vld [vmem:[#allocation2 + $0x11] ss:$2 sm:$0xff]  ;;  %v4883_v32 = vld [vmem:[#allocation2 + $0x12] ss:$2 sm:$0xff] }
 0x693   : > { %v4887_v49 = vld [vmem:[#allocation2 + $0x13] ss:$2 sm:$0xff]  ;;  %4873 = vst [vmem:[#allocation2 + $0x121] sm:$0xff] %v4794_v58  ;;  %v4886_v57 = vld [vmem:[#allocation2 + $0x3] ss:$2 sm:$0xff] }
 0x694   : > { %v4878_v55 = vld [vmem:[#allocation2 + $0x1] ss:$2 sm:$0xff]  ;;  %v4874_v53 = vld [vmem:[#allocation2] ss:$2 sm:$0xff]  ;;  %4871 = vst [vmem:[#allocation2 + $0x111] sm:$0xff] %v4792_v59  ;;  %v4893_v38 = vpack.c.bf16 %v4887_v49, %v4886_v57  ;;  %v10792_v30 = vld [vmem:[%s13084_s8 + $0x3b0] sm:$0xff]  }
 0x695   : > { %v4891_v42 = vpack.c.bf16 %v4879_v37, %v4878_v55  ;;  %5267 = vst [vmem:[#allocation2 + $0x11] sm:$0x1] %v11058_v0  ;;  %v4875_v19 = vld [vmem:[#allocation2 + $0x10] ss:$2 sm:$0xff]  ;;  %5265 = vst [vmem:[#allocation2] sm:$0x1] %v11058_v0 }
 0x696   : > { %v4882_v41 = vld [vmem:[#allocation2 + $0x2] ss:$2 sm:$0xff]  ;;  %v4890_v39 = vpack.c.bf16 %v4875_v19, %v4874_v53  ;;  %5177 = vmatprep.mubr.bf16.mxu1 %v4893_v38  ;;  %v10794_v56 = vld [vmem:[%s13084_s8 + $0x338] sm:$0xff]  }
 0x697   : > { %v4892_v44 = vpack.c.bf16 %v4883_v32, %v4882_v41  ;;  %5128 = vmatprep.mubr.bf16.mxu0 %v4891_v42  ;;  %v10796_v5 = vld [vmem:[%s13084_s8 + $0x3b8] sm:$0xff]   ;;  %v12469_v58 = vld [vmem:[#allocation5 + $0xc0] sm:$0xff]   ;;  %v8558_v49 = vld [vmem:[%s13083_s7 + $0x2] ss:$0 sm:$0xff] }
 0x698   : > { %5129 = vmatmul.mubr.bf16.vlgmr.msra.gmra.mrb[200].mxu0 %v4890_v39  ;;  %v8689_v19 = vld [vmem:[%s13079_s3 + $0x6] sm:$0x3] }
 0x699   : > { %5178 = vmatmul.mubr.bf16.vlgmr.msra.gmra.mrb[192].mxu1 %v4892_v44  ;;  %10028 = vmatpush3.bf16.msra.mxu0 %v10766_v28 }
 0x69a   : > { %v4881_v63 = vld [vmem:[#allocation2 + $0x119] ss:$2 sm:$0xff]  ;;  %v4885_v46 = vld [vmem:[#allocation2 + $0x11a] ss:$2 sm:$0xff]  ;;  %10050 = vmatpush3.bf16.msra.mxu1 %v10768_v23  ;;  %10029 = vmatprep.subr.bf16.mxu0 %v10769_v6 }
 0x69b   : > { %v4889_v45 = vld [vmem:[#allocation2 + $0x11b] ss:$2 sm:$0xff]  ;;  %v4888_v12 = vld [vmem:[#allocation2 + $0x10b] ss:$2 sm:$0xff]  ;;  %v4876_v60 = vld [vmem:[#allocation2 + $0x108] ss:$2 sm:$0xff]  ;;  %10051 = vmatprep.subr.bf16.mxu1 %v10771_v4 }
 0x69c   : > { %v4880_v50 = vld [vmem:[#allocation2 + $0x109] ss:$2 sm:$0xff]  ;;  %5268 = vst [vmem:[#allocation2 + $0x119] sm:$0x1] %v11058_v0  ;;  %v4897_v2 = vpack.c.bf16 %v4889_v45, %v4888_v12  ;;  %v4877_v7 = vld [vmem:[#allocation2 + $0x118] ss:$2 sm:$0xff] }
 0x69d   : > { %v4895_v47 = vpack.c.bf16 %v4881_v63, %v4880_v50  ;;  %5266 = vst [vmem:[#allocation2 + $0x108] sm:$0x1] %v11058_v0  ;;  %v4884_v48 = vld [vmem:[#allocation2 + $0x10a] ss:$2 sm:$0xff]  ;;  %v4894_v62 = vpack.c.bf16 %v4877_v7, %v4876_v60  ;;  %10030 = vmatpush3.bf16.msra.mxu0 %v10770_v3 }
 0x69e   : > { %v4896_v1 = vpack.c.bf16 %v4885_v46, %v4884_v48  ;;  %5185 = vmatprep.mubr.bf16.mxu1 %v4897_v2  ;;  %10052 = vmatpush3.bf16.msra.mxu1 %v10772_v29  ;;  %v5570_v46 = vrot.slane %v8689_v19, %v11397_v10 }
 0x69f   : > { %5136 = vmatprep.mubr.bf16.mxu0 %v4895_v47  ;;  %10031 = vmatprep.subr.bf16.mxu0 %v10773_v40 }
 0x6a0   : > { %5137 = vmatmul.mubr.bf16.gmra.mrb[204].mxu0 %v4894_v62  ;;  %10053 = vmatprep.subr.bf16.mxu1 %v10775_v61  ;;  %v5578_v62 = vrot.slane %v8689_v19, %v11408_v21  ;;  %v10800_v19 = vld [vmem:[#allocation5 + $0xd8] sm:$0xff]  }
 0x6a1   : > { %5186 = vmatmul.mubr.bf16.gmra.mrb[196].mxu1 %v4896_v1  ;;  %10032 = vmatpush3.bf16.msra.mxu0 %v10774_v8 }
 0x6a2   : > { %10054 = vmatpush3.bf16.msra.mxu1 %v10776_v24  ;;  %10033 = vmatprep.subr.bf16.mxu0 %v10777_v14 }
 0x6a3   : > { %10055 = vmatprep.subr.bf16.mxu1 %v10779_v16 }
 0x6a5   : > { %10034 = vmatpush3.bf16.msra.mxu0 %v10778_v17 }
 0x6a6   : > { %10056 = vmatpush3.bf16.msra.mxu1 %v10780_v18  ;;  %10035 = vmatprep.subr.bf16.mxu0 %v10781_v20 }
 0x6a7   : > { %10057 = vmatprep.subr.bf16.mxu1 %v10783_v25 }
 0x6a9   : > { %10036 = vmatpush3.bf16.msra.mxu0 %v10782_v27 }
 0x6aa   : > { %10058 = vmatpush3.bf16.msra.mxu1 %v10784_v22  ;;  %10037 = vmatprep.subr.bf16.mxu0 %v10785_v36 }
 0x6ab   : > { %10059 = vmatprep.subr.bf16.mxu1 %v10787_v15 }
 0x6ad   : > { %10038 = vmatpush3.bf16.msra.mxu0 %v10786_v26 }
 0x6ae   : > { %10060 = vmatpush3.bf16.msra.mxu1 %v10788_v35  ;;  %10039 = vmatprep.subr.bf16.mxu0 %v10789_v54 }
 0x6af   : > { %10061 = vmatprep.subr.bf16.mxu1 %v10791_v31 }
 0x6b1   : > { %10040 = vmatpush3.bf16.msra.mxu0 %v10790_v34 }
 0x6b2   : > { %10062 = vmatpush3.bf16.msra.mxu1 %v10792_v30  ;;  %10041 = vmatprep.subr.bf16.mxu0 %v10793_v43 }
 0x6b3   : > { %10063 = vmatprep.subr.bf16.mxu1 %v10795_v11 }
 0x6b5   : > { %10042 = vmatpush3.bf16.msra.mxu0 %v10794_v56 }
 0x6b6   : > { %10064 = vmatpush3.bf16.msra.mxu1 %v10796_v5  ;;  %10423 = vmatprep.subr.bf16.mxu0 %v12469_v58 }
 0x76b   : > { %v9987_v59 = vpop.f32.mrb[200].mxu0 }
 0x76c   : > { %v10015_v37 = vpop.f32.mrb[192].mxu1  ;;  %v9988_v28 = vpop.f32.mrb[201].mxu0 }
 0x76d   : > { %v10016_v55 = vpop.f32.mrb[193].mxu1  ;;  %v9989_v57 = vadd.f32 %v9988_v28, %v9987_v59  ;;  %v9990_v42 = vpop.f32.mrb[202].mxu0 }
 0x76e   : > { %v10017_v53 = vadd.f32 %v10016_v55, %v10015_v37  ;;  %v10018_v38 = vpop.f32.mrb[194].mxu1  ;;  %v9991_v41 = vpop.f32.mrb[203].mxu0 }
 0x76f   : > { %v10019_v32 = vpop.f32.mrb[195].mxu1  ;;  %v5131_v39 = vadd.f32 %v9989_v57, %v8558_v49  ;;  %v9992_v44 = vadd.f32 %v9991_v41, %v9990_v42  ;;  %v10798_v42 = vld [vmem:[#allocation5 + $0xc8] sm:$0xff]   ;;  %v10801_v41 = vld [vmem:[#allocation5 + $0xe0] sm:$0xff]  }
 0x770   : > { %v10020_v63 = vadd.f32 %v10019_v32, %v10018_v38  ;;  %v10799_v38 = vld [vmem:[#allocation5 + $0xd0] sm:$0xff]   ;;  %v10802_v32 = vld [vmem:[#allocation5 + $0xe8] sm:$0xff]  }
 0x771   : > { %v5180_v45 = vadd.f32 %v10017_v53, %v5131_v39  ;;  %v5134_v50 = vadd.f32 %v9992_v44, %v8558_v49  ;;  %v10803_v39 = vld [vmem:[#allocation5 + $0xf0] sm:$0xff]   ;;  %v10804_v44 = vld [vmem:[#allocation5 + $0xf8] sm:$0xff]  }
 0x773   : > { %v5194_v12 = vadd.f32 %v5180_v45, %v12364_v13  ;;  %v5183_v60 = vadd.f32 %v10020_v63, %v5134_v50  ;;  %v9993_v47 = vpop.f32.mrb[204].mxu0  ;;  %v10806_v63 = vld [vmem:[%s13082_s6 + $0x3c0] sm:$0xff]   ;;  %v10809_v50 = vld [vmem:[%s13082_s6 + $0x348] sm:$0xff]  }
 0x774   : > { %v10021_v2 = vpop.f32.mrb[196].mxu1  ;;  %v9994_v7 = vpop.f32.mrb[205].mxu0  ;;  %v10807_v45 = vld [vmem:[%s13082_s6 + $0x300] sm:$0xff]  }
 0x775   : > { %v10022_v48 = vpop.f32.mrb[197].mxu1  ;;  %v5571_v1 = vmul.f32 %v5570_v46, %v5194_v12  ;;  %5269 = vst [vmem:[#allocation2 + $0x1] sm:$0xff] %v5194_v12  ;;  %v5195_v23 = vadd.f32 %v5183_v60, %v12366_v52  ;;  %v9995_v6 = vadd.f32 %v9994_v7, %v9993_v47  ;;  %v9996_v4 = vpop.f32.mrb[206].mxu0  ;;  %v10810_v12 = vld [vmem:[%s13082_s6 + $0x3c8] sm:$0xff]   ;;  %v10814_v7 = vld [vmem:[%s13082_s6 + $0x3d0] sm:$0xff]  }
 0x776   : > { %v10023_v3 = vadd.f32 %v10022_v48, %v10021_v2  ;;  %v10024_v29 = vpop.f32.mrb[198].mxu1  ;;  %v9997_v40 = vpop.f32.mrb[207].mxu0  ;;  %v10811_v60 = vld [vmem:[%s13082_s6 + $0x308] sm:$0xff]   ;;  %v10813_v2 = vld [vmem:[%s13082_s6 + $0x350] sm:$0xff]  }
 0x777   : > { %v10025_v8 = vpop.f32.mrb[199].mxu1  ;;  %v5572_v61 = vmul.f32 %v5570_v46, %v5195_v23  ;;  %5270 = vst [vmem:[#allocation2 + $0x9] sm:$0xff] %v5195_v23  ;;  %v5139_v13 = vadd.f32 %v9995_v6, %v8558_v49  ;;  %v9998_v24 = vadd.f32 %v9997_v40, %v9996_v4  ;;  %v5579_v17 = vadd.f32 %v5578_v62, %v5571_v1  ;;  %v10812_v47 = vld [vmem:[%s13082_s6 + $0x388] sm:$0xff]   ;;  %v10815_v48 = vld [vmem:[%s13082_s6 + $0x310] sm:$0xff]   ;;  %v10817_v1 = vld [vmem:[%s13082_s6 + $0x358] sm:$0xff]  }
 0x778   : > { %v10026_v14 = vadd.f32 %v10025_v8, %v10024_v29  ;;  %v10818_v23 = vld [vmem:[%s13082_s6 + $0x3d8] sm:$0xff]   ;;  %v10821_v4 = vld [vmem:[%s13082_s6 + $0x360] sm:$0xff]  }
 0x779   : > { %v5188_v16 = vadd.f32 %v10023_v3, %v5139_v13  ;;  %v5142_v18 = vadd.f32 %v9998_v24, %v8558_v49  ;;  %v5580_v20 = vadd.f32 %v5578_v62, %v5572_v61  ;;  %v5583_v22 = vmax.f32 %v5579_v17, 0.0  ;;  %v10819_v6 = vld [vmem:[%s13082_s6 + $0x318] sm:$0xff]   ;;  %v10822_v29 = vld [vmem:[%s13082_s6 + $0x3e0] sm:$0xff]   ;;  %v10825_v61 = vld [vmem:[%s13082_s6 + $0x368] sm:$0xff]  }
 0x77a   : > { %v10820_v3 = vld [vmem:[%s13082_s6 + $0x398] sm:$0xff]   ;;  %v10823_v40 = vld [vmem:[%s13082_s6 + $0x320] sm:$0xff]   ;;  %v10826_v13 = vld [vmem:[%s13082_s6 + $0x3e8] sm:$0xff]  }
 0x77b   : > { %v5196_v27 = vadd.f32 %v5188_v16, %v12368_v33  ;;  %v5191_v25 = vadd.f32 %v10026_v14, %v5142_v18  ;;  %v5584_v52 = vmax.f32 %v5580_v20, 0.0  ;;  %v10824_v8 = vld [vmem:[%s13082_s6 + $0x3a0] sm:$0xff]   ;;  %v10827_v24 = vld [vmem:[%s13082_s6 + $0x328] sm:$0xff]   ;;  %v10829_v17 = vld [vmem:[%s13082_s6 + $0x370] sm:$0xff]  }
 0x77c   : > { %v10828_v14 = vld [vmem:[%s13082_s6 + $0x3a8] sm:$0xff]   ;;  %v10830_v16 = vld [vmem:[%s13082_s6 + $0x3f0] sm:$0xff]  }
 0x77d   : > { %v5573_v36 = vmul.f32 %v5570_v46, %v5196_v27  ;;  %5271 = vst [vmem:[#allocation2 + $0x109] sm:$0xff] %v5196_v27  ;;  %v5197_v26 = vadd.f32 %v5191_v25, %v12373_v51  ;;  %v5587_v15 = vpack.c.bf16 %v5584_v52, %v5583_v22  ;;  %v10831_v18 = vld [vmem:[%s13082_s6 + $0x330] sm:$0xff]   ;;  %v10833_v27 = vld [vmem:[%s13082_s6 + $0x378] sm:$0xff]  }
 0x77e   : > { %v5279_v35 = vld [vmem:[#allocation2 + $0x3] ss:$2 sm:$0xff]  ;;  %v5273_v54 = vld [vmem:[#allocation2] ss:$2 sm:$0xff]  ;;  %v10834_v25 = vld [vmem:[%s13082_s6 + $0x3f8] sm:$0xff]  }
 0x77f   : > { %v5581_v34 = vadd.f32 %v5578_v62, %v5573_v36  ;;  %v5574_v31 = vmul.f32 %v5570_v46, %v5197_v26  ;;  %5272 = vst [vmem:[#allocation2 + $0x111] sm:$0xff] %v5197_v26  ;;  %5784 = vst [vmem:[#allocation2 + $0x11] sm:$0x1] %v11058_v0  ;;  %v5275_v11 = vld [vmem:[#allocation2 + $0x1] ss:$2 sm:$0xff]  ;;  %v10832_v20 = vld [vmem:[%s13082_s6 + $0x3b0] sm:$0xff]  }
 0x780   : > { %5782 = vst [vmem:[#allocation2] sm:$0x1] %v11058_v0  ;;  %v5277_v55 = vld [vmem:[#allocation2 + $0x2] ss:$2 sm:$0xff]  ;;  %v10835_v22 = vld [vmem:[%s13082_s6 + $0x338] sm:$0xff]  }
 0x781   : > { %v5582_v30 = vadd.f32 %v5578_v62, %v5574_v31  ;;  %v5585_v43 = vmax.f32 %v5581_v34, 0.0  ;;  %v10808_v46 = vld [vmem:[%s13082_s6 + $0x380] sm:$0xff]   ;;  %v10816_v62 = vld [vmem:[%s13082_s6 + $0x390] sm:$0xff]   ;;  %v10836_v52 = vld [vmem:[%s13082_s6 + $0x3b8] sm:$0xff]  }
 0x782   : > { %v10837_v36 = vld [vmem:[%s13084_s8 + $0x440] sm:$0xff]  }
 0x783   : > { %v5586_v33 = vmax.f32 %v5582_v30, 0.0  ;;  %v10839_v26 = vld [vmem:[%s13084_s8 + $0x4c0] sm:$0xff]  }
 0x785   : > { %v5588_v56 = vpack.c.bf16 %v5586_v33, %v5585_v43 }
 0x786   : > { %v5276_v5 = vld [vmem:[#allocation2 + $0x109] ss:$2 sm:$0xff]  ;;  %v5274_v37 = vld [vmem:[#allocation2 + $0x108] ss:$2 sm:$0xff] }
 0x787   : > { %v5280_v59 = vld [vmem:[#allocation2 + $0x10b] ss:$2 sm:$0xff]  ;;  %v5282_v49 = vpack.c.bf16 %v5276_v5, %v5275_v11  ;;  %v5281_v28 = vpack.c.bf16 %v5274_v37, %v5273_v54  ;;  %5783 = vst [vmem:[#allocation2 + $0x108] sm:$0x1] %v11058_v0  ;;  %v5278_v57 = vld [vmem:[#allocation2 + $0x10a] ss:$2 sm:$0xff] }
 0x788   : > { %v5284_v51 = vpack.c.bf16 %v5280_v59, %v5279_v35  ;;  %5785 = vst [vmem:[#allocation2 + $0x119] sm:$0x1] %v11058_v0  ;;  %v5283_v53 = vpack.c.bf16 %v5278_v57, %v5277_v55  ;;  %v8656_v54 = vld [vmem:[%s13085_s9 + $0x3] ss:$0 sm:$0xff] }
 0x789   : > { %5515 = vmatprep.mubr.bf16.mxu0 %v5282_v49  ;;  %v8691_v57 = vld [vmem:[%s13081_s5 + $0x3] ss:$0 sm:$0xff] }
 0x78a   : > { %5556 = vmatprep.mubr.bf16.mxu1 %v5284_v51  ;;  %5516 = vmatmul.mubr.bf16.vlgmr.msra.gmra.mrb[208].mxu0 %v5281_v28 }
 0x78b   : > { %5557 = vmatmul.mubr.bf16.vlgmr.msra.gmra.mrb[200].mxu1 %v5283_v53  ;;  %10424 = vmatpush3.bf16.msra.mxu0 %v12469_v58  ;;  %v10805_v58 = vld [vmem:[%s13082_s6 + $0x340] sm:$0xff]  }
 0x78c   : > { %10439 = vmatprep.mubr.bf16.mxu0 %v5587_v15  ;;  %10425 = vmatprep.subr.bf16.mxu0 %v10798_v42 }
 0x78d   : > { %10081 = vmatprep.subr.bf16.mxu1 %v10805_v58 }
 0x78e   : > { %10082 = vmatpush3.bf16.msra.mxu1 %v10807_v45 }
 0x78f   : > { %10426 = vmatpush3.bf16.msra.mxu0 %v10798_v42  ;;  %10083 = vmatprep.subr.bf16.mxu1 %v10809_v50 }
 0x790   : > { %10427 = vmatprep.subr.bf16.mxu0 %v10799_v38 }
 0x792   : > { %10084 = vmatpush3.bf16.msra.mxu1 %v10811_v60 }
 0x793   : > { %10428 = vmatpush3.bf16.msra.mxu0 %v10799_v38  ;;  %10085 = vmatprep.subr.bf16.mxu1 %v10813_v2 }
 0x794   : > { %10429 = vmatprep.subr.bf16.mxu0 %v10800_v19 }
 0x796   : > { %10086 = vmatpush3.bf16.msra.mxu1 %v10815_v48 }
 0x797   : > { %10430 = vmatpush3.bf16.msra.mxu0 %v10800_v19  ;;  %10087 = vmatprep.subr.bf16.mxu1 %v10817_v1 }
 0x798   : > { %10431 = vmatprep.subr.bf16.mxu0 %v10801_v41 }
 0x79a   : > { %10088 = vmatpush3.bf16.msra.mxu1 %v10819_v6 }
 0x79b   : > { %10432 = vmatpush3.bf16.msra.mxu0 %v10801_v41  ;;  %10089 = vmatprep.subr.bf16.mxu1 %v10821_v4  ;;  %v10840_v4 = vld [vmem:[%s13084_s8 + $0x480] sm:$0xff]  }
 0x79c   : > { %10433 = vmatprep.subr.bf16.mxu0 %v10802_v32 }
 0x79e   : > { %10090 = vmatpush3.bf16.msra.mxu1 %v10823_v40  ;;  %v10841_v40 = vld [vmem:[%s13084_s8 + $0x448] sm:$0xff]  }
 0x79f   : > { %10434 = vmatpush3.bf16.msra.mxu0 %v10802_v32  ;;  %10091 = vmatprep.subr.bf16.mxu1 %v10825_v61  ;;  %v10842_v61 = vld [vmem:[%s13084_s8 + $0x408] sm:$0xff]  }
 0x7a0   : > { %10435 = vmatprep.subr.bf16.mxu0 %v10803_v39 }
 0x7a2   : > { %10092 = vmatpush3.bf16.msra.mxu1 %v10827_v24  ;;  %v10845_v24 = vld [vmem:[%s13084_s8 + $0x450] sm:$0xff]  }
 0x7a3   : > { %10436 = vmatpush3.bf16.msra.mxu0 %v10803_v39  ;;  %10093 = vmatprep.subr.bf16.mxu1 %v10829_v17  ;;  %v10847_v17 = vld [vmem:[%s13084_s8 + $0x4d0] sm:$0xff]  }
 0x7a4   : > { %10437 = vmatprep.subr.bf16.mxu0 %v10804_v44 }
 0x7a6   : > { %10094 = vmatpush3.bf16.msra.mxu1 %v10831_v18  ;;  %v10849_v18 = vld [vmem:[%s13084_s8 + $0x458] sm:$0xff]  }
 0x7a7   : > { %10438 = vmatpush3.bf16.msra.mxu0 %v10804_v44  ;;  %10095 = vmatprep.subr.bf16.mxu1 %v10833_v27  ;;  %v10851_v27 = vld [vmem:[%s13084_s8 + $0x4d8] sm:$0xff]  }
 0x7a8   : > { %10103 = vmatprep.subr.bf16.mxu0 %v10806_v63 }
 0x7aa   : > { %10440 = vmatmul.mubr.bf16.vlgmr.msra.gmra.mrb[212].mxu0 %v5588_v56  ;;  %10096 = vmatpush3.bf16.msra.mxu1 %v10835_v22  ;;  %v10853_v22 = vld [vmem:[%s13084_s8 + $0x460] sm:$0xff]  }
 0x7ab   : > { %10104 = vmatpush3.bf16.msra.mxu0 %v10808_v46  ;;  %10125 = vmatprep.subr.bf16.mxu1 %v10837_v36  ;;  %v10855_v36 = vld [vmem:[%s13084_s8 + $0x4e0] sm:$0xff]  }
 0x7ac   : > { %10105 = vmatprep.subr.bf16.mxu0 %v10810_v12 }
 0x7af   : > { %10106 = vmatpush3.bf16.msra.mxu0 %v10812_v47  ;;  %v10838_v47 = vld [vmem:[%s13084_s8 + $0x400] sm:$0xff]  }
 0x7b0   : > { %10107 = vmatprep.subr.bf16.mxu0 %v10814_v7 }
 0x7b3   : > { %10108 = vmatpush3.bf16.msra.mxu0 %v10816_v62 }
 0x7b4   : > { %10109 = vmatprep.subr.bf16.mxu0 %v10818_v23 }
 0x7b7   : > { %10110 = vmatpush3.bf16.msra.mxu0 %v10820_v3 }
 0x7b8   : > { %10111 = vmatprep.subr.bf16.mxu0 %v10822_v29 }
 0x7bb   : > { %10112 = vmatpush3.bf16.msra.mxu0 %v10824_v8  ;;  %v10843_v8 = vld [vmem:[%s13084_s8 + $0x4c8] sm:$0xff]  }
 0x7bc   : > { %10113 = vmatprep.subr.bf16.mxu0 %v10826_v13  ;;  %v10844_v13 = vld [vmem:[%s13084_s8 + $0x488] sm:$0xff]  }
 0x7bf   : > { %10114 = vmatpush3.bf16.msra.mxu0 %v10828_v14  ;;  %v10846_v14 = vld [vmem:[%s13084_s8 + $0x410] sm:$0xff]  }
 0x7c0   : > { %10115 = vmatprep.subr.bf16.mxu0 %v10830_v16  ;;  %v10848_v16 = vld [vmem:[%s13084_s8 + $0x490] sm:$0xff]  }
 0x7c3   : > { %10116 = vmatpush3.bf16.msra.mxu0 %v10832_v20  ;;  %v10850_v20 = vld [vmem:[%s13084_s8 + $0x418] sm:$0xff]  }
 0x7c4   : > { %10117 = vmatprep.subr.bf16.mxu0 %v10834_v25  ;;  %v10852_v25 = vld [vmem:[%s13084_s8 + $0x498] sm:$0xff]  }
 0x7c7   : > { %10118 = vmatpush3.bf16.msra.mxu0 %v10836_v52  ;;  %v10854_v52 = vld [vmem:[%s13084_s8 + $0x420] sm:$0xff]  }
 0x7c8   : > { %10147 = vmatprep.subr.bf16.mxu0 %v10839_v26  ;;  %v10856_v26 = vld [vmem:[%s13084_s8 + $0x4a0] sm:$0xff]  }
 0x85d   : > { %v10043_v15 = vpop.f32.mrb[208].mxu0 }
 0x85e   : > { %v10065_v35 = vpop.f32.mrb[200].mxu1  ;;  %v10044_v34 = vpop.f32.mrb[209].mxu0 }
 0x85f   : > { %v10066_v31 = vpop.f32.mrb[201].mxu1  ;;  %v10045_v30 = vadd.f32 %v10044_v34, %v10043_v15  ;;  %v10046_v33 = vpop.f32.mrb[210].mxu0  ;;  %v10857_v15 = vld [vmem:[%s13084_s8 + $0x468] sm:$0xff]  }
 0x860   : > { %v10067_v43 = vadd.f32 %v10066_v31, %v10065_v35  ;;  %v10068_v11 = vpop.f32.mrb[202].mxu1  ;;  %v10047_v56 = vpop.f32.mrb[211].mxu0  ;;  %v10858_v35 = vld [vmem:[%s13084_s8 + $0x428] sm:$0xff]   ;;  %v10861_v31 = vld [vmem:[%s13084_s8 + $0x470] sm:$0xff]  }
 0x861   : > { %v10069_v5 = vpop.f32.mrb[203].mxu1  ;;  %v5518_v59 = vadd.f32 %v10045_v30, %v8656_v54  ;;  %v10048_v37 = vadd.f32 %v10047_v56, %v10046_v33  ;;  %v10860_v34 = vld [vmem:[%s13084_s8 + $0x4a8] sm:$0xff]   ;;  %v10862_v30 = vld [vmem:[%s13084_s8 + $0x430] sm:$0xff]   ;;  %v10867_v56 = vld [vmem:[%s13084_s8 + $0x4f8] sm:$0xff]  }
 0x862   : > { %v10070_v49 = vadd.f32 %v10069_v5, %v10068_v11  ;;  %v10864_v33 = vld [vmem:[%s13084_s8 + $0x4b0] sm:$0xff]   ;;  %v10865_v11 = vld [vmem:[%s13084_s8 + $0x478] sm:$0xff]  }
 0x863   : > { %v12594_v51 = vadd.f32 %v10067_v43, %v5518_v59  ;;  %v5521_v28 = vadd.f32 %v10048_v37, %v8656_v54  ;;  %v10859_v54 = vld [vmem:[%s13084_s8 + $0x4e8] sm:$0xff]   ;;  %v10863_v43 = vld [vmem:[%s13084_s8 + $0x4f0] sm:$0xff]   ;;  %v10866_v5 = vld [vmem:[%s13084_s8 + $0x438] sm:$0xff]  }
 0x864   : > { %v10868_v59 = vld [vmem:[%s13084_s8 + $0x4b8] sm:$0xff]  }
 0x865   : > { %v12596_v55 = vadd.f32 %v10070_v49, %v5521_v28  ;;  %v8765_v28 = vld [vmem:[%s13083_s7 + $0x3] ss:$0 sm:$0xff] }
 0x87d   : > { %v10441_v53 = vpop.f32.mrb[212].mxu0 }
 0x87e   : > { %v5705_v42 = vadd.f32 %v10441_v53, %v8691_v57  ;;  %v5696_v38 = vpop.f32.mrb[213].mxu0 }
 0x87f   : > { %v5697_v19 = vadd.f32 %v8691_v57, %v5696_v38  ;;  %v10442_v41 = vpop.f32.mrb[214].mxu0 }
 0x880   : > { %v5713_v32 = vmax.f32 %v5705_v42, 0.0  ;;  %v5708_v39 = vadd.f32 %v10442_v41, %v8691_v57  ;;  %v5699_v44 = vpop.f32.mrb[215].mxu0 }
 0x881   : > { %v5711_v58 = vmax.f32 %v5697_v19, 0.0  ;;  %v5700_v63 = vadd.f32 %v8691_v57, %v5699_v44 }
 0x882   : > { %5788 = vst [vmem:[#allocation2 + $0x109] sm:$0xff] %v5713_v32  ;;  %v5714_v45 = vmax.f32 %v5708_v39, 0.0  ;;  %v8900_v32 = vld [vmem:[%s13079_s3 + $0x8] sm:$0x3] }
 0x883   : > { %5786 = vst [vmem:[#allocation2 + $0x1] sm:$0xff] %v5711_v58  ;;  %v5712_v46 = vmax.f32 %v5700_v63, 0.0 }
 0x884   : > { %5789 = vst [vmem:[#allocation2 + $0x111] sm:$0xff] %v5714_v45 }
 0x885   : > { %5787 = vst [vmem:[#allocation2 + $0x9] sm:$0xff] %v5712_v46 }
 0x88b   : > { %v5793_v50 = vld [vmem:[#allocation2 + $0x109] ss:$2 sm:$0xff]  ;;  %v5791_v60 = vld [vmem:[#allocation2 + $0x108] ss:$2 sm:$0xff] }
 0x88c   : > { %v5797_v12 = vld [vmem:[#allocation2 + $0x10b] ss:$2 sm:$0xff]  ;;  %v5790_v48 = vld [vmem:[#allocation2] ss:$2 sm:$0xff]  ;;  %6152 = vst [vmem:[#allocation2 + $0x108] sm:$0x1] %v11058_v0 }
 0x88d   : > { %v5792_v2 = vld [vmem:[#allocation2 + $0x1] ss:$2 sm:$0xff]  ;;  %6154 = vst [vmem:[#allocation2 + $0x111] sm:$0x1] %v11058_v0  ;;  %v5798_v23 = vpack.c.bf16 %v5791_v60, %v5790_v48  ;;  %6151 = vst [vmem:[#allocation2] sm:$0x1] %v11058_v0 }
 0x88e   : > { %v5796_v7 = vld [vmem:[#allocation2 + $0x3] ss:$2 sm:$0xff]  ;;  %v5799_v62 = vpack.c.bf16 %v5793_v50, %v5792_v2  ;;  %v5794_v6 = vld [vmem:[#allocation2 + $0x2] ss:$2 sm:$0xff]  ;;  %v6475_v50 = vrot.slane %v8900_v32, %v11397_v10 }
 0x88f   : > { %v5801_v1 = vpack.c.bf16 %v5797_v12, %v5796_v7  ;;  %6153 = vst [vmem:[#allocation2 + $0x9] sm:$0x1] %v11058_v0  ;;  %v5795_v3 = vld [vmem:[#allocation2 + $0x10a] ss:$2 sm:$0xff] }
 0x890   : > { %v5800_v29 = vpack.c.bf16 %v5795_v3, %v5794_v6  ;;  %6032 = vmatprep.mubr.bf16.mxu1 %v5799_v62 }
 0x891   : > { %6073 = vmatprep.mubr.bf16.mxu0 %v5801_v1  ;;  %6033 = vmatmul.mubr.bf16.vlgmr.msra.gmra.mrb[204].mxu1 %v5798_v23 }
 0x892   : > { %6074 = vmatmul.mubr.bf16.vlgmr.msra.gmra.mrb[216].mxu0 %v5800_v29  ;;  %10126 = vmatpush3.bf16.msra.mxu1 %v10838_v47  ;;  %v6481_v47 = vrot.slane %v8900_v32, %v11408_v21  ;;  %v10893_v32 = vld [vmem:[%s13082_s6 + $0x460] sm:$0xff]  }
 0x893   : > { %10148 = vmatpush3.bf16.msra.mxu0 %v10840_v4  ;;  %10127 = vmatprep.subr.bf16.mxu1 %v10841_v40 }
 0x894   : > { %10149 = vmatprep.subr.bf16.mxu0 %v10843_v8 }
 0x896   : > { %10128 = vmatpush3.bf16.msra.mxu1 %v10842_v61 }
 0x897   : > { %10150 = vmatpush3.bf16.msra.mxu0 %v10844_v13  ;;  %10129 = vmatprep.subr.bf16.mxu1 %v10845_v24 }
 0x898   : > { %10151 = vmatprep.subr.bf16.mxu0 %v10847_v17 }
 0x89a   : > { %10130 = vmatpush3.bf16.msra.mxu1 %v10846_v14 }
 0x89b   : > { %10152 = vmatpush3.bf16.msra.mxu0 %v10848_v16  ;;  %10131 = vmatprep.subr.bf16.mxu1 %v10849_v18 }
 0x89c   : > { %10153 = vmatprep.subr.bf16.mxu0 %v10851_v27 }
 0x89e   : > { %10132 = vmatpush3.bf16.msra.mxu1 %v10850_v20 }
 0x89f   : > { %10154 = vmatpush3.bf16.msra.mxu0 %v10852_v25  ;;  %10133 = vmatprep.subr.bf16.mxu1 %v10853_v22  ;;  %v10869_v25 = vld [vmem:[#allocation5 + $0x100] sm:$0xff]  }
 0x8a0   : > { %10155 = vmatprep.subr.bf16.mxu0 %v10855_v36  ;;  %v10870_v36 = vld [vmem:[#allocation5 + $0x108] sm:$0xff]  }
 0x8a2   : > { %10134 = vmatpush3.bf16.msra.mxu1 %v10854_v52 }
 0x8a3   : > { %10156 = vmatpush3.bf16.msra.mxu0 %v10856_v26  ;;  %10135 = vmatprep.subr.bf16.mxu1 %v10857_v15  ;;  %v10871_v26 = vld [vmem:[#allocation5 + $0x110] sm:$0xff]   ;;  %v10872_v15 = vld [vmem:[#allocation5 + $0x118] sm:$0xff]  }
 0x8a4   : > { %10157 = vmatprep.subr.bf16.mxu0 %v10859_v54  ;;  %v10874_v54 = vld [vmem:[#allocation5 + $0x128] sm:$0xff]  }
 0x8a6   : > { %10136 = vmatpush3.bf16.msra.mxu1 %v10858_v35  ;;  %v10873_v35 = vld [vmem:[#allocation5 + $0x120] sm:$0xff]  }
 0x8a7   : > { %10158 = vmatpush3.bf16.msra.mxu0 %v10860_v34  ;;  %10137 = vmatprep.subr.bf16.mxu1 %v10861_v31  ;;  %v10875_v34 = vld [vmem:[#allocation5 + $0x130] sm:$0xff]   ;;  %v10876_v31 = vld [vmem:[#allocation5 + $0x138] sm:$0xff]  }
 0x8a8   : > { %10159 = vmatprep.subr.bf16.mxu0 %v10863_v43  ;;  %v10878_v43 = vld [vmem:[%s13082_s6 + $0x4c0] sm:$0xff]  }
 0x8aa   : > { %10138 = vmatpush3.bf16.msra.mxu1 %v10862_v30  ;;  %v10877_v30 = vld [vmem:[%s13082_s6 + $0x440] sm:$0xff]  }
 0x8ab   : > { %10160 = vmatpush3.bf16.msra.mxu0 %v10864_v33  ;;  %10139 = vmatprep.subr.bf16.mxu1 %v10865_v11  ;;  %v10879_v33 = vld [vmem:[%s13082_s6 + $0x400] sm:$0xff]  }
 0x8ac   : > { %10161 = vmatprep.subr.bf16.mxu0 %v10867_v56  ;;  %v10880_v11 = vld [vmem:[%s13082_s6 + $0x480] sm:$0xff]   ;;  %v10881_v56 = vld [vmem:[%s13082_s6 + $0x448] sm:$0xff]  }
 0x8ae   : > { %10140 = vmatpush3.bf16.msra.mxu1 %v10866_v5  ;;  %v10882_v5 = vld [vmem:[%s13082_s6 + $0x4c8] sm:$0xff]  }
 0x8af   : > { %10162 = vmatpush3.bf16.msra.mxu0 %v10868_v59  ;;  %10443 = vmatprep.subr.bf16.mxu1 %v11058_v0  ;;  %v10883_v59 = vld [vmem:[%s13082_s6 + $0x408] sm:$0xff]  }
 0x8b0   : > { %10178 = vmatprep.subr.bf16.mxu0 %v10877_v30 }
 0x964   : > { %v10097_v37 = vpop.f32.mrb[204].mxu1 }
 0x965   : > { %v10119_v49 = vpop.f32.mrb[216].mxu0  ;;  %v10098_v57 = vpop.f32.mrb[205].mxu1 }
 0x966   : > { %v10120_v53 = vpop.f32.mrb[217].mxu0  ;;  %v10099_v42 = vadd.f32 %v10098_v57, %v10097_v37  ;;  %v10100_v19 = vpop.f32.mrb[206].mxu1  ;;  %v10884_v37 = vld [vmem:[%s13082_s6 + $0x488] sm:$0xff]   ;;  %v10887_v57 = vld [vmem:[%s13082_s6 + $0x410] sm:$0xff]  }
 0x967   : > { %v10121_v38 = vadd.f32 %v10120_v53, %v10119_v49  ;;  %v10122_v41 = vpop.f32.mrb[218].mxu0  ;;  %v10101_v39 = vpop.f32.mrb[207].mxu1  ;;  %v10885_v49 = vld [vmem:[%s13082_s6 + $0x450] sm:$0xff]  }
 0x968   : > { %v10123_v44 = vpop.f32.mrb[219].mxu0  ;;  %v6035_v58 = vadd.f32 %v10099_v42, %v8765_v28  ;;  %v10102_v63 = vadd.f32 %v10101_v39, %v10100_v19  ;;  %v10888_v53 = vld [vmem:[%s13082_s6 + $0x490] sm:$0xff]   ;;  %v10889_v42 = vld [vmem:[%s13082_s6 + $0x458] sm:$0xff]   ;;  %v10894_v39 = vld [vmem:[%s13082_s6 + $0x4e0] sm:$0xff]  }
 0x969   : > { %v10124_v45 = vadd.f32 %v10123_v44, %v10122_v41  ;;  %v10891_v19 = vld [vmem:[%s13082_s6 + $0x418] sm:$0xff]   ;;  %v10895_v44 = vld [vmem:[%s13082_s6 + $0x420] sm:$0xff]  }
 0x96a   : > { %v6076_v46 = vadd.f32 %v10121_v38, %v6035_v58  ;;  %v6038_v12 = vadd.f32 %v10102_v63, %v8765_v28  ;;  %v10886_v28 = vld [vmem:[%s13082_s6 + $0x4d0] sm:$0xff]   ;;  %v10890_v38 = vld [vmem:[%s13082_s6 + $0x4d8] sm:$0xff]   ;;  %v10896_v58 = vld [vmem:[%s13082_s6 + $0x4a0] sm:$0xff]  }
 0x96b   : > { %v10892_v41 = vld [vmem:[%s13082_s6 + $0x498] sm:$0xff]   ;;  %v10897_v63 = vld [vmem:[%s13082_s6 + $0x468] sm:$0xff]  }
 0x96c   : > { %v6082_v60 = vadd.f32 %v6076_v46, %v12594_v51  ;;  %v6079_v2 = vadd.f32 %v10124_v45, %v6038_v12  ;;  %v10898_v45 = vld [vmem:[%s13082_s6 + $0x4e8] sm:$0xff]   ;;  %v10901_v12 = vld [vmem:[%s13082_s6 + $0x470] sm:$0xff]  }
 0x96d   : > { %v10899_v46 = vld [vmem:[%s13082_s6 + $0x428] sm:$0xff]  }
 0x96e   : > { %v6476_v7 = vmul.f32 %v6475_v50, %v6082_v60  ;;  %6155 = vst [vmem:[#allocation2 + $0x1] sm:$0xff] %v6082_v60  ;;  %v6083_v48 = vadd.f32 %v6079_v2, %v12596_v55  ;;  %v10902_v60 = vld [vmem:[%s13082_s6 + $0x4f0] sm:$0xff]  }
 0x96f   : > { %v10904_v2 = vld [vmem:[%s13082_s6 + $0x4b0] sm:$0xff]  }
 0x970   : > { %v6482_v62 = vadd.f32 %v6481_v47, %v6476_v7  ;;  %v6477_v1 = vmul.f32 %v6475_v50, %v6083_v48  ;;  %6156 = vst [vmem:[#allocation2 + $0x109] sm:$0xff] %v6083_v48  ;;  %v10900_v50 = vld [vmem:[%s13082_s6 + $0x4a8] sm:$0xff]   ;;  %v10905_v7 = vld [vmem:[%s13082_s6 + $0x478] sm:$0xff]  }
 0x971   : > { %v10906_v48 = vld [vmem:[%s13082_s6 + $0x4f8] sm:$0xff]  }
 0x972   : > { %v6483_v23 = vadd.f32 %v6481_v47, %v6477_v1  ;;  %v6484_v6 = vmax.f32 %v6482_v62, 0.0  ;;  %v10903_v47 = vld [vmem:[%s13082_s6 + $0x430] sm:$0xff]   ;;  %v10907_v62 = vld [vmem:[%s13082_s6 + $0x438] sm:$0xff]  }
 0x973   : > { %v10908_v1 = vld [vmem:[%s13082_s6 + $0x4b8] sm:$0xff]  }
 0x974   : > { %v6485_v3 = vmax.f32 %v6483_v23, 0.0  ;;  %v10909_v23 = vld [vmem:[%s13084_s8 + $0x540] sm:$0xff]  }
 0x975   : > { %v6159_v4 = vld [vmem:[#allocation2 + $0x1] ss:$2 sm:$0xf]  ;;  %v6157_v40 = vld [vmem:[#allocation2] ss:$2 sm:$0xf] }
 0x976   : > { %v6163_v29 = vld [vmem:[#allocation2 + $0x3] ss:$2 sm:$0xf]  ;;  %v6161_v8 = vld [vmem:[#allocation2 + $0x2] ss:$2 sm:$0xf]  ;;  %v6486_v51 = vpack.c.bf16 %v6485_v3, %v6484_v6 }
 0x977   : > { %6672 = vst [vmem:[#allocation2 + $0x9] sm:$0x1] %v11058_v0  ;;  %v6160_v61 = vld [vmem:[#allocation2 + $0x109] ss:$2 sm:$0xf]  ;;  %v10911_v6 = vld [vmem:[%s13084_s8 + $0x5c0] sm:$0xff]  }
 0x978   : > { %v6164_v13 = vld [vmem:[#allocation2 + $0x10b] ss:$2 sm:$0xf]  ;;  %6670 = vst [vmem:[#allocation2] sm:$0x1] %v11058_v0  ;;  %v8864_v24 = vcombine.low %v6159_v4, %v6160_v61 }
 0x979   : > { %v8866_v14 = vcombine.low %v6163_v29, %v6164_v13  ;;  %6673 = vst [vmem:[#allocation2 + $0x111] sm:$0x1] %v11058_v0  ;;  %v6158_v55 = vld [vmem:[#allocation2 + $0x108] ss:$2 sm:$0xf] }
 0x97a   : > { %v6162_v17 = vld [vmem:[#allocation2 + $0x10a] ss:$2 sm:$0xf]  ;;  %v8863_v16 = vcombine.low %v6157_v40, %v6158_v55  ;;  %6671 = vst [vmem:[#allocation2 + $0x108] sm:$0x1] %v11058_v0  ;;  %v6186_v20 = vpack.c.bf16 %v8864_v24, %v8864_v24 }
 0x97b   : > { %v8865_v18 = vcombine.low %v6161_v8, %v6162_v17  ;;  %v6188_v27 = vpack.c.bf16 %v8866_v14, %v8866_v14  ;;  %v8867_v29 = vld [vmem:[%s13085_s9 + $0x4] ss:$0 sm:$0xff] }
 0x97c   : > { %v6185_v22 = vpack.c.bf16 %v8863_v16, %v8863_v16  ;;  %6419 = vmatprep.mubr.bf16.mxu1 %v6186_v20 }
 0x97d   : > { %v6187_v52 = vpack.c.bf16 %v8865_v18, %v8865_v18  ;;  %6459 = vmatprep.mubr.bf16.mxu0 %v6188_v27  ;;  %v8902_v18 = vld [vmem:[%s13081_s5 + $0x4] ss:$0 sm:$0xff] }
 0x97e   : > { %6420 = vmatmul.mubr.bf16.vlgmr.msra.gmra.mrb[208].mxu1 %v6185_v22 }
 0x97f   : > { %6460 = vmatmul.mubr.bf16.vlgmr.msra.gmra.mrb[220].mxu0 %v6187_v52  ;;  %10444 = vmatpush3.bf16.msra.mxu1 %v10869_v25 }
 0x980   : > { %10459 = vmatprep.mubr.msk.bf16.mxu1 %vm11059_vm0, %v11058_v0  ;;  %10445 = vmatprep.subr.bf16.mxu1 %v11058_v0 }
 0x981   : > { %10179 = vmatpush3.bf16.msra.mxu0 %v10879_v33 }
 0x982   : > { %10180 = vmatprep.subr.bf16.mxu0 %v10881_v56 }
 0x983   : > { %10446 = vmatpush3.bf16.msra.mxu1 %v10870_v36 }
 0x984   : > { %10447 = vmatprep.subr.bf16.mxu1 %v11058_v0 }
 0x985   : > { %10181 = vmatpush3.bf16.msra.mxu0 %v10883_v59 }
 0x986   : > { %10182 = vmatprep.subr.bf16.mxu0 %v10885_v49 }
 0x987   : > { %10448 = vmatpush3.bf16.msra.mxu1 %v10871_v26 }
 0x988   : > { %10449 = vmatprep.subr.bf16.mxu1 %v11058_v0 }
 0x989   : > { %10183 = vmatpush3.bf16.msra.mxu0 %v10887_v57  ;;  %v10910_v57 = vld [vmem:[%s13084_s8 + $0x500] sm:$0xff]  }
 0x98a   : > { %10184 = vmatprep.subr.bf16.mxu0 %v10889_v42 }
 0x98b   : > { %10450 = vmatpush3.bf16.msra.mxu1 %v10872_v15 }
 0x98c   : > { %10451 = vmatprep.subr.bf16.mxu1 %v11058_v0 }
 0x98d   : > { %10185 = vmatpush3.bf16.msra.mxu0 %v10891_v19  ;;  %v10913_v19 = vld [vmem:[%s13084_s8 + $0x548] sm:$0xff]  }
 0x98e   : > { %10186 = vmatprep.subr.bf16.mxu0 %v10893_v32  ;;  %v10915_v32 = vld [vmem:[%s13084_s8 + $0x5c8] sm:$0xff]  }
 0x98f   : > { %10452 = vmatpush3.bf16.msra.mxu1 %v10873_v35 }
 0x990   : > { %10453 = vmatprep.subr.bf16.mxu1 %v11058_v0 }
 0x991   : > { %10187 = vmatpush3.bf16.msra.mxu0 %v10895_v44  ;;  %v10917_v44 = vld [vmem:[%s13084_s8 + $0x550] sm:$0xff]  }
 0x992   : > { %10188 = vmatprep.subr.bf16.mxu0 %v10897_v63  ;;  %v10919_v63 = vld [vmem:[%s13084_s8 + $0x5d0] sm:$0xff]  }
 0x993   : > { %10454 = vmatpush3.bf16.msra.mxu1 %v10874_v54 }
 0x994   : > { %10455 = vmatprep.subr.bf16.mxu1 %v11058_v0 }
 0x995   : > { %10189 = vmatpush3.bf16.msra.mxu0 %v10899_v46  ;;  %v10921_v46 = vld [vmem:[%s13084_s8 + $0x558] sm:$0xff]  }
 0x996   : > { %10190 = vmatprep.subr.bf16.mxu0 %v10901_v12  ;;  %v10923_v12 = vld [vmem:[%s13084_s8 + $0x5d8] sm:$0xff]  }
 0x997   : > { %10456 = vmatpush3.bf16.msra.mxu1 %v10875_v34 }
 0x998   : > { %10457 = vmatprep.subr.bf16.mxu1 %v11058_v0 }
 0x999   : > { %10191 = vmatpush3.bf16.msra.mxu0 %v10903_v47  ;;  %v10925_v47 = vld [vmem:[%s13084_s8 + $0x560] sm:$0xff]  }
 0x99a   : > { %10192 = vmatprep.subr.bf16.mxu0 %v10905_v7  ;;  %v10927_v7 = vld [vmem:[%s13084_s8 + $0x5e0] sm:$0xff]  }
 0x99b   : > { %10458 = vmatpush3.bf16.msra.mxu1 %v10876_v31 }
 0x99c   : > { %10200 = vmatprep.subr.bf16.mxu1 %v10878_v43 }
 0x99d   : > { %10193 = vmatpush3.bf16.msra.mxu0 %v10907_v62  ;;  %v10929_v62 = vld [vmem:[%s13084_s8 + $0x568] sm:$0xff]  }
 0x99e   : > { %10460 = vmatmul.mubr.bf16.vlgmr.msra.gmra.mrb[212].mxu1 %v6486_v51  ;;  %10222 = vmatprep.subr.bf16.mxu0 %v10909_v23  ;;  %v10931_v23 = vld [vmem:[%s13084_s8 + $0x5e8] sm:$0xff]  }
 0x99f   : > { %10201 = vmatpush3.bf16.msra.mxu1 %v10880_v11 }
 0x9a0   : > { %10202 = vmatprep.subr.bf16.mxu1 %v10882_v5 }
 0x9a3   : > { %10203 = vmatpush3.bf16.msra.mxu1 %v10884_v37 }
 0x9a4   : > { %10204 = vmatprep.subr.bf16.mxu1 %v10886_v28 }
 0x9a7   : > { %10205 = vmatpush3.bf16.msra.mxu1 %v10888_v53  ;;  %v10912_v53 = vld [vmem:[%s13084_s8 + $0x580] sm:$0xff]  }
 0x9a8   : > { %10206 = vmatprep.subr.bf16.mxu1 %v10890_v38 }
 0x9ab   : > { %10207 = vmatpush3.bf16.msra.mxu1 %v10892_v41  ;;  %v10914_v41 = vld [vmem:[%s13084_s8 + $0x508] sm:$0xff]  }
 0x9ac   : > { %10208 = vmatprep.subr.bf16.mxu1 %v10894_v39  ;;  %v10916_v39 = vld [vmem:[%s13084_s8 + $0x588] sm:$0xff]  }
 0x9af   : > { %10209 = vmatpush3.bf16.msra.mxu1 %v10896_v58  ;;  %v10918_v58 = vld [vmem:[%s13084_s8 + $0x510] sm:$0xff]  }
 0x9b0   : > { %10210 = vmatprep.subr.bf16.mxu1 %v10898_v45  ;;  %v10920_v45 = vld [vmem:[%s13084_s8 + $0x590] sm:$0xff]  }
 0x9b3   : > { %10211 = vmatpush3.bf16.msra.mxu1 %v10900_v50  ;;  %v10922_v50 = vld [vmem:[%s13084_s8 + $0x518] sm:$0xff]  }
 0x9b4   : > { %10212 = vmatprep.subr.bf16.mxu1 %v10902_v60  ;;  %v10924_v60 = vld [vmem:[%s13084_s8 + $0x598] sm:$0xff]  }
 0x9b7   : > { %10213 = vmatpush3.bf16.msra.mxu1 %v10904_v2  ;;  %v10926_v2 = vld [vmem:[%s13084_s8 + $0x520] sm:$0xff]  }
 0x9b8   : > { %10214 = vmatprep.subr.bf16.mxu1 %v10906_v48  ;;  %v10928_v48 = vld [vmem:[%s13084_s8 + $0x5a0] sm:$0xff]  }
 0x9bb   : > { %10215 = vmatpush3.bf16.msra.mxu1 %v10908_v1  ;;  %v10930_v1 = vld [vmem:[%s13084_s8 + $0x528] sm:$0xff]  }
 0x9bc   : > { %10244 = vmatprep.subr.bf16.mxu1 %v10911_v6  ;;  %v10932_v6 = vld [vmem:[%s13084_s8 + $0x5a8] sm:$0xff]  }
 0xa51   : > { %v10141_v3 = vpop.f32.mrb[208].mxu1 }
 0xa52   : > { %v10163_v4 = vpop.f32.mrb[220].mxu0  ;;  %v10142_v40 = vpop.f32.mrb[209].mxu1 }
 0xa53   : > { %v10164_v8 = vpop.f32.mrb[221].mxu0  ;;  %v10143_v51 = vadd.f32 %v10142_v40, %v10141_v3  ;;  %v10144_v13 = vpop.f32.mrb[210].mxu1  ;;  %v10933_v3 = vld [vmem:[%s13084_s8 + $0x570] sm:$0xff]  }
 0xa54   : > { %v10165_v61 = vadd.f32 %v10164_v8, %v10163_v4  ;;  %v10166_v24 = vpop.f32.mrb[222].mxu0  ;;  %v10145_v14 = vpop.f32.mrb[211].mxu1  ;;  %v10935_v4 = vld [vmem:[%s13084_s8 + $0x5f0] sm:$0xff]   ;;  %v10937_v8 = vld [vmem:[%s13084_s8 + $0x578] sm:$0xff]  }
 0xa55   : > { %v10167_v55 = vpop.f32.mrb[223].mxu0  ;;  %v6422_v17 = vadd.f32 %v10143_v51, %v8867_v29  ;;  %v10934_v29 = vld [vmem:[%s13084_s8 + $0x530] sm:$0xff]   ;;  %v10939_v51 = vld [vmem:[%s13084_s8 + $0x5f8] sm:$0xff]  }
 0xa56   : > { %v10936_v40 = vld [vmem:[%s13084_s8 + $0x5b0] sm:$0xff]   ;;  %v10940_v13 = vld [vmem:[%s13084_s8 + $0x5b8] sm:$0xff]   ;;  %v8980_v55 = vld [vmem:[%s13083_s7 + $0x4] ss:$0 sm:$0xff] }
 0xa57   : > { %v12824_v16 = vadd.f32 %v10165_v61, %v6422_v17  ;;  %v10938_v61 = vld [vmem:[%s13084_s8 + $0x538] sm:$0xff]  }
 0xa71   : > { %v6594_v20 = vpop.f32.mrb[212].mxu1 }
 0xa72   : > { %v6595_v27 = vadd.f32 %v8902_v18, %v6594_v20  ;;  %v10461_v25 = vpop.f32.mrb[213].mxu1 }
 0xa73   : > { %v6597_v22 = vpop.f32.mrb[214].mxu1 }
 0xa74   : > { %v6601_v52 = vmax.f32 %v6595_v27, 0.0  ;;  %v6598_v36 = vadd.f32 %v8902_v18, %v6597_v22  ;;  %v10462_v26 = vpop.f32.mrb[215].mxu1 }
 0xa76   : > { %6674 = vst [vmem:[#allocation2 + $0x1] sm:$0xff] %v6601_v52  ;;  %v6602_v15 = vmax.f32 %v6598_v36, 0.0  ;;  %v9111_v52 = vld [vmem:[%s13079_s3 + $0xa] sm:$0x3] }
 0xa78   : > { %6675 = vst [vmem:[#allocation2 + $0x109] sm:$0xff] %v6602_v15 }
 0xa7d   : > { %v6678_v35 = vld [vmem:[#allocation2 + $0x1] ss:$2 sm:$0xf]  ;;  %v6676_v34 = vld [vmem:[#allocation2] ss:$2 sm:$0xf] }
 0xa7e   : > { %v6682_v54 = vld [vmem:[#allocation2 + $0x3] ss:$2 sm:$0xf]  ;;  %v6680_v31 = vld [vmem:[#allocation2 + $0x2] ss:$2 sm:$0xf] }
 0xa7f   : > { %7060 = vst [vmem:[#allocation2 + $0x5] sm:$0x1] %v11058_v0  ;;  %v6679_v30 = vld [vmem:[#allocation2 + $0x109] ss:$2 sm:$0xf] }
 0xa80   : > { %v6683_v43 = vld [vmem:[#allocation2 + $0x10b] ss:$2 sm:$0xf]  ;;  %7625 = vst [vmem:[#allocation2 + $0x5] sm:$0x1] %v11058_v0  ;;  %v8977_v33 = vcombine.low %v6678_v35, %v6679_v30 }
 0xa81   : > { %7058 = vst [vmem:[#allocation2] sm:$0x1] %v11058_v0  ;;  %v8979_v11 = vcombine.low %v6682_v54, %v6683_v43  ;;  %7061 = vst [vmem:[#allocation2 + $0x10d] sm:$0x1] %v11058_v0  ;;  %v7423_v54 = vrot.slane %v9111_v52, %v11397_v10  ;;  %v7429_v43 = vrot.slane %v9111_v52, %v11408_v21 }
 0xa82   : > { %v6677_v56 = vld [vmem:[#allocation2 + $0x108] ss:$2 sm:$0xf]  ;;  %7623 = vst [vmem:[#allocation2] sm:$0x1] %v11058_v0  ;;  %v6705_v49 = vpack.c.bf16 %v8977_v33, %v8977_v33 }
 0xa83   : > { %v6681_v5 = vld [vmem:[#allocation2 + $0x10a] ss:$2 sm:$0xf]  ;;  %7626 = vst [vmem:[#allocation2 + $0x10d] sm:$0x1] %v11058_v0  ;;  %v8976_v59 = vcombine.low %v6676_v34, %v6677_v56  ;;  %v6707_v28 = vpack.c.bf16 %v8979_v11, %v8979_v11  ;;  %v6468_v34 = vcombine.high %v12824_v16, %v12824_v16 }
 0xa84   : > { %7059 = vst [vmem:[#allocation2 + $0x108] sm:$0x1] %v11058_v0  ;;  %v8978_v37 = vcombine.low %v6680_v31, %v6681_v5  ;;  %6938 = vmatprep.mubr.bf16.mxu0 %v6705_v49 }
 0xa85   : > { %7624 = vst [vmem:[#allocation2 + $0x108] sm:$0x1] %v11058_v0  ;;  %v6704_v42 = vpack.c.bf16 %v8976_v59, %v8976_v59  ;;  %6978 = vmatprep.mubr.bf16.mxu1 %v6707_v28 }
 0xa86   : > { %v6706_v38 = vpack.c.bf16 %v8978_v37, %v8978_v37 }
 0xa87   : > { %6939 = vmatmul.mubr.bf16.vlgmr.msra.gmra.mrb[224].mxu0 %v6704_v42 }
 0xa88   : > { %6979 = vmatmul.mubr.bf16.vlgmr.msra.gmra.mrb[216].mxu1 %v6706_v38  ;;  %10223 = vmatpush3.bf16.msra.mxu0 %v10910_v57 }
 0xa89   : > { %10245 = vmatpush3.bf16.msra.mxu1 %v10912_v53  ;;  %10224 = vmatprep.subr.bf16.mxu0 %v10913_v19 }
 0xa8a   : > { %10246 = vmatprep.subr.bf16.mxu1 %v10915_v32 }
 0xa8c   : > { %10225 = vmatpush3.bf16.msra.mxu0 %v10914_v41 }
 0xa8d   : > { %10247 = vmatpush3.bf16.msra.mxu1 %v10916_v39  ;;  %10226 = vmatprep.subr.bf16.mxu0 %v10917_v44 }
 0xa8e   : > { %10248 = vmatprep.subr.bf16.mxu1 %v10919_v63 }
 0xa90   : > { %10227 = vmatpush3.bf16.msra.mxu0 %v10918_v58 }
 0xa91   : > { %10249 = vmatpush3.bf16.msra.mxu1 %v10920_v45  ;;  %10228 = vmatprep.subr.bf16.mxu0 %v10921_v46 }
 0xa92   : > { %10250 = vmatprep.subr.bf16.mxu1 %v10923_v12 }
 0xa94   : > { %10229 = vmatpush3.bf16.msra.mxu0 %v10922_v50 }
 0xa95   : > { %10251 = vmatpush3.bf16.msra.mxu1 %v10924_v60  ;;  %10230 = vmatprep.subr.bf16.mxu0 %v10925_v47 }
 0xa96   : > { %10252 = vmatprep.subr.bf16.mxu1 %v10927_v7 }
 0xa98   : > { %10231 = vmatpush3.bf16.msra.mxu0 %v10926_v2 }
 0xa99   : > { %10253 = vmatpush3.bf16.msra.mxu1 %v10928_v48  ;;  %10232 = vmatprep.subr.bf16.mxu0 %v10929_v62 }
 0xa9a   : > { %10254 = vmatprep.subr.bf16.mxu1 %v10931_v23 }
 0xa9c   : > { %10233 = vmatpush3.bf16.msra.mxu0 %v10930_v1 }
 0xa9d   : > { %10255 = vmatpush3.bf16.msra.mxu1 %v10932_v6  ;;  %10234 = vmatprep.subr.bf16.mxu0 %v10933_v3 }
 0xa9e   : > { %10256 = vmatprep.subr.bf16.mxu1 %v10935_v4 }
 0xaa0   : > { %10235 = vmatpush3.bf16.msra.mxu0 %v10934_v29 }
 0xaa1   : > { %10257 = vmatpush3.bf16.msra.mxu1 %v10936_v40  ;;  %10236 = vmatprep.subr.bf16.mxu0 %v10937_v8 }
 0xaa2   : > { %10258 = vmatprep.subr.bf16.mxu1 %v10939_v51 }
 0xaa4   : > { %10237 = vmatpush3.bf16.msra.mxu0 %v10938_v61 }
 0xaa5   : > { %10259 = vmatpush3.bf16.msra.mxu1 %v10940_v13  ;;  %10463 = vmatprep.subr.bf16.mxu0 %v11058_v0  ;;  %v10941_v13 = vld [vmem:[#allocation5 + $0x140] sm:$0xff]  }
 0xb5a   : > { %v10194_v24 = vpop.f32.mrb[224].mxu0 }
 0xb5b   : > { %v10216_v14 = vpop.f32.mrb[216].mxu1  ;;  %v10195_v17 = vpop.f32.mrb[225].mxu0 }
 0xb5c   : > { %v10217_v18 = vpop.f32.mrb[217].mxu1  ;;  %v10196_v20 = vadd.f32 %v10195_v17, %v10194_v24  ;;  %v10197_v25 = vpop.f32.mrb[226].mxu0  ;;  %v10943_v17 = vld [vmem:[#allocation5 + $0x150] sm:$0xff]  }
 0xb5d   : > { %v10218_v27 = vadd.f32 %v10217_v18, %v10216_v14  ;;  %v10219_v22 = vpop.f32.mrb[218].mxu1  ;;  %v10198_v36 = vpop.f32.mrb[227].mxu0  ;;  %v10944_v18 = vld [vmem:[#allocation5 + $0x158] sm:$0xff]   ;;  %v10947_v25 = vld [vmem:[#allocation5 + $0x170] sm:$0xff]  }
 0xb5e   : > { %v10220_v26 = vpop.f32.mrb[219].mxu1  ;;  %v6941_v15 = vadd.f32 %v10196_v20, %v8980_v55  ;;  %v10942_v55 = vld [vmem:[#allocation5 + $0x148] sm:$0xff]   ;;  %v10945_v20 = vld [vmem:[#allocation5 + $0x160] sm:$0xff]   ;;  %v10948_v22 = vld [vmem:[#allocation5 + $0x178] sm:$0xff]  }
 0xb5f   : > { %v10949_v36 = vld [vmem:[%s13082_s6 + $0x540] sm:$0xff]  }
 0xb60   : > { %v6981_v35 = vadd.f32 %v10218_v27, %v6941_v15  ;;  %v10946_v27 = vld [vmem:[#allocation5 + $0x168] sm:$0xff]   ;;  %v10950_v26 = vld [vmem:[%s13082_s6 + $0x5c0] sm:$0xff]   ;;  %10275 = vmatprep.subr.bf16.mxu1 %v10949_v36 }
 0xb61   : > { %v10951_v15 = vld [vmem:[%s13082_s6 + $0x500] sm:$0xff]  }
 0xb62   : > { %v6987_v31 = vcombine.high %v6981_v35, %v6981_v35  ;;  %v6989_v30 = vadd.f32 %v6981_v35, %v12824_v16  ;;  %v10953_v35 = vld [vmem:[%s13082_s6 + $0x548] sm:$0xff]  }
 0xb64   : > { %v6990_v33 = vadd.f32 %v6987_v31, %v6468_v34  ;;  %v7424_v11 = vmul.f32 %v7423_v54, %v6989_v30  ;;  %7062 = vst [vmem:[#allocation2 + $0x1] sm:$0xf] %v6989_v30  ;;  %v10955_v34 = vld [vmem:[%s13082_s6 + $0x508] sm:$0xff]   ;;  %v10957_v30 = vld [vmem:[%s13082_s6 + $0x550] sm:$0xff]  }
 0xb65   : > { %v10956_v31 = vld [vmem:[%s13082_s6 + $0x588] sm:$0xff]  }
 0xb66   : > { %v7425_v56 = vmul.f32 %v7423_v54, %v6990_v33  ;;  %v7430_v5 = vadd.f32 %v7429_v43, %v7424_v11  ;;  %7063 = vst [vmem:[#allocation2 + $0x109] sm:$0xf] %v6990_v33  ;;  %v10954_v54 = vld [vmem:[%s13082_s6 + $0x5c8] sm:$0xff]   ;;  %v10959_v33 = vld [vmem:[%s13082_s6 + $0x510] sm:$0xff]  }
 0xb67   : > { %v10960_v11 = vld [vmem:[%s13082_s6 + $0x590] sm:$0xff]  }
 0xb68   : > { %v7431_v59 = vadd.f32 %v7429_v43, %v7425_v56  ;;  %v7432_v37 = vmax.f32 %v7430_v5, 0.0  ;;  %v10958_v43 = vld [vmem:[%s13082_s6 + $0x5d0] sm:$0xff]   ;;  %v10961_v56 = vld [vmem:[%s13082_s6 + $0x558] sm:$0xff]  }
 0xb69   : > { %v10962_v5 = vld [vmem:[%s13082_s6 + $0x5d8] sm:$0xff]  }
 0xb6a   : > { %v7433_v49 = vmax.f32 %v7431_v59, 0.0  ;;  %v10963_v59 = vld [vmem:[%s13082_s6 + $0x518] sm:$0xff]  }
 0xb6b   : > { %v7066_v28 = vld [vmem:[#allocation2 + $0x2] ss:$2 sm:$0x1]  ;;  %v7071_v57 = vld [vmem:[#allocation2 + $0x4] ss:$2 sm:$0x1] }
 0xb6c   : > { %v7064_v10 = vld [vmem:[#allocation2 + $0x1] ss:$2 sm:$0x1]  ;;  %v7068_v53 = vld [vmem:[#allocation2 + $0x3] ss:$2 sm:$0x1]  ;;  %v12939_v42 = vcombine.low %v7432_v37, %v7433_v49  ;;  %v7075_v16 = vpack.c.bf16 %v7066_v28, %v7066_v28  ;;  %v7077_v21 = vpack.c.bf16 %v7071_v57, %v7071_v57 }
 0xb6d   : > { %v7067_v38 = vld [vmem:[#allocation2 + $0x10a] ss:$2 sm:$0x1]  ;;  %v7073_v19 = vld [vmem:[#allocation2 + $0x10c] ss:$2 sm:$0x1]  ;;  %v7074_v58 = vpack.c.bf16 %v7064_v10, %v7064_v10  ;;  %v7076_v45 = vpack.c.bf16 %v7068_v53, %v7068_v53 }
 0xb6e   : > { %v7079_v41 = vpack.c.bf16 %v7067_v38, %v7067_v38  ;;  %v7081_v32 = vpack.c.bf16 %v7073_v19, %v7073_v19  ;;  %v7065_v39 = vld [vmem:[#allocation2 + $0x109] ss:$2 sm:$0x1]  ;;  %v7069_v44 = vld [vmem:[#allocation2 + $0x10b] ss:$2 sm:$0x1]  ;;  %v7097_v2 = vunpack.c.l.b16 %v7075_v16  ;;  %v7099_v48 = vunpack.c.l.b16 %v7077_v21 }
 0xb6f   : > { %v7078_v63 = vpack.c.bf16 %v7065_v39, %v7065_v39  ;;  %v7080_v46 = vpack.c.bf16 %v7069_v44, %v7069_v44  ;;  %v7096_v1 = vunpack.c.l.b16 %v7074_v58  ;;  %v7098_v6 = vunpack.c.l.b16 %v7076_v45  ;;  %v10964_v37 = vld [vmem:[%s13082_s6 + $0x598] sm:$0xff]   ;;  %v10965_v49 = vld [vmem:[%s13082_s6 + $0x560] sm:$0xff]   ;;  %v10969_v53 = vld [vmem:[%s13082_s6 + $0x568] sm:$0xff]  }
 0xb70   : > { %v7101_v50 = vunpack.c.l.b16 %v7079_v41  ;;  %v7103_v12 = vunpack.c.l.b16 %v7081_v32  ;;  %v7438_v52 = vpack.c.bf16 %v12939_v42, %v12939_v42  ;;  %v10966_v28 = vld [vmem:[%s13082_s6 + $0x5e0] sm:$0xff]   ;;  %v10970_v42 = vld [vmem:[%s13082_s6 + $0x5e8] sm:$0xff]   ;;  %v10973_v16 = vld [vmem:[%s13082_s6 + $0x570] sm:$0xff]  }
 0xb71   : > { %v7100_v60 = vunpack.c.l.b16 %v7078_v63  ;;  %v7102_v47 = vunpack.c.l.b16 %v7080_v46  ;;  %v10967_v57 = vld [vmem:[%s13082_s6 + $0x520] sm:$0xff]   ;;  %v10971_v38 = vld [vmem:[%s13082_s6 + $0x528] sm:$0xff]   ;;  %v10974_v41 = vld [vmem:[%s13082_s6 + $0x5f0] sm:$0xff]  }
 0xb72   : > { %v7107_v7 = vrot.slane %v7101_v50, 7  ;;  %v7111_v62 = vrot.slane %v7103_v12, 7  ;;  %v10968_v10 = vld [vmem:[%s13082_s6 + $0x5a0] sm:$0xff]   ;;  %v10972_v19 = vld [vmem:[%s13082_s6 + $0x5a8] sm:$0xff]   ;;  %v10975_v21 = vld [vmem:[%s13082_s6 + $0x530] sm:$0xff]  }
 0xb73   : > { %v7104_v23 = vrot.slane %v7100_v60, 7  ;;  %v7109_v3 = vrot.slane %v7102_v47, 7  ;;  %v10976_v32 = vld [vmem:[%s13082_s6 + $0x5b0] sm:$0xff]   ;;  %v10977_v39 = vld [vmem:[%s13082_s6 + $0x578] sm:$0xff]   ;;  %v9078_v50 = vld [vmem:[%s13085_s9 + $0x5] ss:$0 sm:$0xff] }
 0xb74   : > { %v7108_v4 = vsel %vm7105_vm1, %v7107_v7, %v7097_v2  ;;  %v7112_v29 = vsel %vm7105_vm1, %v7111_v62, %v7099_v48  ;;  %v10978_v44 = vld [vmem:[%s13082_s6 + $0x5f8] sm:$0xff]  }
 0xb75   : > { %v7114_v40 = vpack.c.b16 %v7108_v4, %v7108_v4  ;;  %v7116_v8 = vpack.c.b16 %v7112_v29, %v7112_v29  ;;  %v7106_v51 = vsel %vm7105_vm1, %v7104_v23, %v7096_v1  ;;  %v7110_v61 = vsel %vm7105_vm1, %v7109_v3, %v7098_v6  ;;  %v10979_v58 = vld [vmem:[%s13082_s6 + $0x538] sm:$0xff]   ;;  %v9113_v3 = vld [vmem:[%s13081_s5 + $0x5] ss:$0 sm:$0xff] }
 0xb76   : > { %v7113_v24 = vpack.c.b16 %v7106_v51, %v7106_v51  ;;  %v7115_v14 = vpack.c.b16 %v7110_v61, %v7110_v61  ;;  %v10980_v63 = vld [vmem:[%s13082_s6 + $0x5b8] sm:$0xff]  }
 0xb77   : > { %7345 = vmatprep.mubr.bf16.mxu0 %v7114_v40  ;;  %7385 = vmatprep.mubr.bf16.mxu1 %v7116_v8 }
 0xb78   : > { %7346 = vmatmul.mubr.bf16.vlgmr.msra.gmra.mrb[228].mxu0 %v7113_v24  ;;  %7386 = vmatmul.mubr.bf16.vlgmr.msra.gmra.mrb[220].mxu1 %v7115_v14 }
 0xb79   : > { %10464 = vmatpush3.bf16.msra.mxu0 %v10941_v13  ;;  %10479 = vmatprep.mubr.msk.bf16.mxu0 %vm11059_vm0, %v11058_v0 }
 0xb7a   : > { %10465 = vmatprep.subr.bf16.mxu0 %v11058_v0  ;;  %10276 = vmatpush3.bf16.msra.mxu1 %v10951_v15 }
 0xb7b   : > { %10277 = vmatprep.subr.bf16.mxu1 %v10953_v35 }
 0xb7d   : > { %10466 = vmatpush3.bf16.msra.mxu0 %v10942_v55 }
 0xb7e   : > { %10467 = vmatprep.subr.bf16.mxu0 %v11058_v0  ;;  %10278 = vmatpush3.bf16.msra.mxu1 %v10955_v34 }
 0xb7f   : > { %10279 = vmatprep.subr.bf16.mxu1 %v10957_v30 }
 0xb81   : > { %10468 = vmatpush3.bf16.msra.mxu0 %v10943_v17 }
 0xb82   : > { %10469 = vmatprep.subr.bf16.mxu0 %v11058_v0  ;;  %10280 = vmatpush3.bf16.msra.mxu1 %v10959_v33 }
 0xb83   : > { %10281 = vmatprep.subr.bf16.mxu1 %v10961_v56 }
 0xb85   : > { %10470 = vmatpush3.bf16.msra.mxu0 %v10944_v18 }
 0xb86   : > { %10471 = vmatprep.subr.bf16.mxu0 %v11058_v0  ;;  %10282 = vmatpush3.bf16.msra.mxu1 %v10963_v59 }
 0xb87   : > { %10283 = vmatprep.subr.bf16.mxu1 %v10965_v49 }
 0xb89   : > { %10472 = vmatpush3.bf16.msra.mxu0 %v10945_v20 }
 0xb8a   : > { %10473 = vmatprep.subr.bf16.mxu0 %v11058_v0  ;;  %10284 = vmatpush3.bf16.msra.mxu1 %v10967_v57 }
 0xb8b   : > { %10285 = vmatprep.subr.bf16.mxu1 %v10969_v53 }
 0xb8d   : > { %10474 = vmatpush3.bf16.msra.mxu0 %v10946_v27 }
 0xb8e   : > { %10475 = vmatprep.subr.bf16.mxu0 %v11058_v0  ;;  %10286 = vmatpush3.bf16.msra.mxu1 %v10971_v38 }
 0xb8f   : > { %10287 = vmatprep.subr.bf16.mxu1 %v10973_v16 }
 0xb91   : > { %10476 = vmatpush3.bf16.msra.mxu0 %v10947_v25 }
 0xb92   : > { %10477 = vmatprep.subr.bf16.mxu0 %v11058_v0  ;;  %v10952_v0 = vld [vmem:[%s13082_s6 + $0x580] sm:$0xff]   ;;  %10288 = vmatpush3.bf16.msra.mxu1 %v10975_v21  ;;  %v11060_v21 = vmov 1966171168  }
 0xb93   : > { %10289 = vmatprep.subr.bf16.mxu1 %v10977_v39 }
 0xb95   : > { %10478 = vmatpush3.bf16.msra.mxu0 %v10948_v22 }
 0xb96   : > { %10297 = vmatprep.subr.bf16.mxu0 %v10950_v26  ;;  %10290 = vmatpush3.bf16.msra.mxu1 %v10979_v58 }
 0xb98   : > { %10480 = vmatmul.mubr.bf16.vlgmr.msra.gmra.mrb[232].mxu0 %v7438_v52 }
 0xb99   : > { %10298 = vmatpush3.bf16.msra.mxu0 %v10952_v0 }
 0xb9a   : > { %10299 = vmatprep.subr.bf16.mxu0 %v10954_v54 }
 0xb9d   : > { %10300 = vmatpush3.bf16.msra.mxu0 %v10956_v31 }
 0xb9e   : > { %10301 = vmatprep.subr.bf16.mxu0 %v10958_v43 }
 0xba1   : > { %10302 = vmatpush3.bf16.msra.mxu0 %v10960_v11 }
 0xba2   : > { %10303 = vmatprep.subr.bf16.mxu0 %v10962_v5 }
 0xba5   : > { %10304 = vmatpush3.bf16.msra.mxu0 %v10964_v37 }
 0xba6   : > { %10305 = vmatprep.subr.bf16.mxu0 %v10966_v28 }
 0xba9   : > { %10306 = vmatpush3.bf16.msra.mxu0 %v10968_v10 }
 0xbaa   : > { %10307 = vmatprep.subr.bf16.mxu0 %v10970_v42 }
 0xbad   : > { %10308 = vmatpush3.bf16.msra.mxu0 %v10972_v19 }
 0xbae   : > { %10309 = vmatprep.subr.bf16.mxu0 %v10974_v41 }
 0xbb1   : > { %10310 = vmatpush3.bf16.msra.mxu0 %v10976_v32  ;;  %v7395_v32 = vunpack.c.l.s4 %v11060_v21 }
 0xbb2   : > { %10311 = vmatprep.subr.bf16.mxu0 %v10978_v44 }
 0xbb3   : > { %v7396_v39 = vunpack.c.0.s8 %v7395_v32 }
 0xbb5   : > { %10312 = vmatpush3.bf16.msra.mxu0 %v10980_v63  ;;  %v7399_v44 = vsub.s32 %v7396_v39, %v11394_v9 }
 0xc4b   : > { %v10238_v45 = vpop.f32.mrb[228].mxu0  ;;  %v10260_v46 = vpop.f32.mrb[220].mxu1 }
 0xc4c   : > { %v10239_v12 = vpop.f32.mrb[229].mxu0  ;;  %v10261_v60 = vpop.f32.mrb[221].mxu1 }
 0xc4d   : > { %v10240_v47 = vadd.f32 %v10239_v12, %v10238_v45  ;;  %v10262_v2 = vadd.f32 %v10261_v60, %v10260_v46  ;;  %v10241_v7 = vpop.f32.mrb[230].mxu0  ;;  %v10263_v48 = vpop.f32.mrb[222].mxu1  ;;  %v9187_v45 = vld [vmem:[%s13083_s7 + $0x5] ss:$0 sm:$0xff] }
 0xc4e   : > { %v10242_v62 = vpop.f32.mrb[231].mxu0  ;;  %v10264_v1 = vpop.f32.mrb[223].mxu1 }
 0xc4f   : > { %v7348_v23 = vadd.f32 %v10240_v47, %v9078_v50 }
 0xc51   : > { %v13055_v6 = vadd.f32 %v10262_v2, %v7348_v23 }
 0xc53   : > { %v7400_v62 = vrot.slane %v13055_v6, %v7399_v44 }
 0xc55   : > { %v7401_v9 = vcombine.high %v7400_v62, %v7400_v62 }
 0xc6b   : > { %v7546_v4 = vpop.f32.mrb[232].mxu0 }
 0xc6c   : > { %v7547_v29 = vadd.f32 %v9113_v3, %v7546_v4  ;;  %v10481_v40 = vpop.f32.mrb[233].mxu0  ;;  %v7408_v4 = vrot.slane %v7400_v62, %v7399_v44 }
 0xc6d   : > { %v7549_v8 = vpop.f32.mrb[234].mxu0 }
 0xc6e   : > { %v7552_v51 = vmax.f32 %v7547_v29, 0.0  ;;  %v10482_v61 = vpop.f32.mrb[235].mxu0  ;;  %v7415_v8 = vrot.slane %v7401_v9, %v7399_v44 }
 0xc70   : > { %v7554_v13 = vcombine.high %v7552_v51, %v7552_v51  ;;  %7627 = vst [vmem:[#allocation2 + $0x1] sm:$0xf] %v7552_v51 }
 0xc72   : > { %7628 = vst [vmem:[#allocation2 + $0x109] sm:$0xf] %v7554_v13 }
 0xc77   : > { %v7631_v24 = vld [vmem:[#allocation2 + $0x2] ss:$2 sm:$0x1]  ;;  %v7635_v14 = vld [vmem:[#allocation2 + $0x4] ss:$2 sm:$0x1] }
 0xc78   : > { %v7629_v55 = vld [vmem:[#allocation2 + $0x1] ss:$2 sm:$0x1]  ;;  %v7633_v17 = vld [vmem:[#allocation2 + $0x3] ss:$2 sm:$0x1]  ;;  %v7638_v27 = vpack.c.bf16 %v7631_v24, %v7631_v24  ;;  %v7640_v22 = vpack.c.bf16 %v7635_v14, %v7635_v14 }
 0xc79   : > { %v7632_v18 = vld [vmem:[#allocation2 + $0x10a] ss:$2 sm:$0x1]  ;;  %v7636_v20 = vld [vmem:[#allocation2 + $0x10c] ss:$2 sm:$0x1]  ;;  %v7637_v15 = vpack.c.bf16 %v7629_v55, %v7629_v55  ;;  %v7639_v35 = vpack.c.bf16 %v7633_v17, %v7633_v17 }
 0xc7a   : > { %v7642_v25 = vpack.c.bf16 %v7632_v18, %v7632_v18  ;;  %v7644_v52 = vpack.c.bf16 %v7636_v20, %v7636_v20  ;;  %v7630_v36 = vld [vmem:[#allocation2 + $0x109] ss:$2 sm:$0x1]  ;;  %v7634_v26 = vld [vmem:[#allocation2 + $0x10b] ss:$2 sm:$0x1]  ;;  %v7660_v33 = vunpack.c.l.b16 %v7638_v27  ;;  %v7662_v56 = vunpack.c.l.b16 %v7640_v22 }
 0xc7b   : > { %v7641_v0 = vpack.c.bf16 %v7630_v36, %v7630_v36  ;;  %v7643_v54 = vpack.c.bf16 %v7634_v26, %v7634_v26  ;;  %v7659_v59 = vunpack.c.l.b16 %v7637_v15  ;;  %v7661_v49 = vunpack.c.l.b16 %v7639_v35 }
 0xc7c   : > { %v7664_v34 = vunpack.c.l.b16 %v7642_v25  ;;  %v7666_v31 = vunpack.c.l.b16 %v7644_v52 }
 0xc7d   : > { %v7663_v30 = vunpack.c.l.b16 %v7641_v0  ;;  %v7665_v43 = vunpack.c.l.b16 %v7643_v54 }
 0xc7e   : > { %v7669_v11 = vrot.slane %v7664_v34, 7  ;;  %v7673_v5 = vrot.slane %v7666_v31, 7 }
 0xc7f   : > { %v7667_v37 = vrot.slane %v7663_v30, 7  ;;  %v7671_v28 = vrot.slane %v7665_v43, 7 }
 0xc80   : > { %v7670_v57 = vsel %vm7105_vm1, %v7669_v11, %v7660_v33  ;;  %v7674_v10 = vsel %vm7105_vm1, %v7673_v5, %v7662_v56 }
 0xc81   : > { %v7676_v53 = vpack.c.b16 %v7670_v57, %v7670_v57  ;;  %v7678_v42 = vpack.c.b16 %v7674_v10, %v7674_v10  ;;  %v7668_v38 = vsel %vm7105_vm1, %v7667_v37, %v7659_v59  ;;  %v7672_v19 = vsel %vm7105_vm1, %v7671_v28, %v7661_v49 }
 0xc82   : > { %v7675_v16 = vpack.c.b16 %v7668_v38, %v7668_v38  ;;  %v7677_v41 = vpack.c.b16 %v7672_v19, %v7672_v19 }
 0xc83   : > { %7907 = vmatprep.mubr.bf16.mxu1 %v7676_v53  ;;  %7947 = vmatprep.mubr.bf16.mxu0 %v7678_v42 }
 0xc84   : > { %7908 = vmatmul.mubr.bf16.vlgmr.msra.gmra.mrb[224].mxu1 %v7675_v16  ;;  %7948 = vmatmul.mubr.bf16.vlgmr.msra.gmra.mrb[236].mxu0 %v7677_v41 }
 0xd57   : > { %v10291_v58 = vpop.f32.mrb[224].mxu1  ;;  %v10313_v63 = vpop.f32.mrb[236].mxu0 }
 0xd58   : > { %v10292_v46 = vpop.f32.mrb[225].mxu1  ;;  %v10314_v50 = vpop.f32.mrb[237].mxu0 }
 0xd59   : > { %v10293_v12 = vadd.f32 %v10292_v46, %v10291_v58  ;;  %v10315_v60 = vadd.f32 %v10314_v50, %v10313_v63  ;;  %v10294_v47 = vpop.f32.mrb[226].mxu1  ;;  %v10316_v2 = vpop.f32.mrb[238].mxu0 }
 0xd5a   : > { %v10295_v7 = vpop.f32.mrb[227].mxu1  ;;  %v10317_v48 = vpop.f32.mrb[239].mxu0 }
 0xd5b   : > { %v7910_v1 = vadd.f32 %v10293_v12, %v9187_v45 }
 0xd5d   : > { %v7950_v23 = vadd.f32 %v10315_v60, %v7910_v1 }
 0xd5f   : > { %v7962_v3 = vrot.slane %v7950_v23, %v7399_v44 }
 0xd61   : > { %v7963_v29 = vcombine.high %v7962_v3, %v7962_v3  ;;  %v7970_v40 = vrot.slane %v7962_v3, %v7399_v44 }
 0xd63   : > { %v7977_v51 = vrot.slane %v7963_v29, %v7399_v44  ;;  %v7980_v61 = vadd.f32 %v7970_v40, %v7408_v4 }
 0xd65   : > { %v7981_v13 = vadd.f32 %v7977_v51, %v7415_v8  ;;  %7982 = vst [vmem:[%s392_s28] sm:$0x1] %v7980_v61 }
 0xd67   : > { %7983 = vst [vmem:[%s392_s28 + $0x1] sm:$0x1] %v7981_v13 }
 0xd68 PF: > { %s22_s13 = sadd.s32 1, %s11052_s13  }
 0xd69   : > { %p19_p7 = scmp.ge.s32.totalorder %s22_s13, 4  }
 0xd6b   :  { %21 = sbr.rel (!%p19_p7) target bundleno = 2 (0x2), region = 279 }
 0xd72   :  { %8004 = vsyncpa [#allocation4], 1 }
 0xd73   :  { %8006 = vsyncpa [#allocation4 + $0x1], 1 }
 0xd74   :  { %8007 = vsyncpa [#allocation6], 1 }

</bundles_post_ra>
